<compile_context>
chip_gen: v5e
topology: v5e:2x2
jax: 0.10.0
libtpu: 0.0.40
codegen_flags: <defaults>
</compile_context>

<pallas_src>
import functools

import jax
import jax.numpy as jnp
from jax.experimental import pallas as pl
from jax.experimental.pallas import tpu as pltpu


def _conv_pad_kernel(w_ref, x_ref, out_ref, *, C, O, K, stride, padding,
                     Hout, Wout):
    """Fused conv2d(stride, VALID) + zero-pad for one batch sample.

    w_ref   : SMEM (O*C*K*K,) f32   -- filter taps read as scalars.
    x_ref   : VMEM (1, C, H, W) f32 -- one input sample.
    out_ref : VMEM (1, O, Hout+2p, Wout+2p) f32 -- padded output sample.
    """
    # Zero the whole padded output block (this is the F.pad border).
    out_ref[...] = jnp.zeros_like(out_ref)

    h_span = (Hout - 1) * stride + 1
    w_span = (Wout - 1) * stride + 1

    accs = [jnp.zeros((Hout, Wout), jnp.float32) for _ in range(O)]
    # Static (compile-time) unrolled shift-and-add over the conv taps.
    for c in range(C):
        for kh in range(K):
            for kw in range(K):
                if stride == 1:
                    xs = x_ref[0, c, kh:kh + h_span, kw:kw + w_span]
                else:
                    xs = x_ref[0, c,
                               pl.ds(kh, Hout, stride=stride),
                               pl.ds(kw, Wout, stride=stride)]
                for o in range(O):
                    w = w_ref[((o * C + c) * K + kh) * K + kw]  # SMEM scalar
                    accs[o] = accs[o] + w * xs

    # Write the conv result into the interior of the padded output block.
    for o in range(O):
        out_ref[0, o, padding:padding + Hout, padding:padding + Wout] = accs[o]


def constrain_cnn_forward(x, weight, stride, padding):
    """Replicates ConstrainCNN.forward: conv2d(stride, no pad) then zero pad."""
    N, C, H, W = x.shape
    O, Ci, K, K2 = weight.shape
    assert C == Ci and K == K2
    Hout = (H - K) // stride + 1
    Wout = (W - K) // stride + 1
    Hp, Wp = Hout + 2 * padding, Wout + 2 * padding

    # Filter taps as a flat scalar table for SMEM (row-major o, c, kh, kw).
    w_flat = weight.astype(jnp.float32).reshape(O * C * K * K)

    kernel = functools.partial(
        _conv_pad_kernel, C=C, O=O, K=K, stride=stride, padding=padding,
        Hout=Hout, Wout=Wout)

    out = pl.pallas_call(
        kernel,
        out_shape=jax.ShapeDtypeStruct((N, O, Hp, Wp), jnp.float32),
        grid=(N,),
        in_specs=[
            pl.BlockSpec(memory_space=pltpu.MemorySpace.SMEM),   # filter taps
            pl.BlockSpec((1, C, H, W), lambda n: (n, 0, 0, 0)),  # one sample
        ],
        out_specs=pl.BlockSpec((1, O, Hp, Wp), lambda n: (n, 0, 0, 0)),
        compiler_params=pltpu.CompilerParams(
            dimension_semantics=("parallel",),   # batch-parallel (v7x 2 TCs)
        ),
    )(w_flat, x.astype(jnp.float32))
    return out


def make_constrained_weight(key, out_channel, in_channel, kernel_size):
    """Deterministic replica of the nn.Parameter constraint in __init__."""
    w = jax.random.normal(
        key, (out_channel, in_channel, kernel_size, kernel_size), jnp.float32
    )
    central = w[:, 0, 2, 2]                               # per output filter
    sumed = w.sum(axis=(1, 2, 3)) - central
    w = w / sumed[:, None, None, None]
    w = w.at[:, 0, 2, 2].set(-1.0)
    return w


if __name__ == "__main__":
    key = jax.random.PRNGKey(0)
    kx, kw = jax.random.split(key)

    # Small shapes implied by the module (kernel_size >= 3 for the [2,2] center).
    N, C, O = 2, 4, 4
    K, stride, padding = 5, 1, 2
    H = W = 16

    x = jax.random.normal(kx, (N, C, H, W), jnp.float32)
    weight = make_constrained_weight(kw, O, C, K)

    out = constrain_cnn_forward(x, weight, stride, padding)
    out = jax.block_until_ready(out)

    # Reference check against XLA's conv + pad.
    ref = jax.lax.conv_general_dilated(
        x, weight, (stride, stride), "VALID",
        dimension_numbers=("NCHW", "OIHW", "NCHW"),
        precision=jax.lax.Precision.HIGHEST,
    )
    ref = jnp.pad(ref, ((0, 0), (0, 0), (padding, padding), (padding, padding)))

    Hout = (H - K) // stride + 1
    assert out.shape == ref.shape == (N, O, Hout + 2 * padding, Hout + 2 * padding)
    assert jnp.allclose(out, ref, atol=1e-3, rtol=1e-3)
    print("KERNEL_OK")
</pallas_src>

<mosaic_0001>
module attributes {stable_mosaic.version = 11 : i64} {
  func.func @_conv_pad_kernel(%arg0: i32, %arg1: memref<400xf32, #tpu.memory_space<smem>>, %arg2: memref<1x4x16x16xf32, #tpu.memory_space<vmem>>, %arg3: memref<1x4x16x16xf32, #tpu.memory_space<vmem>>) attributes {dimension_semantics = [#tpu.dimension_semantics<parallel>], iteration_bounds = array<i64: 2>, scalar_prefetch = 0 : i64, scratch_operands = 0 : i64, tpu.core_type = #tpu.core_type<tc>, window_params = [{transform_indices = @transform_0, window_bounds = array<i64: 400>}, {transform_indices = @transform_1, window_bounds = array<i64: 1, 4, 16, 16>}, {transform_indices = @transform_2, window_bounds = array<i64: 1, 4, 16, 16>}]} {
    %cst = arith.constant 0.000000e+00 : f32
    %0 = vector.broadcast %cst : f32 to vector<1x4x16x16xf32>
    %c0 = arith.constant 0 : index
    %c0_0 = arith.constant 0 : index
    %c0_1 = arith.constant 0 : index
    %c0_2 = arith.constant 0 : index
    %1 = vector.load %arg3[%c0, %c0_0, %c0_1, %c0_2] : memref<1x4x16x16xf32, #tpu.memory_space<vmem>>, vector<1x4x16x16xf32>
    tpu.vector_store %arg3[%c0, %c0_0, %c0_1, %c0_2], %0 {strides = array<i32>} : memref<1x4x16x16xf32, #tpu.memory_space<vmem>>, vector<1x4x16x16xf32>,
    %cst_3 = arith.constant 0.000000e+00 : f32
    %2 = vector.broadcast %cst_3 : f32 to vector<12x12xf32>
    %cst_4 = arith.constant 0.000000e+00 : f32
    %3 = vector.broadcast %cst_4 : f32 to vector<12x12xf32>
    %cst_5 = arith.constant 0.000000e+00 : f32
    %4 = vector.broadcast %cst_5 : f32 to vector<12x12xf32>
    %cst_6 = arith.constant 0.000000e+00 : f32
    %5 = vector.broadcast %cst_6 : f32 to vector<12x12xf32>
    %c0_7 = arith.constant 0 : index
    %c0_8 = arith.constant 0 : index
    %c0_9 = arith.constant 0 : index
    %c0_10 = arith.constant 0 : index
    %6 = vector.load %arg2[%c0_7, %c0_8, %c0_9, %c0_10] : memref<1x4x16x16xf32, #tpu.memory_space<vmem>>, vector<1x1x12x12xf32>
    %7 = vector.shape_cast %6 : vector<1x1x12x12xf32> to vector<12x12xf32>
    %c0_11 = arith.constant 0 : index
    %8 = memref.load %arg1[%c0_11] : memref<400xf32, #tpu.memory_space<smem>>
    %9 = vector.broadcast %8 : f32 to vector<12x12xf32>
    %10 = arith.mulf %9, %7 : vector<12x12xf32>
    %11 = arith.addf %2, %10 : vector<12x12xf32>
    %c100 = arith.constant 100 : index
    %12 = memref.load %arg1[%c100] : memref<400xf32, #tpu.memory_space<smem>>
    %13 = vector.broadcast %12 : f32 to vector<12x12xf32>
    %14 = arith.mulf %13, %7 : vector<12x12xf32>
    %15 = arith.addf %3, %14 : vector<12x12xf32>
    %c200 = arith.constant 200 : index
    %16 = memref.load %arg1[%c200] : memref<400xf32, #tpu.memory_space<smem>>
    %17 = vector.broadcast %16 : f32 to vector<12x12xf32>
    %18 = arith.mulf %17, %7 : vector<12x12xf32>
    %19 = arith.addf %4, %18 : vector<12x12xf32>
    %c300 = arith.constant 300 : index
    %20 = memref.load %arg1[%c300] : memref<400xf32, #tpu.memory_space<smem>>
    %21 = vector.broadcast %20 : f32 to vector<12x12xf32>
    %22 = arith.mulf %21, %7 : vector<12x12xf32>
    %23 = arith.addf %5, %22 : vector<12x12xf32>
    %c0_12 = arith.constant 0 : index
    %c0_13 = arith.constant 0 : index
    %c0_14 = arith.constant 0 : index
    %c1 = arith.constant 1 : index
    %24 = vector.load %arg2[%c0_12, %c0_13, %c0_14, %c1] : memref<1x4x16x16xf32, #tpu.memory_space<vmem>>, vector<1x1x12x12xf32>
    %25 = vector.shape_cast %24 : vector<1x1x12x12xf32> to vector<12x12xf32>
    %c1_15 = arith.constant 1 : index
    %26 = memref.load %arg1[%c1_15] : memref<400xf32, #tpu.memory_space<smem>>
    %27 = vector.broadcast %26 : f32 to vector<12x12xf32>
    %28 = arith.mulf %27, %25 : vector<12x12xf32>
    %29 = arith.addf %11, %28 : vector<12x12xf32>
    %c101 = arith.constant 101 : index
    %30 = memref.load %arg1[%c101] : memref<400xf32, #tpu.memory_space<smem>>
    %31 = vector.broadcast %30 : f32 to vector<12x12xf32>
    %32 = arith.mulf %31, %25 : vector<12x12xf32>
    %33 = arith.addf %15, %32 : vector<12x12xf32>
    %c201 = arith.constant 201 : index
    %34 = memref.load %arg1[%c201] : memref<400xf32, #tpu.memory_space<smem>>
    %35 = vector.broadcast %34 : f32 to vector<12x12xf32>
    %36 = arith.mulf %35, %25 : vector<12x12xf32>
    %37 = arith.addf %19, %36 : vector<12x12xf32>
    %c301 = arith.constant 301 : index
    %38 = memref.load %arg1[%c301] : memref<400xf32, #tpu.memory_space<smem>>
    %39 = vector.broadcast %38 : f32 to vector<12x12xf32>
    %40 = arith.mulf %39, %25 : vector<12x12xf32>
    %41 = arith.addf %23, %40 : vector<12x12xf32>
    %c0_16 = arith.constant 0 : index
    %c0_17 = arith.constant 0 : index
    %c0_18 = arith.constant 0 : index
    %c2 = arith.constant 2 : index
    %42 = vector.load %arg2[%c0_16, %c0_17, %c0_18, %c2] : memref<1x4x16x16xf32, #tpu.memory_space<vmem>>, vector<1x1x12x12xf32>
    %43 = vector.shape_cast %42 : vector<1x1x12x12xf32> to vector<12x12xf32>
    %c2_19 = arith.constant 2 : index
    %44 = memref.load %arg1[%c2_19] : memref<400xf32, #tpu.memory_space<smem>>
    %45 = vector.broadcast %44 : f32 to vector<12x12xf32>
    %46 = arith.mulf %45, %43 : vector<12x12xf32>
    %47 = arith.addf %29, %46 : vector<12x12xf32>
    %c102 = arith.constant 102 : index
    %48 = memref.load %arg1[%c102] : memref<400xf32, #tpu.memory_space<smem>>
    %49 = vector.broadcast %48 : f32 to vector<12x12xf32>
    %50 = arith.mulf %49, %43 : vector<12x12xf32>
    %51 = arith.addf %33, %50 : vector<12x12xf32>
    %c202 = arith.constant 202 : index
    %52 = memref.load %arg1[%c202] : memref<400xf32, #tpu.memory_space<smem>>
    %53 = vector.broadcast %52 : f32 to vector<12x12xf32>
    %54 = arith.mulf %53, %43 : vector<12x12xf32>
    %55 = arith.addf %37, %54 : vector<12x12xf32>
    %c302 = arith.constant 302 : index
    %56 = memref.load %arg1[%c302] : memref<400xf32, #tpu.memory_space<smem>>
    %57 = vector.broadcast %56 : f32 to vector<12x12xf32>
    %58 = arith.mulf %57, %43 : vector<12x12xf32>
    %59 = arith.addf %41, %58 : vector<12x12xf32>
    %c0_20 = arith.constant 0 : index
    %c0_21 = arith.constant 0 : index
    %c0_22 = arith.constant 0 : index
    %c3 = arith.constant 3 : index
    %60 = vector.load %arg2[%c0_20, %c0_21, %c0_22, %c3] : memref<1x4x16x16xf32, #tpu.memory_space<vmem>>, vector<1x1x12x12xf32>
    %61 = vector.shape_cast %60 : vector<1x1x12x12xf32> to vector<12x12xf32>
    %c3_23 = arith.constant 3 : index
    %62 = memref.load %arg1[%c3_23] : memref<400xf32, #tpu.memory_space<smem>>
    %63 = vector.broadcast %62 : f32 to vector<12x12xf32>
    %64 = arith.mulf %63, %61 : vector<12x12xf32>
    %65 = arith.addf %47, %64 : vector<12x12xf32>
    %c103 = arith.constant 103 : index
    %66 = memref.load %arg1[%c103] : memref<400xf32, #tpu.memory_space<smem>>
    %67 = vector.broadcast %66 : f32 to vector<12x12xf32>
    %68 = arith.mulf %67, %61 : vector<12x12xf32>
    %69 = arith.addf %51, %68 : vector<12x12xf32>
    %c203 = arith.constant 203 : index
    %70 = memref.load %arg1[%c203] : memref<400xf32, #tpu.memory_space<smem>>
    %71 = vector.broadcast %70 : f32 to vector<12x12xf32>
    %72 = arith.mulf %71, %61 : vector<12x12xf32>
    %73 = arith.addf %55, %72 : vector<12x12xf32>
    %c303 = arith.constant 303 : index
    %74 = memref.load %arg1[%c303] : memref<400xf32, #tpu.memory_space<smem>>
    %75 = vector.broadcast %74 : f32 to vector<12x12xf32>
    %76 = arith.mulf %75, %61 : vector<12x12xf32>
    %77 = arith.addf %59, %76 : vector<12x12xf32>
    %c0_24 = arith.constant 0 : index
    %c0_25 = arith.constant 0 : index
    %c0_26 = arith.constant 0 : index
    %c4 = arith.constant 4 : index
    %78 = vector.load %arg2[%c0_24, %c0_25, %c0_26, %c4] : memref<1x4x16x16xf32, #tpu.memory_space<vmem>>, vector<1x1x12x12xf32>
    %79 = vector.shape_cast %78 : vector<1x1x12x12xf32> to vector<12x12xf32>
    %c4_27 = arith.constant 4 : index
    %80 = memref.load %arg1[%c4_27] : memref<400xf32, #tpu.memory_space<smem>>
    %81 = vector.broadcast %80 : f32 to vector<12x12xf32>
    %82 = arith.mulf %81, %79 : vector<12x12xf32>
    %83 = arith.addf %65, %82 : vector<12x12xf32>
    %c104 = arith.constant 104 : index
    %84 = memref.load %arg1[%c104] : memref<400xf32, #tpu.memory_space<smem>>
    %85 = vector.broadcast %84 : f32 to vector<12x12xf32>
    %86 = arith.mulf %85, %79 : vector<12x12xf32>
    %87 = arith.addf %69, %86 : vector<12x12xf32>
    %c204 = arith.constant 204 : index
    %88 = memref.load %arg1[%c204] : memref<400xf32, #tpu.memory_space<smem>>
    %89 = vector.broadcast %88 : f32 to vector<12x12xf32>
    %90 = arith.mulf %89, %79 : vector<12x12xf32>
    %91 = arith.addf %73, %90 : vector<12x12xf32>
    %c304 = arith.constant 304 : index
    %92 = memref.load %arg1[%c304] : memref<400xf32, #tpu.memory_space<smem>>
    %93 = vector.broadcast %92 : f32 to vector<12x12xf32>
    %94 = arith.mulf %93, %79 : vector<12x12xf32>
    %95 = arith.addf %77, %94 : vector<12x12xf32>
    %c0_28 = arith.constant 0 : index
    %c0_29 = arith.constant 0 : index
    %c1_30 = arith.constant 1 : index
    %c0_31 = arith.constant 0 : index
    %96 = vector.load %arg2[%c0_28, %c0_29, %c1_30, %c0_31] : memref<1x4x16x16xf32, #tpu.memory_space<vmem>>, vector<1x1x12x12xf32>
    %97 = vector.shape_cast %96 : vector<1x1x12x12xf32> to vector<12x12xf32>
    %c5 = arith.constant 5 : index
    %98 = memref.load %arg1[%c5] : memref<400xf32, #tpu.memory_space<smem>>
    %99 = vector.broadcast %98 : f32 to vector<12x12xf32>
    %100 = arith.mulf %99, %97 : vector<12x12xf32>
    %101 = arith.addf %83, %100 : vector<12x12xf32>
    %c105 = arith.constant 105 : index
    %102 = memref.load %arg1[%c105] : memref<400xf32, #tpu.memory_space<smem>>
    %103 = vector.broadcast %102 : f32 to vector<12x12xf32>
    %104 = arith.mulf %103, %97 : vector<12x12xf32>
    %105 = arith.addf %87, %104 : vector<12x12xf32>
    %c205 = arith.constant 205 : index
    %106 = memref.load %arg1[%c205] : memref<400xf32, #tpu.memory_space<smem>>
    %107 = vector.broadcast %106 : f32 to vector<12x12xf32>
    %108 = arith.mulf %107, %97 : vector<12x12xf32>
    %109 = arith.addf %91, %108 : vector<12x12xf32>
    %c305 = arith.constant 305 : index
    %110 = memref.load %arg1[%c305] : memref<400xf32, #tpu.memory_space<smem>>
    %111 = vector.broadcast %110 : f32 to vector<12x12xf32>
    %112 = arith.mulf %111, %97 : vector<12x12xf32>
    %113 = arith.addf %95, %112 : vector<12x12xf32>
    %c0_32 = arith.constant 0 : index
    %c0_33 = arith.constant 0 : index
    %c1_34 = arith.constant 1 : index
    %c1_35 = arith.constant 1 : index
    %114 = vector.load %arg2[%c0_32, %c0_33, %c1_34, %c1_35] : memref<1x4x16x16xf32, #tpu.memory_space<vmem>>, vector<1x1x12x12xf32>
    %115 = vector.shape_cast %114 : vector<1x1x12x12xf32> to vector<12x12xf32>
    %c6 = arith.constant 6 : index
    %116 = memref.load %arg1[%c6] : memref<400xf32, #tpu.memory_space<smem>>
    %117 = vector.broadcast %116 : f32 to vector<12x12xf32>
    %118 = arith.mulf %117, %115 : vector<12x12xf32>
    %119 = arith.addf %101, %118 : vector<12x12xf32>
    %c106 = arith.constant 106 : index
    %120 = memref.load %arg1[%c106] : memref<400xf32, #tpu.memory_space<smem>>
    %121 = vector.broadcast %120 : f32 to vector<12x12xf32>
    %122 = arith.mulf %121, %115 : vector<12x12xf32>
    %123 = arith.addf %105, %122 : vector<12x12xf32>
    %c206 = arith.constant 206 : index
    %124 = memref.load %arg1[%c206] : memref<400xf32, #tpu.memory_space<smem>>
    %125 = vector.broadcast %124 : f32 to vector<12x12xf32>
    %126 = arith.mulf %125, %115 : vector<12x12xf32>
    %127 = arith.addf %109, %126 : vector<12x12xf32>
    %c306 = arith.constant 306 : index
    %128 = memref.load %arg1[%c306] : memref<400xf32, #tpu.memory_space<smem>>
    %129 = vector.broadcast %128 : f32 to vector<12x12xf32>
    %130 = arith.mulf %129, %115 : vector<12x12xf32>
    %131 = arith.addf %113, %130 : vector<12x12xf32>
    %c0_36 = arith.constant 0 : index
    %c0_37 = arith.constant 0 : index
    %c1_38 = arith.constant 1 : index
    %c2_39 = arith.constant 2 : index
    %132 = vector.load %arg2[%c0_36, %c0_37, %c1_38, %c2_39] : memref<1x4x16x16xf32, #tpu.memory_space<vmem>>, vector<1x1x12x12xf32>
    %133 = vector.shape_cast %132 : vector<1x1x12x12xf32> to vector<12x12xf32>
    %c7 = arith.constant 7 : index
    %134 = memref.load %arg1[%c7] : memref<400xf32, #tpu.memory_space<smem>>
    %135 = vector.broadcast %134 : f32 to vector<12x12xf32>
    %136 = arith.mulf %135, %133 : vector<12x12xf32>
    %137 = arith.addf %119, %136 : vector<12x12xf32>
    %c107 = arith.constant 107 : index
    %138 = memref.load %arg1[%c107] : memref<400xf32, #tpu.memory_space<smem>>
    %139 = vector.broadcast %138 : f32 to vector<12x12xf32>
    %140 = arith.mulf %139, %133 : vector<12x12xf32>
    %141 = arith.addf %123, %140 : vector<12x12xf32>
    %c207 = arith.constant 207 : index
    %142 = memref.load %arg1[%c207] : memref<400xf32, #tpu.memory_space<smem>>
    %143 = vector.broadcast %142 : f32 to vector<12x12xf32>
    %144 = arith.mulf %143, %133 : vector<12x12xf32>
    %145 = arith.addf %127, %144 : vector<12x12xf32>
    %c307 = arith.constant 307 : index
    %146 = memref.load %arg1[%c307] : memref<400xf32, #tpu.memory_space<smem>>
    %147 = vector.broadcast %146 : f32 to vector<12x12xf32>
    %148 = arith.mulf %147, %133 : vector<12x12xf32>
    %149 = arith.addf %131, %148 : vector<12x12xf32>
    %c0_40 = arith.constant 0 : index
    %c0_41 = arith.constant 0 : index
    %c1_42 = arith.constant 1 : index
    %c3_43 = arith.constant 3 : index
    %150 = vector.load %arg2[%c0_40, %c0_41, %c1_42, %c3_43] : memref<1x4x16x16xf32, #tpu.memory_space<vmem>>, vector<1x1x12x12xf32>
    %151 = vector.shape_cast %150 : vector<1x1x12x12xf32> to vector<12x12xf32>
    %c8 = arith.constant 8 : index
    %152 = memref.load %arg1[%c8] : memref<400xf32, #tpu.memory_space<smem>>
    %153 = vector.broadcast %152 : f32 to vector<12x12xf32>
    %154 = arith.mulf %153, %151 : vector<12x12xf32>
    %155 = arith.addf %137, %154 : vector<12x12xf32>
    %c108 = arith.constant 108 : index
    %156 = memref.load %arg1[%c108] : memref<400xf32, #tpu.memory_space<smem>>
    %157 = vector.broadcast %156 : f32 to vector<12x12xf32>
    %158 = arith.mulf %157, %151 : vector<12x12xf32>
    %159 = arith.addf %141, %158 : vector<12x12xf32>
    %c208 = arith.constant 208 : index
    %160 = memref.load %arg1[%c208] : memref<400xf32, #tpu.memory_space<smem>>
    %161 = vector.broadcast %160 : f32 to vector<12x12xf32>
    %162 = arith.mulf %161, %151 : vector<12x12xf32>
    %163 = arith.addf %145, %162 : vector<12x12xf32>
    %c308 = arith.constant 308 : index
    %164 = memref.load %arg1[%c308] : memref<400xf32, #tpu.memory_space<smem>>
    %165 = vector.broadcast %164 : f32 to vector<12x12xf32>
    %166 = arith.mulf %165, %151 : vector<12x12xf32>
    %167 = arith.addf %149, %166 : vector<12x12xf32>
    %c0_44 = arith.constant 0 : index
    %c0_45 = arith.constant 0 : index
    %c1_46 = arith.constant 1 : index
    %c4_47 = arith.constant 4 : index
    %168 = vector.load %arg2[%c0_44, %c0_45, %c1_46, %c4_47] : memref<1x4x16x16xf32, #tpu.memory_space<vmem>>, vector<1x1x12x12xf32>
    %169 = vector.shape_cast %168 : vector<1x1x12x12xf32> to vector<12x12xf32>
    %c9 = arith.constant 9 : index
    %170 = memref.load %arg1[%c9] : memref<400xf32, #tpu.memory_space<smem>>
    %171 = vector.broadcast %170 : f32 to vector<12x12xf32>
    %172 = arith.mulf %171, %169 : vector<12x12xf32>
    %173 = arith.addf %155, %172 : vector<12x12xf32>
    %c109 = arith.constant 109 : index
    %174 = memref.load %arg1[%c109] : memref<400xf32, #tpu.memory_space<smem>>
    %175 = vector.broadcast %174 : f32 to vector<12x12xf32>
    %176 = arith.mulf %175, %169 : vector<12x12xf32>
    %177 = arith.addf %159, %176 : vector<12x12xf32>
    %c209 = arith.constant 209 : index
    %178 = memref.load %arg1[%c209] : memref<400xf32, #tpu.memory_space<smem>>
    %179 = vector.broadcast %178 : f32 to vector<12x12xf32>
    %180 = arith.mulf %179, %169 : vector<12x12xf32>
    %181 = arith.addf %163, %180 : vector<12x12xf32>
    %c309 = arith.constant 309 : index
    %182 = memref.load %arg1[%c309] : memref<400xf32, #tpu.memory_space<smem>>
    %183 = vector.broadcast %182 : f32 to vector<12x12xf32>
    %184 = arith.mulf %183, %169 : vector<12x12xf32>
    %185 = arith.addf %167, %184 : vector<12x12xf32>
    %c0_48 = arith.constant 0 : index
    %c0_49 = arith.constant 0 : index
    %c2_50 = arith.constant 2 : index
    %c0_51 = arith.constant 0 : index
    %186 = vector.load %arg2[%c0_48, %c0_49, %c2_50, %c0_51] : memref<1x4x16x16xf32, #tpu.memory_space<vmem>>, vector<1x1x12x12xf32>
    %187 = vector.shape_cast %186 : vector<1x1x12x12xf32> to vector<12x12xf32>
    %c10 = arith.constant 10 : index
    %188 = memref.load %arg1[%c10] : memref<400xf32, #tpu.memory_space<smem>>
    %189 = vector.broadcast %188 : f32 to vector<12x12xf32>
    %190 = arith.mulf %189, %187 : vector<12x12xf32>
    %191 = arith.addf %173, %190 : vector<12x12xf32>
    %c110 = arith.constant 110 : index
    %192 = memref.load %arg1[%c110] : memref<400xf32, #tpu.memory_space<smem>>
    %193 = vector.broadcast %192 : f32 to vector<12x12xf32>
    %194 = arith.mulf %193, %187 : vector<12x12xf32>
    %195 = arith.addf %177, %194 : vector<12x12xf32>
    %c210 = arith.constant 210 : index
    %196 = memref.load %arg1[%c210] : memref<400xf32, #tpu.memory_space<smem>>
    %197 = vector.broadcast %196 : f32 to vector<12x12xf32>
    %198 = arith.mulf %197, %187 : vector<12x12xf32>
    %199 = arith.addf %181, %198 : vector<12x12xf32>
    %c310 = arith.constant 310 : index
    %200 = memref.load %arg1[%c310] : memref<400xf32, #tpu.memory_space<smem>>
    %201 = vector.broadcast %200 : f32 to vector<12x12xf32>
    %202 = arith.mulf %201, %187 : vector<12x12xf32>
    %203 = arith.addf %185, %202 : vector<12x12xf32>
    %c0_52 = arith.constant 0 : index
    %c0_53 = arith.constant 0 : index
    %c2_54 = arith.constant 2 : index
    %c1_55 = arith.constant 1 : index
    %204 = vector.load %arg2[%c0_52, %c0_53, %c2_54, %c1_55] : memref<1x4x16x16xf32, #tpu.memory_space<vmem>>, vector<1x1x12x12xf32>
    %205 = vector.shape_cast %204 : vector<1x1x12x12xf32> to vector<12x12xf32>
    %c11 = arith.constant 11 : index
    %206 = memref.load %arg1[%c11] : memref<400xf32, #tpu.memory_space<smem>>
    %207 = vector.broadcast %206 : f32 to vector<12x12xf32>
    %208 = arith.mulf %207, %205 : vector<12x12xf32>
    %209 = arith.addf %191, %208 : vector<12x12xf32>
    %c111 = arith.constant 111 : index
    %210 = memref.load %arg1[%c111] : memref<400xf32, #tpu.memory_space<smem>>
    %211 = vector.broadcast %210 : f32 to vector<12x12xf32>
    %212 = arith.mulf %211, %205 : vector<12x12xf32>
    %213 = arith.addf %195, %212 : vector<12x12xf32>
    %c211 = arith.constant 211 : index
    %214 = memref.load %arg1[%c211] : memref<400xf32, #tpu.memory_space<smem>>
    %215 = vector.broadcast %214 : f32 to vector<12x12xf32>
    %216 = arith.mulf %215, %205 : vector<12x12xf32>
    %217 = arith.addf %199, %216 : vector<12x12xf32>
    %c311 = arith.constant 311 : index
    %218 = memref.load %arg1[%c311] : memref<400xf32, #tpu.memory_space<smem>>
    %219 = vector.broadcast %218 : f32 to vector<12x12xf32>
    %220 = arith.mulf %219, %205 : vector<12x12xf32>
    %221 = arith.addf %203, %220 : vector<12x12xf32>
    %c0_56 = arith.constant 0 : index
    %c0_57 = arith.constant 0 : index
    %c2_58 = arith.constant 2 : index
    %c2_59 = arith.constant 2 : index
    %222 = vector.load %arg2[%c0_56, %c0_57, %c2_58, %c2_59] : memref<1x4x16x16xf32, #tpu.memory_space<vmem>>, vector<1x1x12x12xf32>
    %223 = vector.shape_cast %222 : vector<1x1x12x12xf32> to vector<12x12xf32>
    %c12 = arith.constant 12 : index
    %224 = memref.load %arg1[%c12] : memref<400xf32, #tpu.memory_space<smem>>
    %225 = vector.broadcast %224 : f32 to vector<12x12xf32>
    %226 = arith.mulf %225, %223 : vector<12x12xf32>
    %227 = arith.addf %209, %226 : vector<12x12xf32>
    %c112 = arith.constant 112 : index
    %228 = memref.load %arg1[%c112] : memref<400xf32, #tpu.memory_space<smem>>
    %229 = vector.broadcast %228 : f32 to vector<12x12xf32>
    %230 = arith.mulf %229, %223 : vector<12x12xf32>
    %231 = arith.addf %213, %230 : vector<12x12xf32>
    %c212 = arith.constant 212 : index
    %232 = memref.load %arg1[%c212] : memref<400xf32, #tpu.memory_space<smem>>
    %233 = vector.broadcast %232 : f32 to vector<12x12xf32>
    %234 = arith.mulf %233, %223 : vector<12x12xf32>
    %235 = arith.addf %217, %234 : vector<12x12xf32>
    %c312 = arith.constant 312 : index
    %236 = memref.load %arg1[%c312] : memref<400xf32, #tpu.memory_space<smem>>
    %237 = vector.broadcast %236 : f32 to vector<12x12xf32>
    %238 = arith.mulf %237, %223 : vector<12x12xf32>
    %239 = arith.addf %221, %238 : vector<12x12xf32>
    %c0_60 = arith.constant 0 : index
    %c0_61 = arith.constant 0 : index
    %c2_62 = arith.constant 2 : index
    %c3_63 = arith.constant 3 : index
    %240 = vector.load %arg2[%c0_60, %c0_61, %c2_62, %c3_63] : memref<1x4x16x16xf32, #tpu.memory_space<vmem>>, vector<1x1x12x12xf32>
    %241 = vector.shape_cast %240 : vector<1x1x12x12xf32> to vector<12x12xf32>
    %c13 = arith.constant 13 : index
    %242 = memref.load %arg1[%c13] : memref<400xf32, #tpu.memory_space<smem>>
    %243 = vector.broadcast %242 : f32 to vector<12x12xf32>
    %244 = arith.mulf %243, %241 : vector<12x12xf32>
    %245 = arith.addf %227, %244 : vector<12x12xf32>
    %c113 = arith.constant 113 : index
    %246 = memref.load %arg1[%c113] : memref<400xf32, #tpu.memory_space<smem>>
    %247 = vector.broadcast %246 : f32 to vector<12x12xf32>
    %248 = arith.mulf %247, %241 : vector<12x12xf32>
    %249 = arith.addf %231, %248 : vector<12x12xf32>
    %c213 = arith.constant 213 : index
    %250 = memref.load %arg1[%c213] : memref<400xf32, #tpu.memory_space<smem>>
    %251 = vector.broadcast %250 : f32 to vector<12x12xf32>
    %252 = arith.mulf %251, %241 : vector<12x12xf32>
    %253 = arith.addf %235, %252 : vector<12x12xf32>
    %c313 = arith.constant 313 : index
    %254 = memref.load %arg1[%c313] : memref<400xf32, #tpu.memory_space<smem>>
    %255 = vector.broadcast %254 : f32 to vector<12x12xf32>
    %256 = arith.mulf %255, %241 : vector<12x12xf32>
    %257 = arith.addf %239, %256 : vector<12x12xf32>
    %c0_64 = arith.constant 0 : index
    %c0_65 = arith.constant 0 : index
    %c2_66 = arith.constant 2 : index
    %c4_67 = arith.constant 4 : index
    %258 = vector.load %arg2[%c0_64, %c0_65, %c2_66, %c4_67] : memref<1x4x16x16xf32, #tpu.memory_space<vmem>>, vector<1x1x12x12xf32>
    %259 = vector.shape_cast %258 : vector<1x1x12x12xf32> to vector<12x12xf32>
    %c14 = arith.constant 14 : index
    %260 = memref.load %arg1[%c14] : memref<400xf32, #tpu.memory_space<smem>>
    %261 = vector.broadcast %260 : f32 to vector<12x12xf32>
    %262 = arith.mulf %261, %259 : vector<12x12xf32>
    %263 = arith.addf %245, %262 : vector<12x12xf32>
    %c114 = arith.constant 114 : index
    %264 = memref.load %arg1[%c114] : memref<400xf32, #tpu.memory_space<smem>>
    %265 = vector.broadcast %264 : f32 to vector<12x12xf32>
    %266 = arith.mulf %265, %259 : vector<12x12xf32>
    %267 = arith.addf %249, %266 : vector<12x12xf32>
    %c214 = arith.constant 214 : index
    %268 = memref.load %arg1[%c214] : memref<400xf32, #tpu.memory_space<smem>>
    %269 = vector.broadcast %268 : f32 to vector<12x12xf32>
    %270 = arith.mulf %269, %259 : vector<12x12xf32>
    %271 = arith.addf %253, %270 : vector<12x12xf32>
    %c314 = arith.constant 314 : index
    %272 = memref.load %arg1[%c314] : memref<400xf32, #tpu.memory_space<smem>>
    %273 = vector.broadcast %272 : f32 to vector<12x12xf32>
    %274 = arith.mulf %273, %259 : vector<12x12xf32>
    %275 = arith.addf %257, %274 : vector<12x12xf32>
    %c0_68 = arith.constant 0 : index
    %c0_69 = arith.constant 0 : index
    %c3_70 = arith.constant 3 : index
    %c0_71 = arith.constant 0 : index
    %276 = vector.load %arg2[%c0_68, %c0_69, %c3_70, %c0_71] : memref<1x4x16x16xf32, #tpu.memory_space<vmem>>, vector<1x1x12x12xf32>
    %277 = vector.shape_cast %276 : vector<1x1x12x12xf32> to vector<12x12xf32>
    %c15 = arith.constant 15 : index
    %278 = memref.load %arg1[%c15] : memref<400xf32, #tpu.memory_space<smem>>
    %279 = vector.broadcast %278 : f32 to vector<12x12xf32>
    %280 = arith.mulf %279, %277 : vector<12x12xf32>
    %281 = arith.addf %263, %280 : vector<12x12xf32>
    %c115 = arith.constant 115 : index
    %282 = memref.load %arg1[%c115] : memref<400xf32, #tpu.memory_space<smem>>
    %283 = vector.broadcast %282 : f32 to vector<12x12xf32>
    %284 = arith.mulf %283, %277 : vector<12x12xf32>
    %285 = arith.addf %267, %284 : vector<12x12xf32>
    %c215 = arith.constant 215 : index
    %286 = memref.load %arg1[%c215] : memref<400xf32, #tpu.memory_space<smem>>
    %287 = vector.broadcast %286 : f32 to vector<12x12xf32>
    %288 = arith.mulf %287, %277 : vector<12x12xf32>
    %289 = arith.addf %271, %288 : vector<12x12xf32>
    %c315 = arith.constant 315 : index
    %290 = memref.load %arg1[%c315] : memref<400xf32, #tpu.memory_space<smem>>
    %291 = vector.broadcast %290 : f32 to vector<12x12xf32>
    %292 = arith.mulf %291, %277 : vector<12x12xf32>
    %293 = arith.addf %275, %292 : vector<12x12xf32>
    %c0_72 = arith.constant 0 : index
    %c0_73 = arith.constant 0 : index
    %c3_74 = arith.constant 3 : index
    %c1_75 = arith.constant 1 : index
    %294 = vector.load %arg2[%c0_72, %c0_73, %c3_74, %c1_75] : memref<1x4x16x16xf32, #tpu.memory_space<vmem>>, vector<1x1x12x12xf32>
    %295 = vector.shape_cast %294 : vector<1x1x12x12xf32> to vector<12x12xf32>
    %c16 = arith.constant 16 : index
    %296 = memref.load %arg1[%c16] : memref<400xf32, #tpu.memory_space<smem>>
    %297 = vector.broadcast %296 : f32 to vector<12x12xf32>
    %298 = arith.mulf %297, %295 : vector<12x12xf32>
    %299 = arith.addf %281, %298 : vector<12x12xf32>
    %c116 = arith.constant 116 : index
    %300 = memref.load %arg1[%c116] : memref<400xf32, #tpu.memory_space<smem>>
    %301 = vector.broadcast %300 : f32 to vector<12x12xf32>
    %302 = arith.mulf %301, %295 : vector<12x12xf32>
    %303 = arith.addf %285, %302 : vector<12x12xf32>
    %c216 = arith.constant 216 : index
    %304 = memref.load %arg1[%c216] : memref<400xf32, #tpu.memory_space<smem>>
    %305 = vector.broadcast %304 : f32 to vector<12x12xf32>
    %306 = arith.mulf %305, %295 : vector<12x12xf32>
    %307 = arith.addf %289, %306 : vector<12x12xf32>
    %c316 = arith.constant 316 : index
    %308 = memref.load %arg1[%c316] : memref<400xf32, #tpu.memory_space<smem>>
    %309 = vector.broadcast %308 : f32 to vector<12x12xf32>
    %310 = arith.mulf %309, %295 : vector<12x12xf32>
    %311 = arith.addf %293, %310 : vector<12x12xf32>
    %c0_76 = arith.constant 0 : index
    %c0_77 = arith.constant 0 : index
    %c3_78 = arith.constant 3 : index
    %c2_79 = arith.constant 2 : index
    %312 = vector.load %arg2[%c0_76, %c0_77, %c3_78, %c2_79] : memref<1x4x16x16xf32, #tpu.memory_space<vmem>>, vector<1x1x12x12xf32>
    %313 = vector.shape_cast %312 : vector<1x1x12x12xf32> to vector<12x12xf32>
    %c17 = arith.constant 17 : index
    %314 = memref.load %arg1[%c17] : memref<400xf32, #tpu.memory_space<smem>>
    %315 = vector.broadcast %314 : f32 to vector<12x12xf32>
    %316 = arith.mulf %315, %313 : vector<12x12xf32>
    %317 = arith.addf %299, %316 : vector<12x12xf32>
    %c117 = arith.constant 117 : index
    %318 = memref.load %arg1[%c117] : memref<400xf32, #tpu.memory_space<smem>>
    %319 = vector.broadcast %318 : f32 to vector<12x12xf32>
    %320 = arith.mulf %319, %313 : vector<12x12xf32>
    %321 = arith.addf %303, %320 : vector<12x12xf32>
    %c217 = arith.constant 217 : index
    %322 = memref.load %arg1[%c217] : memref<400xf32, #tpu.memory_space<smem>>
    %323 = vector.broadcast %322 : f32 to vector<12x12xf32>
    %324 = arith.mulf %323, %313 : vector<12x12xf32>
    %325 = arith.addf %307, %324 : vector<12x12xf32>
    %c317 = arith.constant 317 : index
    %326 = memref.load %arg1[%c317] : memref<400xf32, #tpu.memory_space<smem>>
    %327 = vector.broadcast %326 : f32 to vector<12x12xf32>
    %328 = arith.mulf %327, %313 : vector<12x12xf32>
    %329 = arith.addf %311, %328 : vector<12x12xf32>
    %c0_80 = arith.constant 0 : index
    %c0_81 = arith.constant 0 : index
    %c3_82 = arith.constant 3 : index
    %c3_83 = arith.constant 3 : index
    %330 = vector.load %arg2[%c0_80, %c0_81, %c3_82, %c3_83] : memref<1x4x16x16xf32, #tpu.memory_space<vmem>>, vector<1x1x12x12xf32>
    %331 = vector.shape_cast %330 : vector<1x1x12x12xf32> to vector<12x12xf32>
    %c18 = arith.constant 18 : index
    %332 = memref.load %arg1[%c18] : memref<400xf32, #tpu.memory_space<smem>>
    %333 = vector.broadcast %332 : f32 to vector<12x12xf32>
    %334 = arith.mulf %333, %331 : vector<12x12xf32>
    %335 = arith.addf %317, %334 : vector<12x12xf32>
    %c118 = arith.constant 118 : index
    %336 = memref.load %arg1[%c118] : memref<400xf32, #tpu.memory_space<smem>>
    %337 = vector.broadcast %336 : f32 to vector<12x12xf32>
    %338 = arith.mulf %337, %331 : vector<12x12xf32>
    %339 = arith.addf %321, %338 : vector<12x12xf32>
    %c218 = arith.constant 218 : index
    %340 = memref.load %arg1[%c218] : memref<400xf32, #tpu.memory_space<smem>>
    %341 = vector.broadcast %340 : f32 to vector<12x12xf32>
    %342 = arith.mulf %341, %331 : vector<12x12xf32>
    %343 = arith.addf %325, %342 : vector<12x12xf32>
    %c318 = arith.constant 318 : index
    %344 = memref.load %arg1[%c318] : memref<400xf32, #tpu.memory_space<smem>>
    %345 = vector.broadcast %344 : f32 to vector<12x12xf32>
    %346 = arith.mulf %345, %331 : vector<12x12xf32>
    %347 = arith.addf %329, %346 : vector<12x12xf32>
    %c0_84 = arith.constant 0 : index
    %c0_85 = arith.constant 0 : index
    %c3_86 = arith.constant 3 : index
    %c4_87 = arith.constant 4 : index
    %348 = vector.load %arg2[%c0_84, %c0_85, %c3_86, %c4_87] : memref<1x4x16x16xf32, #tpu.memory_space<vmem>>, vector<1x1x12x12xf32>
    %349 = vector.shape_cast %348 : vector<1x1x12x12xf32> to vector<12x12xf32>
    %c19 = arith.constant 19 : index
    %350 = memref.load %arg1[%c19] : memref<400xf32, #tpu.memory_space<smem>>
    %351 = vector.broadcast %350 : f32 to vector<12x12xf32>
    %352 = arith.mulf %351, %349 : vector<12x12xf32>
    %353 = arith.addf %335, %352 : vector<12x12xf32>
    %c119 = arith.constant 119 : index
    %354 = memref.load %arg1[%c119] : memref<400xf32, #tpu.memory_space<smem>>
    %355 = vector.broadcast %354 : f32 to vector<12x12xf32>
    %356 = arith.mulf %355, %349 : vector<12x12xf32>
    %357 = arith.addf %339, %356 : vector<12x12xf32>
    %c219 = arith.constant 219 : index
    %358 = memref.load %arg1[%c219] : memref<400xf32, #tpu.memory_space<smem>>
    %359 = vector.broadcast %358 : f32 to vector<12x12xf32>
    %360 = arith.mulf %359, %349 : vector<12x12xf32>
    %361 = arith.addf %343, %360 : vector<12x12xf32>
    %c319 = arith.constant 319 : index
    %362 = memref.load %arg1[%c319] : memref<400xf32, #tpu.memory_space<smem>>
    %363 = vector.broadcast %362 : f32 to vector<12x12xf32>
    %364 = arith.mulf %363, %349 : vector<12x12xf32>
    %365 = arith.addf %347, %364 : vector<12x12xf32>
    %c0_88 = arith.constant 0 : index
    %c0_89 = arith.constant 0 : index
    %c4_90 = arith.constant 4 : index
    %c0_91 = arith.constant 0 : index
    %366 = vector.load %arg2[%c0_88, %c0_89, %c4_90, %c0_91] : memref<1x4x16x16xf32, #tpu.memory_space<vmem>>, vector<1x1x12x12xf32>
    %367 = vector.shape_cast %366 : vector<1x1x12x12xf32> to vector<12x12xf32>
    %c20 = arith.constant 20 : index
    %368 = memref.load %arg1[%c20] : memref<400xf32, #tpu.memory_space<smem>>
    %369 = vector.broadcast %368 : f32 to vector<12x12xf32>
    %370 = arith.mulf %369, %367 : vector<12x12xf32>
    %371 = arith.addf %353, %370 : vector<12x12xf32>
    %c120 = arith.constant 120 : index
    %372 = memref.load %arg1[%c120] : memref<400xf32, #tpu.memory_space<smem>>
    %373 = vector.broadcast %372 : f32 to vector<12x12xf32>
    %374 = arith.mulf %373, %367 : vector<12x12xf32>
    %375 = arith.addf %357, %374 : vector<12x12xf32>
    %c220 = arith.constant 220 : index
    %376 = memref.load %arg1[%c220] : memref<400xf32, #tpu.memory_space<smem>>
    %377 = vector.broadcast %376 : f32 to vector<12x12xf32>
    %378 = arith.mulf %377, %367 : vector<12x12xf32>
    %379 = arith.addf %361, %378 : vector<12x12xf32>
    %c320 = arith.constant 320 : index
    %380 = memref.load %arg1[%c320] : memref<400xf32, #tpu.memory_space<smem>>
    %381 = vector.broadcast %380 : f32 to vector<12x12xf32>
    %382 = arith.mulf %381, %367 : vector<12x12xf32>
    %383 = arith.addf %365, %382 : vector<12x12xf32>
    %c0_92 = arith.constant 0 : index
    %c0_93 = arith.constant 0 : index
    %c4_94 = arith.constant 4 : index
    %c1_95 = arith.constant 1 : index
    %384 = vector.load %arg2[%c0_92, %c0_93, %c4_94, %c1_95] : memref<1x4x16x16xf32, #tpu.memory_space<vmem>>, vector<1x1x12x12xf32>
    %385 = vector.shape_cast %384 : vector<1x1x12x12xf32> to vector<12x12xf32>
    %c21 = arith.constant 21 : index
    %386 = memref.load %arg1[%c21] : memref<400xf32, #tpu.memory_space<smem>>
    %387 = vector.broadcast %386 : f32 to vector<12x12xf32>
    %388 = arith.mulf %387, %385 : vector<12x12xf32>
    %389 = arith.addf %371, %388 : vector<12x12xf32>
    %c121 = arith.constant 121 : index
    %390 = memref.load %arg1[%c121] : memref<400xf32, #tpu.memory_space<smem>>
    %391 = vector.broadcast %390 : f32 to vector<12x12xf32>
    %392 = arith.mulf %391, %385 : vector<12x12xf32>
    %393 = arith.addf %375, %392 : vector<12x12xf32>
    %c221 = arith.constant 221 : index
    %394 = memref.load %arg1[%c221] : memref<400xf32, #tpu.memory_space<smem>>
    %395 = vector.broadcast %394 : f32 to vector<12x12xf32>
    %396 = arith.mulf %395, %385 : vector<12x12xf32>
    %397 = arith.addf %379, %396 : vector<12x12xf32>
    %c321 = arith.constant 321 : index
    %398 = memref.load %arg1[%c321] : memref<400xf32, #tpu.memory_space<smem>>
    %399 = vector.broadcast %398 : f32 to vector<12x12xf32>
    %400 = arith.mulf %399, %385 : vector<12x12xf32>
    %401 = arith.addf %383, %400 : vector<12x12xf32>
    %c0_96 = arith.constant 0 : index
    %c0_97 = arith.constant 0 : index
    %c4_98 = arith.constant 4 : index
    %c2_99 = arith.constant 2 : index
    %402 = vector.load %arg2[%c0_96, %c0_97, %c4_98, %c2_99] : memref<1x4x16x16xf32, #tpu.memory_space<vmem>>, vector<1x1x12x12xf32>
    %403 = vector.shape_cast %402 : vector<1x1x12x12xf32> to vector<12x12xf32>
    %c22 = arith.constant 22 : index
    %404 = memref.load %arg1[%c22] : memref<400xf32, #tpu.memory_space<smem>>
    %405 = vector.broadcast %404 : f32 to vector<12x12xf32>
    %406 = arith.mulf %405, %403 : vector<12x12xf32>
    %407 = arith.addf %389, %406 : vector<12x12xf32>
    %c122 = arith.constant 122 : index
    %408 = memref.load %arg1[%c122] : memref<400xf32, #tpu.memory_space<smem>>
    %409 = vector.broadcast %408 : f32 to vector<12x12xf32>
    %410 = arith.mulf %409, %403 : vector<12x12xf32>
    %411 = arith.addf %393, %410 : vector<12x12xf32>
    %c222 = arith.constant 222 : index
    %412 = memref.load %arg1[%c222] : memref<400xf32, #tpu.memory_space<smem>>
    %413 = vector.broadcast %412 : f32 to vector<12x12xf32>
    %414 = arith.mulf %413, %403 : vector<12x12xf32>
    %415 = arith.addf %397, %414 : vector<12x12xf32>
    %c322 = arith.constant 322 : index
    %416 = memref.load %arg1[%c322] : memref<400xf32, #tpu.memory_space<smem>>
    %417 = vector.broadcast %416 : f32 to vector<12x12xf32>
    %418 = arith.mulf %417, %403 : vector<12x12xf32>
    %419 = arith.addf %401, %418 : vector<12x12xf32>
    %c0_100 = arith.constant 0 : index
    %c0_101 = arith.constant 0 : index
    %c4_102 = arith.constant 4 : index
    %c3_103 = arith.constant 3 : index
    %420 = vector.load %arg2[%c0_100, %c0_101, %c4_102, %c3_103] : memref<1x4x16x16xf32, #tpu.memory_space<vmem>>, vector<1x1x12x12xf32>
    %421 = vector.shape_cast %420 : vector<1x1x12x12xf32> to vector<12x12xf32>
    %c23 = arith.constant 23 : index
    %422 = memref.load %arg1[%c23] : memref<400xf32, #tpu.memory_space<smem>>
    %423 = vector.broadcast %422 : f32 to vector<12x12xf32>
    %424 = arith.mulf %423, %421 : vector<12x12xf32>
    %425 = arith.addf %407, %424 : vector<12x12xf32>
    %c123 = arith.constant 123 : index
    %426 = memref.load %arg1[%c123] : memref<400xf32, #tpu.memory_space<smem>>
    %427 = vector.broadcast %426 : f32 to vector<12x12xf32>
    %428 = arith.mulf %427, %421 : vector<12x12xf32>
    %429 = arith.addf %411, %428 : vector<12x12xf32>
    %c223 = arith.constant 223 : index
    %430 = memref.load %arg1[%c223] : memref<400xf32, #tpu.memory_space<smem>>
    %431 = vector.broadcast %430 : f32 to vector<12x12xf32>
    %432 = arith.mulf %431, %421 : vector<12x12xf32>
    %433 = arith.addf %415, %432 : vector<12x12xf32>
    %c323 = arith.constant 323 : index
    %434 = memref.load %arg1[%c323] : memref<400xf32, #tpu.memory_space<smem>>
    %435 = vector.broadcast %434 : f32 to vector<12x12xf32>
    %436 = arith.mulf %435, %421 : vector<12x12xf32>
    %437 = arith.addf %419, %436 : vector<12x12xf32>
    %c0_104 = arith.constant 0 : index
    %c0_105 = arith.constant 0 : index
    %c4_106 = arith.constant 4 : index
    %c4_107 = arith.constant 4 : index
    %438 = vector.load %arg2[%c0_104, %c0_105, %c4_106, %c4_107] : memref<1x4x16x16xf32, #tpu.memory_space<vmem>>, vector<1x1x12x12xf32>
    %439 = vector.shape_cast %438 : vector<1x1x12x12xf32> to vector<12x12xf32>
    %c24 = arith.constant 24 : index
    %440 = memref.load %arg1[%c24] : memref<400xf32, #tpu.memory_space<smem>>
    %441 = vector.broadcast %440 : f32 to vector<12x12xf32>
    %442 = arith.mulf %441, %439 : vector<12x12xf32>
    %443 = arith.addf %425, %442 : vector<12x12xf32>
    %c124 = arith.constant 124 : index
    %444 = memref.load %arg1[%c124] : memref<400xf32, #tpu.memory_space<smem>>
    %445 = vector.broadcast %444 : f32 to vector<12x12xf32>
    %446 = arith.mulf %445, %439 : vector<12x12xf32>
    %447 = arith.addf %429, %446 : vector<12x12xf32>
    %c224 = arith.constant 224 : index
    %448 = memref.load %arg1[%c224] : memref<400xf32, #tpu.memory_space<smem>>
    %449 = vector.broadcast %448 : f32 to vector<12x12xf32>
    %450 = arith.mulf %449, %439 : vector<12x12xf32>
    %451 = arith.addf %433, %450 : vector<12x12xf32>
    %c324 = arith.constant 324 : index
    %452 = memref.load %arg1[%c324] : memref<400xf32, #tpu.memory_space<smem>>
    %453 = vector.broadcast %452 : f32 to vector<12x12xf32>
    %454 = arith.mulf %453, %439 : vector<12x12xf32>
    %455 = arith.addf %437, %454 : vector<12x12xf32>
    %c0_108 = arith.constant 0 : index
    %c1_109 = arith.constant 1 : index
    %c0_110 = arith.constant 0 : index
    %c0_111 = arith.constant 0 : index
    %456 = vector.load %arg2[%c0_108, %c1_109, %c0_110, %c0_111] : memref<1x4x16x16xf32, #tpu.memory_space<vmem>>, vector<1x1x12x12xf32>
    %457 = vector.shape_cast %456 : vector<1x1x12x12xf32> to vector<12x12xf32>
    %c25 = arith.constant 25 : index
    %458 = memref.load %arg1[%c25] : memref<400xf32, #tpu.memory_space<smem>>
    %459 = vector.broadcast %458 : f32 to vector<12x12xf32>
    %460 = arith.mulf %459, %457 : vector<12x12xf32>
    %461 = arith.addf %443, %460 : vector<12x12xf32>
    %c125 = arith.constant 125 : index
    %462 = memref.load %arg1[%c125] : memref<400xf32, #tpu.memory_space<smem>>
    %463 = vector.broadcast %462 : f32 to vector<12x12xf32>
    %464 = arith.mulf %463, %457 : vector<12x12xf32>
    %465 = arith.addf %447, %464 : vector<12x12xf32>
    %c225 = arith.constant 225 : index
    %466 = memref.load %arg1[%c225] : memref<400xf32, #tpu.memory_space<smem>>
    %467 = vector.broadcast %466 : f32 to vector<12x12xf32>
    %468 = arith.mulf %467, %457 : vector<12x12xf32>
    %469 = arith.addf %451, %468 : vector<12x12xf32>
    %c325 = arith.constant 325 : index
    %470 = memref.load %arg1[%c325] : memref<400xf32, #tpu.memory_space<smem>>
    %471 = vector.broadcast %470 : f32 to vector<12x12xf32>
    %472 = arith.mulf %471, %457 : vector<12x12xf32>
    %473 = arith.addf %455, %472 : vector<12x12xf32>
    %c0_112 = arith.constant 0 : index
    %c1_113 = arith.constant 1 : index
    %c0_114 = arith.constant 0 : index
    %c1_115 = arith.constant 1 : index
    %474 = vector.load %arg2[%c0_112, %c1_113, %c0_114, %c1_115] : memref<1x4x16x16xf32, #tpu.memory_space<vmem>>, vector<1x1x12x12xf32>
    %475 = vector.shape_cast %474 : vector<1x1x12x12xf32> to vector<12x12xf32>
    %c26 = arith.constant 26 : index
    %476 = memref.load %arg1[%c26] : memref<400xf32, #tpu.memory_space<smem>>
    %477 = vector.broadcast %476 : f32 to vector<12x12xf32>
    %478 = arith.mulf %477, %475 : vector<12x12xf32>
    %479 = arith.addf %461, %478 : vector<12x12xf32>
    %c126 = arith.constant 126 : index
    %480 = memref.load %arg1[%c126] : memref<400xf32, #tpu.memory_space<smem>>
    %481 = vector.broadcast %480 : f32 to vector<12x12xf32>
    %482 = arith.mulf %481, %475 : vector<12x12xf32>
    %483 = arith.addf %465, %482 : vector<12x12xf32>
    %c226 = arith.constant 226 : index
    %484 = memref.load %arg1[%c226] : memref<400xf32, #tpu.memory_space<smem>>
    %485 = vector.broadcast %484 : f32 to vector<12x12xf32>
    %486 = arith.mulf %485, %475 : vector<12x12xf32>
    %487 = arith.addf %469, %486 : vector<12x12xf32>
    %c326 = arith.constant 326 : index
    %488 = memref.load %arg1[%c326] : memref<400xf32, #tpu.memory_space<smem>>
    %489 = vector.broadcast %488 : f32 to vector<12x12xf32>
    %490 = arith.mulf %489, %475 : vector<12x12xf32>
    %491 = arith.addf %473, %490 : vector<12x12xf32>
    %c0_116 = arith.constant 0 : index
    %c1_117 = arith.constant 1 : index
    %c0_118 = arith.constant 0 : index
    %c2_119 = arith.constant 2 : index
    %492 = vector.load %arg2[%c0_116, %c1_117, %c0_118, %c2_119] : memref<1x4x16x16xf32, #tpu.memory_space<vmem>>, vector<1x1x12x12xf32>
    %493 = vector.shape_cast %492 : vector<1x1x12x12xf32> to vector<12x12xf32>
    %c27 = arith.constant 27 : index
    %494 = memref.load %arg1[%c27] : memref<400xf32, #tpu.memory_space<smem>>
    %495 = vector.broadcast %494 : f32 to vector<12x12xf32>
    %496 = arith.mulf %495, %493 : vector<12x12xf32>
    %497 = arith.addf %479, %496 : vector<12x12xf32>
    %c127 = arith.constant 127 : index
    %498 = memref.load %arg1[%c127] : memref<400xf32, #tpu.memory_space<smem>>
    %499 = vector.broadcast %498 : f32 to vector<12x12xf32>
    %500 = arith.mulf %499, %493 : vector<12x12xf32>
    %501 = arith.addf %483, %500 : vector<12x12xf32>
    %c227 = arith.constant 227 : index
    %502 = memref.load %arg1[%c227] : memref<400xf32, #tpu.memory_space<smem>>
    %503 = vector.broadcast %502 : f32 to vector<12x12xf32>
    %504 = arith.mulf %503, %493 : vector<12x12xf32>
    %505 = arith.addf %487, %504 : vector<12x12xf32>
    %c327 = arith.constant 327 : index
    %506 = memref.load %arg1[%c327] : memref<400xf32, #tpu.memory_space<smem>>
    %507 = vector.broadcast %506 : f32 to vector<12x12xf32>
    %508 = arith.mulf %507, %493 : vector<12x12xf32>
    %509 = arith.addf %491, %508 : vector<12x12xf32>
    %c0_120 = arith.constant 0 : index
    %c1_121 = arith.constant 1 : index
    %c0_122 = arith.constant 0 : index
    %c3_123 = arith.constant 3 : index
    %510 = vector.load %arg2[%c0_120, %c1_121, %c0_122, %c3_123] : memref<1x4x16x16xf32, #tpu.memory_space<vmem>>, vector<1x1x12x12xf32>
    %511 = vector.shape_cast %510 : vector<1x1x12x12xf32> to vector<12x12xf32>
    %c28 = arith.constant 28 : index
    %512 = memref.load %arg1[%c28] : memref<400xf32, #tpu.memory_space<smem>>
    %513 = vector.broadcast %512 : f32 to vector<12x12xf32>
    %514 = arith.mulf %513, %511 : vector<12x12xf32>
    %515 = arith.addf %497, %514 : vector<12x12xf32>
    %c128 = arith.constant 128 : index
    %516 = memref.load %arg1[%c128] : memref<400xf32, #tpu.memory_space<smem>>
    %517 = vector.broadcast %516 : f32 to vector<12x12xf32>
    %518 = arith.mulf %517, %511 : vector<12x12xf32>
    %519 = arith.addf %501, %518 : vector<12x12xf32>
    %c228 = arith.constant 228 : index
    %520 = memref.load %arg1[%c228] : memref<400xf32, #tpu.memory_space<smem>>
    %521 = vector.broadcast %520 : f32 to vector<12x12xf32>
    %522 = arith.mulf %521, %511 : vector<12x12xf32>
    %523 = arith.addf %505, %522 : vector<12x12xf32>
    %c328 = arith.constant 328 : index
    %524 = memref.load %arg1[%c328] : memref<400xf32, #tpu.memory_space<smem>>
    %525 = vector.broadcast %524 : f32 to vector<12x12xf32>
    %526 = arith.mulf %525, %511 : vector<12x12xf32>
    %527 = arith.addf %509, %526 : vector<12x12xf32>
    %c0_124 = arith.constant 0 : index
    %c1_125 = arith.constant 1 : index
    %c0_126 = arith.constant 0 : index
    %c4_127 = arith.constant 4 : index
    %528 = vector.load %arg2[%c0_124, %c1_125, %c0_126, %c4_127] : memref<1x4x16x16xf32, #tpu.memory_space<vmem>>, vector<1x1x12x12xf32>
    %529 = vector.shape_cast %528 : vector<1x1x12x12xf32> to vector<12x12xf32>
    %c29 = arith.constant 29 : index
    %530 = memref.load %arg1[%c29] : memref<400xf32, #tpu.memory_space<smem>>
    %531 = vector.broadcast %530 : f32 to vector<12x12xf32>
    %532 = arith.mulf %531, %529 : vector<12x12xf32>
    %533 = arith.addf %515, %532 : vector<12x12xf32>
    %c129 = arith.constant 129 : index
    %534 = memref.load %arg1[%c129] : memref<400xf32, #tpu.memory_space<smem>>
    %535 = vector.broadcast %534 : f32 to vector<12x12xf32>
    %536 = arith.mulf %535, %529 : vector<12x12xf32>
    %537 = arith.addf %519, %536 : vector<12x12xf32>
    %c229 = arith.constant 229 : index
    %538 = memref.load %arg1[%c229] : memref<400xf32, #tpu.memory_space<smem>>
    %539 = vector.broadcast %538 : f32 to vector<12x12xf32>
    %540 = arith.mulf %539, %529 : vector<12x12xf32>
    %541 = arith.addf %523, %540 : vector<12x12xf32>
    %c329 = arith.constant 329 : index
    %542 = memref.load %arg1[%c329] : memref<400xf32, #tpu.memory_space<smem>>
    %543 = vector.broadcast %542 : f32 to vector<12x12xf32>
    %544 = arith.mulf %543, %529 : vector<12x12xf32>
    %545 = arith.addf %527, %544 : vector<12x12xf32>
    %c0_128 = arith.constant 0 : index
    %c1_129 = arith.constant 1 : index
    %c1_130 = arith.constant 1 : index
    %c0_131 = arith.constant 0 : index
    %546 = vector.load %arg2[%c0_128, %c1_129, %c1_130, %c0_131] : memref<1x4x16x16xf32, #tpu.memory_space<vmem>>, vector<1x1x12x12xf32>
    %547 = vector.shape_cast %546 : vector<1x1x12x12xf32> to vector<12x12xf32>
    %c30 = arith.constant 30 : index
    %548 = memref.load %arg1[%c30] : memref<400xf32, #tpu.memory_space<smem>>
    %549 = vector.broadcast %548 : f32 to vector<12x12xf32>
    %550 = arith.mulf %549, %547 : vector<12x12xf32>
    %551 = arith.addf %533, %550 : vector<12x12xf32>
    %c130 = arith.constant 130 : index
    %552 = memref.load %arg1[%c130] : memref<400xf32, #tpu.memory_space<smem>>
    %553 = vector.broadcast %552 : f32 to vector<12x12xf32>
    %554 = arith.mulf %553, %547 : vector<12x12xf32>
    %555 = arith.addf %537, %554 : vector<12x12xf32>
    %c230 = arith.constant 230 : index
    %556 = memref.load %arg1[%c230] : memref<400xf32, #tpu.memory_space<smem>>
    %557 = vector.broadcast %556 : f32 to vector<12x12xf32>
    %558 = arith.mulf %557, %547 : vector<12x12xf32>
    %559 = arith.addf %541, %558 : vector<12x12xf32>
    %c330 = arith.constant 330 : index
    %560 = memref.load %arg1[%c330] : memref<400xf32, #tpu.memory_space<smem>>
    %561 = vector.broadcast %560 : f32 to vector<12x12xf32>
    %562 = arith.mulf %561, %547 : vector<12x12xf32>
    %563 = arith.addf %545, %562 : vector<12x12xf32>
    %c0_132 = arith.constant 0 : index
    %c1_133 = arith.constant 1 : index
    %c1_134 = arith.constant 1 : index
    %c1_135 = arith.constant 1 : index
    %564 = vector.load %arg2[%c0_132, %c1_133, %c1_134, %c1_135] : memref<1x4x16x16xf32, #tpu.memory_space<vmem>>, vector<1x1x12x12xf32>
    %565 = vector.shape_cast %564 : vector<1x1x12x12xf32> to vector<12x12xf32>
    %c31 = arith.constant 31 : index
    %566 = memref.load %arg1[%c31] : memref<400xf32, #tpu.memory_space<smem>>
    %567 = vector.broadcast %566 : f32 to vector<12x12xf32>
    %568 = arith.mulf %567, %565 : vector<12x12xf32>
    %569 = arith.addf %551, %568 : vector<12x12xf32>
    %c131 = arith.constant 131 : index
    %570 = memref.load %arg1[%c131] : memref<400xf32, #tpu.memory_space<smem>>
    %571 = vector.broadcast %570 : f32 to vector<12x12xf32>
    %572 = arith.mulf %571, %565 : vector<12x12xf32>
    %573 = arith.addf %555, %572 : vector<12x12xf32>
    %c231 = arith.constant 231 : index
    %574 = memref.load %arg1[%c231] : memref<400xf32, #tpu.memory_space<smem>>
    %575 = vector.broadcast %574 : f32 to vector<12x12xf32>
    %576 = arith.mulf %575, %565 : vector<12x12xf32>
    %577 = arith.addf %559, %576 : vector<12x12xf32>
    %c331 = arith.constant 331 : index
    %578 = memref.load %arg1[%c331] : memref<400xf32, #tpu.memory_space<smem>>
    %579 = vector.broadcast %578 : f32 to vector<12x12xf32>
    %580 = arith.mulf %579, %565 : vector<12x12xf32>
    %581 = arith.addf %563, %580 : vector<12x12xf32>
    %c0_136 = arith.constant 0 : index
    %c1_137 = arith.constant 1 : index
    %c1_138 = arith.constant 1 : index
    %c2_139 = arith.constant 2 : index
    %582 = vector.load %arg2[%c0_136, %c1_137, %c1_138, %c2_139] : memref<1x4x16x16xf32, #tpu.memory_space<vmem>>, vector<1x1x12x12xf32>
    %583 = vector.shape_cast %582 : vector<1x1x12x12xf32> to vector<12x12xf32>
    %c32 = arith.constant 32 : index
    %584 = memref.load %arg1[%c32] : memref<400xf32, #tpu.memory_space<smem>>
    %585 = vector.broadcast %584 : f32 to vector<12x12xf32>
    %586 = arith.mulf %585, %583 : vector<12x12xf32>
    %587 = arith.addf %569, %586 : vector<12x12xf32>
    %c132 = arith.constant 132 : index
    %588 = memref.load %arg1[%c132] : memref<400xf32, #tpu.memory_space<smem>>
    %589 = vector.broadcast %588 : f32 to vector<12x12xf32>
    %590 = arith.mulf %589, %583 : vector<12x12xf32>
    %591 = arith.addf %573, %590 : vector<12x12xf32>
    %c232 = arith.constant 232 : index
    %592 = memref.load %arg1[%c232] : memref<400xf32, #tpu.memory_space<smem>>
    %593 = vector.broadcast %592 : f32 to vector<12x12xf32>
    %594 = arith.mulf %593, %583 : vector<12x12xf32>
    %595 = arith.addf %577, %594 : vector<12x12xf32>
    %c332 = arith.constant 332 : index
    %596 = memref.load %arg1[%c332] : memref<400xf32, #tpu.memory_space<smem>>
    %597 = vector.broadcast %596 : f32 to vector<12x12xf32>
    %598 = arith.mulf %597, %583 : vector<12x12xf32>
    %599 = arith.addf %581, %598 : vector<12x12xf32>
    %c0_140 = arith.constant 0 : index
    %c1_141 = arith.constant 1 : index
    %c1_142 = arith.constant 1 : index
    %c3_143 = arith.constant 3 : index
    %600 = vector.load %arg2[%c0_140, %c1_141, %c1_142, %c3_143] : memref<1x4x16x16xf32, #tpu.memory_space<vmem>>, vector<1x1x12x12xf32>
    %601 = vector.shape_cast %600 : vector<1x1x12x12xf32> to vector<12x12xf32>
    %c33 = arith.constant 33 : index
    %602 = memref.load %arg1[%c33] : memref<400xf32, #tpu.memory_space<smem>>
    %603 = vector.broadcast %602 : f32 to vector<12x12xf32>
    %604 = arith.mulf %603, %601 : vector<12x12xf32>
    %605 = arith.addf %587, %604 : vector<12x12xf32>
    %c133 = arith.constant 133 : index
    %606 = memref.load %arg1[%c133] : memref<400xf32, #tpu.memory_space<smem>>
    %607 = vector.broadcast %606 : f32 to vector<12x12xf32>
    %608 = arith.mulf %607, %601 : vector<12x12xf32>
    %609 = arith.addf %591, %608 : vector<12x12xf32>
    %c233 = arith.constant 233 : index
    %610 = memref.load %arg1[%c233] : memref<400xf32, #tpu.memory_space<smem>>
    %611 = vector.broadcast %610 : f32 to vector<12x12xf32>
    %612 = arith.mulf %611, %601 : vector<12x12xf32>
    %613 = arith.addf %595, %612 : vector<12x12xf32>
    %c333 = arith.constant 333 : index
    %614 = memref.load %arg1[%c333] : memref<400xf32, #tpu.memory_space<smem>>
    %615 = vector.broadcast %614 : f32 to vector<12x12xf32>
    %616 = arith.mulf %615, %601 : vector<12x12xf32>
    %617 = arith.addf %599, %616 : vector<12x12xf32>
    %c0_144 = arith.constant 0 : index
    %c1_145 = arith.constant 1 : index
    %c1_146 = arith.constant 1 : index
    %c4_147 = arith.constant 4 : index
    %618 = vector.load %arg2[%c0_144, %c1_145, %c1_146, %c4_147] : memref<1x4x16x16xf32, #tpu.memory_space<vmem>>, vector<1x1x12x12xf32>
    %619 = vector.shape_cast %618 : vector<1x1x12x12xf32> to vector<12x12xf32>
    %c34 = arith.constant 34 : index
    %620 = memref.load %arg1[%c34] : memref<400xf32, #tpu.memory_space<smem>>
    %621 = vector.broadcast %620 : f32 to vector<12x12xf32>
    %622 = arith.mulf %621, %619 : vector<12x12xf32>
    %623 = arith.addf %605, %622 : vector<12x12xf32>
    %c134 = arith.constant 134 : index
    %624 = memref.load %arg1[%c134] : memref<400xf32, #tpu.memory_space<smem>>
    %625 = vector.broadcast %624 : f32 to vector<12x12xf32>
    %626 = arith.mulf %625, %619 : vector<12x12xf32>
    %627 = arith.addf %609, %626 : vector<12x12xf32>
    %c234 = arith.constant 234 : index
    %628 = memref.load %arg1[%c234] : memref<400xf32, #tpu.memory_space<smem>>
    %629 = vector.broadcast %628 : f32 to vector<12x12xf32>
    %630 = arith.mulf %629, %619 : vector<12x12xf32>
    %631 = arith.addf %613, %630 : vector<12x12xf32>
    %c334 = arith.constant 334 : index
    %632 = memref.load %arg1[%c334] : memref<400xf32, #tpu.memory_space<smem>>
    %633 = vector.broadcast %632 : f32 to vector<12x12xf32>
    %634 = arith.mulf %633, %619 : vector<12x12xf32>
    %635 = arith.addf %617, %634 : vector<12x12xf32>
    %c0_148 = arith.constant 0 : index
    %c1_149 = arith.constant 1 : index
    %c2_150 = arith.constant 2 : index
    %c0_151 = arith.constant 0 : index
    %636 = vector.load %arg2[%c0_148, %c1_149, %c2_150, %c0_151] : memref<1x4x16x16xf32, #tpu.memory_space<vmem>>, vector<1x1x12x12xf32>
    %637 = vector.shape_cast %636 : vector<1x1x12x12xf32> to vector<12x12xf32>
    %c35 = arith.constant 35 : index
    %638 = memref.load %arg1[%c35] : memref<400xf32, #tpu.memory_space<smem>>
    %639 = vector.broadcast %638 : f32 to vector<12x12xf32>
    %640 = arith.mulf %639, %637 : vector<12x12xf32>
    %641 = arith.addf %623, %640 : vector<12x12xf32>
    %c135 = arith.constant 135 : index
    %642 = memref.load %arg1[%c135] : memref<400xf32, #tpu.memory_space<smem>>
    %643 = vector.broadcast %642 : f32 to vector<12x12xf32>
    %644 = arith.mulf %643, %637 : vector<12x12xf32>
    %645 = arith.addf %627, %644 : vector<12x12xf32>
    %c235 = arith.constant 235 : index
    %646 = memref.load %arg1[%c235] : memref<400xf32, #tpu.memory_space<smem>>
    %647 = vector.broadcast %646 : f32 to vector<12x12xf32>
    %648 = arith.mulf %647, %637 : vector<12x12xf32>
    %649 = arith.addf %631, %648 : vector<12x12xf32>
    %c335 = arith.constant 335 : index
    %650 = memref.load %arg1[%c335] : memref<400xf32, #tpu.memory_space<smem>>
    %651 = vector.broadcast %650 : f32 to vector<12x12xf32>
    %652 = arith.mulf %651, %637 : vector<12x12xf32>
    %653 = arith.addf %635, %652 : vector<12x12xf32>
    %c0_152 = arith.constant 0 : index
    %c1_153 = arith.constant 1 : index
    %c2_154 = arith.constant 2 : index
    %c1_155 = arith.constant 1 : index
    %654 = vector.load %arg2[%c0_152, %c1_153, %c2_154, %c1_155] : memref<1x4x16x16xf32, #tpu.memory_space<vmem>>, vector<1x1x12x12xf32>
    %655 = vector.shape_cast %654 : vector<1x1x12x12xf32> to vector<12x12xf32>
    %c36 = arith.constant 36 : index
    %656 = memref.load %arg1[%c36] : memref<400xf32, #tpu.memory_space<smem>>
    %657 = vector.broadcast %656 : f32 to vector<12x12xf32>
    %658 = arith.mulf %657, %655 : vector<12x12xf32>
    %659 = arith.addf %641, %658 : vector<12x12xf32>
    %c136 = arith.constant 136 : index
    %660 = memref.load %arg1[%c136] : memref<400xf32, #tpu.memory_space<smem>>
    %661 = vector.broadcast %660 : f32 to vector<12x12xf32>
    %662 = arith.mulf %661, %655 : vector<12x12xf32>
    %663 = arith.addf %645, %662 : vector<12x12xf32>
    %c236 = arith.constant 236 : index
    %664 = memref.load %arg1[%c236] : memref<400xf32, #tpu.memory_space<smem>>
    %665 = vector.broadcast %664 : f32 to vector<12x12xf32>
    %666 = arith.mulf %665, %655 : vector<12x12xf32>
    %667 = arith.addf %649, %666 : vector<12x12xf32>
    %c336 = arith.constant 336 : index
    %668 = memref.load %arg1[%c336] : memref<400xf32, #tpu.memory_space<smem>>
    %669 = vector.broadcast %668 : f32 to vector<12x12xf32>
    %670 = arith.mulf %669, %655 : vector<12x12xf32>
    %671 = arith.addf %653, %670 : vector<12x12xf32>
    %c0_156 = arith.constant 0 : index
    %c1_157 = arith.constant 1 : index
    %c2_158 = arith.constant 2 : index
    %c2_159 = arith.constant 2 : index
    %672 = vector.load %arg2[%c0_156, %c1_157, %c2_158, %c2_159] : memref<1x4x16x16xf32, #tpu.memory_space<vmem>>, vector<1x1x12x12xf32>
    %673 = vector.shape_cast %672 : vector<1x1x12x12xf32> to vector<12x12xf32>
    %c37 = arith.constant 37 : index
    %674 = memref.load %arg1[%c37] : memref<400xf32, #tpu.memory_space<smem>>
    %675 = vector.broadcast %674 : f32 to vector<12x12xf32>
    %676 = arith.mulf %675, %673 : vector<12x12xf32>
    %677 = arith.addf %659, %676 : vector<12x12xf32>
    %c137 = arith.constant 137 : index
    %678 = memref.load %arg1[%c137] : memref<400xf32, #tpu.memory_space<smem>>
    %679 = vector.broadcast %678 : f32 to vector<12x12xf32>
    %680 = arith.mulf %679, %673 : vector<12x12xf32>
    %681 = arith.addf %663, %680 : vector<12x12xf32>
    %c237 = arith.constant 237 : index
    %682 = memref.load %arg1[%c237] : memref<400xf32, #tpu.memory_space<smem>>
    %683 = vector.broadcast %682 : f32 to vector<12x12xf32>
    %684 = arith.mulf %683, %673 : vector<12x12xf32>
    %685 = arith.addf %667, %684 : vector<12x12xf32>
    %c337 = arith.constant 337 : index
    %686 = memref.load %arg1[%c337] : memref<400xf32, #tpu.memory_space<smem>>
    %687 = vector.broadcast %686 : f32 to vector<12x12xf32>
    %688 = arith.mulf %687, %673 : vector<12x12xf32>
    %689 = arith.addf %671, %688 : vector<12x12xf32>
    %c0_160 = arith.constant 0 : index
    %c1_161 = arith.constant 1 : index
    %c2_162 = arith.constant 2 : index
    %c3_163 = arith.constant 3 : index
    %690 = vector.load %arg2[%c0_160, %c1_161, %c2_162, %c3_163] : memref<1x4x16x16xf32, #tpu.memory_space<vmem>>, vector<1x1x12x12xf32>
    %691 = vector.shape_cast %690 : vector<1x1x12x12xf32> to vector<12x12xf32>
    %c38 = arith.constant 38 : index
    %692 = memref.load %arg1[%c38] : memref<400xf32, #tpu.memory_space<smem>>
    %693 = vector.broadcast %692 : f32 to vector<12x12xf32>
    %694 = arith.mulf %693, %691 : vector<12x12xf32>
    %695 = arith.addf %677, %694 : vector<12x12xf32>
    %c138 = arith.constant 138 : index
    %696 = memref.load %arg1[%c138] : memref<400xf32, #tpu.memory_space<smem>>
    %697 = vector.broadcast %696 : f32 to vector<12x12xf32>
    %698 = arith.mulf %697, %691 : vector<12x12xf32>
    %699 = arith.addf %681, %698 : vector<12x12xf32>
    %c238 = arith.constant 238 : index
    %700 = memref.load %arg1[%c238] : memref<400xf32, #tpu.memory_space<smem>>
    %701 = vector.broadcast %700 : f32 to vector<12x12xf32>
    %702 = arith.mulf %701, %691 : vector<12x12xf32>
    %703 = arith.addf %685, %702 : vector<12x12xf32>
    %c338 = arith.constant 338 : index
    %704 = memref.load %arg1[%c338] : memref<400xf32, #tpu.memory_space<smem>>
    %705 = vector.broadcast %704 : f32 to vector<12x12xf32>
    %706 = arith.mulf %705, %691 : vector<12x12xf32>
    %707 = arith.addf %689, %706 : vector<12x12xf32>
    %c0_164 = arith.constant 0 : index
    %c1_165 = arith.constant 1 : index
    %c2_166 = arith.constant 2 : index
    %c4_167 = arith.constant 4 : index
    %708 = vector.load %arg2[%c0_164, %c1_165, %c2_166, %c4_167] : memref<1x4x16x16xf32, #tpu.memory_space<vmem>>, vector<1x1x12x12xf32>
    %709 = vector.shape_cast %708 : vector<1x1x12x12xf32> to vector<12x12xf32>
    %c39 = arith.constant 39 : index
    %710 = memref.load %arg1[%c39] : memref<400xf32, #tpu.memory_space<smem>>
    %711 = vector.broadcast %710 : f32 to vector<12x12xf32>
    %712 = arith.mulf %711, %709 : vector<12x12xf32>
    %713 = arith.addf %695, %712 : vector<12x12xf32>
    %c139 = arith.constant 139 : index
    %714 = memref.load %arg1[%c139] : memref<400xf32, #tpu.memory_space<smem>>
    %715 = vector.broadcast %714 : f32 to vector<12x12xf32>
    %716 = arith.mulf %715, %709 : vector<12x12xf32>
    %717 = arith.addf %699, %716 : vector<12x12xf32>
    %c239 = arith.constant 239 : index
    %718 = memref.load %arg1[%c239] : memref<400xf32, #tpu.memory_space<smem>>
    %719 = vector.broadcast %718 : f32 to vector<12x12xf32>
    %720 = arith.mulf %719, %709 : vector<12x12xf32>
    %721 = arith.addf %703, %720 : vector<12x12xf32>
    %c339 = arith.constant 339 : index
    %722 = memref.load %arg1[%c339] : memref<400xf32, #tpu.memory_space<smem>>
    %723 = vector.broadcast %722 : f32 to vector<12x12xf32>
    %724 = arith.mulf %723, %709 : vector<12x12xf32>
    %725 = arith.addf %707, %724 : vector<12x12xf32>
    %c0_168 = arith.constant 0 : index
    %c1_169 = arith.constant 1 : index
    %c3_170 = arith.constant 3 : index
    %c0_171 = arith.constant 0 : index
    %726 = vector.load %arg2[%c0_168, %c1_169, %c3_170, %c0_171] : memref<1x4x16x16xf32, #tpu.memory_space<vmem>>, vector<1x1x12x12xf32>
    %727 = vector.shape_cast %726 : vector<1x1x12x12xf32> to vector<12x12xf32>
    %c40 = arith.constant 40 : index
    %728 = memref.load %arg1[%c40] : memref<400xf32, #tpu.memory_space<smem>>
    %729 = vector.broadcast %728 : f32 to vector<12x12xf32>
    %730 = arith.mulf %729, %727 : vector<12x12xf32>
    %731 = arith.addf %713, %730 : vector<12x12xf32>
    %c140 = arith.constant 140 : index
    %732 = memref.load %arg1[%c140] : memref<400xf32, #tpu.memory_space<smem>>
    %733 = vector.broadcast %732 : f32 to vector<12x12xf32>
    %734 = arith.mulf %733, %727 : vector<12x12xf32>
    %735 = arith.addf %717, %734 : vector<12x12xf32>
    %c240 = arith.constant 240 : index
    %736 = memref.load %arg1[%c240] : memref<400xf32, #tpu.memory_space<smem>>
    %737 = vector.broadcast %736 : f32 to vector<12x12xf32>
    %738 = arith.mulf %737, %727 : vector<12x12xf32>
    %739 = arith.addf %721, %738 : vector<12x12xf32>
    %c340 = arith.constant 340 : index
    %740 = memref.load %arg1[%c340] : memref<400xf32, #tpu.memory_space<smem>>
    %741 = vector.broadcast %740 : f32 to vector<12x12xf32>
    %742 = arith.mulf %741, %727 : vector<12x12xf32>
    %743 = arith.addf %725, %742 : vector<12x12xf32>
    %c0_172 = arith.constant 0 : index
    %c1_173 = arith.constant 1 : index
    %c3_174 = arith.constant 3 : index
    %c1_175 = arith.constant 1 : index
    %744 = vector.load %arg2[%c0_172, %c1_173, %c3_174, %c1_175] : memref<1x4x16x16xf32, #tpu.memory_space<vmem>>, vector<1x1x12x12xf32>
    %745 = vector.shape_cast %744 : vector<1x1x12x12xf32> to vector<12x12xf32>
    %c41 = arith.constant 41 : index
    %746 = memref.load %arg1[%c41] : memref<400xf32, #tpu.memory_space<smem>>
    %747 = vector.broadcast %746 : f32 to vector<12x12xf32>
    %748 = arith.mulf %747, %745 : vector<12x12xf32>
    %749 = arith.addf %731, %748 : vector<12x12xf32>
    %c141 = arith.constant 141 : index
    %750 = memref.load %arg1[%c141] : memref<400xf32, #tpu.memory_space<smem>>
    %751 = vector.broadcast %750 : f32 to vector<12x12xf32>
    %752 = arith.mulf %751, %745 : vector<12x12xf32>
    %753 = arith.addf %735, %752 : vector<12x12xf32>
    %c241 = arith.constant 241 : index
    %754 = memref.load %arg1[%c241] : memref<400xf32, #tpu.memory_space<smem>>
    %755 = vector.broadcast %754 : f32 to vector<12x12xf32>
    %756 = arith.mulf %755, %745 : vector<12x12xf32>
    %757 = arith.addf %739, %756 : vector<12x12xf32>
    %c341 = arith.constant 341 : index
    %758 = memref.load %arg1[%c341] : memref<400xf32, #tpu.memory_space<smem>>
    %759 = vector.broadcast %758 : f32 to vector<12x12xf32>
    %760 = arith.mulf %759, %745 : vector<12x12xf32>
    %761 = arith.addf %743, %760 : vector<12x12xf32>
    %c0_176 = arith.constant 0 : index
    %c1_177 = arith.constant 1 : index
    %c3_178 = arith.constant 3 : index
    %c2_179 = arith.constant 2 : index
    %762 = vector.load %arg2[%c0_176, %c1_177, %c3_178, %c2_179] : memref<1x4x16x16xf32, #tpu.memory_space<vmem>>, vector<1x1x12x12xf32>
    %763 = vector.shape_cast %762 : vector<1x1x12x12xf32> to vector<12x12xf32>
    %c42 = arith.constant 42 : index
    %764 = memref.load %arg1[%c42] : memref<400xf32, #tpu.memory_space<smem>>
    %765 = vector.broadcast %764 : f32 to vector<12x12xf32>
    %766 = arith.mulf %765, %763 : vector<12x12xf32>
    %767 = arith.addf %749, %766 : vector<12x12xf32>
    %c142 = arith.constant 142 : index
    %768 = memref.load %arg1[%c142] : memref<400xf32, #tpu.memory_space<smem>>
    %769 = vector.broadcast %768 : f32 to vector<12x12xf32>
    %770 = arith.mulf %769, %763 : vector<12x12xf32>
    %771 = arith.addf %753, %770 : vector<12x12xf32>
    %c242 = arith.constant 242 : index
    %772 = memref.load %arg1[%c242] : memref<400xf32, #tpu.memory_space<smem>>
    %773 = vector.broadcast %772 : f32 to vector<12x12xf32>
    %774 = arith.mulf %773, %763 : vector<12x12xf32>
    %775 = arith.addf %757, %774 : vector<12x12xf32>
    %c342 = arith.constant 342 : index
    %776 = memref.load %arg1[%c342] : memref<400xf32, #tpu.memory_space<smem>>
    %777 = vector.broadcast %776 : f32 to vector<12x12xf32>
    %778 = arith.mulf %777, %763 : vector<12x12xf32>
    %779 = arith.addf %761, %778 : vector<12x12xf32>
    %c0_180 = arith.constant 0 : index
    %c1_181 = arith.constant 1 : index
    %c3_182 = arith.constant 3 : index
    %c3_183 = arith.constant 3 : index
    %780 = vector.load %arg2[%c0_180, %c1_181, %c3_182, %c3_183] : memref<1x4x16x16xf32, #tpu.memory_space<vmem>>, vector<1x1x12x12xf32>
    %781 = vector.shape_cast %780 : vector<1x1x12x12xf32> to vector<12x12xf32>
    %c43 = arith.constant 43 : index
    %782 = memref.load %arg1[%c43] : memref<400xf32, #tpu.memory_space<smem>>
    %783 = vector.broadcast %782 : f32 to vector<12x12xf32>
    %784 = arith.mulf %783, %781 : vector<12x12xf32>
    %785 = arith.addf %767, %784 : vector<12x12xf32>
    %c143 = arith.constant 143 : index
    %786 = memref.load %arg1[%c143] : memref<400xf32, #tpu.memory_space<smem>>
    %787 = vector.broadcast %786 : f32 to vector<12x12xf32>
    %788 = arith.mulf %787, %781 : vector<12x12xf32>
    %789 = arith.addf %771, %788 : vector<12x12xf32>
    %c243 = arith.constant 243 : index
    %790 = memref.load %arg1[%c243] : memref<400xf32, #tpu.memory_space<smem>>
    %791 = vector.broadcast %790 : f32 to vector<12x12xf32>
    %792 = arith.mulf %791, %781 : vector<12x12xf32>
    %793 = arith.addf %775, %792 : vector<12x12xf32>
    %c343 = arith.constant 343 : index
    %794 = memref.load %arg1[%c343] : memref<400xf32, #tpu.memory_space<smem>>
    %795 = vector.broadcast %794 : f32 to vector<12x12xf32>
    %796 = arith.mulf %795, %781 : vector<12x12xf32>
    %797 = arith.addf %779, %796 : vector<12x12xf32>
    %c0_184 = arith.constant 0 : index
    %c1_185 = arith.constant 1 : index
    %c3_186 = arith.constant 3 : index
    %c4_187 = arith.constant 4 : index
    %798 = vector.load %arg2[%c0_184, %c1_185, %c3_186, %c4_187] : memref<1x4x16x16xf32, #tpu.memory_space<vmem>>, vector<1x1x12x12xf32>
    %799 = vector.shape_cast %798 : vector<1x1x12x12xf32> to vector<12x12xf32>
    %c44 = arith.constant 44 : index
    %800 = memref.load %arg1[%c44] : memref<400xf32, #tpu.memory_space<smem>>
    %801 = vector.broadcast %800 : f32 to vector<12x12xf32>
    %802 = arith.mulf %801, %799 : vector<12x12xf32>
    %803 = arith.addf %785, %802 : vector<12x12xf32>
    %c144 = arith.constant 144 : index
    %804 = memref.load %arg1[%c144] : memref<400xf32, #tpu.memory_space<smem>>
    %805 = vector.broadcast %804 : f32 to vector<12x12xf32>
    %806 = arith.mulf %805, %799 : vector<12x12xf32>
    %807 = arith.addf %789, %806 : vector<12x12xf32>
    %c244 = arith.constant 244 : index
    %808 = memref.load %arg1[%c244] : memref<400xf32, #tpu.memory_space<smem>>
    %809 = vector.broadcast %808 : f32 to vector<12x12xf32>
    %810 = arith.mulf %809, %799 : vector<12x12xf32>
    %811 = arith.addf %793, %810 : vector<12x12xf32>
    %c344 = arith.constant 344 : index
    %812 = memref.load %arg1[%c344] : memref<400xf32, #tpu.memory_space<smem>>
    %813 = vector.broadcast %812 : f32 to vector<12x12xf32>
    %814 = arith.mulf %813, %799 : vector<12x12xf32>
    %815 = arith.addf %797, %814 : vector<12x12xf32>
    %c0_188 = arith.constant 0 : index
    %c1_189 = arith.constant 1 : index
    %c4_190 = arith.constant 4 : index
    %c0_191 = arith.constant 0 : index
    %816 = vector.load %arg2[%c0_188, %c1_189, %c4_190, %c0_191] : memref<1x4x16x16xf32, #tpu.memory_space<vmem>>, vector<1x1x12x12xf32>
    %817 = vector.shape_cast %816 : vector<1x1x12x12xf32> to vector<12x12xf32>
    %c45 = arith.constant 45 : index
    %818 = memref.load %arg1[%c45] : memref<400xf32, #tpu.memory_space<smem>>
    %819 = vector.broadcast %818 : f32 to vector<12x12xf32>
    %820 = arith.mulf %819, %817 : vector<12x12xf32>
    %821 = arith.addf %803, %820 : vector<12x12xf32>
    %c145 = arith.constant 145 : index
    %822 = memref.load %arg1[%c145] : memref<400xf32, #tpu.memory_space<smem>>
    %823 = vector.broadcast %822 : f32 to vector<12x12xf32>
    %824 = arith.mulf %823, %817 : vector<12x12xf32>
    %825 = arith.addf %807, %824 : vector<12x12xf32>
    %c245 = arith.constant 245 : index
    %826 = memref.load %arg1[%c245] : memref<400xf32, #tpu.memory_space<smem>>
    %827 = vector.broadcast %826 : f32 to vector<12x12xf32>
    %828 = arith.mulf %827, %817 : vector<12x12xf32>
    %829 = arith.addf %811, %828 : vector<12x12xf32>
    %c345 = arith.constant 345 : index
    %830 = memref.load %arg1[%c345] : memref<400xf32, #tpu.memory_space<smem>>
    %831 = vector.broadcast %830 : f32 to vector<12x12xf32>
    %832 = arith.mulf %831, %817 : vector<12x12xf32>
    %833 = arith.addf %815, %832 : vector<12x12xf32>
    %c0_192 = arith.constant 0 : index
    %c1_193 = arith.constant 1 : index
    %c4_194 = arith.constant 4 : index
    %c1_195 = arith.constant 1 : index
    %834 = vector.load %arg2[%c0_192, %c1_193, %c4_194, %c1_195] : memref<1x4x16x16xf32, #tpu.memory_space<vmem>>, vector<1x1x12x12xf32>
    %835 = vector.shape_cast %834 : vector<1x1x12x12xf32> to vector<12x12xf32>
    %c46 = arith.constant 46 : index
    %836 = memref.load %arg1[%c46] : memref<400xf32, #tpu.memory_space<smem>>
    %837 = vector.broadcast %836 : f32 to vector<12x12xf32>
    %838 = arith.mulf %837, %835 : vector<12x12xf32>
    %839 = arith.addf %821, %838 : vector<12x12xf32>
    %c146 = arith.constant 146 : index
    %840 = memref.load %arg1[%c146] : memref<400xf32, #tpu.memory_space<smem>>
    %841 = vector.broadcast %840 : f32 to vector<12x12xf32>
    %842 = arith.mulf %841, %835 : vector<12x12xf32>
    %843 = arith.addf %825, %842 : vector<12x12xf32>
    %c246 = arith.constant 246 : index
    %844 = memref.load %arg1[%c246] : memref<400xf32, #tpu.memory_space<smem>>
    %845 = vector.broadcast %844 : f32 to vector<12x12xf32>
    %846 = arith.mulf %845, %835 : vector<12x12xf32>
    %847 = arith.addf %829, %846 : vector<12x12xf32>
    %c346 = arith.constant 346 : index
    %848 = memref.load %arg1[%c346] : memref<400xf32, #tpu.memory_space<smem>>
    %849 = vector.broadcast %848 : f32 to vector<12x12xf32>
    %850 = arith.mulf %849, %835 : vector<12x12xf32>
    %851 = arith.addf %833, %850 : vector<12x12xf32>
    %c0_196 = arith.constant 0 : index
    %c1_197 = arith.constant 1 : index
    %c4_198 = arith.constant 4 : index
    %c2_199 = arith.constant 2 : index
    %852 = vector.load %arg2[%c0_196, %c1_197, %c4_198, %c2_199] : memref<1x4x16x16xf32, #tpu.memory_space<vmem>>, vector<1x1x12x12xf32>
    %853 = vector.shape_cast %852 : vector<1x1x12x12xf32> to vector<12x12xf32>
    %c47 = arith.constant 47 : index
    %854 = memref.load %arg1[%c47] : memref<400xf32, #tpu.memory_space<smem>>
    %855 = vector.broadcast %854 : f32 to vector<12x12xf32>
    %856 = arith.mulf %855, %853 : vector<12x12xf32>
    %857 = arith.addf %839, %856 : vector<12x12xf32>
    %c147 = arith.constant 147 : index
    %858 = memref.load %arg1[%c147] : memref<400xf32, #tpu.memory_space<smem>>
    %859 = vector.broadcast %858 : f32 to vector<12x12xf32>
    %860 = arith.mulf %859, %853 : vector<12x12xf32>
    %861 = arith.addf %843, %860 : vector<12x12xf32>
    %c247 = arith.constant 247 : index
    %862 = memref.load %arg1[%c247] : memref<400xf32, #tpu.memory_space<smem>>
    %863 = vector.broadcast %862 : f32 to vector<12x12xf32>
    %864 = arith.mulf %863, %853 : vector<12x12xf32>
    %865 = arith.addf %847, %864 : vector<12x12xf32>
    %c347 = arith.constant 347 : index
    %866 = memref.load %arg1[%c347] : memref<400xf32, #tpu.memory_space<smem>>
    %867 = vector.broadcast %866 : f32 to vector<12x12xf32>
    %868 = arith.mulf %867, %853 : vector<12x12xf32>
    %869 = arith.addf %851, %868 : vector<12x12xf32>
    %c0_200 = arith.constant 0 : index
    %c1_201 = arith.constant 1 : index
    %c4_202 = arith.constant 4 : index
    %c3_203 = arith.constant 3 : index
    %870 = vector.load %arg2[%c0_200, %c1_201, %c4_202, %c3_203] : memref<1x4x16x16xf32, #tpu.memory_space<vmem>>, vector<1x1x12x12xf32>
    %871 = vector.shape_cast %870 : vector<1x1x12x12xf32> to vector<12x12xf32>
    %c48 = arith.constant 48 : index
    %872 = memref.load %arg1[%c48] : memref<400xf32, #tpu.memory_space<smem>>
    %873 = vector.broadcast %872 : f32 to vector<12x12xf32>
    %874 = arith.mulf %873, %871 : vector<12x12xf32>
    %875 = arith.addf %857, %874 : vector<12x12xf32>
    %c148 = arith.constant 148 : index
    %876 = memref.load %arg1[%c148] : memref<400xf32, #tpu.memory_space<smem>>
    %877 = vector.broadcast %876 : f32 to vector<12x12xf32>
    %878 = arith.mulf %877, %871 : vector<12x12xf32>
    %879 = arith.addf %861, %878 : vector<12x12xf32>
    %c248 = arith.constant 248 : index
    %880 = memref.load %arg1[%c248] : memref<400xf32, #tpu.memory_space<smem>>
    %881 = vector.broadcast %880 : f32 to vector<12x12xf32>
    %882 = arith.mulf %881, %871 : vector<12x12xf32>
    %883 = arith.addf %865, %882 : vector<12x12xf32>
    %c348 = arith.constant 348 : index
    %884 = memref.load %arg1[%c348] : memref<400xf32, #tpu.memory_space<smem>>
    %885 = vector.broadcast %884 : f32 to vector<12x12xf32>
    %886 = arith.mulf %885, %871 : vector<12x12xf32>
    %887 = arith.addf %869, %886 : vector<12x12xf32>
    %c0_204 = arith.constant 0 : index
    %c1_205 = arith.constant 1 : index
    %c4_206 = arith.constant 4 : index
    %c4_207 = arith.constant 4 : index
    %888 = vector.load %arg2[%c0_204, %c1_205, %c4_206, %c4_207] : memref<1x4x16x16xf32, #tpu.memory_space<vmem>>, vector<1x1x12x12xf32>
    %889 = vector.shape_cast %888 : vector<1x1x12x12xf32> to vector<12x12xf32>
    %c49 = arith.constant 49 : index
    %890 = memref.load %arg1[%c49] : memref<400xf32, #tpu.memory_space<smem>>
    %891 = vector.broadcast %890 : f32 to vector<12x12xf32>
    %892 = arith.mulf %891, %889 : vector<12x12xf32>
    %893 = arith.addf %875, %892 : vector<12x12xf32>
    %c149 = arith.constant 149 : index
    %894 = memref.load %arg1[%c149] : memref<400xf32, #tpu.memory_space<smem>>
    %895 = vector.broadcast %894 : f32 to vector<12x12xf32>
    %896 = arith.mulf %895, %889 : vector<12x12xf32>
    %897 = arith.addf %879, %896 : vector<12x12xf32>
    %c249 = arith.constant 249 : index
    %898 = memref.load %arg1[%c249] : memref<400xf32, #tpu.memory_space<smem>>
    %899 = vector.broadcast %898 : f32 to vector<12x12xf32>
    %900 = arith.mulf %899, %889 : vector<12x12xf32>
    %901 = arith.addf %883, %900 : vector<12x12xf32>
    %c349 = arith.constant 349 : index
    %902 = memref.load %arg1[%c349] : memref<400xf32, #tpu.memory_space<smem>>
    %903 = vector.broadcast %902 : f32 to vector<12x12xf32>
    %904 = arith.mulf %903, %889 : vector<12x12xf32>
    %905 = arith.addf %887, %904 : vector<12x12xf32>
    %c0_208 = arith.constant 0 : index
    %c2_209 = arith.constant 2 : index
    %c0_210 = arith.constant 0 : index
    %c0_211 = arith.constant 0 : index
    %906 = vector.load %arg2[%c0_208, %c2_209, %c0_210, %c0_211] : memref<1x4x16x16xf32, #tpu.memory_space<vmem>>, vector<1x1x12x12xf32>
    %907 = vector.shape_cast %906 : vector<1x1x12x12xf32> to vector<12x12xf32>
    %c50 = arith.constant 50 : index
    %908 = memref.load %arg1[%c50] : memref<400xf32, #tpu.memory_space<smem>>
    %909 = vector.broadcast %908 : f32 to vector<12x12xf32>
    %910 = arith.mulf %909, %907 : vector<12x12xf32>
    %911 = arith.addf %893, %910 : vector<12x12xf32>
    %c150 = arith.constant 150 : index
    %912 = memref.load %arg1[%c150] : memref<400xf32, #tpu.memory_space<smem>>
    %913 = vector.broadcast %912 : f32 to vector<12x12xf32>
    %914 = arith.mulf %913, %907 : vector<12x12xf32>
    %915 = arith.addf %897, %914 : vector<12x12xf32>
    %c250 = arith.constant 250 : index
    %916 = memref.load %arg1[%c250] : memref<400xf32, #tpu.memory_space<smem>>
    %917 = vector.broadcast %916 : f32 to vector<12x12xf32>
    %918 = arith.mulf %917, %907 : vector<12x12xf32>
    %919 = arith.addf %901, %918 : vector<12x12xf32>
    %c350 = arith.constant 350 : index
    %920 = memref.load %arg1[%c350] : memref<400xf32, #tpu.memory_space<smem>>
    %921 = vector.broadcast %920 : f32 to vector<12x12xf32>
    %922 = arith.mulf %921, %907 : vector<12x12xf32>
    %923 = arith.addf %905, %922 : vector<12x12xf32>
    %c0_212 = arith.constant 0 : index
    %c2_213 = arith.constant 2 : index
    %c0_214 = arith.constant 0 : index
    %c1_215 = arith.constant 1 : index
    %924 = vector.load %arg2[%c0_212, %c2_213, %c0_214, %c1_215] : memref<1x4x16x16xf32, #tpu.memory_space<vmem>>, vector<1x1x12x12xf32>
    %925 = vector.shape_cast %924 : vector<1x1x12x12xf32> to vector<12x12xf32>
    %c51 = arith.constant 51 : index
    %926 = memref.load %arg1[%c51] : memref<400xf32, #tpu.memory_space<smem>>
    %927 = vector.broadcast %926 : f32 to vector<12x12xf32>
    %928 = arith.mulf %927, %925 : vector<12x12xf32>
    %929 = arith.addf %911, %928 : vector<12x12xf32>
    %c151 = arith.constant 151 : index
    %930 = memref.load %arg1[%c151] : memref<400xf32, #tpu.memory_space<smem>>
    %931 = vector.broadcast %930 : f32 to vector<12x12xf32>
    %932 = arith.mulf %931, %925 : vector<12x12xf32>
    %933 = arith.addf %915, %932 : vector<12x12xf32>
    %c251 = arith.constant 251 : index
    %934 = memref.load %arg1[%c251] : memref<400xf32, #tpu.memory_space<smem>>
    %935 = vector.broadcast %934 : f32 to vector<12x12xf32>
    %936 = arith.mulf %935, %925 : vector<12x12xf32>
    %937 = arith.addf %919, %936 : vector<12x12xf32>
    %c351 = arith.constant 351 : index
    %938 = memref.load %arg1[%c351] : memref<400xf32, #tpu.memory_space<smem>>
    %939 = vector.broadcast %938 : f32 to vector<12x12xf32>
    %940 = arith.mulf %939, %925 : vector<12x12xf32>
    %941 = arith.addf %923, %940 : vector<12x12xf32>
    %c0_216 = arith.constant 0 : index
    %c2_217 = arith.constant 2 : index
    %c0_218 = arith.constant 0 : index
    %c2_219 = arith.constant 2 : index
    %942 = vector.load %arg2[%c0_216, %c2_217, %c0_218, %c2_219] : memref<1x4x16x16xf32, #tpu.memory_space<vmem>>, vector<1x1x12x12xf32>
    %943 = vector.shape_cast %942 : vector<1x1x12x12xf32> to vector<12x12xf32>
    %c52 = arith.constant 52 : index
    %944 = memref.load %arg1[%c52] : memref<400xf32, #tpu.memory_space<smem>>
    %945 = vector.broadcast %944 : f32 to vector<12x12xf32>
    %946 = arith.mulf %945, %943 : vector<12x12xf32>
    %947 = arith.addf %929, %946 : vector<12x12xf32>
    %c152 = arith.constant 152 : index
    %948 = memref.load %arg1[%c152] : memref<400xf32, #tpu.memory_space<smem>>
    %949 = vector.broadcast %948 : f32 to vector<12x12xf32>
    %950 = arith.mulf %949, %943 : vector<12x12xf32>
    %951 = arith.addf %933, %950 : vector<12x12xf32>
    %c252 = arith.constant 252 : index
    %952 = memref.load %arg1[%c252] : memref<400xf32, #tpu.memory_space<smem>>
    %953 = vector.broadcast %952 : f32 to vector<12x12xf32>
    %954 = arith.mulf %953, %943 : vector<12x12xf32>
    %955 = arith.addf %937, %954 : vector<12x12xf32>
    %c352 = arith.constant 352 : index
    %956 = memref.load %arg1[%c352] : memref<400xf32, #tpu.memory_space<smem>>
    %957 = vector.broadcast %956 : f32 to vector<12x12xf32>
    %958 = arith.mulf %957, %943 : vector<12x12xf32>
    %959 = arith.addf %941, %958 : vector<12x12xf32>
    %c0_220 = arith.constant 0 : index
    %c2_221 = arith.constant 2 : index
    %c0_222 = arith.constant 0 : index
    %c3_223 = arith.constant 3 : index
    %960 = vector.load %arg2[%c0_220, %c2_221, %c0_222, %c3_223] : memref<1x4x16x16xf32, #tpu.memory_space<vmem>>, vector<1x1x12x12xf32>
    %961 = vector.shape_cast %960 : vector<1x1x12x12xf32> to vector<12x12xf32>
    %c53 = arith.constant 53 : index
    %962 = memref.load %arg1[%c53] : memref<400xf32, #tpu.memory_space<smem>>
    %963 = vector.broadcast %962 : f32 to vector<12x12xf32>
    %964 = arith.mulf %963, %961 : vector<12x12xf32>
    %965 = arith.addf %947, %964 : vector<12x12xf32>
    %c153 = arith.constant 153 : index
    %966 = memref.load %arg1[%c153] : memref<400xf32, #tpu.memory_space<smem>>
    %967 = vector.broadcast %966 : f32 to vector<12x12xf32>
    %968 = arith.mulf %967, %961 : vector<12x12xf32>
    %969 = arith.addf %951, %968 : vector<12x12xf32>
    %c253 = arith.constant 253 : index
    %970 = memref.load %arg1[%c253] : memref<400xf32, #tpu.memory_space<smem>>
    %971 = vector.broadcast %970 : f32 to vector<12x12xf32>
    %972 = arith.mulf %971, %961 : vector<12x12xf32>
    %973 = arith.addf %955, %972 : vector<12x12xf32>
    %c353 = arith.constant 353 : index
    %974 = memref.load %arg1[%c353] : memref<400xf32, #tpu.memory_space<smem>>
    %975 = vector.broadcast %974 : f32 to vector<12x12xf32>
    %976 = arith.mulf %975, %961 : vector<12x12xf32>
    %977 = arith.addf %959, %976 : vector<12x12xf32>
    %c0_224 = arith.constant 0 : index
    %c2_225 = arith.constant 2 : index
    %c0_226 = arith.constant 0 : index
    %c4_227 = arith.constant 4 : index
    %978 = vector.load %arg2[%c0_224, %c2_225, %c0_226, %c4_227] : memref<1x4x16x16xf32, #tpu.memory_space<vmem>>, vector<1x1x12x12xf32>
    %979 = vector.shape_cast %978 : vector<1x1x12x12xf32> to vector<12x12xf32>
    %c54 = arith.constant 54 : index
    %980 = memref.load %arg1[%c54] : memref<400xf32, #tpu.memory_space<smem>>
    %981 = vector.broadcast %980 : f32 to vector<12x12xf32>
    %982 = arith.mulf %981, %979 : vector<12x12xf32>
    %983 = arith.addf %965, %982 : vector<12x12xf32>
    %c154 = arith.constant 154 : index
    %984 = memref.load %arg1[%c154] : memref<400xf32, #tpu.memory_space<smem>>
    %985 = vector.broadcast %984 : f32 to vector<12x12xf32>
    %986 = arith.mulf %985, %979 : vector<12x12xf32>
    %987 = arith.addf %969, %986 : vector<12x12xf32>
    %c254 = arith.constant 254 : index
    %988 = memref.load %arg1[%c254] : memref<400xf32, #tpu.memory_space<smem>>
    %989 = vector.broadcast %988 : f32 to vector<12x12xf32>
    %990 = arith.mulf %989, %979 : vector<12x12xf32>
    %991 = arith.addf %973, %990 : vector<12x12xf32>
    %c354 = arith.constant 354 : index
    %992 = memref.load %arg1[%c354] : memref<400xf32, #tpu.memory_space<smem>>
    %993 = vector.broadcast %992 : f32 to vector<12x12xf32>
    %994 = arith.mulf %993, %979 : vector<12x12xf32>
    %995 = arith.addf %977, %994 : vector<12x12xf32>
    %c0_228 = arith.constant 0 : index
    %c2_229 = arith.constant 2 : index
    %c1_230 = arith.constant 1 : index
    %c0_231 = arith.constant 0 : index
    %996 = vector.load %arg2[%c0_228, %c2_229, %c1_230, %c0_231] : memref<1x4x16x16xf32, #tpu.memory_space<vmem>>, vector<1x1x12x12xf32>
    %997 = vector.shape_cast %996 : vector<1x1x12x12xf32> to vector<12x12xf32>
    %c55 = arith.constant 55 : index
    %998 = memref.load %arg1[%c55] : memref<400xf32, #tpu.memory_space<smem>>
    %999 = vector.broadcast %998 : f32 to vector<12x12xf32>
    %1000 = arith.mulf %999, %997 : vector<12x12xf32>
    %1001 = arith.addf %983, %1000 : vector<12x12xf32>
    %c155 = arith.constant 155 : index
    %1002 = memref.load %arg1[%c155] : memref<400xf32, #tpu.memory_space<smem>>
    %1003 = vector.broadcast %1002 : f32 to vector<12x12xf32>
    %1004 = arith.mulf %1003, %997 : vector<12x12xf32>
    %1005 = arith.addf %987, %1004 : vector<12x12xf32>
    %c255 = arith.constant 255 : index
    %1006 = memref.load %arg1[%c255] : memref<400xf32, #tpu.memory_space<smem>>
    %1007 = vector.broadcast %1006 : f32 to vector<12x12xf32>
    %1008 = arith.mulf %1007, %997 : vector<12x12xf32>
    %1009 = arith.addf %991, %1008 : vector<12x12xf32>
    %c355 = arith.constant 355 : index
    %1010 = memref.load %arg1[%c355] : memref<400xf32, #tpu.memory_space<smem>>
    %1011 = vector.broadcast %1010 : f32 to vector<12x12xf32>
    %1012 = arith.mulf %1011, %997 : vector<12x12xf32>
    %1013 = arith.addf %995, %1012 : vector<12x12xf32>
    %c0_232 = arith.constant 0 : index
    %c2_233 = arith.constant 2 : index
    %c1_234 = arith.constant 1 : index
    %c1_235 = arith.constant 1 : index
    %1014 = vector.load %arg2[%c0_232, %c2_233, %c1_234, %c1_235] : memref<1x4x16x16xf32, #tpu.memory_space<vmem>>, vector<1x1x12x12xf32>
    %1015 = vector.shape_cast %1014 : vector<1x1x12x12xf32> to vector<12x12xf32>
    %c56 = arith.constant 56 : index
    %1016 = memref.load %arg1[%c56] : memref<400xf32, #tpu.memory_space<smem>>
    %1017 = vector.broadcast %1016 : f32 to vector<12x12xf32>
    %1018 = arith.mulf %1017, %1015 : vector<12x12xf32>
    %1019 = arith.addf %1001, %1018 : vector<12x12xf32>
    %c156 = arith.constant 156 : index
    %1020 = memref.load %arg1[%c156] : memref<400xf32, #tpu.memory_space<smem>>
    %1021 = vector.broadcast %1020 : f32 to vector<12x12xf32>
    %1022 = arith.mulf %1021, %1015 : vector<12x12xf32>
    %1023 = arith.addf %1005, %1022 : vector<12x12xf32>
    %c256 = arith.constant 256 : index
    %1024 = memref.load %arg1[%c256] : memref<400xf32, #tpu.memory_space<smem>>
    %1025 = vector.broadcast %1024 : f32 to vector<12x12xf32>
    %1026 = arith.mulf %1025, %1015 : vector<12x12xf32>
    %1027 = arith.addf %1009, %1026 : vector<12x12xf32>
    %c356 = arith.constant 356 : index
    %1028 = memref.load %arg1[%c356] : memref<400xf32, #tpu.memory_space<smem>>
    %1029 = vector.broadcast %1028 : f32 to vector<12x12xf32>
    %1030 = arith.mulf %1029, %1015 : vector<12x12xf32>
    %1031 = arith.addf %1013, %1030 : vector<12x12xf32>
    %c0_236 = arith.constant 0 : index
    %c2_237 = arith.constant 2 : index
    %c1_238 = arith.constant 1 : index
    %c2_239 = arith.constant 2 : index
    %1032 = vector.load %arg2[%c0_236, %c2_237, %c1_238, %c2_239] : memref<1x4x16x16xf32, #tpu.memory_space<vmem>>, vector<1x1x12x12xf32>
    %1033 = vector.shape_cast %1032 : vector<1x1x12x12xf32> to vector<12x12xf32>
    %c57 = arith.constant 57 : index
    %1034 = memref.load %arg1[%c57] : memref<400xf32, #tpu.memory_space<smem>>
    %1035 = vector.broadcast %1034 : f32 to vector<12x12xf32>
    %1036 = arith.mulf %1035, %1033 : vector<12x12xf32>
    %1037 = arith.addf %1019, %1036 : vector<12x12xf32>
    %c157 = arith.constant 157 : index
    %1038 = memref.load %arg1[%c157] : memref<400xf32, #tpu.memory_space<smem>>
    %1039 = vector.broadcast %1038 : f32 to vector<12x12xf32>
    %1040 = arith.mulf %1039, %1033 : vector<12x12xf32>
    %1041 = arith.addf %1023, %1040 : vector<12x12xf32>
    %c257 = arith.constant 257 : index
    %1042 = memref.load %arg1[%c257] : memref<400xf32, #tpu.memory_space<smem>>
    %1043 = vector.broadcast %1042 : f32 to vector<12x12xf32>
    %1044 = arith.mulf %1043, %1033 : vector<12x12xf32>
    %1045 = arith.addf %1027, %1044 : vector<12x12xf32>
    %c357 = arith.constant 357 : index
    %1046 = memref.load %arg1[%c357] : memref<400xf32, #tpu.memory_space<smem>>
    %1047 = vector.broadcast %1046 : f32 to vector<12x12xf32>
    %1048 = arith.mulf %1047, %1033 : vector<12x12xf32>
    %1049 = arith.addf %1031, %1048 : vector<12x12xf32>
    %c0_240 = arith.constant 0 : index
    %c2_241 = arith.constant 2 : index
    %c1_242 = arith.constant 1 : index
    %c3_243 = arith.constant 3 : index
    %1050 = vector.load %arg2[%c0_240, %c2_241, %c1_242, %c3_243] : memref<1x4x16x16xf32, #tpu.memory_space<vmem>>, vector<1x1x12x12xf32>
    %1051 = vector.shape_cast %1050 : vector<1x1x12x12xf32> to vector<12x12xf32>
    %c58 = arith.constant 58 : index
    %1052 = memref.load %arg1[%c58] : memref<400xf32, #tpu.memory_space<smem>>
    %1053 = vector.broadcast %1052 : f32 to vector<12x12xf32>
    %1054 = arith.mulf %1053, %1051 : vector<12x12xf32>
    %1055 = arith.addf %1037, %1054 : vector<12x12xf32>
    %c158 = arith.constant 158 : index
    %1056 = memref.load %arg1[%c158] : memref<400xf32, #tpu.memory_space<smem>>
    %1057 = vector.broadcast %1056 : f32 to vector<12x12xf32>
    %1058 = arith.mulf %1057, %1051 : vector<12x12xf32>
    %1059 = arith.addf %1041, %1058 : vector<12x12xf32>
    %c258 = arith.constant 258 : index
    %1060 = memref.load %arg1[%c258] : memref<400xf32, #tpu.memory_space<smem>>
    %1061 = vector.broadcast %1060 : f32 to vector<12x12xf32>
    %1062 = arith.mulf %1061, %1051 : vector<12x12xf32>
    %1063 = arith.addf %1045, %1062 : vector<12x12xf32>
    %c358 = arith.constant 358 : index
    %1064 = memref.load %arg1[%c358] : memref<400xf32, #tpu.memory_space<smem>>
    %1065 = vector.broadcast %1064 : f32 to vector<12x12xf32>
    %1066 = arith.mulf %1065, %1051 : vector<12x12xf32>
    %1067 = arith.addf %1049, %1066 : vector<12x12xf32>
    %c0_244 = arith.constant 0 : index
    %c2_245 = arith.constant 2 : index
    %c1_246 = arith.constant 1 : index
    %c4_247 = arith.constant 4 : index
    %1068 = vector.load %arg2[%c0_244, %c2_245, %c1_246, %c4_247] : memref<1x4x16x16xf32, #tpu.memory_space<vmem>>, vector<1x1x12x12xf32>
    %1069 = vector.shape_cast %1068 : vector<1x1x12x12xf32> to vector<12x12xf32>
    %c59 = arith.constant 59 : index
    %1070 = memref.load %arg1[%c59] : memref<400xf32, #tpu.memory_space<smem>>
    %1071 = vector.broadcast %1070 : f32 to vector<12x12xf32>
    %1072 = arith.mulf %1071, %1069 : vector<12x12xf32>
    %1073 = arith.addf %1055, %1072 : vector<12x12xf32>
    %c159 = arith.constant 159 : index
    %1074 = memref.load %arg1[%c159] : memref<400xf32, #tpu.memory_space<smem>>
    %1075 = vector.broadcast %1074 : f32 to vector<12x12xf32>
    %1076 = arith.mulf %1075, %1069 : vector<12x12xf32>
    %1077 = arith.addf %1059, %1076 : vector<12x12xf32>
    %c259 = arith.constant 259 : index
    %1078 = memref.load %arg1[%c259] : memref<400xf32, #tpu.memory_space<smem>>
    %1079 = vector.broadcast %1078 : f32 to vector<12x12xf32>
    %1080 = arith.mulf %1079, %1069 : vector<12x12xf32>
    %1081 = arith.addf %1063, %1080 : vector<12x12xf32>
    %c359 = arith.constant 359 : index
    %1082 = memref.load %arg1[%c359] : memref<400xf32, #tpu.memory_space<smem>>
    %1083 = vector.broadcast %1082 : f32 to vector<12x12xf32>
    %1084 = arith.mulf %1083, %1069 : vector<12x12xf32>
    %1085 = arith.addf %1067, %1084 : vector<12x12xf32>
    %c0_248 = arith.constant 0 : index
    %c2_249 = arith.constant 2 : index
    %c2_250 = arith.constant 2 : index
    %c0_251 = arith.constant 0 : index
    %1086 = vector.load %arg2[%c0_248, %c2_249, %c2_250, %c0_251] : memref<1x4x16x16xf32, #tpu.memory_space<vmem>>, vector<1x1x12x12xf32>
    %1087 = vector.shape_cast %1086 : vector<1x1x12x12xf32> to vector<12x12xf32>
    %c60 = arith.constant 60 : index
    %1088 = memref.load %arg1[%c60] : memref<400xf32, #tpu.memory_space<smem>>
    %1089 = vector.broadcast %1088 : f32 to vector<12x12xf32>
    %1090 = arith.mulf %1089, %1087 : vector<12x12xf32>
    %1091 = arith.addf %1073, %1090 : vector<12x12xf32>
    %c160 = arith.constant 160 : index
    %1092 = memref.load %arg1[%c160] : memref<400xf32, #tpu.memory_space<smem>>
    %1093 = vector.broadcast %1092 : f32 to vector<12x12xf32>
    %1094 = arith.mulf %1093, %1087 : vector<12x12xf32>
    %1095 = arith.addf %1077, %1094 : vector<12x12xf32>
    %c260 = arith.constant 260 : index
    %1096 = memref.load %arg1[%c260] : memref<400xf32, #tpu.memory_space<smem>>
    %1097 = vector.broadcast %1096 : f32 to vector<12x12xf32>
    %1098 = arith.mulf %1097, %1087 : vector<12x12xf32>
    %1099 = arith.addf %1081, %1098 : vector<12x12xf32>
    %c360 = arith.constant 360 : index
    %1100 = memref.load %arg1[%c360] : memref<400xf32, #tpu.memory_space<smem>>
    %1101 = vector.broadcast %1100 : f32 to vector<12x12xf32>
    %1102 = arith.mulf %1101, %1087 : vector<12x12xf32>
    %1103 = arith.addf %1085, %1102 : vector<12x12xf32>
    %c0_252 = arith.constant 0 : index
    %c2_253 = arith.constant 2 : index
    %c2_254 = arith.constant 2 : index
    %c1_255 = arith.constant 1 : index
    %1104 = vector.load %arg2[%c0_252, %c2_253, %c2_254, %c1_255] : memref<1x4x16x16xf32, #tpu.memory_space<vmem>>, vector<1x1x12x12xf32>
    %1105 = vector.shape_cast %1104 : vector<1x1x12x12xf32> to vector<12x12xf32>
    %c61 = arith.constant 61 : index
    %1106 = memref.load %arg1[%c61] : memref<400xf32, #tpu.memory_space<smem>>
    %1107 = vector.broadcast %1106 : f32 to vector<12x12xf32>
    %1108 = arith.mulf %1107, %1105 : vector<12x12xf32>
    %1109 = arith.addf %1091, %1108 : vector<12x12xf32>
    %c161 = arith.constant 161 : index
    %1110 = memref.load %arg1[%c161] : memref<400xf32, #tpu.memory_space<smem>>
    %1111 = vector.broadcast %1110 : f32 to vector<12x12xf32>
    %1112 = arith.mulf %1111, %1105 : vector<12x12xf32>
    %1113 = arith.addf %1095, %1112 : vector<12x12xf32>
    %c261 = arith.constant 261 : index
    %1114 = memref.load %arg1[%c261] : memref<400xf32, #tpu.memory_space<smem>>
    %1115 = vector.broadcast %1114 : f32 to vector<12x12xf32>
    %1116 = arith.mulf %1115, %1105 : vector<12x12xf32>
    %1117 = arith.addf %1099, %1116 : vector<12x12xf32>
    %c361 = arith.constant 361 : index
    %1118 = memref.load %arg1[%c361] : memref<400xf32, #tpu.memory_space<smem>>
    %1119 = vector.broadcast %1118 : f32 to vector<12x12xf32>
    %1120 = arith.mulf %1119, %1105 : vector<12x12xf32>
    %1121 = arith.addf %1103, %1120 : vector<12x12xf32>
    %c0_256 = arith.constant 0 : index
    %c2_257 = arith.constant 2 : index
    %c2_258 = arith.constant 2 : index
    %c2_259 = arith.constant 2 : index
    %1122 = vector.load %arg2[%c0_256, %c2_257, %c2_258, %c2_259] : memref<1x4x16x16xf32, #tpu.memory_space<vmem>>, vector<1x1x12x12xf32>
    %1123 = vector.shape_cast %1122 : vector<1x1x12x12xf32> to vector<12x12xf32>
    %c62 = arith.constant 62 : index
    %1124 = memref.load %arg1[%c62] : memref<400xf32, #tpu.memory_space<smem>>
    %1125 = vector.broadcast %1124 : f32 to vector<12x12xf32>
    %1126 = arith.mulf %1125, %1123 : vector<12x12xf32>
    %1127 = arith.addf %1109, %1126 : vector<12x12xf32>
    %c162 = arith.constant 162 : index
    %1128 = memref.load %arg1[%c162] : memref<400xf32, #tpu.memory_space<smem>>
    %1129 = vector.broadcast %1128 : f32 to vector<12x12xf32>
    %1130 = arith.mulf %1129, %1123 : vector<12x12xf32>
    %1131 = arith.addf %1113, %1130 : vector<12x12xf32>
    %c262 = arith.constant 262 : index
    %1132 = memref.load %arg1[%c262] : memref<400xf32, #tpu.memory_space<smem>>
    %1133 = vector.broadcast %1132 : f32 to vector<12x12xf32>
    %1134 = arith.mulf %1133, %1123 : vector<12x12xf32>
    %1135 = arith.addf %1117, %1134 : vector<12x12xf32>
    %c362 = arith.constant 362 : index
    %1136 = memref.load %arg1[%c362] : memref<400xf32, #tpu.memory_space<smem>>
    %1137 = vector.broadcast %1136 : f32 to vector<12x12xf32>
    %1138 = arith.mulf %1137, %1123 : vector<12x12xf32>
    %1139 = arith.addf %1121, %1138 : vector<12x12xf32>
    %c0_260 = arith.constant 0 : index
    %c2_261 = arith.constant 2 : index
    %c2_262 = arith.constant 2 : index
    %c3_263 = arith.constant 3 : index
    %1140 = vector.load %arg2[%c0_260, %c2_261, %c2_262, %c3_263] : memref<1x4x16x16xf32, #tpu.memory_space<vmem>>, vector<1x1x12x12xf32>
    %1141 = vector.shape_cast %1140 : vector<1x1x12x12xf32> to vector<12x12xf32>
    %c63 = arith.constant 63 : index
    %1142 = memref.load %arg1[%c63] : memref<400xf32, #tpu.memory_space<smem>>
    %1143 = vector.broadcast %1142 : f32 to vector<12x12xf32>
    %1144 = arith.mulf %1143, %1141 : vector<12x12xf32>
    %1145 = arith.addf %1127, %1144 : vector<12x12xf32>
    %c163 = arith.constant 163 : index
    %1146 = memref.load %arg1[%c163] : memref<400xf32, #tpu.memory_space<smem>>
    %1147 = vector.broadcast %1146 : f32 to vector<12x12xf32>
    %1148 = arith.mulf %1147, %1141 : vector<12x12xf32>
    %1149 = arith.addf %1131, %1148 : vector<12x12xf32>
    %c263 = arith.constant 263 : index
    %1150 = memref.load %arg1[%c263] : memref<400xf32, #tpu.memory_space<smem>>
    %1151 = vector.broadcast %1150 : f32 to vector<12x12xf32>
    %1152 = arith.mulf %1151, %1141 : vector<12x12xf32>
    %1153 = arith.addf %1135, %1152 : vector<12x12xf32>
    %c363 = arith.constant 363 : index
    %1154 = memref.load %arg1[%c363] : memref<400xf32, #tpu.memory_space<smem>>
    %1155 = vector.broadcast %1154 : f32 to vector<12x12xf32>
    %1156 = arith.mulf %1155, %1141 : vector<12x12xf32>
    %1157 = arith.addf %1139, %1156 : vector<12x12xf32>
    %c0_264 = arith.constant 0 : index
    %c2_265 = arith.constant 2 : index
    %c2_266 = arith.constant 2 : index
    %c4_267 = arith.constant 4 : index
    %1158 = vector.load %arg2[%c0_264, %c2_265, %c2_266, %c4_267] : memref<1x4x16x16xf32, #tpu.memory_space<vmem>>, vector<1x1x12x12xf32>
    %1159 = vector.shape_cast %1158 : vector<1x1x12x12xf32> to vector<12x12xf32>
    %c64 = arith.constant 64 : index
    %1160 = memref.load %arg1[%c64] : memref<400xf32, #tpu.memory_space<smem>>
    %1161 = vector.broadcast %1160 : f32 to vector<12x12xf32>
    %1162 = arith.mulf %1161, %1159 : vector<12x12xf32>
    %1163 = arith.addf %1145, %1162 : vector<12x12xf32>
    %c164 = arith.constant 164 : index
    %1164 = memref.load %arg1[%c164] : memref<400xf32, #tpu.memory_space<smem>>
    %1165 = vector.broadcast %1164 : f32 to vector<12x12xf32>
    %1166 = arith.mulf %1165, %1159 : vector<12x12xf32>
    %1167 = arith.addf %1149, %1166 : vector<12x12xf32>
    %c264 = arith.constant 264 : index
    %1168 = memref.load %arg1[%c264] : memref<400xf32, #tpu.memory_space<smem>>
    %1169 = vector.broadcast %1168 : f32 to vector<12x12xf32>
    %1170 = arith.mulf %1169, %1159 : vector<12x12xf32>
    %1171 = arith.addf %1153, %1170 : vector<12x12xf32>
    %c364 = arith.constant 364 : index
    %1172 = memref.load %arg1[%c364] : memref<400xf32, #tpu.memory_space<smem>>
    %1173 = vector.broadcast %1172 : f32 to vector<12x12xf32>
    %1174 = arith.mulf %1173, %1159 : vector<12x12xf32>
    %1175 = arith.addf %1157, %1174 : vector<12x12xf32>
    %c0_268 = arith.constant 0 : index
    %c2_269 = arith.constant 2 : index
    %c3_270 = arith.constant 3 : index
    %c0_271 = arith.constant 0 : index
    %1176 = vector.load %arg2[%c0_268, %c2_269, %c3_270, %c0_271] : memref<1x4x16x16xf32, #tpu.memory_space<vmem>>, vector<1x1x12x12xf32>
    %1177 = vector.shape_cast %1176 : vector<1x1x12x12xf32> to vector<12x12xf32>
    %c65 = arith.constant 65 : index
    %1178 = memref.load %arg1[%c65] : memref<400xf32, #tpu.memory_space<smem>>
    %1179 = vector.broadcast %1178 : f32 to vector<12x12xf32>
    %1180 = arith.mulf %1179, %1177 : vector<12x12xf32>
    %1181 = arith.addf %1163, %1180 : vector<12x12xf32>
    %c165 = arith.constant 165 : index
    %1182 = memref.load %arg1[%c165] : memref<400xf32, #tpu.memory_space<smem>>
    %1183 = vector.broadcast %1182 : f32 to vector<12x12xf32>
    %1184 = arith.mulf %1183, %1177 : vector<12x12xf32>
    %1185 = arith.addf %1167, %1184 : vector<12x12xf32>
    %c265 = arith.constant 265 : index
    %1186 = memref.load %arg1[%c265] : memref<400xf32, #tpu.memory_space<smem>>
    %1187 = vector.broadcast %1186 : f32 to vector<12x12xf32>
    %1188 = arith.mulf %1187, %1177 : vector<12x12xf32>
    %1189 = arith.addf %1171, %1188 : vector<12x12xf32>
    %c365 = arith.constant 365 : index
    %1190 = memref.load %arg1[%c365] : memref<400xf32, #tpu.memory_space<smem>>
    %1191 = vector.broadcast %1190 : f32 to vector<12x12xf32>
    %1192 = arith.mulf %1191, %1177 : vector<12x12xf32>
    %1193 = arith.addf %1175, %1192 : vector<12x12xf32>
    %c0_272 = arith.constant 0 : index
    %c2_273 = arith.constant 2 : index
    %c3_274 = arith.constant 3 : index
    %c1_275 = arith.constant 1 : index
    %1194 = vector.load %arg2[%c0_272, %c2_273, %c3_274, %c1_275] : memref<1x4x16x16xf32, #tpu.memory_space<vmem>>, vector<1x1x12x12xf32>
    %1195 = vector.shape_cast %1194 : vector<1x1x12x12xf32> to vector<12x12xf32>
    %c66 = arith.constant 66 : index
    %1196 = memref.load %arg1[%c66] : memref<400xf32, #tpu.memory_space<smem>>
    %1197 = vector.broadcast %1196 : f32 to vector<12x12xf32>
    %1198 = arith.mulf %1197, %1195 : vector<12x12xf32>
    %1199 = arith.addf %1181, %1198 : vector<12x12xf32>
    %c166 = arith.constant 166 : index
    %1200 = memref.load %arg1[%c166] : memref<400xf32, #tpu.memory_space<smem>>
    %1201 = vector.broadcast %1200 : f32 to vector<12x12xf32>
    %1202 = arith.mulf %1201, %1195 : vector<12x12xf32>
    %1203 = arith.addf %1185, %1202 : vector<12x12xf32>
    %c266 = arith.constant 266 : index
    %1204 = memref.load %arg1[%c266] : memref<400xf32, #tpu.memory_space<smem>>
    %1205 = vector.broadcast %1204 : f32 to vector<12x12xf32>
    %1206 = arith.mulf %1205, %1195 : vector<12x12xf32>
    %1207 = arith.addf %1189, %1206 : vector<12x12xf32>
    %c366 = arith.constant 366 : index
    %1208 = memref.load %arg1[%c366] : memref<400xf32, #tpu.memory_space<smem>>
    %1209 = vector.broadcast %1208 : f32 to vector<12x12xf32>
    %1210 = arith.mulf %1209, %1195 : vector<12x12xf32>
    %1211 = arith.addf %1193, %1210 : vector<12x12xf32>
    %c0_276 = arith.constant 0 : index
    %c2_277 = arith.constant 2 : index
    %c3_278 = arith.constant 3 : index
    %c2_279 = arith.constant 2 : index
    %1212 = vector.load %arg2[%c0_276, %c2_277, %c3_278, %c2_279] : memref<1x4x16x16xf32, #tpu.memory_space<vmem>>, vector<1x1x12x12xf32>
    %1213 = vector.shape_cast %1212 : vector<1x1x12x12xf32> to vector<12x12xf32>
    %c67 = arith.constant 67 : index
    %1214 = memref.load %arg1[%c67] : memref<400xf32, #tpu.memory_space<smem>>
    %1215 = vector.broadcast %1214 : f32 to vector<12x12xf32>
    %1216 = arith.mulf %1215, %1213 : vector<12x12xf32>
    %1217 = arith.addf %1199, %1216 : vector<12x12xf32>
    %c167 = arith.constant 167 : index
    %1218 = memref.load %arg1[%c167] : memref<400xf32, #tpu.memory_space<smem>>
    %1219 = vector.broadcast %1218 : f32 to vector<12x12xf32>
    %1220 = arith.mulf %1219, %1213 : vector<12x12xf32>
    %1221 = arith.addf %1203, %1220 : vector<12x12xf32>
    %c267 = arith.constant 267 : index
    %1222 = memref.load %arg1[%c267] : memref<400xf32, #tpu.memory_space<smem>>
    %1223 = vector.broadcast %1222 : f32 to vector<12x12xf32>
    %1224 = arith.mulf %1223, %1213 : vector<12x12xf32>
    %1225 = arith.addf %1207, %1224 : vector<12x12xf32>
    %c367 = arith.constant 367 : index
    %1226 = memref.load %arg1[%c367] : memref<400xf32, #tpu.memory_space<smem>>
    %1227 = vector.broadcast %1226 : f32 to vector<12x12xf32>
    %1228 = arith.mulf %1227, %1213 : vector<12x12xf32>
    %1229 = arith.addf %1211, %1228 : vector<12x12xf32>
    %c0_280 = arith.constant 0 : index
    %c2_281 = arith.constant 2 : index
    %c3_282 = arith.constant 3 : index
    %c3_283 = arith.constant 3 : index
    %1230 = vector.load %arg2[%c0_280, %c2_281, %c3_282, %c3_283] : memref<1x4x16x16xf32, #tpu.memory_space<vmem>>, vector<1x1x12x12xf32>
    %1231 = vector.shape_cast %1230 : vector<1x1x12x12xf32> to vector<12x12xf32>
    %c68 = arith.constant 68 : index
    %1232 = memref.load %arg1[%c68] : memref<400xf32, #tpu.memory_space<smem>>
    %1233 = vector.broadcast %1232 : f32 to vector<12x12xf32>
    %1234 = arith.mulf %1233, %1231 : vector<12x12xf32>
    %1235 = arith.addf %1217, %1234 : vector<12x12xf32>
    %c168 = arith.constant 168 : index
    %1236 = memref.load %arg1[%c168] : memref<400xf32, #tpu.memory_space<smem>>
    %1237 = vector.broadcast %1236 : f32 to vector<12x12xf32>
    %1238 = arith.mulf %1237, %1231 : vector<12x12xf32>
    %1239 = arith.addf %1221, %1238 : vector<12x12xf32>
    %c268 = arith.constant 268 : index
    %1240 = memref.load %arg1[%c268] : memref<400xf32, #tpu.memory_space<smem>>
    %1241 = vector.broadcast %1240 : f32 to vector<12x12xf32>
    %1242 = arith.mulf %1241, %1231 : vector<12x12xf32>
    %1243 = arith.addf %1225, %1242 : vector<12x12xf32>
    %c368 = arith.constant 368 : index
    %1244 = memref.load %arg1[%c368] : memref<400xf32, #tpu.memory_space<smem>>
    %1245 = vector.broadcast %1244 : f32 to vector<12x12xf32>
    %1246 = arith.mulf %1245, %1231 : vector<12x12xf32>
    %1247 = arith.addf %1229, %1246 : vector<12x12xf32>
    %c0_284 = arith.constant 0 : index
    %c2_285 = arith.constant 2 : index
    %c3_286 = arith.constant 3 : index
    %c4_287 = arith.constant 4 : index
    %1248 = vector.load %arg2[%c0_284, %c2_285, %c3_286, %c4_287] : memref<1x4x16x16xf32, #tpu.memory_space<vmem>>, vector<1x1x12x12xf32>
    %1249 = vector.shape_cast %1248 : vector<1x1x12x12xf32> to vector<12x12xf32>
    %c69 = arith.constant 69 : index
    %1250 = memref.load %arg1[%c69] : memref<400xf32, #tpu.memory_space<smem>>
    %1251 = vector.broadcast %1250 : f32 to vector<12x12xf32>
    %1252 = arith.mulf %1251, %1249 : vector<12x12xf32>
    %1253 = arith.addf %1235, %1252 : vector<12x12xf32>
    %c169 = arith.constant 169 : index
    %1254 = memref.load %arg1[%c169] : memref<400xf32, #tpu.memory_space<smem>>
    %1255 = vector.broadcast %1254 : f32 to vector<12x12xf32>
    %1256 = arith.mulf %1255, %1249 : vector<12x12xf32>
    %1257 = arith.addf %1239, %1256 : vector<12x12xf32>
    %c269 = arith.constant 269 : index
    %1258 = memref.load %arg1[%c269] : memref<400xf32, #tpu.memory_space<smem>>
    %1259 = vector.broadcast %1258 : f32 to vector<12x12xf32>
    %1260 = arith.mulf %1259, %1249 : vector<12x12xf32>
    %1261 = arith.addf %1243, %1260 : vector<12x12xf32>
    %c369 = arith.constant 369 : index
    %1262 = memref.load %arg1[%c369] : memref<400xf32, #tpu.memory_space<smem>>
    %1263 = vector.broadcast %1262 : f32 to vector<12x12xf32>
    %1264 = arith.mulf %1263, %1249 : vector<12x12xf32>
    %1265 = arith.addf %1247, %1264 : vector<12x12xf32>
    %c0_288 = arith.constant 0 : index
    %c2_289 = arith.constant 2 : index
    %c4_290 = arith.constant 4 : index
    %c0_291 = arith.constant 0 : index
    %1266 = vector.load %arg2[%c0_288, %c2_289, %c4_290, %c0_291] : memref<1x4x16x16xf32, #tpu.memory_space<vmem>>, vector<1x1x12x12xf32>
    %1267 = vector.shape_cast %1266 : vector<1x1x12x12xf32> to vector<12x12xf32>
    %c70 = arith.constant 70 : index
    %1268 = memref.load %arg1[%c70] : memref<400xf32, #tpu.memory_space<smem>>
    %1269 = vector.broadcast %1268 : f32 to vector<12x12xf32>
    %1270 = arith.mulf %1269, %1267 : vector<12x12xf32>
    %1271 = arith.addf %1253, %1270 : vector<12x12xf32>
    %c170 = arith.constant 170 : index
    %1272 = memref.load %arg1[%c170] : memref<400xf32, #tpu.memory_space<smem>>
    %1273 = vector.broadcast %1272 : f32 to vector<12x12xf32>
    %1274 = arith.mulf %1273, %1267 : vector<12x12xf32>
    %1275 = arith.addf %1257, %1274 : vector<12x12xf32>
    %c270 = arith.constant 270 : index
    %1276 = memref.load %arg1[%c270] : memref<400xf32, #tpu.memory_space<smem>>
    %1277 = vector.broadcast %1276 : f32 to vector<12x12xf32>
    %1278 = arith.mulf %1277, %1267 : vector<12x12xf32>
    %1279 = arith.addf %1261, %1278 : vector<12x12xf32>
    %c370 = arith.constant 370 : index
    %1280 = memref.load %arg1[%c370] : memref<400xf32, #tpu.memory_space<smem>>
    %1281 = vector.broadcast %1280 : f32 to vector<12x12xf32>
    %1282 = arith.mulf %1281, %1267 : vector<12x12xf32>
    %1283 = arith.addf %1265, %1282 : vector<12x12xf32>
    %c0_292 = arith.constant 0 : index
    %c2_293 = arith.constant 2 : index
    %c4_294 = arith.constant 4 : index
    %c1_295 = arith.constant 1 : index
    %1284 = vector.load %arg2[%c0_292, %c2_293, %c4_294, %c1_295] : memref<1x4x16x16xf32, #tpu.memory_space<vmem>>, vector<1x1x12x12xf32>
    %1285 = vector.shape_cast %1284 : vector<1x1x12x12xf32> to vector<12x12xf32>
    %c71 = arith.constant 71 : index
    %1286 = memref.load %arg1[%c71] : memref<400xf32, #tpu.memory_space<smem>>
    %1287 = vector.broadcast %1286 : f32 to vector<12x12xf32>
    %1288 = arith.mulf %1287, %1285 : vector<12x12xf32>
    %1289 = arith.addf %1271, %1288 : vector<12x12xf32>
    %c171 = arith.constant 171 : index
    %1290 = memref.load %arg1[%c171] : memref<400xf32, #tpu.memory_space<smem>>
    %1291 = vector.broadcast %1290 : f32 to vector<12x12xf32>
    %1292 = arith.mulf %1291, %1285 : vector<12x12xf32>
    %1293 = arith.addf %1275, %1292 : vector<12x12xf32>
    %c271 = arith.constant 271 : index
    %1294 = memref.load %arg1[%c271] : memref<400xf32, #tpu.memory_space<smem>>
    %1295 = vector.broadcast %1294 : f32 to vector<12x12xf32>
    %1296 = arith.mulf %1295, %1285 : vector<12x12xf32>
    %1297 = arith.addf %1279, %1296 : vector<12x12xf32>
    %c371 = arith.constant 371 : index
    %1298 = memref.load %arg1[%c371] : memref<400xf32, #tpu.memory_space<smem>>
    %1299 = vector.broadcast %1298 : f32 to vector<12x12xf32>
    %1300 = arith.mulf %1299, %1285 : vector<12x12xf32>
    %1301 = arith.addf %1283, %1300 : vector<12x12xf32>
    %c0_296 = arith.constant 0 : index
    %c2_297 = arith.constant 2 : index
    %c4_298 = arith.constant 4 : index
    %c2_299 = arith.constant 2 : index
    %1302 = vector.load %arg2[%c0_296, %c2_297, %c4_298, %c2_299] : memref<1x4x16x16xf32, #tpu.memory_space<vmem>>, vector<1x1x12x12xf32>
    %1303 = vector.shape_cast %1302 : vector<1x1x12x12xf32> to vector<12x12xf32>
    %c72 = arith.constant 72 : index
    %1304 = memref.load %arg1[%c72] : memref<400xf32, #tpu.memory_space<smem>>
    %1305 = vector.broadcast %1304 : f32 to vector<12x12xf32>
    %1306 = arith.mulf %1305, %1303 : vector<12x12xf32>
    %1307 = arith.addf %1289, %1306 : vector<12x12xf32>
    %c172 = arith.constant 172 : index
    %1308 = memref.load %arg1[%c172] : memref<400xf32, #tpu.memory_space<smem>>
    %1309 = vector.broadcast %1308 : f32 to vector<12x12xf32>
    %1310 = arith.mulf %1309, %1303 : vector<12x12xf32>
    %1311 = arith.addf %1293, %1310 : vector<12x12xf32>
    %c272 = arith.constant 272 : index
    %1312 = memref.load %arg1[%c272] : memref<400xf32, #tpu.memory_space<smem>>
    %1313 = vector.broadcast %1312 : f32 to vector<12x12xf32>
    %1314 = arith.mulf %1313, %1303 : vector<12x12xf32>
    %1315 = arith.addf %1297, %1314 : vector<12x12xf32>
    %c372 = arith.constant 372 : index
    %1316 = memref.load %arg1[%c372] : memref<400xf32, #tpu.memory_space<smem>>
    %1317 = vector.broadcast %1316 : f32 to vector<12x12xf32>
    %1318 = arith.mulf %1317, %1303 : vector<12x12xf32>
    %1319 = arith.addf %1301, %1318 : vector<12x12xf32>
    %c0_300 = arith.constant 0 : index
    %c2_301 = arith.constant 2 : index
    %c4_302 = arith.constant 4 : index
    %c3_303 = arith.constant 3 : index
    %1320 = vector.load %arg2[%c0_300, %c2_301, %c4_302, %c3_303] : memref<1x4x16x16xf32, #tpu.memory_space<vmem>>, vector<1x1x12x12xf32>
    %1321 = vector.shape_cast %1320 : vector<1x1x12x12xf32> to vector<12x12xf32>
    %c73 = arith.constant 73 : index
    %1322 = memref.load %arg1[%c73] : memref<400xf32, #tpu.memory_space<smem>>
    %1323 = vector.broadcast %1322 : f32 to vector<12x12xf32>
    %1324 = arith.mulf %1323, %1321 : vector<12x12xf32>
    %1325 = arith.addf %1307, %1324 : vector<12x12xf32>
    %c173 = arith.constant 173 : index
    %1326 = memref.load %arg1[%c173] : memref<400xf32, #tpu.memory_space<smem>>
    %1327 = vector.broadcast %1326 : f32 to vector<12x12xf32>
    %1328 = arith.mulf %1327, %1321 : vector<12x12xf32>
    %1329 = arith.addf %1311, %1328 : vector<12x12xf32>
    %c273 = arith.constant 273 : index
    %1330 = memref.load %arg1[%c273] : memref<400xf32, #tpu.memory_space<smem>>
    %1331 = vector.broadcast %1330 : f32 to vector<12x12xf32>
    %1332 = arith.mulf %1331, %1321 : vector<12x12xf32>
    %1333 = arith.addf %1315, %1332 : vector<12x12xf32>
    %c373 = arith.constant 373 : index
    %1334 = memref.load %arg1[%c373] : memref<400xf32, #tpu.memory_space<smem>>
    %1335 = vector.broadcast %1334 : f32 to vector<12x12xf32>
    %1336 = arith.mulf %1335, %1321 : vector<12x12xf32>
    %1337 = arith.addf %1319, %1336 : vector<12x12xf32>
    %c0_304 = arith.constant 0 : index
    %c2_305 = arith.constant 2 : index
    %c4_306 = arith.constant 4 : index
    %c4_307 = arith.constant 4 : index
    %1338 = vector.load %arg2[%c0_304, %c2_305, %c4_306, %c4_307] : memref<1x4x16x16xf32, #tpu.memory_space<vmem>>, vector<1x1x12x12xf32>
    %1339 = vector.shape_cast %1338 : vector<1x1x12x12xf32> to vector<12x12xf32>
    %c74 = arith.constant 74 : index
    %1340 = memref.load %arg1[%c74] : memref<400xf32, #tpu.memory_space<smem>>
    %1341 = vector.broadcast %1340 : f32 to vector<12x12xf32>
    %1342 = arith.mulf %1341, %1339 : vector<12x12xf32>
    %1343 = arith.addf %1325, %1342 : vector<12x12xf32>
    %c174 = arith.constant 174 : index
    %1344 = memref.load %arg1[%c174] : memref<400xf32, #tpu.memory_space<smem>>
    %1345 = vector.broadcast %1344 : f32 to vector<12x12xf32>
    %1346 = arith.mulf %1345, %1339 : vector<12x12xf32>
    %1347 = arith.addf %1329, %1346 : vector<12x12xf32>
    %c274 = arith.constant 274 : index
    %1348 = memref.load %arg1[%c274] : memref<400xf32, #tpu.memory_space<smem>>
    %1349 = vector.broadcast %1348 : f32 to vector<12x12xf32>
    %1350 = arith.mulf %1349, %1339 : vector<12x12xf32>
    %1351 = arith.addf %1333, %1350 : vector<12x12xf32>
    %c374 = arith.constant 374 : index
    %1352 = memref.load %arg1[%c374] : memref<400xf32, #tpu.memory_space<smem>>
    %1353 = vector.broadcast %1352 : f32 to vector<12x12xf32>
    %1354 = arith.mulf %1353, %1339 : vector<12x12xf32>
    %1355 = arith.addf %1337, %1354 : vector<12x12xf32>
    %c0_308 = arith.constant 0 : index
    %c3_309 = arith.constant 3 : index
    %c0_310 = arith.constant 0 : index
    %c0_311 = arith.constant 0 : index
    %1356 = vector.load %arg2[%c0_308, %c3_309, %c0_310, %c0_311] : memref<1x4x16x16xf32, #tpu.memory_space<vmem>>, vector<1x1x12x12xf32>
    %1357 = vector.shape_cast %1356 : vector<1x1x12x12xf32> to vector<12x12xf32>
    %c75 = arith.constant 75 : index
    %1358 = memref.load %arg1[%c75] : memref<400xf32, #tpu.memory_space<smem>>
    %1359 = vector.broadcast %1358 : f32 to vector<12x12xf32>
    %1360 = arith.mulf %1359, %1357 : vector<12x12xf32>
    %1361 = arith.addf %1343, %1360 : vector<12x12xf32>
    %c175 = arith.constant 175 : index
    %1362 = memref.load %arg1[%c175] : memref<400xf32, #tpu.memory_space<smem>>
    %1363 = vector.broadcast %1362 : f32 to vector<12x12xf32>
    %1364 = arith.mulf %1363, %1357 : vector<12x12xf32>
    %1365 = arith.addf %1347, %1364 : vector<12x12xf32>
    %c275 = arith.constant 275 : index
    %1366 = memref.load %arg1[%c275] : memref<400xf32, #tpu.memory_space<smem>>
    %1367 = vector.broadcast %1366 : f32 to vector<12x12xf32>
    %1368 = arith.mulf %1367, %1357 : vector<12x12xf32>
    %1369 = arith.addf %1351, %1368 : vector<12x12xf32>
    %c375 = arith.constant 375 : index
    %1370 = memref.load %arg1[%c375] : memref<400xf32, #tpu.memory_space<smem>>
    %1371 = vector.broadcast %1370 : f32 to vector<12x12xf32>
    %1372 = arith.mulf %1371, %1357 : vector<12x12xf32>
    %1373 = arith.addf %1355, %1372 : vector<12x12xf32>
    %c0_312 = arith.constant 0 : index
    %c3_313 = arith.constant 3 : index
    %c0_314 = arith.constant 0 : index
    %c1_315 = arith.constant 1 : index
    %1374 = vector.load %arg2[%c0_312, %c3_313, %c0_314, %c1_315] : memref<1x4x16x16xf32, #tpu.memory_space<vmem>>, vector<1x1x12x12xf32>
    %1375 = vector.shape_cast %1374 : vector<1x1x12x12xf32> to vector<12x12xf32>
    %c76 = arith.constant 76 : index
    %1376 = memref.load %arg1[%c76] : memref<400xf32, #tpu.memory_space<smem>>
    %1377 = vector.broadcast %1376 : f32 to vector<12x12xf32>
    %1378 = arith.mulf %1377, %1375 : vector<12x12xf32>
    %1379 = arith.addf %1361, %1378 : vector<12x12xf32>
    %c176 = arith.constant 176 : index
    %1380 = memref.load %arg1[%c176] : memref<400xf32, #tpu.memory_space<smem>>
    %1381 = vector.broadcast %1380 : f32 to vector<12x12xf32>
    %1382 = arith.mulf %1381, %1375 : vector<12x12xf32>
    %1383 = arith.addf %1365, %1382 : vector<12x12xf32>
    %c276 = arith.constant 276 : index
    %1384 = memref.load %arg1[%c276] : memref<400xf32, #tpu.memory_space<smem>>
    %1385 = vector.broadcast %1384 : f32 to vector<12x12xf32>
    %1386 = arith.mulf %1385, %1375 : vector<12x12xf32>
    %1387 = arith.addf %1369, %1386 : vector<12x12xf32>
    %c376 = arith.constant 376 : index
    %1388 = memref.load %arg1[%c376] : memref<400xf32, #tpu.memory_space<smem>>
    %1389 = vector.broadcast %1388 : f32 to vector<12x12xf32>
    %1390 = arith.mulf %1389, %1375 : vector<12x12xf32>
    %1391 = arith.addf %1373, %1390 : vector<12x12xf32>
    %c0_316 = arith.constant 0 : index
    %c3_317 = arith.constant 3 : index
    %c0_318 = arith.constant 0 : index
    %c2_319 = arith.constant 2 : index
    %1392 = vector.load %arg2[%c0_316, %c3_317, %c0_318, %c2_319] : memref<1x4x16x16xf32, #tpu.memory_space<vmem>>, vector<1x1x12x12xf32>
    %1393 = vector.shape_cast %1392 : vector<1x1x12x12xf32> to vector<12x12xf32>
    %c77 = arith.constant 77 : index
    %1394 = memref.load %arg1[%c77] : memref<400xf32, #tpu.memory_space<smem>>
    %1395 = vector.broadcast %1394 : f32 to vector<12x12xf32>
    %1396 = arith.mulf %1395, %1393 : vector<12x12xf32>
    %1397 = arith.addf %1379, %1396 : vector<12x12xf32>
    %c177 = arith.constant 177 : index
    %1398 = memref.load %arg1[%c177] : memref<400xf32, #tpu.memory_space<smem>>
    %1399 = vector.broadcast %1398 : f32 to vector<12x12xf32>
    %1400 = arith.mulf %1399, %1393 : vector<12x12xf32>
    %1401 = arith.addf %1383, %1400 : vector<12x12xf32>
    %c277 = arith.constant 277 : index
    %1402 = memref.load %arg1[%c277] : memref<400xf32, #tpu.memory_space<smem>>
    %1403 = vector.broadcast %1402 : f32 to vector<12x12xf32>
    %1404 = arith.mulf %1403, %1393 : vector<12x12xf32>
    %1405 = arith.addf %1387, %1404 : vector<12x12xf32>
    %c377 = arith.constant 377 : index
    %1406 = memref.load %arg1[%c377] : memref<400xf32, #tpu.memory_space<smem>>
    %1407 = vector.broadcast %1406 : f32 to vector<12x12xf32>
    %1408 = arith.mulf %1407, %1393 : vector<12x12xf32>
    %1409 = arith.addf %1391, %1408 : vector<12x12xf32>
    %c0_320 = arith.constant 0 : index
    %c3_321 = arith.constant 3 : index
    %c0_322 = arith.constant 0 : index
    %c3_323 = arith.constant 3 : index
    %1410 = vector.load %arg2[%c0_320, %c3_321, %c0_322, %c3_323] : memref<1x4x16x16xf32, #tpu.memory_space<vmem>>, vector<1x1x12x12xf32>
    %1411 = vector.shape_cast %1410 : vector<1x1x12x12xf32> to vector<12x12xf32>
    %c78 = arith.constant 78 : index
    %1412 = memref.load %arg1[%c78] : memref<400xf32, #tpu.memory_space<smem>>
    %1413 = vector.broadcast %1412 : f32 to vector<12x12xf32>
    %1414 = arith.mulf %1413, %1411 : vector<12x12xf32>
    %1415 = arith.addf %1397, %1414 : vector<12x12xf32>
    %c178 = arith.constant 178 : index
    %1416 = memref.load %arg1[%c178] : memref<400xf32, #tpu.memory_space<smem>>
    %1417 = vector.broadcast %1416 : f32 to vector<12x12xf32>
    %1418 = arith.mulf %1417, %1411 : vector<12x12xf32>
    %1419 = arith.addf %1401, %1418 : vector<12x12xf32>
    %c278 = arith.constant 278 : index
    %1420 = memref.load %arg1[%c278] : memref<400xf32, #tpu.memory_space<smem>>
    %1421 = vector.broadcast %1420 : f32 to vector<12x12xf32>
    %1422 = arith.mulf %1421, %1411 : vector<12x12xf32>
    %1423 = arith.addf %1405, %1422 : vector<12x12xf32>
    %c378 = arith.constant 378 : index
    %1424 = memref.load %arg1[%c378] : memref<400xf32, #tpu.memory_space<smem>>
    %1425 = vector.broadcast %1424 : f32 to vector<12x12xf32>
    %1426 = arith.mulf %1425, %1411 : vector<12x12xf32>
    %1427 = arith.addf %1409, %1426 : vector<12x12xf32>
    %c0_324 = arith.constant 0 : index
    %c3_325 = arith.constant 3 : index
    %c0_326 = arith.constant 0 : index
    %c4_327 = arith.constant 4 : index
    %1428 = vector.load %arg2[%c0_324, %c3_325, %c0_326, %c4_327] : memref<1x4x16x16xf32, #tpu.memory_space<vmem>>, vector<1x1x12x12xf32>
    %1429 = vector.shape_cast %1428 : vector<1x1x12x12xf32> to vector<12x12xf32>
    %c79 = arith.constant 79 : index
    %1430 = memref.load %arg1[%c79] : memref<400xf32, #tpu.memory_space<smem>>
    %1431 = vector.broadcast %1430 : f32 to vector<12x12xf32>
    %1432 = arith.mulf %1431, %1429 : vector<12x12xf32>
    %1433 = arith.addf %1415, %1432 : vector<12x12xf32>
    %c179 = arith.constant 179 : index
    %1434 = memref.load %arg1[%c179] : memref<400xf32, #tpu.memory_space<smem>>
    %1435 = vector.broadcast %1434 : f32 to vector<12x12xf32>
    %1436 = arith.mulf %1435, %1429 : vector<12x12xf32>
    %1437 = arith.addf %1419, %1436 : vector<12x12xf32>
    %c279 = arith.constant 279 : index
    %1438 = memref.load %arg1[%c279] : memref<400xf32, #tpu.memory_space<smem>>
    %1439 = vector.broadcast %1438 : f32 to vector<12x12xf32>
    %1440 = arith.mulf %1439, %1429 : vector<12x12xf32>
    %1441 = arith.addf %1423, %1440 : vector<12x12xf32>
    %c379 = arith.constant 379 : index
    %1442 = memref.load %arg1[%c379] : memref<400xf32, #tpu.memory_space<smem>>
    %1443 = vector.broadcast %1442 : f32 to vector<12x12xf32>
    %1444 = arith.mulf %1443, %1429 : vector<12x12xf32>
    %1445 = arith.addf %1427, %1444 : vector<12x12xf32>
    %c0_328 = arith.constant 0 : index
    %c3_329 = arith.constant 3 : index
    %c1_330 = arith.constant 1 : index
    %c0_331 = arith.constant 0 : index
    %1446 = vector.load %arg2[%c0_328, %c3_329, %c1_330, %c0_331] : memref<1x4x16x16xf32, #tpu.memory_space<vmem>>, vector<1x1x12x12xf32>
    %1447 = vector.shape_cast %1446 : vector<1x1x12x12xf32> to vector<12x12xf32>
    %c80 = arith.constant 80 : index
    %1448 = memref.load %arg1[%c80] : memref<400xf32, #tpu.memory_space<smem>>
    %1449 = vector.broadcast %1448 : f32 to vector<12x12xf32>
    %1450 = arith.mulf %1449, %1447 : vector<12x12xf32>
    %1451 = arith.addf %1433, %1450 : vector<12x12xf32>
    %c180 = arith.constant 180 : index
    %1452 = memref.load %arg1[%c180] : memref<400xf32, #tpu.memory_space<smem>>
    %1453 = vector.broadcast %1452 : f32 to vector<12x12xf32>
    %1454 = arith.mulf %1453, %1447 : vector<12x12xf32>
    %1455 = arith.addf %1437, %1454 : vector<12x12xf32>
    %c280 = arith.constant 280 : index
    %1456 = memref.load %arg1[%c280] : memref<400xf32, #tpu.memory_space<smem>>
    %1457 = vector.broadcast %1456 : f32 to vector<12x12xf32>
    %1458 = arith.mulf %1457, %1447 : vector<12x12xf32>
    %1459 = arith.addf %1441, %1458 : vector<12x12xf32>
    %c380 = arith.constant 380 : index
    %1460 = memref.load %arg1[%c380] : memref<400xf32, #tpu.memory_space<smem>>
    %1461 = vector.broadcast %1460 : f32 to vector<12x12xf32>
    %1462 = arith.mulf %1461, %1447 : vector<12x12xf32>
    %1463 = arith.addf %1445, %1462 : vector<12x12xf32>
    %c0_332 = arith.constant 0 : index
    %c3_333 = arith.constant 3 : index
    %c1_334 = arith.constant 1 : index
    %c1_335 = arith.constant 1 : index
    %1464 = vector.load %arg2[%c0_332, %c3_333, %c1_334, %c1_335] : memref<1x4x16x16xf32, #tpu.memory_space<vmem>>, vector<1x1x12x12xf32>
    %1465 = vector.shape_cast %1464 : vector<1x1x12x12xf32> to vector<12x12xf32>
    %c81 = arith.constant 81 : index
    %1466 = memref.load %arg1[%c81] : memref<400xf32, #tpu.memory_space<smem>>
    %1467 = vector.broadcast %1466 : f32 to vector<12x12xf32>
    %1468 = arith.mulf %1467, %1465 : vector<12x12xf32>
    %1469 = arith.addf %1451, %1468 : vector<12x12xf32>
    %c181 = arith.constant 181 : index
    %1470 = memref.load %arg1[%c181] : memref<400xf32, #tpu.memory_space<smem>>
    %1471 = vector.broadcast %1470 : f32 to vector<12x12xf32>
    %1472 = arith.mulf %1471, %1465 : vector<12x12xf32>
    %1473 = arith.addf %1455, %1472 : vector<12x12xf32>
    %c281 = arith.constant 281 : index
    %1474 = memref.load %arg1[%c281] : memref<400xf32, #tpu.memory_space<smem>>
    %1475 = vector.broadcast %1474 : f32 to vector<12x12xf32>
    %1476 = arith.mulf %1475, %1465 : vector<12x12xf32>
    %1477 = arith.addf %1459, %1476 : vector<12x12xf32>
    %c381 = arith.constant 381 : index
    %1478 = memref.load %arg1[%c381] : memref<400xf32, #tpu.memory_space<smem>>
    %1479 = vector.broadcast %1478 : f32 to vector<12x12xf32>
    %1480 = arith.mulf %1479, %1465 : vector<12x12xf32>
    %1481 = arith.addf %1463, %1480 : vector<12x12xf32>
    %c0_336 = arith.constant 0 : index
    %c3_337 = arith.constant 3 : index
    %c1_338 = arith.constant 1 : index
    %c2_339 = arith.constant 2 : index
    %1482 = vector.load %arg2[%c0_336, %c3_337, %c1_338, %c2_339] : memref<1x4x16x16xf32, #tpu.memory_space<vmem>>, vector<1x1x12x12xf32>
    %1483 = vector.shape_cast %1482 : vector<1x1x12x12xf32> to vector<12x12xf32>
    %c82 = arith.constant 82 : index
    %1484 = memref.load %arg1[%c82] : memref<400xf32, #tpu.memory_space<smem>>
    %1485 = vector.broadcast %1484 : f32 to vector<12x12xf32>
    %1486 = arith.mulf %1485, %1483 : vector<12x12xf32>
    %1487 = arith.addf %1469, %1486 : vector<12x12xf32>
    %c182 = arith.constant 182 : index
    %1488 = memref.load %arg1[%c182] : memref<400xf32, #tpu.memory_space<smem>>
    %1489 = vector.broadcast %1488 : f32 to vector<12x12xf32>
    %1490 = arith.mulf %1489, %1483 : vector<12x12xf32>
    %1491 = arith.addf %1473, %1490 : vector<12x12xf32>
    %c282 = arith.constant 282 : index
    %1492 = memref.load %arg1[%c282] : memref<400xf32, #tpu.memory_space<smem>>
    %1493 = vector.broadcast %1492 : f32 to vector<12x12xf32>
    %1494 = arith.mulf %1493, %1483 : vector<12x12xf32>
    %1495 = arith.addf %1477, %1494 : vector<12x12xf32>
    %c382 = arith.constant 382 : index
    %1496 = memref.load %arg1[%c382] : memref<400xf32, #tpu.memory_space<smem>>
    %1497 = vector.broadcast %1496 : f32 to vector<12x12xf32>
    %1498 = arith.mulf %1497, %1483 : vector<12x12xf32>
    %1499 = arith.addf %1481, %1498 : vector<12x12xf32>
    %c0_340 = arith.constant 0 : index
    %c3_341 = arith.constant 3 : index
    %c1_342 = arith.constant 1 : index
    %c3_343 = arith.constant 3 : index
    %1500 = vector.load %arg2[%c0_340, %c3_341, %c1_342, %c3_343] : memref<1x4x16x16xf32, #tpu.memory_space<vmem>>, vector<1x1x12x12xf32>
    %1501 = vector.shape_cast %1500 : vector<1x1x12x12xf32> to vector<12x12xf32>
    %c83 = arith.constant 83 : index
    %1502 = memref.load %arg1[%c83] : memref<400xf32, #tpu.memory_space<smem>>
    %1503 = vector.broadcast %1502 : f32 to vector<12x12xf32>
    %1504 = arith.mulf %1503, %1501 : vector<12x12xf32>
    %1505 = arith.addf %1487, %1504 : vector<12x12xf32>
    %c183 = arith.constant 183 : index
    %1506 = memref.load %arg1[%c183] : memref<400xf32, #tpu.memory_space<smem>>
    %1507 = vector.broadcast %1506 : f32 to vector<12x12xf32>
    %1508 = arith.mulf %1507, %1501 : vector<12x12xf32>
    %1509 = arith.addf %1491, %1508 : vector<12x12xf32>
    %c283 = arith.constant 283 : index
    %1510 = memref.load %arg1[%c283] : memref<400xf32, #tpu.memory_space<smem>>
    %1511 = vector.broadcast %1510 : f32 to vector<12x12xf32>
    %1512 = arith.mulf %1511, %1501 : vector<12x12xf32>
    %1513 = arith.addf %1495, %1512 : vector<12x12xf32>
    %c383 = arith.constant 383 : index
    %1514 = memref.load %arg1[%c383] : memref<400xf32, #tpu.memory_space<smem>>
    %1515 = vector.broadcast %1514 : f32 to vector<12x12xf32>
    %1516 = arith.mulf %1515, %1501 : vector<12x12xf32>
    %1517 = arith.addf %1499, %1516 : vector<12x12xf32>
    %c0_344 = arith.constant 0 : index
    %c3_345 = arith.constant 3 : index
    %c1_346 = arith.constant 1 : index
    %c4_347 = arith.constant 4 : index
    %1518 = vector.load %arg2[%c0_344, %c3_345, %c1_346, %c4_347] : memref<1x4x16x16xf32, #tpu.memory_space<vmem>>, vector<1x1x12x12xf32>
    %1519 = vector.shape_cast %1518 : vector<1x1x12x12xf32> to vector<12x12xf32>
    %c84 = arith.constant 84 : index
    %1520 = memref.load %arg1[%c84] : memref<400xf32, #tpu.memory_space<smem>>
    %1521 = vector.broadcast %1520 : f32 to vector<12x12xf32>
    %1522 = arith.mulf %1521, %1519 : vector<12x12xf32>
    %1523 = arith.addf %1505, %1522 : vector<12x12xf32>
    %c184 = arith.constant 184 : index
    %1524 = memref.load %arg1[%c184] : memref<400xf32, #tpu.memory_space<smem>>
    %1525 = vector.broadcast %1524 : f32 to vector<12x12xf32>
    %1526 = arith.mulf %1525, %1519 : vector<12x12xf32>
    %1527 = arith.addf %1509, %1526 : vector<12x12xf32>
    %c284 = arith.constant 284 : index
    %1528 = memref.load %arg1[%c284] : memref<400xf32, #tpu.memory_space<smem>>
    %1529 = vector.broadcast %1528 : f32 to vector<12x12xf32>
    %1530 = arith.mulf %1529, %1519 : vector<12x12xf32>
    %1531 = arith.addf %1513, %1530 : vector<12x12xf32>
    %c384 = arith.constant 384 : index
    %1532 = memref.load %arg1[%c384] : memref<400xf32, #tpu.memory_space<smem>>
    %1533 = vector.broadcast %1532 : f32 to vector<12x12xf32>
    %1534 = arith.mulf %1533, %1519 : vector<12x12xf32>
    %1535 = arith.addf %1517, %1534 : vector<12x12xf32>
    %c0_348 = arith.constant 0 : index
    %c3_349 = arith.constant 3 : index
    %c2_350 = arith.constant 2 : index
    %c0_351 = arith.constant 0 : index
    %1536 = vector.load %arg2[%c0_348, %c3_349, %c2_350, %c0_351] : memref<1x4x16x16xf32, #tpu.memory_space<vmem>>, vector<1x1x12x12xf32>
    %1537 = vector.shape_cast %1536 : vector<1x1x12x12xf32> to vector<12x12xf32>
    %c85 = arith.constant 85 : index
    %1538 = memref.load %arg1[%c85] : memref<400xf32, #tpu.memory_space<smem>>
    %1539 = vector.broadcast %1538 : f32 to vector<12x12xf32>
    %1540 = arith.mulf %1539, %1537 : vector<12x12xf32>
    %1541 = arith.addf %1523, %1540 : vector<12x12xf32>
    %c185 = arith.constant 185 : index
    %1542 = memref.load %arg1[%c185] : memref<400xf32, #tpu.memory_space<smem>>
    %1543 = vector.broadcast %1542 : f32 to vector<12x12xf32>
    %1544 = arith.mulf %1543, %1537 : vector<12x12xf32>
    %1545 = arith.addf %1527, %1544 : vector<12x12xf32>
    %c285 = arith.constant 285 : index
    %1546 = memref.load %arg1[%c285] : memref<400xf32, #tpu.memory_space<smem>>
    %1547 = vector.broadcast %1546 : f32 to vector<12x12xf32>
    %1548 = arith.mulf %1547, %1537 : vector<12x12xf32>
    %1549 = arith.addf %1531, %1548 : vector<12x12xf32>
    %c385 = arith.constant 385 : index
    %1550 = memref.load %arg1[%c385] : memref<400xf32, #tpu.memory_space<smem>>
    %1551 = vector.broadcast %1550 : f32 to vector<12x12xf32>
    %1552 = arith.mulf %1551, %1537 : vector<12x12xf32>
    %1553 = arith.addf %1535, %1552 : vector<12x12xf32>
    %c0_352 = arith.constant 0 : index
    %c3_353 = arith.constant 3 : index
    %c2_354 = arith.constant 2 : index
    %c1_355 = arith.constant 1 : index
    %1554 = vector.load %arg2[%c0_352, %c3_353, %c2_354, %c1_355] : memref<1x4x16x16xf32, #tpu.memory_space<vmem>>, vector<1x1x12x12xf32>
    %1555 = vector.shape_cast %1554 : vector<1x1x12x12xf32> to vector<12x12xf32>
    %c86 = arith.constant 86 : index
    %1556 = memref.load %arg1[%c86] : memref<400xf32, #tpu.memory_space<smem>>
    %1557 = vector.broadcast %1556 : f32 to vector<12x12xf32>
    %1558 = arith.mulf %1557, %1555 : vector<12x12xf32>
    %1559 = arith.addf %1541, %1558 : vector<12x12xf32>
    %c186 = arith.constant 186 : index
    %1560 = memref.load %arg1[%c186] : memref<400xf32, #tpu.memory_space<smem>>
    %1561 = vector.broadcast %1560 : f32 to vector<12x12xf32>
    %1562 = arith.mulf %1561, %1555 : vector<12x12xf32>
    %1563 = arith.addf %1545, %1562 : vector<12x12xf32>
    %c286 = arith.constant 286 : index
    %1564 = memref.load %arg1[%c286] : memref<400xf32, #tpu.memory_space<smem>>
    %1565 = vector.broadcast %1564 : f32 to vector<12x12xf32>
    %1566 = arith.mulf %1565, %1555 : vector<12x12xf32>
    %1567 = arith.addf %1549, %1566 : vector<12x12xf32>
    %c386 = arith.constant 386 : index
    %1568 = memref.load %arg1[%c386] : memref<400xf32, #tpu.memory_space<smem>>
    %1569 = vector.broadcast %1568 : f32 to vector<12x12xf32>
    %1570 = arith.mulf %1569, %1555 : vector<12x12xf32>
    %1571 = arith.addf %1553, %1570 : vector<12x12xf32>
    %c0_356 = arith.constant 0 : index
    %c3_357 = arith.constant 3 : index
    %c2_358 = arith.constant 2 : index
    %c2_359 = arith.constant 2 : index
    %1572 = vector.load %arg2[%c0_356, %c3_357, %c2_358, %c2_359] : memref<1x4x16x16xf32, #tpu.memory_space<vmem>>, vector<1x1x12x12xf32>
    %1573 = vector.shape_cast %1572 : vector<1x1x12x12xf32> to vector<12x12xf32>
    %c87 = arith.constant 87 : index
    %1574 = memref.load %arg1[%c87] : memref<400xf32, #tpu.memory_space<smem>>
    %1575 = vector.broadcast %1574 : f32 to vector<12x12xf32>
    %1576 = arith.mulf %1575, %1573 : vector<12x12xf32>
    %1577 = arith.addf %1559, %1576 : vector<12x12xf32>
    %c187 = arith.constant 187 : index
    %1578 = memref.load %arg1[%c187] : memref<400xf32, #tpu.memory_space<smem>>
    %1579 = vector.broadcast %1578 : f32 to vector<12x12xf32>
    %1580 = arith.mulf %1579, %1573 : vector<12x12xf32>
    %1581 = arith.addf %1563, %1580 : vector<12x12xf32>
    %c287 = arith.constant 287 : index
    %1582 = memref.load %arg1[%c287] : memref<400xf32, #tpu.memory_space<smem>>
    %1583 = vector.broadcast %1582 : f32 to vector<12x12xf32>
    %1584 = arith.mulf %1583, %1573 : vector<12x12xf32>
    %1585 = arith.addf %1567, %1584 : vector<12x12xf32>
    %c387 = arith.constant 387 : index
    %1586 = memref.load %arg1[%c387] : memref<400xf32, #tpu.memory_space<smem>>
    %1587 = vector.broadcast %1586 : f32 to vector<12x12xf32>
    %1588 = arith.mulf %1587, %1573 : vector<12x12xf32>
    %1589 = arith.addf %1571, %1588 : vector<12x12xf32>
    %c0_360 = arith.constant 0 : index
    %c3_361 = arith.constant 3 : index
    %c2_362 = arith.constant 2 : index
    %c3_363 = arith.constant 3 : index
    %1590 = vector.load %arg2[%c0_360, %c3_361, %c2_362, %c3_363] : memref<1x4x16x16xf32, #tpu.memory_space<vmem>>, vector<1x1x12x12xf32>
    %1591 = vector.shape_cast %1590 : vector<1x1x12x12xf32> to vector<12x12xf32>
    %c88 = arith.constant 88 : index
    %1592 = memref.load %arg1[%c88] : memref<400xf32, #tpu.memory_space<smem>>
    %1593 = vector.broadcast %1592 : f32 to vector<12x12xf32>
    %1594 = arith.mulf %1593, %1591 : vector<12x12xf32>
    %1595 = arith.addf %1577, %1594 : vector<12x12xf32>
    %c188 = arith.constant 188 : index
    %1596 = memref.load %arg1[%c188] : memref<400xf32, #tpu.memory_space<smem>>
    %1597 = vector.broadcast %1596 : f32 to vector<12x12xf32>
    %1598 = arith.mulf %1597, %1591 : vector<12x12xf32>
    %1599 = arith.addf %1581, %1598 : vector<12x12xf32>
    %c288 = arith.constant 288 : index
    %1600 = memref.load %arg1[%c288] : memref<400xf32, #tpu.memory_space<smem>>
    %1601 = vector.broadcast %1600 : f32 to vector<12x12xf32>
    %1602 = arith.mulf %1601, %1591 : vector<12x12xf32>
    %1603 = arith.addf %1585, %1602 : vector<12x12xf32>
    %c388 = arith.constant 388 : index
    %1604 = memref.load %arg1[%c388] : memref<400xf32, #tpu.memory_space<smem>>
    %1605 = vector.broadcast %1604 : f32 to vector<12x12xf32>
    %1606 = arith.mulf %1605, %1591 : vector<12x12xf32>
    %1607 = arith.addf %1589, %1606 : vector<12x12xf32>
    %c0_364 = arith.constant 0 : index
    %c3_365 = arith.constant 3 : index
    %c2_366 = arith.constant 2 : index
    %c4_367 = arith.constant 4 : index
    %1608 = vector.load %arg2[%c0_364, %c3_365, %c2_366, %c4_367] : memref<1x4x16x16xf32, #tpu.memory_space<vmem>>, vector<1x1x12x12xf32>
    %1609 = vector.shape_cast %1608 : vector<1x1x12x12xf32> to vector<12x12xf32>
    %c89 = arith.constant 89 : index
    %1610 = memref.load %arg1[%c89] : memref<400xf32, #tpu.memory_space<smem>>
    %1611 = vector.broadcast %1610 : f32 to vector<12x12xf32>
    %1612 = arith.mulf %1611, %1609 : vector<12x12xf32>
    %1613 = arith.addf %1595, %1612 : vector<12x12xf32>
    %c189 = arith.constant 189 : index
    %1614 = memref.load %arg1[%c189] : memref<400xf32, #tpu.memory_space<smem>>
    %1615 = vector.broadcast %1614 : f32 to vector<12x12xf32>
    %1616 = arith.mulf %1615, %1609 : vector<12x12xf32>
    %1617 = arith.addf %1599, %1616 : vector<12x12xf32>
    %c289 = arith.constant 289 : index
    %1618 = memref.load %arg1[%c289] : memref<400xf32, #tpu.memory_space<smem>>
    %1619 = vector.broadcast %1618 : f32 to vector<12x12xf32>
    %1620 = arith.mulf %1619, %1609 : vector<12x12xf32>
    %1621 = arith.addf %1603, %1620 : vector<12x12xf32>
    %c389 = arith.constant 389 : index
    %1622 = memref.load %arg1[%c389] : memref<400xf32, #tpu.memory_space<smem>>
    %1623 = vector.broadcast %1622 : f32 to vector<12x12xf32>
    %1624 = arith.mulf %1623, %1609 : vector<12x12xf32>
    %1625 = arith.addf %1607, %1624 : vector<12x12xf32>
    %c0_368 = arith.constant 0 : index
    %c3_369 = arith.constant 3 : index
    %c3_370 = arith.constant 3 : index
    %c0_371 = arith.constant 0 : index
    %1626 = vector.load %arg2[%c0_368, %c3_369, %c3_370, %c0_371] : memref<1x4x16x16xf32, #tpu.memory_space<vmem>>, vector<1x1x12x12xf32>
    %1627 = vector.shape_cast %1626 : vector<1x1x12x12xf32> to vector<12x12xf32>
    %c90 = arith.constant 90 : index
    %1628 = memref.load %arg1[%c90] : memref<400xf32, #tpu.memory_space<smem>>
    %1629 = vector.broadcast %1628 : f32 to vector<12x12xf32>
    %1630 = arith.mulf %1629, %1627 : vector<12x12xf32>
    %1631 = arith.addf %1613, %1630 : vector<12x12xf32>
    %c190 = arith.constant 190 : index
    %1632 = memref.load %arg1[%c190] : memref<400xf32, #tpu.memory_space<smem>>
    %1633 = vector.broadcast %1632 : f32 to vector<12x12xf32>
    %1634 = arith.mulf %1633, %1627 : vector<12x12xf32>
    %1635 = arith.addf %1617, %1634 : vector<12x12xf32>
    %c290 = arith.constant 290 : index
    %1636 = memref.load %arg1[%c290] : memref<400xf32, #tpu.memory_space<smem>>
    %1637 = vector.broadcast %1636 : f32 to vector<12x12xf32>
    %1638 = arith.mulf %1637, %1627 : vector<12x12xf32>
    %1639 = arith.addf %1621, %1638 : vector<12x12xf32>
    %c390 = arith.constant 390 : index
    %1640 = memref.load %arg1[%c390] : memref<400xf32, #tpu.memory_space<smem>>
    %1641 = vector.broadcast %1640 : f32 to vector<12x12xf32>
    %1642 = arith.mulf %1641, %1627 : vector<12x12xf32>
    %1643 = arith.addf %1625, %1642 : vector<12x12xf32>
    %c0_372 = arith.constant 0 : index
    %c3_373 = arith.constant 3 : index
    %c3_374 = arith.constant 3 : index
    %c1_375 = arith.constant 1 : index
    %1644 = vector.load %arg2[%c0_372, %c3_373, %c3_374, %c1_375] : memref<1x4x16x16xf32, #tpu.memory_space<vmem>>, vector<1x1x12x12xf32>
    %1645 = vector.shape_cast %1644 : vector<1x1x12x12xf32> to vector<12x12xf32>
    %c91 = arith.constant 91 : index
    %1646 = memref.load %arg1[%c91] : memref<400xf32, #tpu.memory_space<smem>>
    %1647 = vector.broadcast %1646 : f32 to vector<12x12xf32>
    %1648 = arith.mulf %1647, %1645 : vector<12x12xf32>
    %1649 = arith.addf %1631, %1648 : vector<12x12xf32>
    %c191 = arith.constant 191 : index
    %1650 = memref.load %arg1[%c191] : memref<400xf32, #tpu.memory_space<smem>>
    %1651 = vector.broadcast %1650 : f32 to vector<12x12xf32>
    %1652 = arith.mulf %1651, %1645 : vector<12x12xf32>
    %1653 = arith.addf %1635, %1652 : vector<12x12xf32>
    %c291 = arith.constant 291 : index
    %1654 = memref.load %arg1[%c291] : memref<400xf32, #tpu.memory_space<smem>>
    %1655 = vector.broadcast %1654 : f32 to vector<12x12xf32>
    %1656 = arith.mulf %1655, %1645 : vector<12x12xf32>
    %1657 = arith.addf %1639, %1656 : vector<12x12xf32>
    %c391 = arith.constant 391 : index
    %1658 = memref.load %arg1[%c391] : memref<400xf32, #tpu.memory_space<smem>>
    %1659 = vector.broadcast %1658 : f32 to vector<12x12xf32>
    %1660 = arith.mulf %1659, %1645 : vector<12x12xf32>
    %1661 = arith.addf %1643, %1660 : vector<12x12xf32>
    %c0_376 = arith.constant 0 : index
    %c3_377 = arith.constant 3 : index
    %c3_378 = arith.constant 3 : index
    %c2_379 = arith.constant 2 : index
    %1662 = vector.load %arg2[%c0_376, %c3_377, %c3_378, %c2_379] : memref<1x4x16x16xf32, #tpu.memory_space<vmem>>, vector<1x1x12x12xf32>
    %1663 = vector.shape_cast %1662 : vector<1x1x12x12xf32> to vector<12x12xf32>
    %c92 = arith.constant 92 : index
    %1664 = memref.load %arg1[%c92] : memref<400xf32, #tpu.memory_space<smem>>
    %1665 = vector.broadcast %1664 : f32 to vector<12x12xf32>
    %1666 = arith.mulf %1665, %1663 : vector<12x12xf32>
    %1667 = arith.addf %1649, %1666 : vector<12x12xf32>
    %c192 = arith.constant 192 : index
    %1668 = memref.load %arg1[%c192] : memref<400xf32, #tpu.memory_space<smem>>
    %1669 = vector.broadcast %1668 : f32 to vector<12x12xf32>
    %1670 = arith.mulf %1669, %1663 : vector<12x12xf32>
    %1671 = arith.addf %1653, %1670 : vector<12x12xf32>
    %c292 = arith.constant 292 : index
    %1672 = memref.load %arg1[%c292] : memref<400xf32, #tpu.memory_space<smem>>
    %1673 = vector.broadcast %1672 : f32 to vector<12x12xf32>
    %1674 = arith.mulf %1673, %1663 : vector<12x12xf32>
    %1675 = arith.addf %1657, %1674 : vector<12x12xf32>
    %c392 = arith.constant 392 : index
    %1676 = memref.load %arg1[%c392] : memref<400xf32, #tpu.memory_space<smem>>
    %1677 = vector.broadcast %1676 : f32 to vector<12x12xf32>
    %1678 = arith.mulf %1677, %1663 : vector<12x12xf32>
    %1679 = arith.addf %1661, %1678 : vector<12x12xf32>
    %c0_380 = arith.constant 0 : index
    %c3_381 = arith.constant 3 : index
    %c3_382 = arith.constant 3 : index
    %c3_383 = arith.constant 3 : index
    %1680 = vector.load %arg2[%c0_380, %c3_381, %c3_382, %c3_383] : memref<1x4x16x16xf32, #tpu.memory_space<vmem>>, vector<1x1x12x12xf32>
    %1681 = vector.shape_cast %1680 : vector<1x1x12x12xf32> to vector<12x12xf32>
    %c93 = arith.constant 93 : index
    %1682 = memref.load %arg1[%c93] : memref<400xf32, #tpu.memory_space<smem>>
    %1683 = vector.broadcast %1682 : f32 to vector<12x12xf32>
    %1684 = arith.mulf %1683, %1681 : vector<12x12xf32>
    %1685 = arith.addf %1667, %1684 : vector<12x12xf32>
    %c193 = arith.constant 193 : index
    %1686 = memref.load %arg1[%c193] : memref<400xf32, #tpu.memory_space<smem>>
    %1687 = vector.broadcast %1686 : f32 to vector<12x12xf32>
    %1688 = arith.mulf %1687, %1681 : vector<12x12xf32>
    %1689 = arith.addf %1671, %1688 : vector<12x12xf32>
    %c293 = arith.constant 293 : index
    %1690 = memref.load %arg1[%c293] : memref<400xf32, #tpu.memory_space<smem>>
    %1691 = vector.broadcast %1690 : f32 to vector<12x12xf32>
    %1692 = arith.mulf %1691, %1681 : vector<12x12xf32>
    %1693 = arith.addf %1675, %1692 : vector<12x12xf32>
    %c393 = arith.constant 393 : index
    %1694 = memref.load %arg1[%c393] : memref<400xf32, #tpu.memory_space<smem>>
    %1695 = vector.broadcast %1694 : f32 to vector<12x12xf32>
    %1696 = arith.mulf %1695, %1681 : vector<12x12xf32>
    %1697 = arith.addf %1679, %1696 : vector<12x12xf32>
    %c0_384 = arith.constant 0 : index
    %c3_385 = arith.constant 3 : index
    %c3_386 = arith.constant 3 : index
    %c4_387 = arith.constant 4 : index
    %1698 = vector.load %arg2[%c0_384, %c3_385, %c3_386, %c4_387] : memref<1x4x16x16xf32, #tpu.memory_space<vmem>>, vector<1x1x12x12xf32>
    %1699 = vector.shape_cast %1698 : vector<1x1x12x12xf32> to vector<12x12xf32>
    %c94 = arith.constant 94 : index
    %1700 = memref.load %arg1[%c94] : memref<400xf32, #tpu.memory_space<smem>>
    %1701 = vector.broadcast %1700 : f32 to vector<12x12xf32>
    %1702 = arith.mulf %1701, %1699 : vector<12x12xf32>
    %1703 = arith.addf %1685, %1702 : vector<12x12xf32>
    %c194 = arith.constant 194 : index
    %1704 = memref.load %arg1[%c194] : memref<400xf32, #tpu.memory_space<smem>>
    %1705 = vector.broadcast %1704 : f32 to vector<12x12xf32>
    %1706 = arith.mulf %1705, %1699 : vector<12x12xf32>
    %1707 = arith.addf %1689, %1706 : vector<12x12xf32>
    %c294 = arith.constant 294 : index
    %1708 = memref.load %arg1[%c294] : memref<400xf32, #tpu.memory_space<smem>>
    %1709 = vector.broadcast %1708 : f32 to vector<12x12xf32>
    %1710 = arith.mulf %1709, %1699 : vector<12x12xf32>
    %1711 = arith.addf %1693, %1710 : vector<12x12xf32>
    %c394 = arith.constant 394 : index
    %1712 = memref.load %arg1[%c394] : memref<400xf32, #tpu.memory_space<smem>>
    %1713 = vector.broadcast %1712 : f32 to vector<12x12xf32>
    %1714 = arith.mulf %1713, %1699 : vector<12x12xf32>
    %1715 = arith.addf %1697, %1714 : vector<12x12xf32>
    %c0_388 = arith.constant 0 : index
    %c3_389 = arith.constant 3 : index
    %c4_390 = arith.constant 4 : index
    %c0_391 = arith.constant 0 : index
    %1716 = vector.load %arg2[%c0_388, %c3_389, %c4_390, %c0_391] : memref<1x4x16x16xf32, #tpu.memory_space<vmem>>, vector<1x1x12x12xf32>
    %1717 = vector.shape_cast %1716 : vector<1x1x12x12xf32> to vector<12x12xf32>
    %c95 = arith.constant 95 : index
    %1718 = memref.load %arg1[%c95] : memref<400xf32, #tpu.memory_space<smem>>
    %1719 = vector.broadcast %1718 : f32 to vector<12x12xf32>
    %1720 = arith.mulf %1719, %1717 : vector<12x12xf32>
    %1721 = arith.addf %1703, %1720 : vector<12x12xf32>
    %c195 = arith.constant 195 : index
    %1722 = memref.load %arg1[%c195] : memref<400xf32, #tpu.memory_space<smem>>
    %1723 = vector.broadcast %1722 : f32 to vector<12x12xf32>
    %1724 = arith.mulf %1723, %1717 : vector<12x12xf32>
    %1725 = arith.addf %1707, %1724 : vector<12x12xf32>
    %c295 = arith.constant 295 : index
    %1726 = memref.load %arg1[%c295] : memref<400xf32, #tpu.memory_space<smem>>
    %1727 = vector.broadcast %1726 : f32 to vector<12x12xf32>
    %1728 = arith.mulf %1727, %1717 : vector<12x12xf32>
    %1729 = arith.addf %1711, %1728 : vector<12x12xf32>
    %c395 = arith.constant 395 : index
    %1730 = memref.load %arg1[%c395] : memref<400xf32, #tpu.memory_space<smem>>
    %1731 = vector.broadcast %1730 : f32 to vector<12x12xf32>
    %1732 = arith.mulf %1731, %1717 : vector<12x12xf32>
    %1733 = arith.addf %1715, %1732 : vector<12x12xf32>
    %c0_392 = arith.constant 0 : index
    %c3_393 = arith.constant 3 : index
    %c4_394 = arith.constant 4 : index
    %c1_395 = arith.constant 1 : index
    %1734 = vector.load %arg2[%c0_392, %c3_393, %c4_394, %c1_395] : memref<1x4x16x16xf32, #tpu.memory_space<vmem>>, vector<1x1x12x12xf32>
    %1735 = vector.shape_cast %1734 : vector<1x1x12x12xf32> to vector<12x12xf32>
    %c96 = arith.constant 96 : index
    %1736 = memref.load %arg1[%c96] : memref<400xf32, #tpu.memory_space<smem>>
    %1737 = vector.broadcast %1736 : f32 to vector<12x12xf32>
    %1738 = arith.mulf %1737, %1735 : vector<12x12xf32>
    %1739 = arith.addf %1721, %1738 : vector<12x12xf32>
    %c196 = arith.constant 196 : index
    %1740 = memref.load %arg1[%c196] : memref<400xf32, #tpu.memory_space<smem>>
    %1741 = vector.broadcast %1740 : f32 to vector<12x12xf32>
    %1742 = arith.mulf %1741, %1735 : vector<12x12xf32>
    %1743 = arith.addf %1725, %1742 : vector<12x12xf32>
    %c296 = arith.constant 296 : index
    %1744 = memref.load %arg1[%c296] : memref<400xf32, #tpu.memory_space<smem>>
    %1745 = vector.broadcast %1744 : f32 to vector<12x12xf32>
    %1746 = arith.mulf %1745, %1735 : vector<12x12xf32>
    %1747 = arith.addf %1729, %1746 : vector<12x12xf32>
    %c396 = arith.constant 396 : index
    %1748 = memref.load %arg1[%c396] : memref<400xf32, #tpu.memory_space<smem>>
    %1749 = vector.broadcast %1748 : f32 to vector<12x12xf32>
    %1750 = arith.mulf %1749, %1735 : vector<12x12xf32>
    %1751 = arith.addf %1733, %1750 : vector<12x12xf32>
    %c0_396 = arith.constant 0 : index
    %c3_397 = arith.constant 3 : index
    %c4_398 = arith.constant 4 : index
    %c2_399 = arith.constant 2 : index
    %1752 = vector.load %arg2[%c0_396, %c3_397, %c4_398, %c2_399] : memref<1x4x16x16xf32, #tpu.memory_space<vmem>>, vector<1x1x12x12xf32>
    %1753 = vector.shape_cast %1752 : vector<1x1x12x12xf32> to vector<12x12xf32>
    %c97 = arith.constant 97 : index
    %1754 = memref.load %arg1[%c97] : memref<400xf32, #tpu.memory_space<smem>>
    %1755 = vector.broadcast %1754 : f32 to vector<12x12xf32>
    %1756 = arith.mulf %1755, %1753 : vector<12x12xf32>
    %1757 = arith.addf %1739, %1756 : vector<12x12xf32>
    %c197 = arith.constant 197 : index
    %1758 = memref.load %arg1[%c197] : memref<400xf32, #tpu.memory_space<smem>>
    %1759 = vector.broadcast %1758 : f32 to vector<12x12xf32>
    %1760 = arith.mulf %1759, %1753 : vector<12x12xf32>
    %1761 = arith.addf %1743, %1760 : vector<12x12xf32>
    %c297 = arith.constant 297 : index
    %1762 = memref.load %arg1[%c297] : memref<400xf32, #tpu.memory_space<smem>>
    %1763 = vector.broadcast %1762 : f32 to vector<12x12xf32>
    %1764 = arith.mulf %1763, %1753 : vector<12x12xf32>
    %1765 = arith.addf %1747, %1764 : vector<12x12xf32>
    %c397 = arith.constant 397 : index
    %1766 = memref.load %arg1[%c397] : memref<400xf32, #tpu.memory_space<smem>>
    %1767 = vector.broadcast %1766 : f32 to vector<12x12xf32>
    %1768 = arith.mulf %1767, %1753 : vector<12x12xf32>
    %1769 = arith.addf %1751, %1768 : vector<12x12xf32>
    %c0_400 = arith.constant 0 : index
    %c3_401 = arith.constant 3 : index
    %c4_402 = arith.constant 4 : index
    %c3_403 = arith.constant 3 : index
    %1770 = vector.load %arg2[%c0_400, %c3_401, %c4_402, %c3_403] : memref<1x4x16x16xf32, #tpu.memory_space<vmem>>, vector<1x1x12x12xf32>
    %1771 = vector.shape_cast %1770 : vector<1x1x12x12xf32> to vector<12x12xf32>
    %c98 = arith.constant 98 : index
    %1772 = memref.load %arg1[%c98] : memref<400xf32, #tpu.memory_space<smem>>
    %1773 = vector.broadcast %1772 : f32 to vector<12x12xf32>
    %1774 = arith.mulf %1773, %1771 : vector<12x12xf32>
    %1775 = arith.addf %1757, %1774 : vector<12x12xf32>
    %c198 = arith.constant 198 : index
    %1776 = memref.load %arg1[%c198] : memref<400xf32, #tpu.memory_space<smem>>
    %1777 = vector.broadcast %1776 : f32 to vector<12x12xf32>
    %1778 = arith.mulf %1777, %1771 : vector<12x12xf32>
    %1779 = arith.addf %1761, %1778 : vector<12x12xf32>
    %c298 = arith.constant 298 : index
    %1780 = memref.load %arg1[%c298] : memref<400xf32, #tpu.memory_space<smem>>
    %1781 = vector.broadcast %1780 : f32 to vector<12x12xf32>
    %1782 = arith.mulf %1781, %1771 : vector<12x12xf32>
    %1783 = arith.addf %1765, %1782 : vector<12x12xf32>
    %c398 = arith.constant 398 : index
    %1784 = memref.load %arg1[%c398] : memref<400xf32, #tpu.memory_space<smem>>
    %1785 = vector.broadcast %1784 : f32 to vector<12x12xf32>
    %1786 = arith.mulf %1785, %1771 : vector<12x12xf32>
    %1787 = arith.addf %1769, %1786 : vector<12x12xf32>
    %c0_404 = arith.constant 0 : index
    %c3_405 = arith.constant 3 : index
    %c4_406 = arith.constant 4 : index
    %c4_407 = arith.constant 4 : index
    %1788 = vector.load %arg2[%c0_404, %c3_405, %c4_406, %c4_407] : memref<1x4x16x16xf32, #tpu.memory_space<vmem>>, vector<1x1x12x12xf32>
    %1789 = vector.shape_cast %1788 : vector<1x1x12x12xf32> to vector<12x12xf32>
    %c99 = arith.constant 99 : index
    %1790 = memref.load %arg1[%c99] : memref<400xf32, #tpu.memory_space<smem>>
    %1791 = vector.broadcast %1790 : f32 to vector<12x12xf32>
    %1792 = arith.mulf %1791, %1789 : vector<12x12xf32>
    %1793 = arith.addf %1775, %1792 : vector<12x12xf32>
    %c199 = arith.constant 199 : index
    %1794 = memref.load %arg1[%c199] : memref<400xf32, #tpu.memory_space<smem>>
    %1795 = vector.broadcast %1794 : f32 to vector<12x12xf32>
    %1796 = arith.mulf %1795, %1789 : vector<12x12xf32>
    %1797 = arith.addf %1779, %1796 : vector<12x12xf32>
    %c299 = arith.constant 299 : index
    %1798 = memref.load %arg1[%c299] : memref<400xf32, #tpu.memory_space<smem>>
    %1799 = vector.broadcast %1798 : f32 to vector<12x12xf32>
    %1800 = arith.mulf %1799, %1789 : vector<12x12xf32>
    %1801 = arith.addf %1783, %1800 : vector<12x12xf32>
    %c399 = arith.constant 399 : index
    %1802 = memref.load %arg1[%c399] : memref<400xf32, #tpu.memory_space<smem>>
    %1803 = vector.broadcast %1802 : f32 to vector<12x12xf32>
    %1804 = arith.mulf %1803, %1789 : vector<12x12xf32>
    %1805 = arith.addf %1787, %1804 : vector<12x12xf32>
    %c0_408 = arith.constant 0 : index
    %c0_409 = arith.constant 0 : index
    %c2_410 = arith.constant 2 : index
    %c2_411 = arith.constant 2 : index
    %1806 = vector.load %arg3[%c0_408, %c0_409, %c2_410, %c2_411] : memref<1x4x16x16xf32, #tpu.memory_space<vmem>>, vector<1x1x12x12xf32>
    %1807 = vector.shape_cast %1806 : vector<1x1x12x12xf32> to vector<12x12xf32>
    %1808 = vector.shape_cast %1793 : vector<12x12xf32> to vector<1x1x12x12xf32>
    tpu.vector_store %arg3[%c0_408, %c0_409, %c2_410, %c2_411], %1808 {strides = array<i32>} : memref<1x4x16x16xf32, #tpu.memory_space<vmem>>, vector<1x1x12x12xf32>,
    %c0_412 = arith.constant 0 : index
    %c1_413 = arith.constant 1 : index
    %c2_414 = arith.constant 2 : index
    %c2_415 = arith.constant 2 : index
    %1809 = vector.load %arg3[%c0_412, %c1_413, %c2_414, %c2_415] : memref<1x4x16x16xf32, #tpu.memory_space<vmem>>, vector<1x1x12x12xf32>
    %1810 = vector.shape_cast %1809 : vector<1x1x12x12xf32> to vector<12x12xf32>
    %1811 = vector.shape_cast %1797 : vector<12x12xf32> to vector<1x1x12x12xf32>
    tpu.vector_store %arg3[%c0_412, %c1_413, %c2_414, %c2_415], %1811 {strides = array<i32>} : memref<1x4x16x16xf32, #tpu.memory_space<vmem>>, vector<1x1x12x12xf32>,
    %c0_416 = arith.constant 0 : index
    %c2_417 = arith.constant 2 : index
    %c2_418 = arith.constant 2 : index
    %c2_419 = arith.constant 2 : index
    %1812 = vector.load %arg3[%c0_416, %c2_417, %c2_418, %c2_419] : memref<1x4x16x16xf32, #tpu.memory_space<vmem>>, vector<1x1x12x12xf32>
    %1813 = vector.shape_cast %1812 : vector<1x1x12x12xf32> to vector<12x12xf32>
    %1814 = vector.shape_cast %1801 : vector<12x12xf32> to vector<1x1x12x12xf32>
    tpu.vector_store %arg3[%c0_416, %c2_417, %c2_418, %c2_419], %1814 {strides = array<i32>} : memref<1x4x16x16xf32, #tpu.memory_space<vmem>>, vector<1x1x12x12xf32>,
    %c0_420 = arith.constant 0 : index
    %c3_421 = arith.constant 3 : index
    %c2_422 = arith.constant 2 : index
    %c2_423 = arith.constant 2 : index
    %1815 = vector.load %arg3[%c0_420, %c3_421, %c2_422, %c2_423] : memref<1x4x16x16xf32, #tpu.memory_space<vmem>>, vector<1x1x12x12xf32>
    %1816 = vector.shape_cast %1815 : vector<1x1x12x12xf32> to vector<12x12xf32>
    %1817 = vector.shape_cast %1805 : vector<12x12xf32> to vector<1x1x12x12xf32>
    tpu.vector_store %arg3[%c0_420, %c3_421, %c2_422, %c2_423], %1817 {strides = array<i32>} : memref<1x4x16x16xf32, #tpu.memory_space<vmem>>, vector<1x1x12x12xf32>,
    return
  }
  func.func @transform_0(%arg0: i32) -> i32 {
    %c0_i32 = arith.constant 0 : i32
    %c0_i32_0 = arith.constant 0 : i32
    return %c0_i32 : i32
  }
  func.func @transform_1(%arg0: i32) -> (i32, i32, i32, i32) {
    %c0_i32 = arith.constant 0 : i32
    %c0_i32_0 = arith.constant 0 : i32
    %c0_i32_1 = arith.constant 0 : i32
    %c0_i32_2 = arith.constant 0 : i32
    return %arg0, %c0_i32, %c0_i32_0, %c0_i32_1 : i32, i32, i32, i32
  }
  func.func @transform_2(%arg0: i32) -> (i32, i32, i32, i32) {
    %c0_i32 = arith.constant 0 : i32
    %c0_i32_0 = arith.constant 0 : i32
    %c0_i32_1 = arith.constant 0 : i32
    %c0_i32_2 = arith.constant 0 : i32
    return %arg0, %c0_i32, %c0_i32_0, %c0_i32_1 : i32, i32, i32, i32
  }
}

</mosaic_0001>

<bundles_post_ra>
// kernel: tpu_custom_call.1
= control target key start
LH: loop header
LB: loop body
LE: loop exit
PB: predicated region body
PF: predicated region fallthrough
CT: control target
= control target key end

     0   :  { %7 = vsyncpa [#allocation5], 0  ;;  %s9816_s0 = inlined_call_operand.hbm [shape: f32[400], index: 0, kind: input, shape index: {}]   ;;  %s9817_s1 = inlined_call_operand.hbm [shape: f32[2,4,16,16], index: 1, kind: input, shape index: {}]   ;;  %s9818_s2 = inlined_call_operand.hbm [shape: f32[2,4,16,16], index: 2, kind: output, shape index: {}]  }
   0x1   :  { %8 = vsyncpa [#allocation3], 0 }
   0x2   :  { %10 = vsyncpa [#allocation3 + $0x1], 0 }
   0x3   :  { %11 = vsyncpa [#allocation4], 0 }
   0x4   :  { %13 = vsyncpa [#allocation4 + $0x1], 0  ;;  %s6033_s9 = smov 0   ;;  %s6035_s10 = smov 0  }
   0x5   :  { %s6037_s11 = smov 0   ;;  %s6039_s12 = smov 0  }
   0x6 LB: > { %s6054_s13 = sadd.s32 4294967295, %s6005_s12   ;;  %s5336_s14 = sadd.s32 4294967294, %s6005_s12   ;;  %s6005_s12 = sphi %s6039_s12, %s10673_s12   ;;  %s6001_s11 = sphi %s6037_s11, %s10672_s11   ;;  %s5997_s10 = sphi %s6035_s10, %s10671_s10   ;;  %s5993_s9 = sphi %s6033_s9, %s10670_s9  }
   0x7   : > { %s6058_s15 = sadd.s32 1, %s6005_s12   ;;  %s47_s16 = sadd.s32 1, %s6001_s11 }
   0x8   : > { %s44_s17 = ssub.s32 %s6005_s12, %s6058_s15  ;;  %p54_p0 = scmp.ne.s32.totalorder %s6001_s11, %s5997_s10 }
   0x9   : > { %p45_p1 = scmp.eq.s32.totalorder %s44_s17, 0  ;;  %p55_p2 = scmp.eq.s32.totalorder %s6005_s12, 0 }
   0xa   : > { %p60_p3 = scmp.ne.s32.totalorder %s5997_s10, %s5993_s9  ;;  %p61_p4 = scmp.eq.s32.totalorder %s6054_s13, 0 }
   0xb   : > { %s6070_s18 = scalar_select %p45_p1, %s6001_s11, %s47_s16  }
   0xc   : > { %p6072_p5 = por %p55_p2, %p54_p0  ;;  %p6078_p6 = por %p61_p4, %p60_p3 }
   0xd   : > { %p84_p7 = scmp.eq.s32.totalorder %s6054_s13, 1  ;;  %p90_p8 = scmp.eq.s32.totalorder %s5336_s14, 1 }
   0xe   : > { %p5337_p9 = scmp.ge.s32.totalorder %s6005_s12, 1  ;;  %p97_p10 = scmp.lt.s32.totalorder %s6005_s12, 3 }
   0xf   : > { %p6085_p11 = por %p84_p7, %p54_p0  ;;  %p6089_p12 = por %p90_p8, %p60_p3 }
  0x10   : > { %p6093_p13 = pnand %p5337_p9, %p97_p10  ;;  %s109_s26 = sshll.u32 %s9816_s0, 4  ;;  %s110_s26 = int_to_ptr.hbm [resolvable:$true] %s109_s26 }
  0x11   : > { %p5810_p2 = scmp.lt.s32.totalorder %s6005_s12, 2  ;;  %s120_s27 = sand.u32 1, %s6001_s11  }
  0x12   : > { %p5797_p1 = pneg %p6093_p13  ;;  %s5340_s29 = sshll.u32 %s120_s27, 6 }
  0x13   : > { %p6109_p3 = pnand %p5810_p2, %p6072_p5  ;;  %s6007_s30 = smov [#allocation2]  }
  0x14   : > { %p5798_p7 = pnand %p5797_p1, %p61_p4  ;;  %s5787_s3 = sshll.u32 %s6005_s12, 6 }
  0x15   : > { %s124_s4 = scalar_lea.vmem [#allocation6], %s5340_s29  ;;  %s129_s8 = scalar_lea.hbm %s9817_s1, %s5787_s3 }
  0x16   : > { %5800 = dma.hbm_to_smem (!%p5798_p7), %s110_s26, 64, %s6007_s30, [#allocation5]  }
  0x17   : > { %s132_s5 = sshll.u32 %s124_s4, 4  ;;  %s130_s14 = sshll.u32 %s129_s8, 4  ;;  %s133_s5 = int_to_ptr.vmem [resolvable:$true] %s132_s5  ;;  %s131_s14 = int_to_ptr.hbm [resolvable:$true] %s130_s14 }
  0x18   : > { %s121_s16 = scalar_lea.sflag [#allocation3], %s120_s27  ;;  %s5905_s17 = sshra.s32 %s131_s14, 4  ;;  %s5906_s17 = int_to_ptr.hbm [resolvable:$true] %s5905_s17 }
  0x19   : > { %s5907_s19 = scalar_lea.hbm %s5906_s17, 64  ;;  %p5909_p8 = pneg %p6109_p3 }
  0x1a   : > { %p5908_p5 = scmp.ne.s32.totalorder %s5906_s17, %s5907_s19  ;;  %s5912_s26 = scalar_lea.hbm %s9817_s1, 128 }
  0x1b   : > { %p5913_p1 = scmp.lt.s32.totalorder %s5906_s17, %s9817_s1  ;;  %p5914_p2 = scmp.lt.s32.totalorder %s5912_s26, %s5907_s19 }
  0x1c   : > { %p5910_p9 = pnand %p5909_p8, %p5908_p5 }
  0x1d   : > { %p5915_p7 = por %p5914_p2, %p5913_p1 }
  0x1e   : > { %p5911_p10 = pneg %p5910_p9 }
  0x20   : > { %p5916_p0 = pnand %p5915_p7, %p5911_p10 }
  0x22   : > { %5919 = shalt.err (!%p5916_p0)
}
  0x23   : > { %s6008_s27 = smov 128   ;;  %s6009_s3 = smov 8  }
  0x24   : > { %5804 = dma.hbm_to_vmem [thread:$0]  (!%p6109_p3), %s131_s14, 1024, %s133_s5, %s121_s16, %s6008_s27, %s6008_s27, %s6009_s3  }
  0x25   : > { %144 = sbr.rel (%p6093_p13) target bundleno = 1990 (0x7c6), region = 28 }
  0x2a   : > { %5980 = dma.done.wait (%p61_p4), [#allocation5], 64  }
  0x2b   : > { %5982 = vsyncadd (%p61_p4), [#allocation5], 4294967232  ;;  %s6134_s4 = sand.u32 1, %s5997_s10  }
  0x2c   : > { %s5345_s6 = sshll.u32 %s6134_s4, 6  ;;  %s152_s7 = scalar_lea.sflag [#allocation3], %s6134_s4 }
  0x2d   : > { %s6140_s28 = scalar_lea.vmem [#allocation6], %s5345_s6 }
  0x2e   : > { %5984 = dma.done.wait (%p6078_p6), %s152_s7, 1024  }
  0x2f   : > { %5986 = vsyncadd (%p6078_p6), %s152_s7, 4294966272 }
  0x30   : > { %161 = sfence }
  0x31   : > { %s5351_s23 = sld [smem:[#allocation2 + $0x65]]  ;;  %v6147_v0 = vld [vmem:[%s6140_s28] sm:$0xff]  ;;  %s6010_s14 = smov 127   ;;  %v6154_v7 = vld [vmem:[%s6140_s28 + $0x8] sm:$0xf]  ;;  %vm178_vm0 = vcmask 130048  }
  0x32   : > { %s5350_s5 = sld [smem:[#allocation2 + $0x1]]  ;;  %s6011_s24 = smov 126   ;;  %v6215_v50 = vld [vmem:[%s6140_s28 + $0x1] sm:$0xff]  ;;  %v6221_v54 = vld [vmem:[%s6140_s28 + $0x9] sm:$0xf]  ;;  %vm5200_vm1 = vcmask 109584  }
  0x33   : > { %s5352_s8 = sld [smem:[#allocation2 + $0xc9]]  ;;  %s6012_s27 = smov 125   ;;  %vm5198_vm2 = vcmask 113680  }
  0x34   : > { %s5353_s20 = sld [smem:[#allocation2 + $0x12d]] }
  0x35   : > { %s5354_s16 = sld [smem:[#allocation2 + $0x2]] }
  0x36   : > { %s5355_s17 = sld [smem:[#allocation2 + $0x66]] }
  0x37   : > { %v228_v1 = vstv %s5351_s23  ;;  %s5356_s19 = sld [smem:[#allocation2 + $0xca]] }
  0x38   : > { %v229_v2 = vmul.f32 %v228_v1, %v6147_v0  ;;  %v214_v3 = vstv %s5350_s5  ;;  %v230_v8 = vmul.f32 %v228_v1, %v6154_v7  ;;  %s5357_s25 = sld [smem:[#allocation2 + $0x12e]] }
  0x39   : > { %v215_v4 = vmul.f32 %v214_v3, %v6147_v0  ;;  %v242_v5 = vstv %s5352_s8  ;;  %v216_v9 = vmul.f32 %v214_v3, %v6154_v7  ;;  %s5358_s26 = sld [smem:[#allocation2 + $0x3]]  ;;  %s6013_s8 = smov 124  }
  0x3a   : > { %233 = vrot.lane.b32.xlu1 %v229_v2, %s6010_s14  ;;  %v243_v6 = vmul.f32 %v242_v5, %v6147_v0  ;;  %v244_v10 = vmul.f32 %v242_v5, %v6154_v7  ;;  %v256_v11 = vstv %s5353_s20  ;;  %s5359_s29 = sld [smem:[#allocation2 + $0x67]] }
  0x3b   : > { %219 = vrot.lane.b32.xlu0 %v215_v4, %s6010_s14  ;;  %v258_v12 = vmul.f32 %v256_v11, %v6154_v7  ;;  %v257_v13 = vmul.f32 %v256_v11, %v6147_v0  ;;  %v270_v14 = vstv %s5354_s16  ;;  %s5360_s30 = sld [smem:[#allocation2 + $0xcb]] }
  0x3c   : > { %247 = vrot.lane.b32.xlu2 %v243_v6, %s6010_s14  ;;  %v271_v15 = vmul.f32 %v270_v14, %v6147_v0  ;;  %v284_v16 = vstv %s5355_s17  ;;  %v272_v18 = vmul.f32 %v270_v14, %v6154_v7  ;;  %s5361_s3 = sld [smem:[#allocation2 + $0x12f]] }
  0x3d   : > { %v285_v17 = vmul.f32 %v284_v16, %v6147_v0  ;;  %v286_v19 = vmul.f32 %v284_v16, %v6154_v7  ;;  %v298_v20 = vstv %s5356_s19  ;;  %s5362_s7 = sld [smem:[#allocation2 + $0x4]] }
  0x3e   : > { %v300_v21 = vmul.f32 %v298_v20, %v6154_v7  ;;  %v299_v22 = vmul.f32 %v298_v20, %v6147_v0  ;;  %v312_v23 = vstv %s5357_s25  ;;  %s5363_s23 = sld [smem:[#allocation2 + $0x68]] }
  0x3f   : > { %v313_v24 = vmul.f32 %v312_v23, %v6147_v0  ;;  %v326_v25 = vstv %s5358_s26  ;;  %v314_v27 = vmul.f32 %v312_v23, %v6154_v7  ;;  %s5364_s5 = sld [smem:[#allocation2 + $0xcc]] }
  0x40   : > { %v327_v26 = vmul.f32 %v326_v25, %v6147_v0  ;;  %v328_v28 = vmul.f32 %v326_v25, %v6154_v7  ;;  %v340_v29 = vstv %s5359_s29  ;;  %s5365_s20 = sld [smem:[#allocation2 + $0x130]] }
  0x41   : > { %v342_v30 = vmul.f32 %v340_v29, %v6154_v7  ;;  %v341_v31 = vmul.f32 %v340_v29, %v6147_v0  ;;  %v354_v32 = vstv %s5360_s30  ;;  %s5370_s16 = sld [smem:[#allocation2 + $0x6]] }
  0x42   : > { %235 = vrot.lane.b32.xlu1 %v230_v8, %s6010_s14  ;;  %v355_v33 = vmul.f32 %v354_v32, %v6147_v0  ;;  %v368_v34 = vstv %s5361_s3  ;;  %v356_v36 = vmul.f32 %v354_v32, %v6154_v7  ;;  %s5371_s17 = sld [smem:[#allocation2 + $0x6a]] }
  0x43   : > { %221 = vrot.lane.b32.xlu0 %v216_v9, %s6010_s14  ;;  %v369_v35 = vmul.f32 %v368_v34, %v6147_v0  ;;  %v370_v37 = vmul.f32 %v368_v34, %v6154_v7  ;;  %v382_v38 = vstv %s5362_s7  ;;  %s5372_s19 = sld [smem:[#allocation2 + $0xce]] }
  0x44   : > { %249 = vrot.lane.b32.xlu2 %v244_v10, %s6010_s14  ;;  %v384_v39 = vmul.f32 %v382_v38, %v6154_v7  ;;  %v383_v40 = vmul.f32 %v382_v38, %v6147_v0  ;;  %v396_v41 = vstv %s5363_s23  ;;  %s5373_s25 = sld [smem:[#allocation2 + $0x132]] }
  0x45   : > { %v397_v42 = vmul.f32 %v396_v41, %v6147_v0  ;;  %v410_v43 = vstv %s5364_s5  ;;  %v398_v45 = vmul.f32 %v396_v41, %v6154_v7  ;;  %s5374_s26 = sld [smem:[#allocation2 + $0x7]] }
  0x46   : > { %v411_v44 = vmul.f32 %v410_v43, %v6147_v0  ;;  %v412_v46 = vmul.f32 %v410_v43, %v6154_v7  ;;  %v424_v47 = vstv %s5365_s20  ;;  %s5375_s29 = sld [smem:[#allocation2 + $0x6b]] }
  0x47   : > { %v426_v48 = vmul.f32 %v424_v47, %v6154_v7  ;;  %v425_v49 = vmul.f32 %v424_v47, %v6147_v0  ;;  %v464_v51 = vstv %s5370_s16  ;;  %s5376_s30 = sld [smem:[#allocation2 + $0xcf]] }
  0x48   : > { %v465_v52 = vmul.f32 %v464_v51, %v6215_v50  ;;  %v478_v53 = vstv %s5371_s17  ;;  %v466_v56 = vmul.f32 %v464_v51, %v6221_v54  ;;  %s5377_s3 = sld [smem:[#allocation2 + $0x133]] }
  0x49   : > { %v479_v55 = vmul.f32 %v478_v53, %v6215_v50  ;;  %v480_v57 = vmul.f32 %v478_v53, %v6221_v54  ;;  %v492_v58 = vstv %s5372_s19  ;;  %s5378_s7 = sld [smem:[#allocation2 + $0x8]] }
  0x4a   : > { %263 = vrot.lane.b32.xlu1 %v258_v12, %s6010_s14  ;;  %v494_v59 = vmul.f32 %v492_v58, %v6221_v54  ;;  %v493_v61 = vmul.f32 %v492_v58, %v6215_v50  ;;  %v506_v62 = vstv %s5373_s25  ;;  %s5379_s23 = sld [smem:[#allocation2 + $0x6c]]  ;;  %v6326_v58 = vld [vmem:[%s6140_s28 + $0x2] sm:$0xff] }
  0x4b   : > { %261 = vrot.lane.b32.xlu0 %v257_v13, %s6010_s14  ;;  %v507_v63 = vmul.f32 %v506_v62, %v6215_v50  ;;  %v520_v0 = vstv %s5374_s26  ;;  %v508_v3 = vmul.f32 %v506_v62, %v6221_v54  ;;  %s5380_s5 = sld [smem:[#allocation2 + $0xd0]] }
  0x4c   : > { %275 = vrot.lane.b32.xlu2 %v271_v15, %s6011_s24  ;;  %v521_v1 = vmul.f32 %v520_v0, %v6215_v50  ;;  %v522_v4 = vmul.f32 %v520_v0, %v6221_v54  ;;  %v534_v5 = vstv %s5375_s29  ;;  %s5381_s20 = sld [smem:[#allocation2 + $0x134]] }
  0x4d   : > { %v536_v6 = vmul.f32 %v534_v5, %v6221_v54  ;;  %v535_v8 = vmul.f32 %v534_v5, %v6215_v50  ;;  %v548_v9 = vstv %s5376_s30  ;;  %s5382_s16 = sld [smem:[#allocation2 + $0x9]] }
  0x4e   : > { %v549_v10 = vmul.f32 %v548_v9, %v6215_v50  ;;  %v562_v11 = vstv %s5377_s3  ;;  %v550_v16 = vmul.f32 %v548_v9, %v6221_v54  ;;  %s5383_s17 = sld [smem:[#allocation2 + $0x6d]] }
  0x4f   : > { %v563_v14 = vmul.f32 %v562_v11, %v6215_v50  ;;  %s5384_s19 = sld [smem:[#allocation2 + $0xd1]] }
  0x50   : > { %s5385_s25 = sld [smem:[#allocation2 + $0x135]] }
  0x51   : > { %s5390_s26 = sld [smem:[#allocation2 + $0xb]] }
  0x52   : > { %289 = vrot.lane.b32.xlu1 %v285_v17, %s6011_s24  ;;  %v564_v17 = vmul.f32 %v562_v11, %v6221_v54  ;;  %s5391_s29 = sld [smem:[#allocation2 + $0x6f]] }
  0x53   : > { %277 = vrot.lane.b32.xlu0 %v272_v18, %s6011_s24  ;;  %v576_v18 = vstv %s5378_s7  ;;  %s5392_s30 = sld [smem:[#allocation2 + $0xd3]] }
  0x54   : > { %291 = vrot.lane.b32.xlu2 %v286_v19, %s6011_s24  ;;  %v577_v23 = vmul.f32 %v576_v18, %v6215_v50  ;;  %v646_v41 = vstv %s5383_s17  ;;  %s5393_s3 = sld [smem:[#allocation2 + $0x137]] }
  0x55   : > { %v648_v47 = vmul.f32 %v646_v41, %v6221_v54  ;;  %s5394_s7 = sld [smem:[#allocation2 + $0xc]] }
  0x56   : > { %s5399_s17 = sld [smem:[#allocation2 + $0x71]] }
  0x5a   : > { %305 = vrot.lane.b32.xlu1 %v300_v21, %s6011_s24  ;;  %v578_v21 = vmul.f32 %v576_v18, %v6221_v54 }
  0x5b   : > { %303 = vrot.lane.b32.xlu0 %v299_v22, %s6011_s24 }
  0x5c   : > { %317 = vrot.lane.b32.xlu2 %v313_v24, %s6011_s24  ;;  %v590_v24 = vstv %s5379_s23  ;;  %s5395_s23 = sld [smem:[#allocation2 + $0x70]] }
  0x5d   : > { %v591_v25 = vmul.f32 %v590_v24, %v6215_v50 }
  0x62   : > { %331 = vrot.lane.b32.xlu1 %v327_v26, %s6012_s27  ;;  %v604_v26 = vstv %s5380_s5  ;;  %s5396_s5 = sld [smem:[#allocation2 + $0xd4]] }
  0x63   : > { %319 = vrot.lane.b32.xlu0 %v314_v27, %s6011_s24  ;;  %v605_v29 = vmul.f32 %v604_v26, %v6215_v50  ;;  %v606_v32 = vmul.f32 %v604_v26, %v6221_v54 }
  0x64   : > { %333 = vrot.lane.b32.xlu2 %v328_v28, %s6012_s27 }
  0x6a   : > { %347 = vrot.lane.b32.xlu1 %v342_v30, %s6012_s27 }
  0x6b   : > { %345 = vrot.lane.b32.xlu0 %v341_v31, %s6012_s27  ;;  %v592_v31 = vmul.f32 %v590_v24, %v6221_v54 }
  0x6c   : > { %359 = vrot.lane.b32.xlu2 %v355_v33, %s6012_s27  ;;  %v618_v33 = vstv %s5381_s20  ;;  %s5397_s20 = sld [smem:[#allocation2 + $0x138]] }
  0x6d   : > { %v619_v38 = vmul.f32 %v618_v33, %v6215_v50 }
  0x72   : > { %373 = vrot.lane.b32.xlu1 %v369_v35, %s6012_s27 }
  0x73   : > { %361 = vrot.lane.b32.xlu0 %v356_v36, %s6012_s27  ;;  %v620_v36 = vmul.f32 %v618_v33, %v6221_v54 }
  0x74   : > { %375 = vrot.lane.b32.xlu2 %v370_v37, %s6012_s27 }
  0x7a   : > { %389 = vrot.lane.b32.xlu1 %v384_v39, %s6013_s8  ;;  %v632_v39 = vstv %s5382_s16  ;;  %s5398_s16 = sld [smem:[#allocation2 + $0xd]] }
  0x7b   : > { %387 = vrot.lane.b32.xlu0 %v383_v40, %s6013_s8  ;;  %v633_v40 = vmul.f32 %v632_v39, %v6215_v50 }
  0x7c   : > { %401 = vrot.lane.b32.xlu2 %v397_v42, %s6013_s8 }
  0x82   : > { %415 = vrot.lane.b32.xlu1 %v411_v44, %s6013_s8  ;;  %v647_v44 = vmul.f32 %v646_v41, %v6215_v50 }
  0x83   : > { %403 = vrot.lane.b32.xlu0 %v398_v45, %s6013_s8 }
  0x84   : > { %417 = vrot.lane.b32.xlu2 %v412_v46, %s6013_s8  ;;  %v634_v46 = vmul.f32 %v632_v39, %v6221_v54  ;;  %v798_v39 = vstv %s5396_s5  ;;  %s5412_s5 = sld [smem:[#allocation2 + $0xd8]] }
  0x8a   : > { %431 = vrot.lane.b32.xlu1 %v426_v48, %s6013_s8  ;;  %v660_v48 = vstv %s5384_s19  ;;  %s5400_s19 = sld [smem:[#allocation2 + $0xd5]] }
  0x8b   : > { %429 = vrot.lane.b32.xlu0 %v425_v49, %s6013_s8 }
  0x8c   : > { %469 = vrot.lane.b32.xlu2 %v465_v52, %s6010_s14  ;;  %v662_v52 = vmul.f32 %v660_v48, %v6221_v54 }
  0x92   : > { %483 = vrot.lane.b32.xlu1 %v479_v55, %s6010_s14  ;;  %v661_v55 = vmul.f32 %v660_v48, %v6215_v50 }
  0x93   : > { %471 = vrot.lane.b32.xlu0 %v466_v56, %s6010_s14  ;;  %v674_v56 = vstv %s5385_s25  ;;  %s5401_s25 = sld [smem:[#allocation2 + $0x139]] }
  0x94   : > { %485 = vrot.lane.b32.xlu2 %v480_v57, %s6010_s14  ;;  %v675_v57 = vmul.f32 %v674_v56, %v6215_v50  ;;  %v676_v50 = vmul.f32 %v674_v56, %v6221_v54 }
  0x96   : > { %v6231_v60 = vpop.permute.xlu2 %247 }
  0x9a   : > { %499 = vrot.lane.b32.xlu1 %v494_v59, %s6010_s14  ;;  %v714_v59 = vstv %s5390_s26  ;;  %s5402_s26 = sld [smem:[#allocation2 + $0xe]] }
  0x9b   : > { %497 = vrot.lane.b32.xlu0 %v493_v61, %s6010_s14 }
  0x9c   : > { %511 = vrot.lane.b32.xlu2 %v507_v63, %s6010_s14  ;;  %v715_v63 = vmul.f32 %v714_v59, %v6326_v58 }
  0x9e   : > { %v6239_v2 = vpop.permute.xlu2 %249 }
  0xa2   : > { %525 = vrot.lane.b32.xlu1 %v521_v1, %s6011_s24  ;;  %v6338_v1 = vld [vmem:[%s6140_s28 + $0xa] sm:$0xf] }
  0xa3   : > { %513 = vrot.lane.b32.xlu0 %v508_v3, %s6010_s14  ;;  %v716_v3 = vmul.f32 %v714_v59, %v6338_v1  ;;  %v800_v48 = vmul.f32 %v798_v39, %v6338_v1 }
  0xa4   : > { %527 = vrot.lane.b32.xlu2 %v522_v4, %s6011_s24  ;;  %v728_v4 = vstv %s5391_s29  ;;  %s5403_s29 = sld [smem:[#allocation2 + $0x72]] }
  0xa5   : > { %v729_v9 = vmul.f32 %v728_v4, %v6326_v58 }
  0xa6   : > { %v6247_v7 = vpop.permute.xlu2 %275 }
  0xaa   : > { %541 = vrot.lane.b32.xlu1 %v536_v6, %s6011_s24 }
  0xab   : > { %539 = vrot.lane.b32.xlu0 %v535_v8, %s6011_s24  ;;  %v730_v8 = vmul.f32 %v728_v4, %v6338_v1  ;;  %v840_v4 = vstv %s5399_s17  ;;  %s5415_s17 = sld [smem:[#allocation2 + $0x75]] }
  0xac   : > { %v6253_v12 = vpop.permute.xlu1 %233  ;;  %553 = vrot.lane.b32.xlu2 %v549_v10, %s6011_s24  ;;  %v742_v10 = vstv %s5392_s30  ;;  %s5404_s30 = sld [smem:[#allocation2 + $0xd6]] }
  0xad   : > { %v6256_v13 = vpop.permute.xlu0 %219  ;;  %v743_v11 = vmul.f32 %v742_v10, %v6326_v58 }
  0xae   : > { %v6259_v15 = vpop.permute.xlu2 %291 }
  0xb2   : > { %567 = vrot.lane.b32.xlu1 %v563_v14, %s6011_s24  ;;  %v756_v14 = vstv %s5393_s3  ;;  %s5405_s3 = sld [smem:[#allocation2 + $0x13a]] }
  0xb3   : > { %555 = vrot.lane.b32.xlu0 %v550_v16, %s6011_s24  ;;  %v757_v18 = vmul.f32 %v756_v14, %v6326_v58  ;;  %v758_v24 = vmul.f32 %v756_v14, %v6338_v1 }
  0xb4   : > { %v6265_v19 = vpop.permute.xlu1 %235  ;;  %569 = vrot.lane.b32.xlu2 %v564_v17, %s6011_s24 }
  0xb5   : > { %v6268_v20 = vpop.permute.xlu0 %221 }
  0xb6   : > { %v6271_v22 = vpop.permute.xlu2 %317 }
  0xba   : > { %583 = vrot.lane.b32.xlu1 %v578_v21, %s6012_s27 }
  0xbb   : > { %581 = vrot.lane.b32.xlu0 %v577_v23, %s6012_s27  ;;  %v744_v23 = vmul.f32 %v742_v10, %v6338_v1  ;;  %v841_v10 = vmul.f32 %v840_v4, %v6326_v58 }
  0xbc   : > { %v6277_v27 = vpop.permute.xlu1 %263  ;;  %595 = vrot.lane.b32.xlu2 %v591_v25, %s6012_s27  ;;  %v770_v25 = vstv %s5394_s7  ;;  %s5410_s7 = sld [smem:[#allocation2 + $0x10]] }
  0xbd   : > { %v6280_v28 = vpop.permute.xlu0 %261  ;;  %v771_v33 = vmul.f32 %v770_v25, %v6326_v58 }
  0xbe   : > { %v6283_v30 = vpop.permute.xlu2 %333 }
  0xc2   : > { %609 = vrot.lane.b32.xlu1 %v605_v29, %s6012_s27 }
  0xc3   : > { %597 = vrot.lane.b32.xlu0 %v592_v31, %s6012_s27  ;;  %v772_v31 = vmul.f32 %v770_v25, %v6338_v1 }
  0xc4   : > { %v6289_v34 = vpop.permute.xlu1 %289  ;;  %611 = vrot.lane.b32.xlu2 %v606_v32, %s6012_s27 }
  0xc5   : > { %v6292_v35 = vpop.permute.xlu0 %277 }
  0xc6   : > { %v6295_v37 = vpop.permute.xlu2 %359 }
  0xca   : > { %625 = vrot.lane.b32.xlu1 %v620_v36, %s6012_s27  ;;  %v784_v36 = vstv %s5395_s23  ;;  %s5411_s23 = sld [smem:[#allocation2 + $0x74]] }
  0xcb   : > { %623 = vrot.lane.b32.xlu0 %v619_v38, %s6012_s27  ;;  %v785_v38 = vmul.f32 %v784_v36, %v6326_v58 }
  0xcc   : > { %v6301_v42 = vpop.permute.xlu1 %305  ;;  %637 = vrot.lane.b32.xlu2 %v633_v40, %s6013_s8 }
  0xcd   : > { %v6304_v43 = vpop.permute.xlu0 %303 }
  0xce   : > { %v6307_v45 = vpop.permute.xlu2 %375 }
  0xd2   : > { %651 = vrot.lane.b32.xlu1 %v647_v44, %s6013_s8  ;;  %v799_v44 = vmul.f32 %v798_v39, %v6326_v58 }
  0xd3   : > { %639 = vrot.lane.b32.xlu0 %v634_v46, %s6013_s8 }
  0xd4   : > { %v6313_v49 = vpop.permute.xlu1 %331  ;;  %653 = vrot.lane.b32.xlu2 %v648_v47, %s6013_s8  ;;  %v786_v47 = vmul.f32 %v784_v36, %v6338_v1 }
  0xd5   : > { %v6316_v51 = vpop.permute.xlu0 %319 }
  0xd6   : > { %v6319_v53 = vpop.permute.xlu2 %401 }
  0xda   : > { %667 = vrot.lane.b32.xlu1 %v662_v52, %s6013_s8  ;;  %v812_v52 = vstv %s5397_s20  ;;  %s5413_s20 = sld [smem:[#allocation2 + $0x13c]] }
  0xdb   : > { %665 = vrot.lane.b32.xlu0 %v661_v55, %s6013_s8 }
  0xdc   : > { %v6328_v61 = vpop.permute.xlu1 %347  ;;  %679 = vrot.lane.b32.xlu2 %v675_v57, %s6013_s8  ;;  %v814_v57 = vmul.f32 %v812_v52, %v6338_v1 }
  0xdd   : > { %v6331_v62 = vpop.permute.xlu0 %345 }
  0xde   : > { %v6334_v0 = vpop.permute.xlu2 %417 }
  0xe2   : > { %719 = vrot.lane.b32.xlu1 %v715_v63, %s6010_s14  ;;  %v813_v63 = vmul.f32 %v812_v52, %v6326_v58 }
  0xe3   : > { %681 = vrot.lane.b32.xlu0 %v676_v50, %s6013_s8  ;;  %v826_v50 = vstv %s5398_s16  ;;  %s5414_s16 = sld [smem:[#allocation2 + $0x11]] }
  0xe4   : > { %v6343_v5 = vpop.permute.xlu1 %373  ;;  %721 = vrot.lane.b32.xlu2 %v716_v3, %s6010_s14  ;;  %v827_v3 = vmul.f32 %v826_v50, %v6326_v58  ;;  %v828_v14 = vmul.f32 %v826_v50, %v6338_v1 }
  0xe5   : > { %v6346_v6 = vpop.permute.xlu0 %361 }
  0xe6   : > { %v6349_v54 = vpop.permute.xlu2 %469 }
  0xea   : > { %735 = vrot.lane.b32.xlu1 %v730_v8, %s6010_s14 }
  0xeb   : > { %733 = vrot.lane.b32.xlu0 %v729_v9, %s6010_s14 }
  0xec   : > { %v6355_v16 = vpop.permute.xlu1 %389  ;;  %747 = vrot.lane.b32.xlu2 %v743_v11, %s6010_s14 }
  0xed   : > { %v6358_v17 = vpop.permute.xlu0 %387 }
  0xee   : > { %v6361_v21 = vpop.permute.xlu2 %485 }
  0xf2   : > { %761 = vrot.lane.b32.xlu1 %v757_v18, %s6010_s14  ;;  %v842_v18 = vmul.f32 %v840_v4, %v6338_v1 }
  0xf3   : > { %749 = vrot.lane.b32.xlu0 %v744_v23, %s6010_s14  ;;  %v854_v23 = vstv %s5400_s19  ;;  %s5416_s19 = sld [smem:[#allocation2 + $0xd9]] }
  0xf4   : > { %v6367_v26 = vpop.permute.xlu1 %415  ;;  %763 = vrot.lane.b32.xlu2 %v758_v24, %s6010_s14  ;;  %v855_v36 = vmul.f32 %v854_v23, %v6326_v58 }
  0xf5   : > { %v6370_v29 = vpop.permute.xlu0 %403 }
  0xf6   : > { %v6373_v32 = vpop.permute.xlu2 %511 }
  0xfa   : > { %777 = vrot.lane.b32.xlu1 %v772_v31, %s6011_s24  ;;  %v856_v31 = vmul.f32 %v854_v23, %v6338_v1 }
  0xfb   : > { %775 = vrot.lane.b32.xlu0 %v771_v33, %s6011_s24 }
  0xfc   : > { %v6379_v40 = vpop.permute.xlu1 %431  ;;  %789 = vrot.lane.b32.xlu2 %v785_v38, %s6011_s24  ;;  %v868_v38 = vstv %s5401_s25  ;;  %s5417_s25 = sld [smem:[#allocation2 + $0x13d]] }
  0xfd   : > { %v6382_v41 = vpop.permute.xlu0 %429  ;;  %v869_v39 = vmul.f32 %v868_v38, %v6326_v58 }
  0xfe   : > { %v6385_v46 = vpop.permute.xlu2 %527 }
 0x102   : > { %803 = vrot.lane.b32.xlu1 %v799_v44, %s6011_s24  ;;  %v882_v44 = vstv %s5402_s26  ;;  %s5418_s26 = sld [smem:[#allocation2 + $0x12]] }
 0x103   : > { %791 = vrot.lane.b32.xlu0 %v786_v47, %s6011_s24  ;;  %v883_v52 = vmul.f32 %v882_v44, %v6326_v58  ;;  %v884_v50 = vmul.f32 %v882_v44, %v6338_v1 }
 0x104   : > { %v6391_v55 = vpop.permute.xlu1 %483  ;;  %805 = vrot.lane.b32.xlu2 %v800_v48, %s6011_s24 }
 0x105   : > { %v6394_v56 = vpop.permute.xlu0 %471 }
 0x106   : > { %v6397_v59 = vpop.permute.xlu2 %553 }
 0x107   : > { %9826 = vst [vmem:[#allocation11_spill] sm:$0xff] %v6397_v59 }
 0x10a   : > { %819 = vrot.lane.b32.xlu1 %v814_v57, %s6011_s24 }
 0x10b   : > { %817 = vrot.lane.b32.xlu0 %v813_v63, %s6011_s24  ;;  %v870_v63 = vmul.f32 %v868_v38, %v6338_v1  ;;  %v924_v38 = vstv %s5405_s3  ;;  %s5421_s3 = sld [smem:[#allocation2 + $0x13e]] }
 0x10c   : > { %v6403_v8 = vpop.permute.xlu1 %499  ;;  %831 = vrot.lane.b32.xlu2 %v827_v3, %s6012_s27  ;;  %v896_v3 = vstv %s5403_s29  ;;  %s5419_s29 = sld [smem:[#allocation2 + $0x76]] }
 0x10d   : > { %v6406_v9 = vpop.permute.xlu0 %497  ;;  %v897_v23 = vmul.f32 %v896_v3, %v6326_v58 }
 0x10e   : > { %v6409_v11 = vpop.permute.xlu2 %569 }
 0x10f   : > { %9827 = vst [vmem:[#allocation12_spill] sm:$0xff] %v6409_v11 }
 0x112   : > { %845 = vrot.lane.b32.xlu1 %v841_v10, %s6012_s27 }
 0x113   : > { %833 = vrot.lane.b32.xlu0 %v828_v14, %s6012_s27  ;;  %v898_v14 = vmul.f32 %v896_v3, %v6338_v1  ;;  %v926_v3 = vmul.f32 %v924_v38, %v6338_v1 }
 0x114   : > { %v6415_v24 = vpop.permute.xlu1 %525  ;;  %847 = vrot.lane.b32.xlu2 %v842_v18, %s6012_s27 }
 0x115   : > { %v6418_v25 = vpop.permute.xlu0 %513 }
 0x116   : > { %v6421_v33 = vpop.permute.xlu2 %595 }
 0x117   : > { %9828 = vst [vmem:[#allocation13_spill] sm:$0xff] %v6421_v33  ;;  %v1020_v33 = vstv %s5414_s16  ;;  %s5430_s16 = sld [smem:[#allocation2 + $0x15]] }
 0x11a   : > { %861 = vrot.lane.b32.xlu1 %v856_v31, %s6012_s27  ;;  %v910_v31 = vstv %s5404_s30  ;;  %s5420_s30 = sld [smem:[#allocation2 + $0xda]] }
 0x11b   : > { %859 = vrot.lane.b32.xlu0 %v855_v36, %s6012_s27  ;;  %v911_v36 = vmul.f32 %v910_v31, %v6326_v58 }
 0x11c   : > { %v6427_v47 = vpop.permute.xlu1 %541  ;;  %873 = vrot.lane.b32.xlu2 %v869_v39, %s6012_s27 }
 0x11d   : > { %9829 = vst [vmem:[#allocation14_spill] sm:$0xff] %v6427_v47  ;;  %v6430_v48 = vpop.permute.xlu0 %539 }
 0x11e   : > { %9830 = vst [vmem:[#allocation15_spill] sm:$0xff] %v6430_v48  ;;  %v6433_v57 = vpop.permute.xlu2 %611 }
 0x11f   : > { %9831 = vst [vmem:[#allocation16_spill] sm:$0xff] %v6433_v57 }
 0x122   : > { %887 = vrot.lane.b32.xlu1 %v883_v52, %s6013_s8  ;;  %v925_v52 = vmul.f32 %v924_v38, %v6326_v58  ;;  %v978_v38 = vstv %s5411_s23  ;;  %s5423_s23 = sld [smem:[#allocation2 + $0x77]] }
 0x123   : > { %875 = vrot.lane.b32.xlu0 %v870_v63, %s6012_s27 }
 0x124   : > { %v6439_v4 = vpop.permute.xlu1 %567  ;;  %889 = vrot.lane.b32.xlu2 %v884_v50, %s6013_s8  ;;  %v912_v50 = vmul.f32 %v910_v31, %v6338_v1 }
 0x125   : > { %9832 = vst [vmem:[#allocation17_spill] sm:$0xff] %v6439_v4  ;;  %v6442_v10 = vpop.permute.xlu0 %555 }
 0x126   : > { %9833 = vst [vmem:[#allocation18_spill] sm:$0xff] %v6442_v10  ;;  %v6445_v18 = vpop.permute.xlu2 %637 }
 0x127   : > { %9834 = vst [vmem:[#allocation19_spill] sm:$0xff] %v6445_v18  ;;  %v6469_v18 = vld [vmem:[%s6140_s28 + $0x3] sm:$0xff] }
 0x12a   : > { %903 = vrot.lane.b32.xlu1 %v898_v14, %s6013_s8  ;;  %v6464_v14 = vld [vmem:[%s6140_s28 + $0xb] sm:$0xf] }
 0x12b   : > { %901 = vrot.lane.b32.xlu0 %v897_v23, %s6013_s8  ;;  %v964_v23 = vstv %s5410_s7  ;;  %s5422_s7 = sld [smem:[#allocation2 + $0x13]] }
 0x12c   : > { %v6451_v39 = vpop.permute.xlu1 %583  ;;  %915 = vrot.lane.b32.xlu2 %v911_v36, %s6013_s8  ;;  %v966_v31 = vmul.f32 %v964_v23, %v6464_v14  ;;  %v965_v1 = vmul.f32 %v964_v23, %v6469_v18  ;;  %v980_v23 = vmul.f32 %v978_v38, %v6464_v14 }
 0x12d   : > { %9835 = vst [vmem:[#allocation20_spill] sm:$0xff] %v6451_v39  ;;  %v6454_v44 = vpop.permute.xlu0 %581 }
 0x12e   : > { %9836 = vst [vmem:[#allocation21_spill] sm:$0xff] %v6454_v44  ;;  %v6457_v63 = vpop.permute.xlu2 %653 }
 0x12f   : > { %9837 = vst [vmem:[#allocation22_spill] sm:$0xff] %v6457_v63 }
 0x132   : > { %929 = vrot.lane.b32.xlu1 %v925_v52, %s6013_s8  ;;  %v979_v52 = vmul.f32 %v978_v38, %v6469_v18 }
 0x133   : > { %917 = vrot.lane.b32.xlu0 %v912_v50, %s6013_s8  ;;  %v992_v50 = vstv %s5412_s5  ;;  %s5424_s5 = sld [smem:[#allocation2 + $0xdb]] }
 0x134   : > { %v6466_v36 = vpop.permute.xlu1 %609  ;;  %931 = vrot.lane.b32.xlu2 %v926_v3, %s6013_s8  ;;  %v993_v57 = vmul.f32 %v992_v50, %v6469_v18  ;;  %v994_v39 = vmul.f32 %v992_v50, %v6464_v14  ;;  %v1021_v50 = vmul.f32 %v1020_v33, %v6469_v18 }
 0x135   : > { %9838 = vst [vmem:[#allocation23_spill] sm:$0xff] %v6466_v36  ;;  %v6472_v58 = vpop.permute.xlu0 %597 }
 0x136   : > { %9839 = vst [vmem:[#allocation24_spill] sm:$0xff] %v6472_v58  ;;  %v6475_v63 = vpop.permute.xlu2 %679 }
 0x137   : > { %9840 = vst [vmem:[#allocation25_spill] sm:$0xff] %v6475_v63 }
 0x13a   : > { %971 = vrot.lane.b32.xlu1 %v966_v31, %s6010_s14  ;;  %v1006_v31 = vstv %s5413_s20  ;;  %s5425_s20 = sld [smem:[#allocation2 + $0x13f]] }
 0x13b   : > { %969 = vrot.lane.b32.xlu0 %v965_v1, %s6010_s14  ;;  %v1007_v38 = vmul.f32 %v1006_v31, %v6469_v18 }
 0x13c   : > { %v6481_v36 = vpop.permute.xlu1 %625  ;;  %983 = vrot.lane.b32.xlu2 %v979_v52, %s6010_s14 }
 0x13d   : > { %9841 = vst [vmem:[#allocation26_spill] sm:$0xff] %v6481_v36  ;;  %v6484_v3 = vpop.permute.xlu0 %623  ;;  %v1008_v36 = vmul.f32 %v1006_v31, %v6464_v14  ;;  %v1022_v31 = vmul.f32 %v1020_v33, %v6464_v14 }
 0x13e   : > { %9842 = vst [vmem:[#allocation27_spill] sm:$0xff] %v6484_v3  ;;  %v6487_v63 = vpop.permute.xlu2 %721 }
 0x13f   : > { %9843 = vst [vmem:[#allocation28_spill] sm:$0xff] %v6487_v63 }
 0x142   : > { %997 = vrot.lane.b32.xlu1 %v993_v57, %s6010_s14  ;;  %v1034_v57 = vstv %s5415_s17  ;;  %s5431_s17 = sld [smem:[#allocation2 + $0x79]] }
 0x143   : > { %985 = vrot.lane.b32.xlu0 %v980_v23, %s6010_s14 }
 0x144   : > { %v6493_v1 = vpop.permute.xlu1 %651  ;;  %999 = vrot.lane.b32.xlu2 %v994_v39, %s6010_s14 }
 0x145   : > { %9844 = vst [vmem:[#allocation29_spill] sm:$0xff] %v6493_v1  ;;  %v6496_v52 = vpop.permute.xlu0 %639  ;;  %v1035_v1 = vmul.f32 %v1034_v57, %v6469_v18 }
 0x146   : > { %9845 = vst [vmem:[#allocation30_spill] sm:$0xff] %v6496_v52  ;;  %v6499_v63 = vpop.permute.xlu2 %747  ;;  %v1036_v52 = vmul.f32 %v1034_v57, %v6464_v14 }
 0x147   : > { %9846 = vst [vmem:[#allocation31_spill] sm:$0xff] %v6499_v63 }
 0x14a   : > { %1013 = vrot.lane.b32.xlu1 %v1008_v36, %s6010_s14  ;;  %v1048_v36 = vstv %s5416_s19  ;;  %s5432_s19 = sld [smem:[#allocation2 + $0xdd]] }
 0x14b   : > { %1011 = vrot.lane.b32.xlu0 %v1007_v38, %s6010_s14  ;;  %v1049_v33 = vmul.f32 %v1048_v36, %v6469_v18 }
 0x14c   : > { %v6505_v23 = vpop.permute.xlu1 %667  ;;  %1025 = vrot.lane.b32.xlu2 %v1021_v50, %s6011_s24 }
 0x14d   : > { %9847 = vst [vmem:[#allocation32_spill] sm:$0xff] %v6505_v23  ;;  %v6508_v39 = vpop.permute.xlu0 %665  ;;  %v1062_v23 = vstv %s5417_s25  ;;  %s5433_s25 = sld [smem:[#allocation2 + $0x141]] }
 0x14e   : > { %9848 = vst [vmem:[#allocation33_spill] sm:$0xff] %v6508_v39  ;;  %v6511_v63 = vpop.permute.xlu2 %763  ;;  %v1050_v39 = vmul.f32 %v1048_v36, %v6464_v14  ;;  %v1063_v57 = vmul.f32 %v1062_v23, %v6469_v18  ;;  %v1064_v36 = vmul.f32 %v1062_v23, %v6464_v14 }
 0x14f   : > { %9849 = vst [vmem:[#allocation34_spill] sm:$0xff] %v6511_v63 }
 0x152   : > { %1039 = vrot.lane.b32.xlu1 %v1035_v1, %s6011_s24  ;;  %v1076_v1 = vstv %s5418_s26  ;;  %s5434_s26 = sld [smem:[#allocation2 + $0x16]] }
 0x153   : > { %1027 = vrot.lane.b32.xlu0 %v1022_v31, %s6011_s24 }
 0x154   : > { %v6517_v38 = vpop.permute.xlu1 %719  ;;  %1041 = vrot.lane.b32.xlu2 %v1036_v52, %s6011_s24 }
 0x155   : > { %9850 = vst [vmem:[#allocation35_spill] sm:$0xff] %v6517_v38  ;;  %v6520_v50 = vpop.permute.xlu0 %681  ;;  %v1077_v38 = vmul.f32 %v1076_v1, %v6469_v18 }
 0x156   : > { %9851 = vst [vmem:[#allocation36_spill] sm:$0xff] %v6520_v50  ;;  %v6523_v63 = vpop.permute.xlu2 %789  ;;  %v1078_v50 = vmul.f32 %v1076_v1, %v6464_v14 }
 0x157   : > { %9852 = vst [vmem:[#allocation37_spill] sm:$0xff] %v6523_v63 }
 0x15a   : > { %1055 = vrot.lane.b32.xlu1 %v1050_v39, %s6011_s24  ;;  %v1090_v39 = vstv %s5419_s29  ;;  %s5435_s29 = sld [smem:[#allocation2 + $0x7a]] }
 0x15b   : > { %1053 = vrot.lane.b32.xlu0 %v1049_v33, %s6011_s24  ;;  %v1091_v23 = vmul.f32 %v1090_v39, %v6469_v18 }
 0x15c   : > { %v6529_v31 = vpop.permute.xlu1 %735  ;;  %1067 = vrot.lane.b32.xlu2 %v1063_v57, %s6011_s24 }
 0x15d   : > { %9853 = vst [vmem:[#allocation38_spill] sm:$0xff] %v6529_v31  ;;  %v6532_v52 = vpop.permute.xlu0 %733  ;;  %v1092_v31 = vmul.f32 %v1090_v39, %v6464_v14 }
 0x15e   : > { %9854 = vst [vmem:[#allocation39_spill] sm:$0xff] %v6532_v52  ;;  %v6535_v63 = vpop.permute.xlu2 %805  ;;  %v1104_v52 = vstv %s5420_s30  ;;  %s5436_s30 = sld [smem:[#allocation2 + $0xde]] }
 0x15f   : > { %9855 = vst [vmem:[#allocation40_spill] sm:$0xff] %v6535_v63  ;;  %v1105_v1 = vmul.f32 %v1104_v52, %v6469_v18  ;;  %v1106_v39 = vmul.f32 %v1104_v52, %v6464_v14 }
 0x162   : > { %1081 = vrot.lane.b32.xlu1 %v1077_v38, %s6012_s27  ;;  %v1118_v38 = vstv %s5421_s3  ;;  %s5437_s3 = sld [smem:[#allocation2 + $0x142]] }
 0x163   : > { %1069 = vrot.lane.b32.xlu0 %v1064_v36, %s6011_s24 }
 0x164   : > { %v6541_v33 = vpop.permute.xlu1 %761  ;;  %1083 = vrot.lane.b32.xlu2 %v1078_v50, %s6012_s27 }
 0x165   : > { %9856 = vst [vmem:[#allocation41_spill] sm:$0xff] %v6541_v33  ;;  %v6544_v57 = vpop.permute.xlu0 %749  ;;  %v1119_v33 = vmul.f32 %v1118_v38, %v6469_v18 }
 0x166   : > { %9857 = vst [vmem:[#allocation42_spill] sm:$0xff] %v6544_v57  ;;  %v6547_v63 = vpop.permute.xlu2 %831  ;;  %v1120_v57 = vmul.f32 %v1118_v38, %v6464_v14 }
 0x167   : > { %9858 = vst [vmem:[#allocation43_spill] sm:$0xff] %v6547_v63 }
 0x16a   : > { %1097 = vrot.lane.b32.xlu1 %v1092_v31, %s6012_s27  ;;  %v1132_v31 = vstv %s5422_s7  ;;  %s5438_s7 = sld [smem:[#allocation2 + $0x17]] }
 0x16b   : > { %1095 = vrot.lane.b32.xlu0 %v1091_v23, %s6012_s27  ;;  %v1133_v52 = vmul.f32 %v1132_v31, %v6469_v18 }
 0x16c   : > { %v6553_v36 = vpop.permute.xlu1 %777  ;;  %1109 = vrot.lane.b32.xlu2 %v1105_v1, %s6012_s27 }
 0x16d   : > { %9859 = vst [vmem:[#allocation44_spill] sm:$0xff] %v6553_v36  ;;  %v6556_v50 = vpop.permute.xlu0 %775  ;;  %v1134_v36 = vmul.f32 %v1132_v31, %v6464_v14 }
 0x16e   : > { %9860 = vst [vmem:[#allocation45_spill] sm:$0xff] %v6556_v50  ;;  %v6559_v63 = vpop.permute.xlu2 %847  ;;  %v1146_v50 = vstv %s5423_s23  ;;  %s5439_s23 = sld [smem:[#allocation2 + $0x7b]] }
 0x16f   : > { %9861 = vst [vmem:[#allocation46_spill] sm:$0xff] %v6559_v63  ;;  %v1147_v38 = vmul.f32 %v1146_v50, %v6469_v18  ;;  %v1148_v31 = vmul.f32 %v1146_v50, %v6464_v14 }
 0x172   : > { %1123 = vrot.lane.b32.xlu1 %v1119_v33, %s6012_s27  ;;  %v1160_v33 = vstv %s5424_s5  ;;  %s5440_s5 = sld [smem:[#allocation2 + $0xdf]] }
 0x173   : > { %1111 = vrot.lane.b32.xlu0 %v1106_v39, %s6012_s27 }
 0x174   : > { %v6565_v23 = vpop.permute.xlu1 %803  ;;  %1125 = vrot.lane.b32.xlu2 %v1120_v57, %s6012_s27 }
 0x175   : > { %9862 = vst [vmem:[#allocation47_spill] sm:$0xff] %v6565_v23  ;;  %v6568_v1 = vpop.permute.xlu0 %791 }
 0x176   : > { %9863 = vst [vmem:[#allocation48_spill] sm:$0xff] %v6568_v1  ;;  %v6571_v63 = vpop.permute.xlu2 %873  ;;  %v1256_v1 = vstv %s5433_s25  ;;  %s5445_s25 = sld [smem:[#allocation2 + $0x144]] }
 0x177   : > { %9864 = vst [vmem:[#allocation49_spill] sm:$0xff] %v6571_v63  ;;  %v1161_v63 = vmul.f32 %v1160_v33, %v6469_v18 }
 0x17a   : > { %1139 = vrot.lane.b32.xlu1 %v1134_v36, %s6013_s8  ;;  %v1162_v36 = vmul.f32 %v1160_v33, %v6464_v14  ;;  %v6599_v33 = vld [vmem:[%s6140_s28 + $0x4] sm:$0xff] }
 0x17b   : > { %1137 = vrot.lane.b32.xlu0 %v1133_v52, %s6013_s8  ;;  %v1174_v52 = vstv %s5425_s20  ;;  %s5441_s20 = sld [smem:[#allocation2 + $0x143]] }
 0x17c   : > { %v6577_v39 = vpop.permute.xlu1 %819  ;;  %1151 = vrot.lane.b32.xlu2 %v1147_v38, %s6013_s8  ;;  %v1175_v50 = vmul.f32 %v1174_v52, %v6469_v18 }
 0x17d   : > { %9865 = vst [vmem:[#allocation50_spill] sm:$0xff] %v6577_v39  ;;  %v6580_v57 = vpop.permute.xlu0 %817 }
 0x17e   : > { %9866 = vst [vmem:[#allocation51_spill] sm:$0xff] %v6580_v57  ;;  %v6583_v23 = vpop.permute.xlu2 %889 }
 0x17f   : > { %9867 = vst [vmem:[#allocation52_spill] sm:$0xff] %v6583_v23  ;;  %v1176_v23 = vmul.f32 %v1174_v52, %v6464_v14 }
 0x182   : > { %1165 = vrot.lane.b32.xlu1 %v1161_v63, %s6013_s8  ;;  %v1214_v63 = vstv %s5430_s16  ;;  %s5442_s16 = sld [smem:[#allocation2 + $0x18]] }
 0x183   : > { %1153 = vrot.lane.b32.xlu0 %v1148_v31, %s6013_s8  ;;  %v1215_v31 = vmul.f32 %v1214_v63, %v6599_v33 }
 0x184   : > { %v6589_v38 = vpop.permute.xlu1 %845  ;;  %1167 = vrot.lane.b32.xlu2 %v1162_v36, %s6013_s8 }
 0x185   : > { %9868 = vst [vmem:[#allocation53_spill] sm:$0xff] %v6589_v38  ;;  %v6592_v39 = vpop.permute.xlu0 %833  ;;  %v1228_v38 = vstv %s5431_s17  ;;  %s5443_s17 = sld [smem:[#allocation2 + $0x7c]] }
 0x186   : > { %9869 = vst [vmem:[#allocation54_spill] sm:$0xff] %v6592_v39  ;;  %v6595_v57 = vpop.permute.xlu2 %915  ;;  %v6607_v39 = vld [vmem:[%s6140_s28 + $0xc] sm:$0xf]  ;;  %v1229_v18 = vmul.f32 %v1228_v38, %v6599_v33 }
 0x187   : > { %9870 = vst [vmem:[#allocation55_spill] sm:$0xff] %v6595_v57  ;;  %v1216_v57 = vmul.f32 %v1214_v63, %v6607_v39 }
 0x18a   : > { %1181 = vrot.lane.b32.xlu1 %v1176_v23, %s6013_s8  ;;  %v1230_v23 = vmul.f32 %v1228_v38, %v6607_v39  ;;  %v1257_v38 = vmul.f32 %v1256_v1, %v6599_v33 }
 0x18b   : > { %1179 = vrot.lane.b32.xlu0 %v1175_v50, %s6013_s8  ;;  %v1242_v50 = vstv %s5432_s19  ;;  %s5444_s19 = sld [smem:[#allocation2 + $0xe0]] }
 0x18c   : > { %v6604_v36 = vpop.permute.xlu1 %861  ;;  %1219 = vrot.lane.b32.xlu2 %v1215_v31, %s6010_s14  ;;  %v1243_v63 = vmul.f32 %v1242_v50, %v6599_v33 }
 0x18d   : > { %9871 = vst [vmem:[#allocation56_spill] sm:$0xff] %v6604_v36  ;;  %v6610_v14 = vpop.permute.xlu0 %859 }
 0x18e   : > { %9872 = vst [vmem:[#allocation57_spill] sm:$0xff] %v6610_v14  ;;  %v6613_v52 = vpop.permute.xlu2 %931  ;;  %v1244_v14 = vmul.f32 %v1242_v50, %v6607_v39  ;;  %v1258_v50 = vmul.f32 %v1256_v1, %v6607_v39 }
 0x18f   : > { %9873 = vst [vmem:[#allocation58_spill] sm:$0xff] %v6613_v52 }
 0x192   : > { %1233 = vrot.lane.b32.xlu1 %v1229_v18, %s6010_s14 }
 0x193   : > { %1221 = vrot.lane.b32.xlu0 %v1216_v57, %s6010_s14  ;;  %v1270_v57 = vstv %s5434_s26  ;;  %s5452_s26 = sld [smem:[#allocation2 + $0x1a]] }
 0x194   : > { %v6619_v36 = vpop.permute.xlu1 %887  ;;  %1235 = vrot.lane.b32.xlu2 %v1230_v23, %s6010_s14 }
 0x195   : > { %9874 = vst [vmem:[#allocation59_spill] sm:$0xff] %v6619_v36  ;;  %v6622_v31 = vpop.permute.xlu0 %875  ;;  %v1272_v36 = vmul.f32 %v1270_v57, %v6607_v39 }
 0x196   : > { %9875 = vst [vmem:[#allocation60_spill] sm:$0xff] %v6622_v31  ;;  %v6625_v52 = vpop.permute.xlu2 %983  ;;  %v1271_v31 = vmul.f32 %v1270_v57, %v6599_v33 }
 0x197   : > { %9876 = vst [vmem:[#allocation61_spill] sm:$0xff] %v6625_v52 }
 0x19a   : > { %1249 = vrot.lane.b32.xlu1 %v1244_v14, %s6010_s14  ;;  %v1284_v14 = vstv %s5435_s29  ;;  %s5453_s29 = sld [smem:[#allocation2 + $0x7e]] }
 0x19b   : > { %1247 = vrot.lane.b32.xlu0 %v1243_v63, %s6010_s14  ;;  %v1285_v1 = vmul.f32 %v1284_v14, %v6599_v33 }
 0x19c   : > { %v6631_v18 = vpop.permute.xlu1 %903  ;;  %1261 = vrot.lane.b32.xlu2 %v1257_v38, %s6010_s14 }
 0x19d   : > { %9877 = vst [vmem:[#allocation62_spill] sm:$0xff] %v6631_v18  ;;  %v6634_v23 = vpop.permute.xlu0 %901  ;;  %v1298_v18 = vstv %s5436_s30  ;;  %s5454_s30 = sld [smem:[#allocation2 + $0xe2]] }
 0x19e   : > { %9878 = vst [vmem:[#allocation63_spill] sm:$0xff] %v6634_v23  ;;  %v6637_v52 = vpop.permute.xlu2 %999  ;;  %v1286_v23 = vmul.f32 %v1284_v14, %v6607_v39  ;;  %v1299_v57 = vmul.f32 %v1298_v18, %v6599_v33  ;;  %v1300_v14 = vmul.f32 %v1298_v18, %v6607_v39 }
 0x19f   : > { %9879 = vst [vmem:[#allocation64_spill] sm:$0xff] %v6637_v52 }
 0x1a2   : > { %1275 = vrot.lane.b32.xlu1 %v1271_v31, %s6011_s24  ;;  %v1312_v31 = vstv %s5437_s3  ;;  %s5455_s3 = sld [smem:[#allocation2 + $0x146]] }
 0x1a3   : > { %1263 = vrot.lane.b32.xlu0 %v1258_v50, %s6010_s14 }
 0x1a4   : > { %v6643_v63 = vpop.permute.xlu1 %929  ;;  %1277 = vrot.lane.b32.xlu2 %v1272_v36, %s6011_s24 }
 0x1a5   : > { %9880 = vst [vmem:[#allocation65_spill] sm:$0xff] %v6643_v63  ;;  %v6646_v38 = vpop.permute.xlu0 %917  ;;  %v1314_v63 = vmul.f32 %v1312_v31, %v6607_v39 }
 0x1a6   : > { %9881 = vst [vmem:[#allocation66_spill] sm:$0xff] %v6646_v38  ;;  %v6649_v52 = vpop.permute.xlu2 %1025  ;;  %v1313_v38 = vmul.f32 %v1312_v31, %v6599_v33 }
 0x1a7   : > { %9882 = vst [vmem:[#allocation67_spill] sm:$0xff] %v6649_v52 }
 0x1aa   : > { %1291 = vrot.lane.b32.xlu1 %v1286_v23, %s6011_s24  ;;  %v1326_v23 = vstv %s5438_s7  ;;  %s5456_s7 = sld [smem:[#allocation2 + $0x1b]] }
 0x1ab   : > { %1289 = vrot.lane.b32.xlu0 %v1285_v1, %s6011_s24  ;;  %v1327_v18 = vmul.f32 %v1326_v23, %v6599_v33 }
 0x1ac   : > { %v6655_v50 = vpop.permute.xlu1 %971  ;;  %1303 = vrot.lane.b32.xlu2 %v1299_v57, %s6011_s24 }
 0x1ad   : > { %9883 = vst [vmem:[#allocation68_spill] sm:$0xff] %v6655_v50  ;;  %v6658_v36 = vpop.permute.xlu0 %969  ;;  %v1328_v50 = vmul.f32 %v1326_v23, %v6607_v39 }
 0x1ae   : > { %9884 = vst [vmem:[#allocation69_spill] sm:$0xff] %v6658_v36  ;;  %v6661_v52 = vpop.permute.xlu2 %1041  ;;  %v1340_v36 = vstv %s5439_s23  ;;  %s5457_s23 = sld [smem:[#allocation2 + $0x7f]] }
 0x1af   : > { %9885 = vst [vmem:[#allocation70_spill] sm:$0xff] %v6661_v52  ;;  %v1341_v31 = vmul.f32 %v1340_v36, %v6599_v33  ;;  %v1342_v23 = vmul.f32 %v1340_v36, %v6607_v39 }
 0x1b2   : > { %1317 = vrot.lane.b32.xlu1 %v1313_v38, %s6011_s24  ;;  %v1354_v38 = vstv %s5440_s5  ;;  %s5458_s5 = sld [smem:[#allocation2 + $0xe3]] }
 0x1b3   : > { %1305 = vrot.lane.b32.xlu0 %v1300_v14, %s6011_s24 }
 0x1b4   : > { %v6667_v1 = vpop.permute.xlu1 %997  ;;  %1319 = vrot.lane.b32.xlu2 %v1314_v63, %s6011_s24 }
 0x1b5   : > { %9886 = vst [vmem:[#allocation71_spill] sm:$0xff] %v6667_v1  ;;  %v6670_v57 = vpop.permute.xlu0 %985  ;;  %v1355_v1 = vmul.f32 %v1354_v38, %v6599_v33 }
 0x1b6   : > { %9887 = vst [vmem:[#allocation72_spill] sm:$0xff] %v6670_v57  ;;  %v6673_v52 = vpop.permute.xlu2 %1067  ;;  %v1356_v57 = vmul.f32 %v1354_v38, %v6607_v39 }
 0x1b7   : > { %9888 = vst [vmem:[#allocation73_spill] sm:$0xff] %v6673_v52 }
 0x1ba   : > { %1333 = vrot.lane.b32.xlu1 %v1328_v50, %s6012_s27  ;;  %v1368_v50 = vstv %s5441_s20  ;;  %s5459_s20 = sld [smem:[#allocation2 + $0x147]] }
 0x1bb   : > { %1331 = vrot.lane.b32.xlu0 %v1327_v18, %s6012_s27  ;;  %v1369_v36 = vmul.f32 %v1368_v50, %v6599_v33 }
 0x1bc   : > { %v6679_v14 = vpop.permute.xlu1 %1013  ;;  %1345 = vrot.lane.b32.xlu2 %v1341_v31, %s6012_s27 }
 0x1bd   : > { %9889 = vst [vmem:[#allocation74_spill] sm:$0xff] %v6679_v14  ;;  %v6682_v63 = vpop.permute.xlu0 %1011  ;;  %v1370_v14 = vmul.f32 %v1368_v50, %v6607_v39 }
 0x1be   : > { %9890 = vst [vmem:[#allocation75_spill] sm:$0xff] %v6682_v63  ;;  %v6685_v52 = vpop.permute.xlu2 %1083  ;;  %v1382_v63 = vstv %s5442_s16  ;;  %s5460_s16 = sld [smem:[#allocation2 + $0x1c]] }
 0x1bf   : > { %9891 = vst [vmem:[#allocation76_spill] sm:$0xff] %v6685_v52  ;;  %v1383_v38 = vmul.f32 %v1382_v63, %v6599_v33  ;;  %v1384_v50 = vmul.f32 %v1382_v63, %v6607_v39 }
 0x1c2   : > { %1359 = vrot.lane.b32.xlu1 %v1355_v1, %s6012_s27  ;;  %v1396_v1 = vstv %s5443_s17  ;;  %s5461_s17 = sld [smem:[#allocation2 + $0x80]] }
 0x1c3   : > { %1347 = vrot.lane.b32.xlu0 %v1342_v23, %s6012_s27 }
 0x1c4   : > { %v6691_v18 = vpop.permute.xlu1 %1039  ;;  %1361 = vrot.lane.b32.xlu2 %v1356_v57, %s6012_s27 }
 0x1c5   : > { %9892 = vst [vmem:[#allocation77_spill] sm:$0xff] %v6691_v18  ;;  %v6694_v31 = vpop.permute.xlu0 %1027  ;;  %v1397_v18 = vmul.f32 %v1396_v1, %v6599_v33 }
 0x1c6   : > { %9893 = vst [vmem:[#allocation78_spill] sm:$0xff] %v6694_v31  ;;  %v6697_v52 = vpop.permute.xlu2 %1109  ;;  %v6740_v31 = vld [vmem:[%s6140_s28 + $0x18] sm:$0xf] }
 0x1c7   : > { %9894 = vst [vmem:[#allocation79_spill] sm:$0xff] %v6697_v52 }
 0x1ca   : > { %1375 = vrot.lane.b32.xlu1 %v1370_v14, %s6012_s27  ;;  %v1398_v14 = vmul.f32 %v1396_v1, %v6607_v39  ;;  %v1424_v1 = vstv %s5445_s25  ;;  %s5463_s25 = sld [smem:[#allocation2 + $0x148]] }
 0x1cb   : > { %1373 = vrot.lane.b32.xlu0 %v1369_v36, %s6012_s27  ;;  %v1410_v36 = vstv %s5444_s19  ;;  %s5462_s19 = sld [smem:[#allocation2 + $0xe4]] }
 0x1cc   : > { %v6703_v23 = vpop.permute.xlu1 %1055  ;;  %1387 = vrot.lane.b32.xlu2 %v1383_v38, %s6013_s8 }
 0x1cd   : > { %9895 = vst [vmem:[#allocation80_spill] sm:$0xff] %v6703_v23  ;;  %v6706_v57 = vpop.permute.xlu0 %1053 }
 0x1ce   : > { %9896 = vst [vmem:[#allocation81_spill] sm:$0xff] %v6706_v57  ;;  %v6709_v52 = vpop.permute.xlu2 %1125  ;;  %v1411_v57 = vmul.f32 %v1410_v36, %v6599_v33 }
 0x1cf   : > { %9897 = vst [vmem:[#allocation82_spill] sm:$0xff] %v6709_v52  ;;  %v1412_v52 = vmul.f32 %v1410_v36, %v6607_v39 }
 0x1d2   : > { %1401 = vrot.lane.b32.xlu1 %v1397_v18, %s6013_s8  ;;  %v1425_v18 = vmul.f32 %v1424_v1, %v6599_v33  ;;  %v1426_v33 = vmul.f32 %v1424_v1, %v6607_v39 }
 0x1d3   : > { %1389 = vrot.lane.b32.xlu0 %v1384_v50, %s6013_s8  ;;  %v6728_v50 = vld [vmem:[%s6140_s28 + $0x10] sm:$0xff] }
 0x1d4   : > { %v6715_v23 = vpop.permute.xlu1 %1081  ;;  %1403 = vrot.lane.b32.xlu2 %v1398_v14, %s6013_s8 }
 0x1d5   : > { %9898 = vst [vmem:[#allocation83_spill] sm:$0xff] %v6715_v23  ;;  %v6718_v38 = vpop.permute.xlu0 %1069  ;;  %v1465_v23 = vstv %s5452_s26  ;;  %s5464_s26 = sld [smem:[#allocation2 + $0x1d]] }
 0x1d6   : > { %9899 = vst [vmem:[#allocation84_spill] sm:$0xff] %v6718_v38  ;;  %v6721_v63 = vpop.permute.xlu2 %1151 }
 0x1d7   : > { %9900 = vst [vmem:[#allocation85_spill] sm:$0xff] %v6721_v63  ;;  %v1466_v63 = vmul.f32 %v6728_v50, %v1465_v23 }
 0x1da   : > { %1417 = vrot.lane.b32.xlu1 %v1412_v52, %s6013_s8  ;;  %v1467_v52 = vmul.f32 %v6740_v31, %v1465_v23 }
 0x1db   : > { %1415 = vrot.lane.b32.xlu0 %v1411_v57, %s6013_s8  ;;  %v1479_v57 = vstv %s5453_s29  ;;  %s5465_s29 = sld [smem:[#allocation2 + $0x81]] }
 0x1dc   : > { %v6730_v14 = vpop.permute.xlu1 %1097  ;;  %1429 = vrot.lane.b32.xlu2 %v1425_v18, %s6013_s8  ;;  %v1480_v1 = vmul.f32 %v6728_v50, %v1479_v57 }
 0x1dd   : > { %9901 = vst [vmem:[#allocation86_spill] sm:$0xff] %v6730_v14  ;;  %v6733_v38 = vpop.permute.xlu0 %1095 }
 0x1de   : > { %9902 = vst [vmem:[#allocation87_spill] sm:$0xff] %v6733_v38  ;;  %v6736_v36 = vpop.permute.xlu2 %1167  ;;  %v1493_v38 = vstv %s5454_s30  ;;  %s5466_s30 = sld [smem:[#allocation2 + $0xe5]] }
 0x1df   : > { %9903 = vst [vmem:[#allocation88_spill] sm:$0xff] %v6736_v36  ;;  %v1481_v36 = vmul.f32 %v6740_v31, %v1479_v57  ;;  %v1494_v23 = vmul.f32 %v6728_v50, %v1493_v38  ;;  %v1495_v57 = vmul.f32 %v6740_v31, %v1493_v38 }
 0x1e2   : > { %1470 = vrot.lane.b32.xlu1 %v1466_v63, %s6010_s14  ;;  %v1507_v63 = vstv %s5455_s3  ;;  %s5467_s3 = sld [smem:[#allocation2 + $0x149]] }
 0x1e3   : > { %1431 = vrot.lane.b32.xlu0 %v1426_v33, %s6013_s8 }
 0x1e4   : > { %v6745_v18 = vpop.permute.xlu1 %1123  ;;  %1472 = vrot.lane.b32.xlu2 %v1467_v52, %s6010_s14 }
 0x1e5   : > { %9904 = vst [vmem:[#allocation89_spill] sm:$0xff] %v6745_v18  ;;  %v6748_v14 = vpop.permute.xlu0 %1111  ;;  %v1508_v18 = vmul.f32 %v6728_v50, %v1507_v63 }
 0x1e6   : > { %9905 = vst [vmem:[#allocation90_spill] sm:$0xff] %v6748_v14  ;;  %v6751_v39 = vpop.permute.xlu2 %1219  ;;  %v1509_v14 = vmul.f32 %v6740_v31, %v1507_v63 }
 0x1e7   : > { %9906 = vst [vmem:[#allocation91_spill] sm:$0xff] %v6751_v39 }
 0x1ea   : > { %1486 = vrot.lane.b32.xlu1 %v1481_v36, %s6010_s14  ;;  %v1521_v36 = vstv %s5456_s7  ;;  %s5474_s7 = sld [smem:[#allocation2 + $0x1f]] }
 0x1eb   : > { %1484 = vrot.lane.b32.xlu0 %v1480_v1, %s6010_s14  ;;  %v1522_v38 = vmul.f32 %v6728_v50, %v1521_v36 }
 0x1ec   : > { %v6757_v33 = vpop.permute.xlu1 %1139  ;;  %1498 = vrot.lane.b32.xlu2 %v1494_v23, %s6010_s14 }
 0x1ed   : > { %9907 = vst [vmem:[#allocation92_spill] sm:$0xff] %v6757_v33  ;;  %v6760_v52 = vpop.permute.xlu0 %1137  ;;  %v1523_v33 = vmul.f32 %v6740_v31, %v1521_v36 }
 0x1ee   : > { %9908 = vst [vmem:[#allocation93_spill] sm:$0xff] %v6760_v52  ;;  %v6763_v39 = vpop.permute.xlu2 %1235  ;;  %v1535_v52 = vstv %s5457_s23  ;;  %s5475_s23 = sld [smem:[#allocation2 + $0x83]] }
 0x1ef   : > { %9909 = vst [vmem:[#allocation94_spill] sm:$0xff] %v6763_v39  ;;  %v1536_v63 = vmul.f32 %v6728_v50, %v1535_v52  ;;  %v1537_v36 = vmul.f32 %v6740_v31, %v1535_v52 }
 0x1f2   : > { %1512 = vrot.lane.b32.xlu1 %v1508_v18, %s6010_s14  ;;  %v1549_v18 = vstv %s5458_s5  ;;  %s5476_s5 = sld [smem:[#allocation2 + $0xe7]] }
 0x1f3   : > { %1500 = vrot.lane.b32.xlu0 %v1495_v57, %s6010_s14 }
 0x1f4   : > { %v6769_v1 = vpop.permute.xlu1 %1165  ;;  %1514 = vrot.lane.b32.xlu2 %v1509_v14, %s6010_s14 }
 0x1f5   : > { %9910 = vst [vmem:[#allocation95_spill] sm:$0xff] %v6769_v1  ;;  %v6772_v23 = vpop.permute.xlu0 %1153  ;;  %v1551_v1 = vmul.f32 %v6740_v31, %v1549_v18 }
 0x1f6   : > { %9911 = vst [vmem:[#allocation96_spill] sm:$0xff] %v6772_v23  ;;  %v6775_v39 = vpop.permute.xlu2 %1261  ;;  %v1550_v23 = vmul.f32 %v6728_v50, %v1549_v18 }
 0x1f7   : > { %9912 = vst [vmem:[#allocation97_spill] sm:$0xff] %v6775_v39 }
 0x1fa   : > { %1528 = vrot.lane.b32.xlu1 %v1523_v33, %s6011_s24  ;;  %v1563_v33 = vstv %s5459_s20  ;;  %s5477_s20 = sld [smem:[#allocation2 + $0x14b]] }
 0x1fb   : > { %1526 = vrot.lane.b32.xlu0 %v1522_v38, %s6011_s24  ;;  %v1564_v52 = vmul.f32 %v6728_v50, %v1563_v33 }
 0x1fc   : > { %v6781_v57 = vpop.permute.xlu1 %1181  ;;  %1540 = vrot.lane.b32.xlu2 %v1536_v63, %s6011_s24 }
 0x1fd   : > { %9913 = vst [vmem:[#allocation98_spill] sm:$0xff] %v6781_v57  ;;  %v6784_v14 = vpop.permute.xlu0 %1179  ;;  %v1577_v57 = vstv %s5460_s16  ;;  %s5478_s16 = sld [smem:[#allocation2 + $0x20]] }
 0x1fe   : > { %9914 = vst [vmem:[#allocation99_spill] sm:$0xff] %v6784_v14  ;;  %v6787_v39 = vpop.permute.xlu2 %1277  ;;  %v1565_v14 = vmul.f32 %v6740_v31, %v1563_v33  ;;  %v1578_v18 = vmul.f32 %v6728_v50, %v1577_v57  ;;  %v1579_v33 = vmul.f32 %v6740_v31, %v1577_v57 }
 0x1ff   : > { %9915 = vst [vmem:[#allocation100_spill] sm:$0xff] %v6787_v39 }
 0x202   : > { %1554 = vrot.lane.b32.xlu1 %v1550_v23, %s6011_s24  ;;  %v1591_v23 = vstv %s5461_s17  ;;  %s5479_s17 = sld [smem:[#allocation2 + $0x84]] }
 0x203   : > { %1542 = vrot.lane.b32.xlu0 %v1537_v36, %s6011_s24 }
 0x204   : > { %v6793_v38 = vpop.permute.xlu1 %1233  ;;  %1556 = vrot.lane.b32.xlu2 %v1551_v1, %s6011_s24 }
 0x205   : > { %9916 = vst [vmem:[#allocation101_spill] sm:$0xff] %v6793_v38  ;;  %v6796_v63 = vpop.permute.xlu0 %1221  ;;  %v1592_v38 = vmul.f32 %v6728_v50, %v1591_v23 }
 0x206   : > { %9917 = vst [vmem:[#allocation102_spill] sm:$0xff] %v6796_v63  ;;  %v6799_v39 = vpop.permute.xlu2 %1303  ;;  %v1593_v63 = vmul.f32 %v6740_v31, %v1591_v23 }
 0x207   : > { %9918 = vst [vmem:[#allocation103_spill] sm:$0xff] %v6799_v39 }
 0x20a   : > { %1570 = vrot.lane.b32.xlu1 %v1565_v14, %s6011_s24  ;;  %v1605_v14 = vstv %s5462_s19  ;;  %s5480_s19 = sld [smem:[#allocation2 + $0xe8]] }
 0x20b   : > { %1568 = vrot.lane.b32.xlu0 %v1564_v52, %s6011_s24  ;;  %v1606_v57 = vmul.f32 %v6728_v50, %v1605_v14 }
 0x20c   : > { %v6805_v36 = vpop.permute.xlu1 %1249  ;;  %1582 = vrot.lane.b32.xlu2 %v1578_v18, %s6012_s27 }
 0x20d   : > { %9919 = vst [vmem:[#allocation104_spill] sm:$0xff] %v6805_v36  ;;  %v6808_v1 = vpop.permute.xlu0 %1247  ;;  %v1607_v36 = vmul.f32 %v6740_v31, %v1605_v14 }
 0x20e   : > { %9920 = vst [vmem:[#allocation105_spill] sm:$0xff] %v6808_v1  ;;  %v6811_v39 = vpop.permute.xlu2 %1319  ;;  %v1619_v1 = vstv %s5463_s25  ;;  %s5481_s25 = sld [smem:[#allocation2 + $0x14c]] }
 0x20f   : > { %9921 = vst [vmem:[#allocation106_spill] sm:$0xff] %v6811_v39  ;;  %v1620_v23 = vmul.f32 %v6728_v50, %v1619_v1  ;;  %v1621_v14 = vmul.f32 %v6740_v31, %v1619_v1 }
 0x212   : > { %1596 = vrot.lane.b32.xlu1 %v1592_v38, %s6012_s27  ;;  %v1633_v38 = vstv %s5464_s26  ;;  %s5482_s26 = sld [smem:[#allocation2 + $0x21]] }
 0x213   : > { %1584 = vrot.lane.b32.xlu0 %v1579_v33, %s6012_s27 }
 0x214   : > { %v6817_v52 = vpop.permute.xlu1 %1275  ;;  %1598 = vrot.lane.b32.xlu2 %v1593_v63, %s6012_s27 }
 0x215   : > { %9922 = vst [vmem:[#allocation107_spill] sm:$0xff] %v6817_v52  ;;  %v6820_v18 = vpop.permute.xlu0 %1263  ;;  %v1634_v52 = vmul.f32 %v6728_v50, %v1633_v38 }
 0x216   : > { %9923 = vst [vmem:[#allocation108_spill] sm:$0xff] %v6820_v18  ;;  %v6823_v39 = vpop.permute.xlu2 %1345  ;;  %v1635_v18 = vmul.f32 %v6740_v31, %v1633_v38  ;;  %v1675_v38 = vstv %s5467_s3  ;;  %s5485_s3 = sld [smem:[#allocation2 + $0x14d]] }
 0x217   : > { %9924 = vst [vmem:[#allocation109_spill] sm:$0xff] %v6823_v39 }
 0x21a   : > { %1612 = vrot.lane.b32.xlu1 %v1607_v36, %s6012_s27  ;;  %v1647_v36 = vstv %s5465_s29  ;;  %s5483_s29 = sld [smem:[#allocation2 + $0x85]] }
 0x21b   : > { %1610 = vrot.lane.b32.xlu0 %v1606_v57, %s6012_s27  ;;  %v1648_v1 = vmul.f32 %v6728_v50, %v1647_v36 }
 0x21c   : > { %v6829_v33 = vpop.permute.xlu1 %1291  ;;  %1624 = vrot.lane.b32.xlu2 %v1620_v23, %s6012_s27 }
 0x21d   : > { %9925 = vst [vmem:[#allocation110_spill] sm:$0xff] %v6829_v33  ;;  %v6832_v63 = vpop.permute.xlu0 %1289  ;;  %v1649_v33 = vmul.f32 %v6740_v31, %v1647_v36 }
 0x21e   : > { %9926 = vst [vmem:[#allocation111_spill] sm:$0xff] %v6832_v63  ;;  %v6835_v39 = vpop.permute.xlu2 %1361  ;;  %v1661_v63 = vstv %s5466_s30  ;;  %s5484_s30 = sld [smem:[#allocation2 + $0xe9]] }
 0x21f   : > { %9927 = vst [vmem:[#allocation112_spill] sm:$0xff] %v6835_v39 }
 0x222   : > { %1638 = vrot.lane.b32.xlu1 %v1634_v52, %s6013_s8  ;;  %v1662_v52 = vmul.f32 %v6728_v50, %v1661_v63 }
 0x223   : > { %1626 = vrot.lane.b32.xlu0 %v1621_v14, %s6012_s27 }
 0x224   : > { %v6841_v57 = vpop.permute.xlu1 %1317  ;;  %1640 = vrot.lane.b32.xlu2 %v1635_v18, %s6013_s8 }
 0x225   : > { %9928 = vst [vmem:[#allocation113_spill] sm:$0xff] %v6841_v57  ;;  %v6844_v23 = vpop.permute.xlu0 %1305  ;;  %v1663_v57 = vmul.f32 %v6740_v31, %v1661_v63 }
 0x226   : > { %9929 = vst [vmem:[#allocation114_spill] sm:$0xff] %v6844_v23  ;;  %v6847_v39 = vpop.permute.xlu2 %1387 }
 0x227   : > { %9930 = vst [vmem:[#allocation115_spill] sm:$0xff] %v6847_v39  ;;  %v1676_v39 = vmul.f32 %v6728_v50, %v1675_v38 }
 0x22a   : > { %1654 = vrot.lane.b32.xlu1 %v1649_v33, %s6013_s8  ;;  %v1677_v33 = vmul.f32 %v6740_v31, %v1675_v38  ;;  %v1743_v38 = vstv %s5476_s5  ;;  %s5488_s5 = sld [smem:[#allocation2 + $0xea]] }
 0x22b   : > { %1652 = vrot.lane.b32.xlu0 %v1648_v1, %s6013_s8  ;;  %v6866_v1 = vld [vmem:[%s6140_s28 + $0x19] sm:$0xf] }
 0x22c   : > { %v6853_v18 = vpop.permute.xlu1 %1333  ;;  %1666 = vrot.lane.b32.xlu2 %v1662_v52, %s6013_s8  ;;  %v1745_v23 = vmul.f32 %v6866_v1, %v1743_v38 }
 0x22d   : > { %9931 = vst [vmem:[#allocation116_spill] sm:$0xff] %v6853_v18  ;;  %v6856_v14 = vpop.permute.xlu0 %1331  ;;  %v1715_v18 = vstv %s5474_s7  ;;  %s5486_s7 = sld [smem:[#allocation2 + $0x22]] }
 0x22e   : > { %9932 = vst [vmem:[#allocation117_spill] sm:$0xff] %v6856_v14  ;;  %v6859_v36 = vpop.permute.xlu2 %1403  ;;  %v6871_v14 = vld [vmem:[%s6140_s28 + $0x11] sm:$0xff]  ;;  %v1717_v63 = vmul.f32 %v6866_v1, %v1715_v18 }
 0x22f   : > { %9933 = vst [vmem:[#allocation118_spill] sm:$0xff] %v6859_v36  ;;  %v1716_v31 = vmul.f32 %v6871_v14, %v1715_v18 }
 0x232   : > { %1680 = vrot.lane.b32.xlu1 %v1676_v39, %s6013_s8  ;;  %v1729_v39 = vstv %s5475_s23  ;;  %s5487_s23 = sld [smem:[#allocation2 + $0x86]] }
 0x233   : > { %1668 = vrot.lane.b32.xlu0 %v1663_v57, %s6013_s8  ;;  %v1730_v57 = vmul.f32 %v6871_v14, %v1729_v39  ;;  %v1731_v18 = vmul.f32 %v6866_v1, %v1729_v39 }
 0x234   : > { %v6868_v52 = vpop.permute.xlu1 %1359  ;;  %1682 = vrot.lane.b32.xlu2 %v1677_v33, %s6013_s8 }
 0x235   : > { %9934 = vst [vmem:[#allocation119_spill] sm:$0xff] %v6868_v52  ;;  %v6874_v50 = vpop.permute.xlu0 %1347 }
 0x236   : > { %9935 = vst [vmem:[#allocation120_spill] sm:$0xff] %v6874_v50  ;;  %v6877_v36 = vpop.permute.xlu2 %1429  ;;  %v1744_v50 = vmul.f32 %v6871_v14, %v1743_v38 }
 0x237   : > { %9936 = vst [vmem:[#allocation121_spill] sm:$0xff] %v6877_v36 }
 0x23a   : > { %1722 = vrot.lane.b32.xlu1 %v1717_v63, %s6010_s14  ;;  %v1757_v63 = vstv %s5477_s20  ;;  %s5489_s20 = sld [smem:[#allocation2 + $0x14e]] }
 0x23b   : > { %1720 = vrot.lane.b32.xlu0 %v1716_v31, %s6010_s14  ;;  %v1758_v39 = vmul.f32 %v6871_v14, %v1757_v63 }
 0x23c   : > { %v6883_v52 = vpop.permute.xlu1 %1375  ;;  %1734 = vrot.lane.b32.xlu2 %v1730_v57, %s6010_s14 }
 0x23d   : > { %9937 = vst [vmem:[#allocation122_spill] sm:$0xff] %v6883_v52  ;;  %v6886_v33 = vpop.permute.xlu0 %1373  ;;  %v1771_v52 = vstv %s5478_s16  ;;  %s5496_s16 = sld [smem:[#allocation2 + $0x24]] }
 0x23e   : > { %9938 = vst [vmem:[#allocation123_spill] sm:$0xff] %v6886_v33  ;;  %v6889_v36 = vpop.permute.xlu2 %1472  ;;  %v1759_v33 = vmul.f32 %v6866_v1, %v1757_v63  ;;  %v1772_v38 = vmul.f32 %v6871_v14, %v1771_v52  ;;  %v1773_v63 = vmul.f32 %v6866_v1, %v1771_v52 }
 0x23f   : > { %9939 = vst [vmem:[#allocation124_spill] sm:$0xff] %v6889_v36 }
 0x242   : > { %1748 = vrot.lane.b32.xlu1 %v1744_v50, %s6010_s14  ;;  %v1785_v50 = vstv %s5479_s17  ;;  %s5497_s17 = sld [smem:[#allocation2 + $0x88]] }
 0x243   : > { %1736 = vrot.lane.b32.xlu0 %v1731_v18, %s6010_s14 }
 0x244   : > { %v6895_v31 = vpop.permute.xlu1 %1401  ;;  %1750 = vrot.lane.b32.xlu2 %v1745_v23, %s6010_s14 }
 0x245   : > { %9940 = vst [vmem:[#allocation125_spill] sm:$0xff] %v6895_v31  ;;  %v6898_v57 = vpop.permute.xlu0 %1389  ;;  %v1787_v31 = vmul.f32 %v6866_v1, %v1785_v50 }
 0x246   : > { %9941 = vst [vmem:[#allocation126_spill] sm:$0xff] %v6898_v57  ;;  %v6901_v36 = vpop.permute.xlu2 %1498  ;;  %v1786_v57 = vmul.f32 %v6871_v14, %v1785_v50 }
 0x247   : > { %9942 = vst [vmem:[#allocation127_spill] sm:$0xff] %v6901_v36 }
 0x24a   : > { %1764 = vrot.lane.b32.xlu1 %v1759_v33, %s6010_s14  ;;  %v1799_v33 = vstv %s5480_s19  ;;  %s5498_s19 = sld [smem:[#allocation2 + $0xec]] }
 0x24b   : > { %1762 = vrot.lane.b32.xlu0 %v1758_v39, %s6010_s14  ;;  %v1800_v52 = vmul.f32 %v6871_v14, %v1799_v33 }
 0x24c   : > { %v6907_v18 = vpop.permute.xlu1 %1417  ;;  %1776 = vrot.lane.b32.xlu2 %v1772_v38, %s6011_s24 }
 0x24d   : > { %9943 = vst [vmem:[#allocation128_spill] sm:$0xff] %v6907_v18  ;;  %v6910_v23 = vpop.permute.xlu0 %1415  ;;  %v1813_v18 = vstv %s5481_s25  ;;  %s5499_s25 = sld [smem:[#allocation2 + $0x150]] }
 0x24e   : > { %9944 = vst [vmem:[#allocation129_spill] sm:$0xff] %v6910_v23  ;;  %v6913_v36 = vpop.permute.xlu2 %1514  ;;  %v1801_v23 = vmul.f32 %v6866_v1, %v1799_v33  ;;  %v1814_v50 = vmul.f32 %v6871_v14, %v1813_v18  ;;  %v1815_v33 = vmul.f32 %v6866_v1, %v1813_v18 }
 0x24f   : > { %9945 = vst [vmem:[#allocation130_spill] sm:$0xff] %v6913_v36 }
 0x252   : > { %1790 = vrot.lane.b32.xlu1 %v1786_v57, %s6011_s24  ;;  %v1827_v57 = vstv %s5482_s26  ;;  %s5500_s26 = sld [smem:[#allocation2 + $0x25]] }
 0x253   : > { %1778 = vrot.lane.b32.xlu0 %v1773_v63, %s6011_s24 }
 0x254   : > { %v6919_v39 = vpop.permute.xlu1 %1470  ;;  %1792 = vrot.lane.b32.xlu2 %v1787_v31, %s6011_s24 }
 0x255   : > { %9946 = vst [vmem:[#allocation131_spill] sm:$0xff] %v6919_v39  ;;  %v6922_v38 = vpop.permute.xlu0 %1431  ;;  %v1828_v39 = vmul.f32 %v6871_v14, %v1827_v57 }
 0x256   : > { %9947 = vst [vmem:[#allocation132_spill] sm:$0xff] %v6922_v38  ;;  %v6925_v36 = vpop.permute.xlu2 %1540  ;;  %v1829_v38 = vmul.f32 %v6866_v1, %v1827_v57 }
 0x257   : > { %9948 = vst [vmem:[#allocation133_spill] sm:$0xff] %v6925_v36 }
 0x25a   : > { %1806 = vrot.lane.b32.xlu1 %v1801_v23, %s6011_s24  ;;  %v1841_v23 = vstv %s5483_s29  ;;  %s5501_s29 = sld [smem:[#allocation2 + $0x89]] }
 0x25b   : > { %1804 = vrot.lane.b32.xlu0 %v1800_v52, %s6011_s24  ;;  %v1842_v18 = vmul.f32 %v6871_v14, %v1841_v23 }
 0x25c   : > { %v6931_v63 = vpop.permute.xlu1 %1486  ;;  %1818 = vrot.lane.b32.xlu2 %v1814_v50, %s6011_s24 }
 0x25d   : > { %9949 = vst [vmem:[#allocation134_spill] sm:$0xff] %v6931_v63  ;;  %v6934_v31 = vpop.permute.xlu0 %1484  ;;  %v1843_v63 = vmul.f32 %v6866_v1, %v1841_v23 }
 0x25e   : > { %9950 = vst [vmem:[#allocation135_spill] sm:$0xff] %v6934_v31  ;;  %v6937_v36 = vpop.permute.xlu2 %1556  ;;  %v1855_v31 = vstv %s5484_s30  ;;  %s5502_s30 = sld [smem:[#allocation2 + $0xed]] }
 0x25f   : > { %9951 = vst [vmem:[#allocation136_spill] sm:$0xff] %v6937_v36  ;;  %v1856_v57 = vmul.f32 %v6871_v14, %v1855_v31  ;;  %v1857_v23 = vmul.f32 %v6866_v1, %v1855_v31 }
 0x262   : > { %1832 = vrot.lane.b32.xlu1 %v1828_v39, %s6012_s27  ;;  %v1869_v39 = vstv %s5485_s3  ;;  %s5503_s3 = sld [smem:[#allocation2 + $0x151]] }
 0x263   : > { %1820 = vrot.lane.b32.xlu0 %v1815_v33, %s6011_s24 }
 0x264   : > { %v6943_v52 = vpop.permute.xlu1 %1512  ;;  %1834 = vrot.lane.b32.xlu2 %v1829_v38, %s6012_s27 }
 0x265   : > { %9952 = vst [vmem:[#allocation137_spill] sm:$0xff] %v6943_v52  ;;  %v6946_v50 = vpop.permute.xlu0 %1500  ;;  %v1870_v52 = vmul.f32 %v6871_v14, %v1869_v39 }
 0x266   : > { %9953 = vst [vmem:[#allocation138_spill] sm:$0xff] %v6946_v50  ;;  %v6949_v36 = vpop.permute.xlu2 %1582  ;;  %v1871_v50 = vmul.f32 %v6866_v1, %v1869_v39 }
 0x267   : > { %9954 = vst [vmem:[#allocation139_spill] sm:$0xff] %v6949_v36 }
 0x26a   : > { %1848 = vrot.lane.b32.xlu1 %v1843_v63, %s6012_s27  ;;  %v1883_v63 = vstv %s5486_s7  ;;  %s5504_s7 = sld [smem:[#allocation2 + $0x26]] }
 0x26b   : > { %1846 = vrot.lane.b32.xlu0 %v1842_v18, %s6012_s27  ;;  %v1884_v31 = vmul.f32 %v6871_v14, %v1883_v63 }
 0x26c   : > { %v6955_v33 = vpop.permute.xlu1 %1528  ;;  %1860 = vrot.lane.b32.xlu2 %v1856_v57, %s6012_s27 }
 0x26d   : > { %9955 = vst [vmem:[#allocation140_spill] sm:$0xff] %v6955_v33  ;;  %v6958_v38 = vpop.permute.xlu0 %1526  ;;  %v1885_v33 = vmul.f32 %v6866_v1, %v1883_v63 }
 0x26e   : > { %9956 = vst [vmem:[#allocation141_spill] sm:$0xff] %v6958_v38  ;;  %v6961_v36 = vpop.permute.xlu2 %1598  ;;  %v1897_v38 = vstv %s5487_s23  ;;  %s5505_s23 = sld [smem:[#allocation2 + $0x8a]] }
 0x26f   : > { %9957 = vst [vmem:[#allocation142_spill] sm:$0xff] %v6961_v36  ;;  %v1898_v39 = vmul.f32 %v6871_v14, %v1897_v38  ;;  %v1899_v63 = vmul.f32 %v6866_v1, %v1897_v38 }
 0x272   : > { %1874 = vrot.lane.b32.xlu1 %v1870_v52, %s6012_s27  ;;  %v1911_v52 = vstv %s5488_s5  ;;  %s5506_s5 = sld [smem:[#allocation2 + $0xee]] }
 0x273   : > { %1862 = vrot.lane.b32.xlu0 %v1857_v23, %s6012_s27 }
 0x274   : > { %v6967_v18 = vpop.permute.xlu1 %1554  ;;  %1876 = vrot.lane.b32.xlu2 %v1871_v50, %s6012_s27 }
 0x275   : > { %9958 = vst [vmem:[#allocation143_spill] sm:$0xff] %v6967_v18  ;;  %v6970_v57 = vpop.permute.xlu0 %1542 }
 0x276   : > { %9959 = vst [vmem:[#allocation144_spill] sm:$0xff] %v6970_v57  ;;  %v6973_v36 = vpop.permute.xlu2 %1624  ;;  %v2007_v57 = vstv %s5499_s25  ;;  %s5511_s25 = sld [smem:[#allocation2 + $0x153]] }
 0x277   : > { %9960 = vst [vmem:[#allocation145_spill] sm:$0xff] %v6973_v36  ;;  %v1912_v36 = vmul.f32 %v6871_v14, %v1911_v52 }
 0x27a   : > { %1890 = vrot.lane.b32.xlu1 %v1885_v33, %s6013_s8  ;;  %v1913_v33 = vmul.f32 %v6866_v1, %v1911_v52  ;;  %v7001_v52 = vld [vmem:[%s6140_s28 + $0x12] sm:$0xff] }
 0x27b   : > { %1888 = vrot.lane.b32.xlu0 %v1884_v31, %s6013_s8  ;;  %v1925_v31 = vstv %s5489_s20  ;;  %s5507_s20 = sld [smem:[#allocation2 + $0x152]] }
 0x27c   : > { %v6979_v23 = vpop.permute.xlu1 %1570  ;;  %1902 = vrot.lane.b32.xlu2 %v1898_v39, %s6013_s8  ;;  %v1926_v38 = vmul.f32 %v6871_v14, %v1925_v31 }
 0x27d   : > { %9961 = vst [vmem:[#allocation146_spill] sm:$0xff] %v6979_v23  ;;  %v6982_v50 = vpop.permute.xlu0 %1568 }
 0x27e   : > { %9962 = vst [vmem:[#allocation147_spill] sm:$0xff] %v6982_v50  ;;  %v6985_v18 = vpop.permute.xlu2 %1640 }
 0x27f   : > { %9963 = vst [vmem:[#allocation148_spill] sm:$0xff] %v6985_v18  ;;  %v1927_v18 = vmul.f32 %v6866_v1, %v1925_v31 }
 0x282   : > { %1916 = vrot.lane.b32.xlu1 %v1912_v36, %s6013_s8  ;;  %v1965_v36 = vstv %s5496_s16  ;;  %s5508_s16 = sld [smem:[#allocation2 + $0x27]] }
 0x283   : > { %1904 = vrot.lane.b32.xlu0 %v1899_v63, %s6013_s8  ;;  %v1966_v63 = vmul.f32 %v7001_v52, %v1965_v36 }
 0x284   : > { %v6991_v39 = vpop.permute.xlu1 %1596  ;;  %1918 = vrot.lane.b32.xlu2 %v1913_v33, %s6013_s8 }
 0x285   : > { %9964 = vst [vmem:[#allocation149_spill] sm:$0xff] %v6991_v39  ;;  %v6994_v50 = vpop.permute.xlu0 %1584  ;;  %v1979_v39 = vstv %s5497_s17  ;;  %s5509_s17 = sld [smem:[#allocation2 + $0x8b]] }
 0x286   : > { %9965 = vst [vmem:[#allocation150_spill] sm:$0xff] %v6994_v50  ;;  %v6997_v23 = vpop.permute.xlu2 %1666  ;;  %v7009_v50 = vld [vmem:[%s6140_s28 + $0x1a] sm:$0xf]  ;;  %v1980_v14 = vmul.f32 %v7001_v52, %v1979_v39 }
 0x287   : > { %9966 = vst [vmem:[#allocation151_spill] sm:$0xff] %v6997_v23  ;;  %v1967_v23 = vmul.f32 %v7009_v50, %v1965_v36 }
 0x28a   : > { %1932 = vrot.lane.b32.xlu1 %v1927_v18, %s6013_s8  ;;  %v1981_v18 = vmul.f32 %v7009_v50, %v1979_v39  ;;  %v2008_v39 = vmul.f32 %v7001_v52, %v2007_v57 }
 0x28b   : > { %1930 = vrot.lane.b32.xlu0 %v1926_v38, %s6013_s8  ;;  %v1993_v38 = vstv %s5498_s19  ;;  %s5510_s19 = sld [smem:[#allocation2 + $0xef]] }
 0x28c   : > { %v7006_v33 = vpop.permute.xlu1 %1612  ;;  %1970 = vrot.lane.b32.xlu2 %v1966_v63, %s6010_s14  ;;  %v1994_v36 = vmul.f32 %v7001_v52, %v1993_v38 }
 0x28d   : > { %9967 = vst [vmem:[#allocation152_spill] sm:$0xff] %v7006_v33  ;;  %v7012_v1 = vpop.permute.xlu0 %1610 }
 0x28e   : > { %9968 = vst [vmem:[#allocation153_spill] sm:$0xff] %v7012_v1  ;;  %v7015_v31 = vpop.permute.xlu2 %1682  ;;  %v1995_v1 = vmul.f32 %v7009_v50, %v1993_v38  ;;  %v2009_v38 = vmul.f32 %v7009_v50, %v2007_v57 }
 0x28f   : > { %9969 = vst [vmem:[#allocation154_spill] sm:$0xff] %v7015_v31 }
 0x292   : > { %1984 = vrot.lane.b32.xlu1 %v1980_v14, %s6010_s14 }
 0x293   : > { %1972 = vrot.lane.b32.xlu0 %v1967_v23, %s6010_s14  ;;  %v2021_v23 = vstv %s5500_s26  ;;  %s5518_s26 = sld [smem:[#allocation2 + $0x29]] }
 0x294   : > { %v7021_v33 = vpop.permute.xlu1 %1638  ;;  %1986 = vrot.lane.b32.xlu2 %v1981_v18, %s6010_s14 }
 0x295   : > { %9970 = vst [vmem:[#allocation155_spill] sm:$0xff] %v7021_v33  ;;  %v7024_v63 = vpop.permute.xlu0 %1626  ;;  %v2023_v33 = vmul.f32 %v7009_v50, %v2021_v23 }
 0x296   : > { %9971 = vst [vmem:[#allocation156_spill] sm:$0xff] %v7024_v63  ;;  %v7027_v31 = vpop.permute.xlu2 %1734  ;;  %v2022_v63 = vmul.f32 %v7001_v52, %v2021_v23 }
 0x297   : > { %9972 = vst [vmem:[#allocation157_spill] sm:$0xff] %v7027_v31 }
 0x29a   : > { %2000 = vrot.lane.b32.xlu1 %v1995_v1, %s6010_s14  ;;  %v2035_v1 = vstv %s5501_s29  ;;  %s5519_s29 = sld [smem:[#allocation2 + $0x8d]] }
 0x29b   : > { %1998 = vrot.lane.b32.xlu0 %v1994_v36, %s6010_s14  ;;  %v2036_v57 = vmul.f32 %v7001_v52, %v2035_v1 }
 0x29c   : > { %v7033_v14 = vpop.permute.xlu1 %1654  ;;  %2012 = vrot.lane.b32.xlu2 %v2008_v39, %s6010_s14 }
 0x29d   : > { %9973 = vst [vmem:[#allocation158_spill] sm:$0xff] %v7033_v14  ;;  %v7036_v18 = vpop.permute.xlu0 %1652  ;;  %v2037_v14 = vmul.f32 %v7009_v50, %v2035_v1 }
 0x29e   : > { %9974 = vst [vmem:[#allocation159_spill] sm:$0xff] %v7036_v18  ;;  %v7039_v31 = vpop.permute.xlu2 %1750  ;;  %v2049_v18 = vstv %s5502_s30  ;;  %s5520_s30 = sld [smem:[#allocation2 + $0xf1]] }
 0x29f   : > { %9975 = vst [vmem:[#allocation160_spill] sm:$0xff] %v7039_v31  ;;  %v2050_v23 = vmul.f32 %v7001_v52, %v2049_v18  ;;  %v2051_v1 = vmul.f32 %v7009_v50, %v2049_v18 }
 0x2a2   : > { %2026 = vrot.lane.b32.xlu1 %v2022_v63, %s6011_s24  ;;  %v2063_v63 = vstv %s5503_s3  ;;  %s5521_s3 = sld [smem:[#allocation2 + $0x155]] }
 0x2a3   : > { %2014 = vrot.lane.b32.xlu0 %v2009_v38, %s6010_s14 }
 0x2a4   : > { %v7045_v36 = vpop.permute.xlu1 %1680  ;;  %2028 = vrot.lane.b32.xlu2 %v2023_v33, %s6011_s24 }
 0x2a5   : > { %9976 = vst [vmem:[#allocation161_spill] sm:$0xff] %v7045_v36  ;;  %v7048_v39 = vpop.permute.xlu0 %1668  ;;  %v2064_v36 = vmul.f32 %v7001_v52, %v2063_v63 }
 0x2a6   : > { %9977 = vst [vmem:[#allocation162_spill] sm:$0xff] %v7048_v39  ;;  %v7051_v31 = vpop.permute.xlu2 %1776  ;;  %v2065_v39 = vmul.f32 %v7009_v50, %v2063_v63 }
 0x2a7   : > { %9978 = vst [vmem:[#allocation163_spill] sm:$0xff] %v7051_v31 }
 0x2aa   : > { %2042 = vrot.lane.b32.xlu1 %v2037_v14, %s6011_s24  ;;  %v2077_v14 = vstv %s5504_s7  ;;  %s5522_s7 = sld [smem:[#allocation2 + $0x2a]] }
 0x2ab   : > { %2040 = vrot.lane.b32.xlu0 %v2036_v57, %s6011_s24  ;;  %v2078_v18 = vmul.f32 %v7001_v52, %v2077_v14 }
 0x2ac   : > { %v7057_v38 = vpop.permute.xlu1 %1722  ;;  %2054 = vrot.lane.b32.xlu2 %v2050_v23, %s6011_s24 }
 0x2ad   : > { %9979 = vst [vmem:[#allocation164_spill] sm:$0xff] %v7057_v38  ;;  %v7060_v33 = vpop.permute.xlu0 %1720  ;;  %v2079_v38 = vmul.f32 %v7009_v50, %v2077_v14 }
 0x2ae   : > { %9980 = vst [vmem:[#allocation165_spill] sm:$0xff] %v7060_v33  ;;  %v7063_v31 = vpop.permute.xlu2 %1792  ;;  %v2091_v33 = vstv %s5505_s23  ;;  %s5523_s23 = sld [smem:[#allocation2 + $0x8e]] }
 0x2af   : > { %9981 = vst [vmem:[#allocation166_spill] sm:$0xff] %v7063_v31  ;;  %v2092_v63 = vmul.f32 %v7001_v52, %v2091_v33  ;;  %v2093_v14 = vmul.f32 %v7009_v50, %v2091_v33 }
 0x2b2   : > { %2068 = vrot.lane.b32.xlu1 %v2064_v36, %s6011_s24  ;;  %v2105_v36 = vstv %s5506_s5  ;;  %s5524_s5 = sld [smem:[#allocation2 + $0xf2]] }
 0x2b3   : > { %2056 = vrot.lane.b32.xlu0 %v2051_v1, %s6011_s24 }
 0x2b4   : > { %v7069_v57 = vpop.permute.xlu1 %1748  ;;  %2070 = vrot.lane.b32.xlu2 %v2065_v39, %s6011_s24 }
 0x2b5   : > { %9982 = vst [vmem:[#allocation167_spill] sm:$0xff] %v7069_v57  ;;  %v7072_v23 = vpop.permute.xlu0 %1736  ;;  %v2107_v57 = vmul.f32 %v7009_v50, %v2105_v36 }
 0x2b6   : > { %9983 = vst [vmem:[#allocation168_spill] sm:$0xff] %v7072_v23  ;;  %v7075_v31 = vpop.permute.xlu2 %1818  ;;  %v2106_v23 = vmul.f32 %v7001_v52, %v2105_v36 }
 0x2b7   : > { %9984 = vst [vmem:[#allocation169_spill] sm:$0xff] %v7075_v31 }
 0x2ba   : > { %2084 = vrot.lane.b32.xlu1 %v2079_v38, %s6012_s27  ;;  %v2119_v38 = vstv %s5507_s20  ;;  %s5525_s20 = sld [smem:[#allocation2 + $0x156]] }
 0x2bb   : > { %2082 = vrot.lane.b32.xlu0 %v2078_v18, %s6012_s27  ;;  %v2120_v33 = vmul.f32 %v7001_v52, %v2119_v38 }
 0x2bc   : > { %v7081_v1 = vpop.permute.xlu1 %1764  ;;  %2096 = vrot.lane.b32.xlu2 %v2092_v63, %s6012_s27 }
 0x2bd   : > { %9985 = vst [vmem:[#allocation170_spill] sm:$0xff] %v7081_v1  ;;  %v7084_v39 = vpop.permute.xlu0 %1762  ;;  %v2121_v1 = vmul.f32 %v7009_v50, %v2119_v38 }
 0x2be   : > { %9986 = vst [vmem:[#allocation171_spill] sm:$0xff] %v7084_v39  ;;  %v7087_v31 = vpop.permute.xlu2 %1834  ;;  %v2133_v39 = vstv %s5508_s16  ;;  %s5526_s16 = sld [smem:[#allocation2 + $0x2b]] }
 0x2bf   : > { %9987 = vst [vmem:[#allocation172_spill] sm:$0xff] %v7087_v31  ;;  %v2134_v36 = vmul.f32 %v7001_v52, %v2133_v39  ;;  %v2135_v38 = vmul.f32 %v7009_v50, %v2133_v39 }
 0x2c2   : > { %2110 = vrot.lane.b32.xlu1 %v2106_v23, %s6012_s27  ;;  %v2147_v23 = vstv %s5509_s17  ;;  %s5527_s17 = sld [smem:[#allocation2 + $0x8f]] }
 0x2c3   : > { %2098 = vrot.lane.b32.xlu0 %v2093_v14, %s6012_s27 }
 0x2c4   : > { %v7093_v18 = vpop.permute.xlu1 %1790  ;;  %2112 = vrot.lane.b32.xlu2 %v2107_v57, %s6012_s27 }
 0x2c5   : > { %9988 = vst [vmem:[#allocation173_spill] sm:$0xff] %v7093_v18  ;;  %v7096_v63 = vpop.permute.xlu0 %1778  ;;  %v2148_v18 = vmul.f32 %v7001_v52, %v2147_v23 }
 0x2c6   : > { %9989 = vst [vmem:[#allocation174_spill] sm:$0xff] %v7096_v63  ;;  %v7099_v31 = vpop.permute.xlu2 %1860  ;;  %v7142_v63 = vld [vmem:[%s6140_s28 + $0x1b] sm:$0xf] }
 0x2c7   : > { %9990 = vst [vmem:[#allocation175_spill] sm:$0xff] %v7099_v31 }
 0x2ca   : > { %2126 = vrot.lane.b32.xlu1 %v2121_v1, %s6012_s27  ;;  %v2149_v1 = vmul.f32 %v7009_v50, %v2147_v23  ;;  %v2175_v23 = vstv %s5511_s25  ;;  %s5529_s25 = sld [smem:[#allocation2 + $0x157]] }
 0x2cb   : > { %2124 = vrot.lane.b32.xlu0 %v2120_v33, %s6012_s27  ;;  %v2161_v33 = vstv %s5510_s19  ;;  %s5528_s19 = sld [smem:[#allocation2 + $0xf3]] }
 0x2cc   : > { %v7105_v14 = vpop.permute.xlu1 %1806  ;;  %2138 = vrot.lane.b32.xlu2 %v2134_v36, %s6013_s8 }
 0x2cd   : > { %9991 = vst [vmem:[#allocation176_spill] sm:$0xff] %v7105_v14  ;;  %v7108_v57 = vpop.permute.xlu0 %1804 }
 0x2ce   : > { %9992 = vst [vmem:[#allocation177_spill] sm:$0xff] %v7108_v57  ;;  %v7111_v31 = vpop.permute.xlu2 %1876  ;;  %v2162_v57 = vmul.f32 %v7001_v52, %v2161_v33 }
 0x2cf   : > { %9993 = vst [vmem:[#allocation178_spill] sm:$0xff] %v7111_v31  ;;  %v2163_v31 = vmul.f32 %v7009_v50, %v2161_v33 }
 0x2d2   : > { %2152 = vrot.lane.b32.xlu1 %v2148_v18, %s6013_s8  ;;  %v2176_v18 = vmul.f32 %v7001_v52, %v2175_v23  ;;  %v2177_v52 = vmul.f32 %v7009_v50, %v2175_v23 }
 0x2d3   : > { %2140 = vrot.lane.b32.xlu0 %v2135_v38, %s6013_s8  ;;  %v7130_v38 = vld [vmem:[%s6140_s28 + $0x13] sm:$0xff] }
 0x2d4   : > { %v7117_v14 = vpop.permute.xlu1 %1832  ;;  %2154 = vrot.lane.b32.xlu2 %v2149_v1, %s6013_s8 }
 0x2d5   : > { %9994 = vst [vmem:[#allocation179_spill] sm:$0xff] %v7117_v14  ;;  %v7120_v36 = vpop.permute.xlu0 %1820  ;;  %v2215_v14 = vstv %s5518_s26  ;;  %s5530_s26 = sld [smem:[#allocation2 + $0x2c]] }
 0x2d6   : > { %9995 = vst [vmem:[#allocation180_spill] sm:$0xff] %v7120_v36  ;;  %v7123_v39 = vpop.permute.xlu2 %1902 }
 0x2d7   : > { %9996 = vst [vmem:[#allocation181_spill] sm:$0xff] %v7123_v39  ;;  %v2216_v39 = vmul.f32 %v7130_v38, %v2215_v14 }
 0x2da   : > { %2168 = vrot.lane.b32.xlu1 %v2163_v31, %s6013_s8  ;;  %v2217_v31 = vmul.f32 %v7142_v63, %v2215_v14 }
 0x2db   : > { %2166 = vrot.lane.b32.xlu0 %v2162_v57, %s6013_s8  ;;  %v2229_v57 = vstv %s5519_s29  ;;  %s5531_s29 = sld [smem:[#allocation2 + $0x90]] }
 0x2dc   : > { %v7132_v1 = vpop.permute.xlu1 %1848  ;;  %2180 = vrot.lane.b32.xlu2 %v2176_v18, %s6013_s8  ;;  %v2230_v23 = vmul.f32 %v7130_v38, %v2229_v57 }
 0x2dd   : > { %9997 = vst [vmem:[#allocation182_spill] sm:$0xff] %v7132_v1  ;;  %v7135_v36 = vpop.permute.xlu0 %1846 }
 0x2de   : > { %9998 = vst [vmem:[#allocation183_spill] sm:$0xff] %v7135_v36  ;;  %v7138_v33 = vpop.permute.xlu2 %1918  ;;  %v2243_v36 = vstv %s5520_s30  ;;  %s5532_s30 = sld [smem:[#allocation2 + $0xf4]] }
 0x2df   : > { %9999 = vst [vmem:[#allocation184_spill] sm:$0xff] %v7138_v33  ;;  %v2231_v33 = vmul.f32 %v7142_v63, %v2229_v57  ;;  %v2244_v14 = vmul.f32 %v7130_v38, %v2243_v36  ;;  %v2245_v57 = vmul.f32 %v7142_v63, %v2243_v36 }
 0x2e2   : > { %2220 = vrot.lane.b32.xlu1 %v2216_v39, %s6010_s14  ;;  %v2257_v39 = vstv %s5521_s3  ;;  %s5533_s3 = sld [smem:[#allocation2 + $0x158]] }
 0x2e3   : > { %2182 = vrot.lane.b32.xlu0 %v2177_v52, %s6013_s8 }
 0x2e4   : > { %v7147_v18 = vpop.permute.xlu1 %1874  ;;  %2222 = vrot.lane.b32.xlu2 %v2217_v31, %s6010_s14 }
 0x2e5   : > { %10000 = vst [vmem:[#allocation185_spill] sm:$0xff] %v7147_v18  ;;  %v7150_v1 = vpop.permute.xlu0 %1862  ;;  %v2258_v18 = vmul.f32 %v7130_v38, %v2257_v39 }
 0x2e6   : > { %10001 = vst [vmem:[#allocation186_spill] sm:$0xff] %v7150_v1  ;;  %v7153_v50 = vpop.permute.xlu2 %1970  ;;  %v2259_v1 = vmul.f32 %v7142_v63, %v2257_v39 }
 0x2e7   : > { %10002 = vst [vmem:[#allocation187_spill] sm:$0xff] %v7153_v50 }
 0x2ea   : > { %2236 = vrot.lane.b32.xlu1 %v2231_v33, %s6010_s14  ;;  %v2271_v33 = vstv %s5522_s7  ;;  %s5540_s7 = sld [smem:[#allocation2 + $0x2e]] }
 0x2eb   : > { %2234 = vrot.lane.b32.xlu0 %v2230_v23, %s6010_s14  ;;  %v2272_v36 = vmul.f32 %v7130_v38, %v2271_v33 }
 0x2ec   : > { %v7159_v52 = vpop.permute.xlu1 %1890  ;;  %2248 = vrot.lane.b32.xlu2 %v2244_v14, %s6010_s14 }
 0x2ed   : > { %10003 = vst [vmem:[#allocation188_spill] sm:$0xff] %v7159_v52  ;;  %v7162_v31 = vpop.permute.xlu0 %1888  ;;  %v2285_v52 = vstv %s5523_s23  ;;  %s5541_s23 = sld [smem:[#allocation2 + $0x92]] }
 0x2ee   : > { %10004 = vst [vmem:[#allocation189_spill] sm:$0xff] %v7162_v31  ;;  %v7165_v50 = vpop.permute.xlu2 %1986  ;;  %v2273_v31 = vmul.f32 %v7142_v63, %v2271_v33  ;;  %v2286_v39 = vmul.f32 %v7130_v38, %v2285_v52  ;;  %v2287_v33 = vmul.f32 %v7142_v63, %v2285_v52 }
 0x2ef   : > { %10005 = vst [vmem:[#allocation190_spill] sm:$0xff] %v7165_v50 }
 0x2f2   : > { %2262 = vrot.lane.b32.xlu1 %v2258_v18, %s6010_s14  ;;  %v2299_v18 = vstv %s5524_s5  ;;  %s5542_s5 = sld [smem:[#allocation2 + $0xf6]] }
 0x2f3   : > { %2250 = vrot.lane.b32.xlu0 %v2245_v57, %s6010_s14 }
 0x2f4   : > { %v7171_v23 = vpop.permute.xlu1 %1916  ;;  %2264 = vrot.lane.b32.xlu2 %v2259_v1, %s6010_s14 }
 0x2f5   : > { %10006 = vst [vmem:[#allocation191_spill] sm:$0xff] %v7171_v23  ;;  %v7174_v14 = vpop.permute.xlu0 %1904  ;;  %v2301_v23 = vmul.f32 %v7142_v63, %v2299_v18 }
 0x2f6   : > { %10007 = vst [vmem:[#allocation192_spill] sm:$0xff] %v7174_v14  ;;  %v7177_v50 = vpop.permute.xlu2 %2012  ;;  %v2300_v14 = vmul.f32 %v7130_v38, %v2299_v18 }
 0x2f7   : > { %10008 = vst [vmem:[#allocation193_spill] sm:$0xff] %v7177_v50 }
 0x2fa   : > { %2278 = vrot.lane.b32.xlu1 %v2273_v31, %s6011_s24  ;;  %v2313_v31 = vstv %s5525_s20  ;;  %s5543_s20 = sld [smem:[#allocation2 + $0x15a]] }
 0x2fb   : > { %2276 = vrot.lane.b32.xlu0 %v2272_v36, %s6011_s24  ;;  %v2314_v52 = vmul.f32 %v7130_v38, %v2313_v31 }
 0x2fc   : > { %v7183_v57 = vpop.permute.xlu1 %1932  ;;  %2290 = vrot.lane.b32.xlu2 %v2286_v39, %s6011_s24 }
 0x2fd   : > { %10009 = vst [vmem:[#allocation194_spill] sm:$0xff] %v7183_v57  ;;  %v7186_v1 = vpop.permute.xlu0 %1930  ;;  %v2327_v57 = vstv %s5526_s16  ;;  %s5544_s16 = sld [smem:[#allocation2 + $0x2f]] }
 0x2fe   : > { %10010 = vst [vmem:[#allocation195_spill] sm:$0xff] %v7186_v1  ;;  %v7189_v50 = vpop.permute.xlu2 %2028  ;;  %v2315_v1 = vmul.f32 %v7142_v63, %v2313_v31  ;;  %v2328_v18 = vmul.f32 %v7130_v38, %v2327_v57  ;;  %v2329_v31 = vmul.f32 %v7142_v63, %v2327_v57 }
 0x2ff   : > { %10011 = vst [vmem:[#allocation196_spill] sm:$0xff] %v7189_v50 }
 0x302   : > { %2304 = vrot.lane.b32.xlu1 %v2300_v14, %s6011_s24  ;;  %v2341_v14 = vstv %s5527_s17  ;;  %s5545_s17 = sld [smem:[#allocation2 + $0x93]] }
 0x303   : > { %2292 = vrot.lane.b32.xlu0 %v2287_v33, %s6011_s24 }
 0x304   : > { %v7195_v36 = vpop.permute.xlu1 %1984  ;;  %2306 = vrot.lane.b32.xlu2 %v2301_v23, %s6011_s24 }
 0x305   : > { %10012 = vst [vmem:[#allocation197_spill] sm:$0xff] %v7195_v36  ;;  %v7198_v39 = vpop.permute.xlu0 %1972  ;;  %v2343_v36 = vmul.f32 %v7142_v63, %v2341_v14 }
 0x306   : > { %10013 = vst [vmem:[#allocation198_spill] sm:$0xff] %v7198_v39  ;;  %v7201_v50 = vpop.permute.xlu2 %2054  ;;  %v2342_v39 = vmul.f32 %v7130_v38, %v2341_v14 }
 0x307   : > { %10014 = vst [vmem:[#allocation199_spill] sm:$0xff] %v7201_v50 }
 0x30a   : > { %2320 = vrot.lane.b32.xlu1 %v2315_v1, %s6011_s24  ;;  %v2355_v1 = vstv %s5528_s19  ;;  %s5546_s19 = sld [smem:[#allocation2 + $0xf7]] }
 0x30b   : > { %2318 = vrot.lane.b32.xlu0 %v2314_v52, %s6011_s24  ;;  %v2356_v57 = vmul.f32 %v7130_v38, %v2355_v1 }
 0x30c   : > { %v7207_v33 = vpop.permute.xlu1 %2000  ;;  %2332 = vrot.lane.b32.xlu2 %v2328_v18, %s6012_s27 }
 0x30d   : > { %10015 = vst [vmem:[#allocation200_spill] sm:$0xff] %v7207_v33  ;;  %v7210_v23 = vpop.permute.xlu0 %1998  ;;  %v2369_v33 = vstv %s5529_s25  ;;  %s5547_s25 = sld [smem:[#allocation2 + $0x15b]] }
 0x30e   : > { %10016 = vst [vmem:[#allocation201_spill] sm:$0xff] %v7210_v23  ;;  %v7213_v50 = vpop.permute.xlu2 %2070  ;;  %v2357_v23 = vmul.f32 %v7142_v63, %v2355_v1  ;;  %v2370_v14 = vmul.f32 %v7130_v38, %v2369_v33  ;;  %v2371_v1 = vmul.f32 %v7142_v63, %v2369_v33 }
 0x30f   : > { %10017 = vst [vmem:[#allocation202_spill] sm:$0xff] %v7213_v50 }
 0x312   : > { %2346 = vrot.lane.b32.xlu1 %v2342_v39, %s6012_s27  ;;  %v2383_v39 = vstv %s5530_s26  ;;  %s5548_s26 = sld [smem:[#allocation2 + $0x30]] }
 0x313   : > { %2334 = vrot.lane.b32.xlu0 %v2329_v31, %s6012_s27 }
 0x314   : > { %v7219_v52 = vpop.permute.xlu1 %2026  ;;  %2348 = vrot.lane.b32.xlu2 %v2343_v36, %s6012_s27 }
 0x315   : > { %10018 = vst [vmem:[#allocation203_spill] sm:$0xff] %v7219_v52  ;;  %v7222_v18 = vpop.permute.xlu0 %2014  ;;  %v2384_v52 = vmul.f32 %v7130_v38, %v2383_v39 }
 0x316   : > { %10019 = vst [vmem:[#allocation204_spill] sm:$0xff] %v7222_v18  ;;  %v7225_v50 = vpop.permute.xlu2 %2096  ;;  %v2385_v18 = vmul.f32 %v7142_v63, %v2383_v39  ;;  %v2425_v39 = vstv %s5533_s3  ;;  %s5551_s3 = sld [smem:[#allocation2 + $0x15c]] }
 0x317   : > { %10020 = vst [vmem:[#allocation205_spill] sm:$0xff] %v7225_v50 }
 0x31a   : > { %2362 = vrot.lane.b32.xlu1 %v2357_v23, %s6012_s27  ;;  %v2397_v23 = vstv %s5531_s29  ;;  %s5549_s29 = sld [smem:[#allocation2 + $0x94]] }
 0x31b   : > { %2360 = vrot.lane.b32.xlu0 %v2356_v57, %s6012_s27  ;;  %v2398_v33 = vmul.f32 %v7130_v38, %v2397_v23 }
 0x31c   : > { %v7231_v31 = vpop.permute.xlu1 %2042  ;;  %2374 = vrot.lane.b32.xlu2 %v2370_v14, %s6012_s27 }
 0x31d   : > { %10021 = vst [vmem:[#allocation206_spill] sm:$0xff] %v7231_v31  ;;  %v7234_v36 = vpop.permute.xlu0 %2040  ;;  %v2399_v31 = vmul.f32 %v7142_v63, %v2397_v23 }
 0x31e   : > { %10022 = vst [vmem:[#allocation207_spill] sm:$0xff] %v7234_v36  ;;  %v7237_v50 = vpop.permute.xlu2 %2112  ;;  %v2411_v36 = vstv %s5532_s30  ;;  %s5550_s30 = sld [smem:[#allocation2 + $0xf8]] }
 0x31f   : > { %10023 = vst [vmem:[#allocation208_spill] sm:$0xff] %v7237_v50 }
 0x322   : > { %2388 = vrot.lane.b32.xlu1 %v2384_v52, %s6013_s8  ;;  %v2412_v52 = vmul.f32 %v7130_v38, %v2411_v36 }
 0x323   : > { %2376 = vrot.lane.b32.xlu0 %v2371_v1, %s6012_s27 }
 0x324   : > { %v7243_v57 = vpop.permute.xlu1 %2068  ;;  %2390 = vrot.lane.b32.xlu2 %v2385_v18, %s6013_s8 }
 0x325   : > { %10024 = vst [vmem:[#allocation209_spill] sm:$0xff] %v7243_v57  ;;  %v7246_v14 = vpop.permute.xlu0 %2056  ;;  %v2413_v57 = vmul.f32 %v7142_v63, %v2411_v36 }
 0x326   : > { %10025 = vst [vmem:[#allocation210_spill] sm:$0xff] %v7246_v14  ;;  %v7249_v50 = vpop.permute.xlu2 %2138 }
 0x327   : > { %10026 = vst [vmem:[#allocation211_spill] sm:$0xff] %v7249_v50  ;;  %v2426_v50 = vmul.f32 %v7130_v38, %v2425_v39 }
 0x32a   : > { %2404 = vrot.lane.b32.xlu1 %v2399_v31, %s6013_s8  ;;  %v2427_v31 = vmul.f32 %v7142_v63, %v2425_v39  ;;  %v2493_v39 = vstv %s5542_s5  ;;  %s5554_s5 = sld [smem:[#allocation2 + $0xf9]] }
 0x32b   : > { %2402 = vrot.lane.b32.xlu0 %v2398_v33, %s6013_s8  ;;  %v7268_v33 = vld [vmem:[%s6140_s28 + $0x1c] sm:$0xf] }
 0x32c   : > { %v7255_v18 = vpop.permute.xlu1 %2084  ;;  %2416 = vrot.lane.b32.xlu2 %v2412_v52, %s6013_s8  ;;  %v2495_v14 = vmul.f32 %v7268_v33, %v2493_v39 }
 0x32d   : > { %10027 = vst [vmem:[#allocation212_spill] sm:$0xff] %v7255_v18  ;;  %v7258_v1 = vpop.permute.xlu0 %2082  ;;  %v2465_v18 = vstv %s5540_s7  ;;  %s5552_s7 = sld [smem:[#allocation2 + $0x31]] }
 0x32e   : > { %10028 = vst [vmem:[#allocation213_spill] sm:$0xff] %v7258_v1  ;;  %v7261_v23 = vpop.permute.xlu2 %2154  ;;  %v7273_v1 = vld [vmem:[%s6140_s28 + $0x14] sm:$0xff]  ;;  %v2467_v36 = vmul.f32 %v7268_v33, %v2465_v18 }
 0x32f   : > { %10029 = vst [vmem:[#allocation214_spill] sm:$0xff] %v7261_v23  ;;  %v2466_v63 = vmul.f32 %v7273_v1, %v2465_v18 }
 0x332   : > { %2430 = vrot.lane.b32.xlu1 %v2426_v50, %s6013_s8  ;;  %v2479_v50 = vstv %s5541_s23  ;;  %s5553_s23 = sld [smem:[#allocation2 + $0x95]] }
 0x333   : > { %2418 = vrot.lane.b32.xlu0 %v2413_v57, %s6013_s8  ;;  %v2480_v57 = vmul.f32 %v7273_v1, %v2479_v50  ;;  %v2481_v18 = vmul.f32 %v7268_v33, %v2479_v50 }
 0x334   : > { %v7270_v52 = vpop.permute.xlu1 %2110  ;;  %2432 = vrot.lane.b32.xlu2 %v2427_v31, %s6013_s8 }
 0x335   : > { %10030 = vst [vmem:[#allocation215_spill] sm:$0xff] %v7270_v52  ;;  %v7276_v38 = vpop.permute.xlu0 %2098 }
 0x336   : > { %10031 = vst [vmem:[#allocation216_spill] sm:$0xff] %v7276_v38  ;;  %v7279_v23 = vpop.permute.xlu2 %2180  ;;  %v2494_v38 = vmul.f32 %v7273_v1, %v2493_v39 }
 0x337   : > { %10032 = vst [vmem:[#allocation217_spill] sm:$0xff] %v7279_v23 }
 0x33a   : > { %2472 = vrot.lane.b32.xlu1 %v2467_v36, %s6010_s14  ;;  %v2507_v36 = vstv %s5543_s20  ;;  %s5555_s20 = sld [smem:[#allocation2 + $0x15d]] }
 0x33b   : > { %2470 = vrot.lane.b32.xlu0 %v2466_v63, %s6010_s14  ;;  %v2508_v50 = vmul.f32 %v7273_v1, %v2507_v36 }
 0x33c   : > { %v7285_v52 = vpop.permute.xlu1 %2126  ;;  %2484 = vrot.lane.b32.xlu2 %v2480_v57, %s6010_s14 }
 0x33d   : > { %10033 = vst [vmem:[#allocation218_spill] sm:$0xff] %v7285_v52  ;;  %v7288_v31 = vpop.permute.xlu0 %2124  ;;  %v2521_v52 = vstv %s5544_s16  ;;  %s5562_s16 = sld [smem:[#allocation2 + $0x33]] }
 0x33e   : > { %10034 = vst [vmem:[#allocation219_spill] sm:$0xff] %v7288_v31  ;;  %v7291_v23 = vpop.permute.xlu2 %2222  ;;  %v2509_v31 = vmul.f32 %v7268_v33, %v2507_v36  ;;  %v2522_v39 = vmul.f32 %v7273_v1, %v2521_v52  ;;  %v2523_v36 = vmul.f32 %v7268_v33, %v2521_v52 }
 0x33f   : > { %10035 = vst [vmem:[#allocation220_spill] sm:$0xff] %v7291_v23 }
 0x342   : > { %2498 = vrot.lane.b32.xlu1 %v2494_v38, %s6010_s14  ;;  %v2535_v38 = vstv %s5545_s17  ;;  %s5563_s17 = sld [smem:[#allocation2 + $0x97]] }
 0x343   : > { %2486 = vrot.lane.b32.xlu0 %v2481_v18, %s6010_s14 }
 0x344   : > { %v7297_v63 = vpop.permute.xlu1 %2152  ;;  %2500 = vrot.lane.b32.xlu2 %v2495_v14, %s6010_s14 }
 0x345   : > { %10036 = vst [vmem:[#allocation221_spill] sm:$0xff] %v7297_v63  ;;  %v7300_v57 = vpop.permute.xlu0 %2140  ;;  %v2537_v63 = vmul.f32 %v7268_v33, %v2535_v38 }
 0x346   : > { %10037 = vst [vmem:[#allocation222_spill] sm:$0xff] %v7300_v57  ;;  %v7303_v23 = vpop.permute.xlu2 %2248  ;;  %v2536_v57 = vmul.f32 %v7273_v1, %v2535_v38 }
 0x347   : > { %10038 = vst [vmem:[#allocation223_spill] sm:$0xff] %v7303_v23 }
 0x34a   : > { %2514 = vrot.lane.b32.xlu1 %v2509_v31, %s6010_s14  ;;  %v2549_v31 = vstv %s5546_s19  ;;  %s5564_s19 = sld [smem:[#allocation2 + $0xfb]] }
 0x34b   : > { %2512 = vrot.lane.b32.xlu0 %v2508_v50, %s6010_s14  ;;  %v2550_v52 = vmul.f32 %v7273_v1, %v2549_v31 }
 0x34c   : > { %v7309_v18 = vpop.permute.xlu1 %2168  ;;  %2526 = vrot.lane.b32.xlu2 %v2522_v39, %s6011_s24 }
 0x34d   : > { %10039 = vst [vmem:[#allocation224_spill] sm:$0xff] %v7309_v18  ;;  %v7312_v14 = vpop.permute.xlu0 %2166  ;;  %v2563_v18 = vstv %s5547_s25  ;;  %s5565_s25 = sld [smem:[#allocation2 + $0x15f]] }
 0x34e   : > { %10040 = vst [vmem:[#allocation225_spill] sm:$0xff] %v7312_v14  ;;  %v7315_v23 = vpop.permute.xlu2 %2264  ;;  %v2551_v14 = vmul.f32 %v7268_v33, %v2549_v31  ;;  %v2564_v38 = vmul.f32 %v7273_v1, %v2563_v18  ;;  %v2565_v31 = vmul.f32 %v7268_v33, %v2563_v18 }
 0x34f   : > { %10041 = vst [vmem:[#allocation226_spill] sm:$0xff] %v7315_v23 }
 0x352   : > { %2540 = vrot.lane.b32.xlu1 %v2536_v57, %s6011_s24  ;;  %v2577_v57 = vstv %s5548_s26  ;;  %s5566_s26 = sld [smem:[#allocation2 + $0x34]] }
 0x353   : > { %2528 = vrot.lane.b32.xlu0 %v2523_v36, %s6011_s24 }
 0x354   : > { %v7321_v50 = vpop.permute.xlu1 %2220  ;;  %2542 = vrot.lane.b32.xlu2 %v2537_v63, %s6011_s24 }
 0x355   : > { %10042 = vst [vmem:[#allocation227_spill] sm:$0xff] %v7321_v50  ;;  %v7324_v39 = vpop.permute.xlu0 %2182  ;;  %v2578_v50 = vmul.f32 %v7273_v1, %v2577_v57 }
 0x356   : > { %10043 = vst [vmem:[#allocation228_spill] sm:$0xff] %v7324_v39  ;;  %v7327_v23 = vpop.permute.xlu2 %2290  ;;  %v2579_v39 = vmul.f32 %v7268_v33, %v2577_v57 }
 0x357   : > { %10044 = vst [vmem:[#allocation229_spill] sm:$0xff] %v7327_v23 }
 0x35a   : > { %2556 = vrot.lane.b32.xlu1 %v2551_v14, %s6011_s24  ;;  %v2591_v14 = vstv %s5549_s29  ;;  %s5567_s29 = sld [smem:[#allocation2 + $0x98]] }
 0x35b   : > { %2554 = vrot.lane.b32.xlu0 %v2550_v52, %s6011_s24  ;;  %v2592_v18 = vmul.f32 %v7273_v1, %v2591_v14 }
 0x35c   : > { %v7333_v36 = vpop.permute.xlu1 %2236  ;;  %2568 = vrot.lane.b32.xlu2 %v2564_v38, %s6011_s24 }
 0x35d   : > { %10045 = vst [vmem:[#allocation230_spill] sm:$0xff] %v7333_v36  ;;  %v7336_v63 = vpop.permute.xlu0 %2234  ;;  %v2593_v36 = vmul.f32 %v7268_v33, %v2591_v14 }
 0x35e   : > { %10046 = vst [vmem:[#allocation231_spill] sm:$0xff] %v7336_v63  ;;  %v7339_v23 = vpop.permute.xlu2 %2306  ;;  %v2605_v63 = vstv %s5550_s30  ;;  %s5568_s30 = sld [smem:[#allocation2 + $0xfc]] }
 0x35f   : > { %10047 = vst [vmem:[#allocation232_spill] sm:$0xff] %v7339_v23  ;;  %v2606_v57 = vmul.f32 %v7273_v1, %v2605_v63  ;;  %v2607_v14 = vmul.f32 %v7268_v33, %v2605_v63 }
 0x362   : > { %2582 = vrot.lane.b32.xlu1 %v2578_v50, %s6012_s27  ;;  %v2619_v50 = vstv %s5551_s3  ;;  %s5569_s3 = sld [smem:[#allocation2 + $0x160]] }
 0x363   : > { %2570 = vrot.lane.b32.xlu0 %v2565_v31, %s6011_s24 }
 0x364   : > { %v7345_v52 = vpop.permute.xlu1 %2262  ;;  %2584 = vrot.lane.b32.xlu2 %v2579_v39, %s6012_s27 }
 0x365   : > { %10048 = vst [vmem:[#allocation233_spill] sm:$0xff] %v7345_v52  ;;  %v7348_v38 = vpop.permute.xlu0 %2250  ;;  %v2620_v52 = vmul.f32 %v7273_v1, %v2619_v50 }
 0x366   : > { %10049 = vst [vmem:[#allocation234_spill] sm:$0xff] %v7348_v38  ;;  %v7351_v23 = vpop.permute.xlu2 %2332  ;;  %v2621_v38 = vmul.f32 %v7268_v33, %v2619_v50 }
 0x367   : > { %10050 = vst [vmem:[#allocation235_spill] sm:$0xff] %v7351_v23 }
 0x36a   : > { %2598 = vrot.lane.b32.xlu1 %v2593_v36, %s6012_s27  ;;  %v2633_v36 = vstv %s5552_s7  ;;  %s5570_s7 = sld [smem:[#allocation2 + $0x35]] }
 0x36b   : > { %2596 = vrot.lane.b32.xlu0 %v2592_v18, %s6012_s27  ;;  %v2634_v63 = vmul.f32 %v7273_v1, %v2633_v36 }
 0x36c   : > { %v7357_v31 = vpop.permute.xlu1 %2278  ;;  %2610 = vrot.lane.b32.xlu2 %v2606_v57, %s6012_s27 }
 0x36d   : > { %10051 = vst [vmem:[#allocation236_spill] sm:$0xff] %v7357_v31  ;;  %v7360_v39 = vpop.permute.xlu0 %2276  ;;  %v2635_v31 = vmul.f32 %v7268_v33, %v2633_v36 }
 0x36e   : > { %10052 = vst [vmem:[#allocation237_spill] sm:$0xff] %v7360_v39  ;;  %v7363_v23 = vpop.permute.xlu2 %2348  ;;  %v2647_v39 = vstv %s5553_s23  ;;  %s5571_s23 = sld [smem:[#allocation2 + $0x99]] }
 0x36f   : > { %10053 = vst [vmem:[#allocation238_spill] sm:$0xff] %v7363_v23  ;;  %v2648_v50 = vmul.f32 %v7273_v1, %v2647_v39  ;;  %v2649_v36 = vmul.f32 %v7268_v33, %v2647_v39 }
 0x372   : > { %2624 = vrot.lane.b32.xlu1 %v2620_v52, %s6012_s27  ;;  %v2661_v52 = vstv %s5554_s5  ;;  %s5572_s5 = sld [smem:[#allocation2 + $0xfd]] }
 0x373   : > { %2612 = vrot.lane.b32.xlu0 %v2607_v14, %s6012_s27 }
 0x374   : > { %v7369_v18 = vpop.permute.xlu1 %2304  ;;  %2626 = vrot.lane.b32.xlu2 %v2621_v38, %s6012_s27 }
 0x375   : > { %10054 = vst [vmem:[#allocation239_spill] sm:$0xff] %v7369_v18  ;;  %v7372_v57 = vpop.permute.xlu0 %2292 }
 0x376   : > { %10055 = vst [vmem:[#allocation240_spill] sm:$0xff] %v7372_v57  ;;  %v7375_v23 = vpop.permute.xlu2 %2374 }
 0x377   : > { %10056 = vst [vmem:[#allocation241_spill] sm:$0xff] %v7375_v23  ;;  %v2662_v23 = vmul.f32 %v7273_v1, %v2661_v52 }
 0x37a   : > { %2640 = vrot.lane.b32.xlu1 %v2635_v31, %s6013_s8  ;;  %v2663_v31 = vmul.f32 %v7268_v33, %v2661_v52  ;;  %v7403_v52 = vld [vmem:[%s6140_s28 + $0x20] sm:$0xff] }
 0x37b   : > { %2638 = vrot.lane.b32.xlu0 %v2634_v63, %s6013_s8  ;;  %v2675_v63 = vstv %s5555_s20  ;;  %s5573_s20 = sld [smem:[#allocation2 + $0x161]] }
 0x37c   : > { %v7381_v14 = vpop.permute.xlu1 %2320  ;;  %2652 = vrot.lane.b32.xlu2 %v2648_v50, %s6013_s8  ;;  %v2676_v39 = vmul.f32 %v7273_v1, %v2675_v63 }
 0x37d   : > { %10057 = vst [vmem:[#allocation242_spill] sm:$0xff] %v7381_v14  ;;  %v7384_v38 = vpop.permute.xlu0 %2318 }
 0x37e   : > { %10058 = vst [vmem:[#allocation243_spill] sm:$0xff] %v7384_v38  ;;  %v7387_v18 = vpop.permute.xlu2 %2390 }
 0x37f   : > { %10059 = vst [vmem:[#allocation244_spill] sm:$0xff] %v7387_v18  ;;  %v2677_v18 = vmul.f32 %v7268_v33, %v2675_v63 }
 0x382   : > { %2666 = vrot.lane.b32.xlu1 %v2662_v23, %s6013_s8  ;;  %v2716_v23 = vstv %s5562_s16  ;;  %s5574_s16 = sld [smem:[#allocation2 + $0x36]] }
 0x383   : > { %2654 = vrot.lane.b32.xlu0 %v2649_v36, %s6013_s8  ;;  %v2717_v36 = vmul.f32 %v7403_v52, %v2716_v23 }
 0x384   : > { %v7393_v50 = vpop.permute.xlu1 %2346  ;;  %2668 = vrot.lane.b32.xlu2 %v2663_v31, %s6013_s8 }
 0x385   : > { %10060 = vst [vmem:[#allocation245_spill] sm:$0xff] %v7393_v50  ;;  %v7396_v14 = vpop.permute.xlu0 %2334  ;;  %v2730_v50 = vstv %s5563_s17  ;;  %s5575_s17 = sld [smem:[#allocation2 + $0x9a]] }
 0x386   : > { %10061 = vst [vmem:[#allocation246_spill] sm:$0xff] %v7396_v14  ;;  %v7399_v38 = vpop.permute.xlu2 %2416  ;;  %v7411_v14 = vld [vmem:[%s6140_s28 + $0x28] sm:$0xf]  ;;  %v2731_v1 = vmul.f32 %v7403_v52, %v2730_v50 }
 0x387   : > { %10062 = vst [vmem:[#allocation247_spill] sm:$0xff] %v7399_v38  ;;  %v2718_v38 = vmul.f32 %v7411_v14, %v2716_v23 }
 0x38a   : > { %2682 = vrot.lane.b32.xlu1 %v2677_v18, %s6013_s8  ;;  %v2732_v18 = vmul.f32 %v7411_v14, %v2730_v50 }
 0x38b   : > { %2680 = vrot.lane.b32.xlu0 %v2676_v39, %s6013_s8  ;;  %v2744_v39 = vstv %s5564_s19  ;;  %s5576_s19 = sld [smem:[#allocation2 + $0xfe]] }
 0x38c   : > { %v7408_v31 = vpop.permute.xlu1 %2362  ;;  %2721 = vrot.lane.b32.xlu2 %v2717_v36, %s6010_s14  ;;  %v2745_v23 = vmul.f32 %v7403_v52, %v2744_v39 }
 0x38d   : > { %10063 = vst [vmem:[#allocation248_spill] sm:$0xff] %v7408_v31  ;;  %v7414_v33 = vpop.permute.xlu0 %2360  ;;  %v2758_v31 = vstv %s5565_s25  ;;  %s5577_s25 = sld [smem:[#allocation2 + $0x162]] }
 0x38e   : > { %10064 = vst [vmem:[#allocation249_spill] sm:$0xff] %v7414_v33  ;;  %v7417_v63 = vpop.permute.xlu2 %2432  ;;  %v2746_v33 = vmul.f32 %v7411_v14, %v2744_v39  ;;  %v2759_v50 = vmul.f32 %v7403_v52, %v2758_v31  ;;  %v2760_v39 = vmul.f32 %v7411_v14, %v2758_v31 }
 0x38f   : > { %10065 = vst [vmem:[#allocation250_spill] sm:$0xff] %v7417_v63 }
 0x392   : > { %2735 = vrot.lane.b32.xlu1 %v2731_v1, %s6010_s14 }
 0x393   : > { %2723 = vrot.lane.b32.xlu0 %v2718_v38, %s6010_s14  ;;  %v2772_v38 = vstv %s5566_s26  ;;  %s5584_s26 = sld [smem:[#allocation2 + $0x38]] }
 0x394   : > { %v7423_v57 = vpop.permute.xlu1 %2388  ;;  %2737 = vrot.lane.b32.xlu2 %v2732_v18, %s6010_s14 }
 0x395   : > { %10066 = vst [vmem:[#allocation251_spill] sm:$0xff] %v7423_v57  ;;  %v7426_v36 = vpop.permute.xlu0 %2376  ;;  %v2774_v57 = vmul.f32 %v7411_v14, %v2772_v38 }
 0x396   : > { %10067 = vst [vmem:[#allocation252_spill] sm:$0xff] %v7426_v36  ;;  %v7429_v63 = vpop.permute.xlu2 %2484  ;;  %v2773_v36 = vmul.f32 %v7403_v52, %v2772_v38 }
 0x397   : > { %10068 = vst [vmem:[#allocation253_spill] sm:$0xff] %v7429_v63 }
 0x39a   : > { %2751 = vrot.lane.b32.xlu1 %v2746_v33, %s6010_s14  ;;  %v2786_v33 = vstv %s5567_s29  ;;  %s5585_s29 = sld [smem:[#allocation2 + $0x9c]] }
 0x39b   : > { %2749 = vrot.lane.b32.xlu0 %v2745_v23, %s6010_s14  ;;  %v2787_v31 = vmul.f32 %v7403_v52, %v2786_v33 }
 0x39c   : > { %v7435_v1 = vpop.permute.xlu1 %2404  ;;  %2763 = vrot.lane.b32.xlu2 %v2759_v50, %s6010_s14 }
 0x39d   : > { %10069 = vst [vmem:[#allocation254_spill] sm:$0xff] %v7435_v1  ;;  %v7438_v18 = vpop.permute.xlu0 %2402  ;;  %v2800_v1 = vstv %s5568_s30  ;;  %s5586_s30 = sld [smem:[#allocation2 + $0x100]] }
 0x39e   : > { %10070 = vst [vmem:[#allocation255_spill] sm:$0xff] %v7438_v18  ;;  %v7441_v63 = vpop.permute.xlu2 %2500  ;;  %v2788_v18 = vmul.f32 %v7411_v14, %v2786_v33  ;;  %v2801_v38 = vmul.f32 %v7403_v52, %v2800_v1  ;;  %v2802_v33 = vmul.f32 %v7411_v14, %v2800_v1 }
 0x39f   : > { %10071 = vst [vmem:[#allocation256_spill] sm:$0xff] %v7441_v63 }
 0x3a2   : > { %2777 = vrot.lane.b32.xlu1 %v2773_v36, %s6011_s24  ;;  %v2814_v36 = vstv %s5569_s3  ;;  %s5587_s3 = sld [smem:[#allocation2 + $0x164]] }
 0x3a3   : > { %2765 = vrot.lane.b32.xlu0 %v2760_v39, %s6010_s14 }
 0x3a4   : > { %v7447_v23 = vpop.permute.xlu1 %2430  ;;  %2779 = vrot.lane.b32.xlu2 %v2774_v57, %s6011_s24 }
 0x3a5   : > { %10072 = vst [vmem:[#allocation257_spill] sm:$0xff] %v7447_v23  ;;  %v7450_v50 = vpop.permute.xlu0 %2418  ;;  %v2815_v23 = vmul.f32 %v7403_v52, %v2814_v36 }
 0x3a6   : > { %10073 = vst [vmem:[#allocation258_spill] sm:$0xff] %v7450_v50  ;;  %v7453_v63 = vpop.permute.xlu2 %2526  ;;  %v2816_v50 = vmul.f32 %v7411_v14, %v2814_v36 }
 0x3a7   : > { %10074 = vst [vmem:[#allocation259_spill] sm:$0xff] %v7453_v63 }
 0x3aa   : > { %2793 = vrot.lane.b32.xlu1 %v2788_v18, %s6011_s24  ;;  %v2828_v18 = vstv %s5570_s7  ;;  %s5588_s7 = sld [smem:[#allocation2 + $0x39]] }
 0x3ab   : > { %2791 = vrot.lane.b32.xlu0 %v2787_v31, %s6011_s24  ;;  %v2829_v1 = vmul.f32 %v7403_v52, %v2828_v18 }
 0x3ac   : > { %v7459_v39 = vpop.permute.xlu1 %2472  ;;  %2805 = vrot.lane.b32.xlu2 %v2801_v38, %s6011_s24 }
 0x3ad   : > { %10075 = vst [vmem:[#allocation260_spill] sm:$0xff] %v7459_v39  ;;  %v7462_v57 = vpop.permute.xlu0 %2470  ;;  %v2830_v39 = vmul.f32 %v7411_v14, %v2828_v18 }
 0x3ae   : > { %10076 = vst [vmem:[#allocation261_spill] sm:$0xff] %v7462_v57  ;;  %v7465_v63 = vpop.permute.xlu2 %2542  ;;  %v2842_v57 = vstv %s5571_s23  ;;  %s5589_s23 = sld [smem:[#allocation2 + $0x9d]] }
 0x3af   : > { %10077 = vst [vmem:[#allocation262_spill] sm:$0xff] %v7465_v63  ;;  %v2843_v36 = vmul.f32 %v7403_v52, %v2842_v57  ;;  %v2844_v18 = vmul.f32 %v7411_v14, %v2842_v57 }
 0x3b2   : > { %2819 = vrot.lane.b32.xlu1 %v2815_v23, %s6011_s24  ;;  %v2856_v23 = vstv %s5572_s5  ;;  %s5590_s5 = sld [smem:[#allocation2 + $0x101]] }
 0x3b3   : > { %2807 = vrot.lane.b32.xlu0 %v2802_v33, %s6011_s24 }
 0x3b4   : > { %v7471_v31 = vpop.permute.xlu1 %2498  ;;  %2821 = vrot.lane.b32.xlu2 %v2816_v50, %s6011_s24 }
 0x3b5   : > { %10078 = vst [vmem:[#allocation263_spill] sm:$0xff] %v7471_v31  ;;  %v7474_v38 = vpop.permute.xlu0 %2486  ;;  %v2857_v31 = vmul.f32 %v7403_v52, %v2856_v23 }
 0x3b6   : > { %10079 = vst [vmem:[#allocation264_spill] sm:$0xff] %v7474_v38  ;;  %v7477_v63 = vpop.permute.xlu2 %2568  ;;  %v2858_v38 = vmul.f32 %v7411_v14, %v2856_v23 }
 0x3b7   : > { %10080 = vst [vmem:[#allocation265_spill] sm:$0xff] %v7477_v63 }
 0x3ba   : > { %2835 = vrot.lane.b32.xlu1 %v2830_v39, %s6012_s27  ;;  %v2870_v39 = vstv %s5573_s20  ;;  %s5591_s20 = sld [smem:[#allocation2 + $0x165]] }
 0x3bb   : > { %2833 = vrot.lane.b32.xlu0 %v2829_v1, %s6012_s27  ;;  %v2871_v57 = vmul.f32 %v7403_v52, %v2870_v39 }
 0x3bc   : > { %v7483_v33 = vpop.permute.xlu1 %2514  ;;  %2847 = vrot.lane.b32.xlu2 %v2843_v36, %s6012_s27 }
 0x3bd   : > { %10081 = vst [vmem:[#allocation266_spill] sm:$0xff] %v7483_v33  ;;  %v7486_v50 = vpop.permute.xlu0 %2512  ;;  %v2872_v33 = vmul.f32 %v7411_v14, %v2870_v39 }
 0x3be   : > { %10082 = vst [vmem:[#allocation267_spill] sm:$0xff] %v7486_v50  ;;  %v7489_v63 = vpop.permute.xlu2 %2584  ;;  %v2884_v50 = vstv %s5574_s16  ;;  %s5592_s16 = sld [smem:[#allocation2 + $0x3a]] }
 0x3bf   : > { %10083 = vst [vmem:[#allocation268_spill] sm:$0xff] %v7489_v63  ;;  %v2885_v23 = vmul.f32 %v7403_v52, %v2884_v50  ;;  %v2886_v39 = vmul.f32 %v7411_v14, %v2884_v50 }
 0x3c2   : > { %2861 = vrot.lane.b32.xlu1 %v2857_v31, %s6012_s27  ;;  %v2898_v31 = vstv %s5575_s17  ;;  %s5593_s17 = sld [smem:[#allocation2 + $0x9e]] }
 0x3c3   : > { %2849 = vrot.lane.b32.xlu0 %v2844_v18, %s6012_s27 }
 0x3c4   : > { %v7495_v1 = vpop.permute.xlu1 %2540  ;;  %2863 = vrot.lane.b32.xlu2 %v2858_v38, %s6012_s27 }
 0x3c5   : > { %10084 = vst [vmem:[#allocation269_spill] sm:$0xff] %v7495_v1  ;;  %v7498_v36 = vpop.permute.xlu0 %2528  ;;  %v2899_v1 = vmul.f32 %v7403_v52, %v2898_v31 }
 0x3c6   : > { %10085 = vst [vmem:[#allocation270_spill] sm:$0xff] %v7498_v36  ;;  %v7501_v63 = vpop.permute.xlu2 %2610 }
 0x3c7   : > { %10086 = vst [vmem:[#allocation271_spill] sm:$0xff] %v7501_v63 }
 0x3ca   : > { %2877 = vrot.lane.b32.xlu1 %v2872_v33, %s6012_s27  ;;  %v2900_v33 = vmul.f32 %v7411_v14, %v2898_v31  ;;  %v2926_v31 = vstv %s5577_s25  ;;  %s5595_s25 = sld [smem:[#allocation2 + $0x166]] }
 0x3cb   : > { %2875 = vrot.lane.b32.xlu0 %v2871_v57, %s6012_s27  ;;  %v2912_v57 = vstv %s5576_s19  ;;  %s5594_s19 = sld [smem:[#allocation2 + $0x102]] }
 0x3cc   : > { %v7507_v18 = vpop.permute.xlu1 %2556  ;;  %2889 = vrot.lane.b32.xlu2 %v2885_v23, %s6013_s8 }
 0x3cd   : > { %10087 = vst [vmem:[#allocation272_spill] sm:$0xff] %v7507_v18  ;;  %v7510_v38 = vpop.permute.xlu0 %2554  ;;  %v7544_v18 = vld [vmem:[%s6140_s28 + $0x29] sm:$0xf] }
 0x3ce   : > { %10088 = vst [vmem:[#allocation273_spill] sm:$0xff] %v7510_v38  ;;  %v7513_v63 = vpop.permute.xlu2 %2626  ;;  %v2913_v38 = vmul.f32 %v7403_v52, %v2912_v57 }
 0x3cf   : > { %10089 = vst [vmem:[#allocation274_spill] sm:$0xff] %v7513_v63  ;;  %v2914_v63 = vmul.f32 %v7411_v14, %v2912_v57 }
 0x3d2   : > { %2903 = vrot.lane.b32.xlu1 %v2899_v1, %s6013_s8  ;;  %v2927_v1 = vmul.f32 %v7403_v52, %v2926_v31  ;;  %v2928_v52 = vmul.f32 %v7411_v14, %v2926_v31 }
 0x3d3   : > { %2891 = vrot.lane.b32.xlu0 %v2886_v39, %s6013_s8  ;;  %v7532_v39 = vld [vmem:[%s6140_s28 + $0x21] sm:$0xff] }
 0x3d4   : > { %v7519_v36 = vpop.permute.xlu1 %2582  ;;  %2905 = vrot.lane.b32.xlu2 %v2900_v33, %s6013_s8 }
 0x3d5   : > { %10090 = vst [vmem:[#allocation275_spill] sm:$0xff] %v7519_v36  ;;  %v7522_v23 = vpop.permute.xlu0 %2570  ;;  %v2966_v36 = vstv %s5584_s26  ;;  %s5596_s26 = sld [smem:[#allocation2 + $0x3b]] }
 0x3d6   : > { %10091 = vst [vmem:[#allocation276_spill] sm:$0xff] %v7522_v23  ;;  %v7525_v50 = vpop.permute.xlu2 %2652 }
 0x3d7   : > { %10092 = vst [vmem:[#allocation277_spill] sm:$0xff] %v7525_v50  ;;  %v2967_v50 = vmul.f32 %v7532_v39, %v2966_v36 }
 0x3da   : > { %2919 = vrot.lane.b32.xlu1 %v2914_v63, %s6013_s8  ;;  %v2968_v63 = vmul.f32 %v7544_v18, %v2966_v36 }
 0x3db   : > { %2917 = vrot.lane.b32.xlu0 %v2913_v38, %s6013_s8  ;;  %v2980_v38 = vstv %s5585_s29  ;;  %s5597_s29 = sld [smem:[#allocation2 + $0x9f]] }
 0x3dc   : > { %v7534_v33 = vpop.permute.xlu1 %2598  ;;  %2931 = vrot.lane.b32.xlu2 %v2927_v1, %s6013_s8  ;;  %v2981_v31 = vmul.f32 %v7532_v39, %v2980_v38 }
 0x3dd   : > { %10093 = vst [vmem:[#allocation278_spill] sm:$0xff] %v7534_v33  ;;  %v7537_v23 = vpop.permute.xlu0 %2596 }
 0x3de   : > { %10094 = vst [vmem:[#allocation279_spill] sm:$0xff] %v7537_v23  ;;  %v7540_v57 = vpop.permute.xlu2 %2668  ;;  %v2982_v23 = vmul.f32 %v7544_v18, %v2980_v38 }
 0x3df   : > { %10095 = vst [vmem:[#allocation280_spill] sm:$0xff] %v7540_v57  ;;  %v2994_v57 = vstv %s5586_s30  ;;  %s5598_s30 = sld [smem:[#allocation2 + $0x103]] }
 0x3e0   : > { %v2995_v36 = vmul.f32 %v7532_v39, %v2994_v57  ;;  %v2996_v38 = vmul.f32 %v7544_v18, %v2994_v57 }
 0x3e2   : > { %2971 = vrot.lane.b32.xlu1 %v2967_v50, %s6010_s14  ;;  %v3008_v50 = vstv %s5587_s3  ;;  %s5599_s3 = sld [smem:[#allocation2 + $0x167]] }
 0x3e3   : > { %2933 = vrot.lane.b32.xlu0 %v2928_v52, %s6013_s8 }
 0x3e4   : > { %v7549_v1 = vpop.permute.xlu1 %2624  ;;  %2973 = vrot.lane.b32.xlu2 %v2968_v63, %s6010_s14 }
 0x3e5   : > { %10096 = vst [vmem:[#allocation281_spill] sm:$0xff] %v7549_v1  ;;  %v7552_v33 = vpop.permute.xlu0 %2612  ;;  %v3009_v1 = vmul.f32 %v7532_v39, %v3008_v50 }
 0x3e6   : > { %10097 = vst [vmem:[#allocation282_spill] sm:$0xff] %v7552_v33  ;;  %v7555_v14 = vpop.permute.xlu2 %2721  ;;  %v3010_v33 = vmul.f32 %v7544_v18, %v3008_v50 }
 0x3e7   : > { %10098 = vst [vmem:[#allocation283_spill] sm:$0xff] %v7555_v14 }
 0x3ea   : > { %2987 = vrot.lane.b32.xlu1 %v2982_v23, %s6010_s14  ;;  %v3022_v23 = vstv %s5588_s7  ;;  %s5606_s7 = sld [smem:[#allocation2 + $0x3d]] }
 0x3eb   : > { %2985 = vrot.lane.b32.xlu0 %v2981_v31, %s6010_s14  ;;  %v3023_v57 = vmul.f32 %v7532_v39, %v3022_v23 }
 0x3ec   : > { %v7561_v52 = vpop.permute.xlu1 %2640  ;;  %2999 = vrot.lane.b32.xlu2 %v2995_v36, %s6010_s14 }
 0x3ed   : > { %10099 = vst [vmem:[#allocation284_spill] sm:$0xff] %v7561_v52  ;;  %v7564_v63 = vpop.permute.xlu0 %2638  ;;  %v3024_v52 = vmul.f32 %v7544_v18, %v3022_v23 }
 0x3ee   : > { %10100 = vst [vmem:[#allocation285_spill] sm:$0xff] %v7564_v63  ;;  %v7567_v14 = vpop.permute.xlu2 %2737  ;;  %v3036_v63 = vstv %s5589_s23  ;;  %s5607_s23 = sld [smem:[#allocation2 + $0xa1]] }
 0x3ef   : > { %10101 = vst [vmem:[#allocation286_spill] sm:$0xff] %v7567_v14  ;;  %v3037_v50 = vmul.f32 %v7532_v39, %v3036_v63  ;;  %v3038_v23 = vmul.f32 %v7544_v18, %v3036_v63 }
 0x3f2   : > { %3013 = vrot.lane.b32.xlu1 %v3009_v1, %s6010_s14  ;;  %v3050_v1 = vstv %s5590_s5  ;;  %s5608_s5 = sld [smem:[#allocation2 + $0x105]] }
 0x3f3   : > { %3001 = vrot.lane.b32.xlu0 %v2996_v38, %s6010_s14 }
 0x3f4   : > { %v7573_v31 = vpop.permute.xlu1 %2666  ;;  %3015 = vrot.lane.b32.xlu2 %v3010_v33, %s6010_s14 }
 0x3f5   : > { %10102 = vst [vmem:[#allocation287_spill] sm:$0xff] %v7573_v31  ;;  %v7576_v36 = vpop.permute.xlu0 %2654  ;;  %v3052_v31 = vmul.f32 %v7544_v18, %v3050_v1 }
 0x3f6   : > { %10103 = vst [vmem:[#allocation288_spill] sm:$0xff] %v7576_v36  ;;  %v7579_v14 = vpop.permute.xlu2 %2763  ;;  %v3051_v36 = vmul.f32 %v7532_v39, %v3050_v1 }
 0x3f7   : > { %10104 = vst [vmem:[#allocation289_spill] sm:$0xff] %v7579_v14 }
 0x3fa   : > { %3029 = vrot.lane.b32.xlu1 %v3024_v52, %s6011_s24  ;;  %v3064_v52 = vstv %s5591_s20  ;;  %s5609_s20 = sld [smem:[#allocation2 + $0x169]] }
 0x3fb   : > { %3027 = vrot.lane.b32.xlu0 %v3023_v57, %s6011_s24  ;;  %v3065_v63 = vmul.f32 %v7532_v39, %v3064_v52 }
 0x3fc   : > { %v7585_v38 = vpop.permute.xlu1 %2682  ;;  %3041 = vrot.lane.b32.xlu2 %v3037_v50, %s6011_s24 }
 0x3fd   : > { %10105 = vst [vmem:[#allocation290_spill] sm:$0xff] %v7585_v38  ;;  %v7588_v33 = vpop.permute.xlu0 %2680  ;;  %v3078_v38 = vstv %s5592_s16  ;;  %s5610_s16 = sld [smem:[#allocation2 + $0x3e]] }
 0x3fe   : > { %10106 = vst [vmem:[#allocation291_spill] sm:$0xff] %v7588_v33  ;;  %v7591_v14 = vpop.permute.xlu2 %2779  ;;  %v3066_v33 = vmul.f32 %v7544_v18, %v3064_v52  ;;  %v3079_v1 = vmul.f32 %v7532_v39, %v3078_v38  ;;  %v3080_v52 = vmul.f32 %v7544_v18, %v3078_v38 }
 0x3ff   : > { %10107 = vst [vmem:[#allocation292_spill] sm:$0xff] %v7591_v14 }
 0x402   : > { %3055 = vrot.lane.b32.xlu1 %v3051_v36, %s6011_s24  ;;  %v3092_v36 = vstv %s5593_s17  ;;  %s5611_s17 = sld [smem:[#allocation2 + $0xa2]] }
 0x403   : > { %3043 = vrot.lane.b32.xlu0 %v3038_v23, %s6011_s24 }
 0x404   : > { %v7597_v57 = vpop.permute.xlu1 %2735  ;;  %3057 = vrot.lane.b32.xlu2 %v3052_v31, %s6011_s24 }
 0x405   : > { %10108 = vst [vmem:[#allocation293_spill] sm:$0xff] %v7597_v57  ;;  %v7600_v50 = vpop.permute.xlu0 %2723  ;;  %v3093_v57 = vmul.f32 %v7532_v39, %v3092_v36 }
 0x406   : > { %10109 = vst [vmem:[#allocation294_spill] sm:$0xff] %v7600_v50  ;;  %v7603_v14 = vpop.permute.xlu2 %2805  ;;  %v3094_v50 = vmul.f32 %v7544_v18, %v3092_v36 }
 0x407   : > { %10110 = vst [vmem:[#allocation295_spill] sm:$0xff] %v7603_v14 }
 0x40a   : > { %3071 = vrot.lane.b32.xlu1 %v3066_v33, %s6011_s24  ;;  %v3106_v33 = vstv %s5594_s19  ;;  %s5612_s19 = sld [smem:[#allocation2 + $0x106]] }
 0x40b   : > { %3069 = vrot.lane.b32.xlu0 %v3065_v63, %s6011_s24  ;;  %v3107_v38 = vmul.f32 %v7532_v39, %v3106_v33 }
 0x40c   : > { %v7609_v23 = vpop.permute.xlu1 %2751  ;;  %3083 = vrot.lane.b32.xlu2 %v3079_v1, %s6012_s27 }
 0x40d   : > { %10111 = vst [vmem:[#allocation296_spill] sm:$0xff] %v7609_v23  ;;  %v7612_v31 = vpop.permute.xlu0 %2749  ;;  %v3120_v23 = vstv %s5595_s25  ;;  %s5613_s25 = sld [smem:[#allocation2 + $0x16a]] }
 0x40e   : > { %10112 = vst [vmem:[#allocation297_spill] sm:$0xff] %v7612_v31  ;;  %v7615_v14 = vpop.permute.xlu2 %2821  ;;  %v3108_v31 = vmul.f32 %v7544_v18, %v3106_v33  ;;  %v3121_v36 = vmul.f32 %v7532_v39, %v3120_v23  ;;  %v3122_v33 = vmul.f32 %v7544_v18, %v3120_v23 }
 0x40f   : > { %10113 = vst [vmem:[#allocation298_spill] sm:$0xff] %v7615_v14 }
 0x412   : > { %3097 = vrot.lane.b32.xlu1 %v3093_v57, %s6012_s27  ;;  %v3134_v57 = vstv %s5596_s26  ;;  %s5614_s26 = sld [smem:[#allocation2 + $0x3f]] }
 0x413   : > { %3085 = vrot.lane.b32.xlu0 %v3080_v52, %s6012_s27 }
 0x414   : > { %v7621_v63 = vpop.permute.xlu1 %2777  ;;  %3099 = vrot.lane.b32.xlu2 %v3094_v50, %s6012_s27 }
 0x415   : > { %10114 = vst [vmem:[#allocation299_spill] sm:$0xff] %v7621_v63  ;;  %v7624_v1 = vpop.permute.xlu0 %2765  ;;  %v3136_v63 = vmul.f32 %v7544_v18, %v3134_v57 }
 0x416   : > { %10115 = vst [vmem:[#allocation300_spill] sm:$0xff] %v7624_v1  ;;  %v7627_v14 = vpop.permute.xlu2 %2847  ;;  %v3135_v1 = vmul.f32 %v7532_v39, %v3134_v57  ;;  %v3176_v57 = vstv %s5599_s3  ;;  %s5617_s3 = sld [smem:[#allocation2 + $0x16b]] }
 0x417   : > { %10116 = vst [vmem:[#allocation301_spill] sm:$0xff] %v7627_v14 }
 0x41a   : > { %3113 = vrot.lane.b32.xlu1 %v3108_v31, %s6012_s27  ;;  %v3148_v31 = vstv %s5597_s29  ;;  %s5615_s29 = sld [smem:[#allocation2 + $0xa3]] }
 0x41b   : > { %3111 = vrot.lane.b32.xlu0 %v3107_v38, %s6012_s27  ;;  %v3149_v23 = vmul.f32 %v7532_v39, %v3148_v31 }
 0x41c   : > { %v7633_v52 = vpop.permute.xlu1 %2793  ;;  %3125 = vrot.lane.b32.xlu2 %v3121_v36, %s6012_s27 }
 0x41d   : > { %10117 = vst [vmem:[#allocation302_spill] sm:$0xff] %v7633_v52  ;;  %v7636_v50 = vpop.permute.xlu0 %2791  ;;  %v3150_v52 = vmul.f32 %v7544_v18, %v3148_v31 }
 0x41e   : > { %10118 = vst [vmem:[#allocation303_spill] sm:$0xff] %v7636_v50  ;;  %v7639_v14 = vpop.permute.xlu2 %2863 }
 0x41f   : > { %10119 = vst [vmem:[#allocation304_spill] sm:$0xff] %v7639_v14  ;;  %v3162_v14 = vstv %s5598_s30  ;;  %s5616_s30 = sld [smem:[#allocation2 + $0x107]] }
 0x422   : > { %3139 = vrot.lane.b32.xlu1 %v3135_v1, %s6013_s8  ;;  %v3163_v1 = vmul.f32 %v7532_v39, %v3162_v14 }
 0x423   : > { %3127 = vrot.lane.b32.xlu0 %v3122_v33, %s6012_s27 }
 0x424   : > { %v7645_v38 = vpop.permute.xlu1 %2819  ;;  %3141 = vrot.lane.b32.xlu2 %v3136_v63, %s6013_s8 }
 0x425   : > { %10120 = vst [vmem:[#allocation305_spill] sm:$0xff] %v7645_v38  ;;  %v7648_v36 = vpop.permute.xlu0 %2807  ;;  %v3177_v38 = vmul.f32 %v7532_v39, %v3176_v57 }
 0x426   : > { %10121 = vst [vmem:[#allocation306_spill] sm:$0xff] %v7648_v36  ;;  %v7651_v50 = vpop.permute.xlu2 %2889 }
 0x427   : > { %10122 = vst [vmem:[#allocation307_spill] sm:$0xff] %v7651_v50  ;;  %v3164_v50 = vmul.f32 %v7544_v18, %v3162_v14 }
 0x42a   : > { %3155 = vrot.lane.b32.xlu1 %v3150_v52, %s6013_s8  ;;  %v3178_v52 = vmul.f32 %v7544_v18, %v3176_v57  ;;  %v3244_v57 = vstv %s5608_s5  ;;  %s5620_s5 = sld [smem:[#allocation2 + $0x108]] }
 0x42b   : > { %3153 = vrot.lane.b32.xlu0 %v3149_v23, %s6013_s8  ;;  %v7670_v23 = vld [vmem:[%s6140_s28 + $0x2a] sm:$0xf] }
 0x42c   : > { %v7657_v63 = vpop.permute.xlu1 %2835  ;;  %3167 = vrot.lane.b32.xlu2 %v3163_v1, %s6013_s8  ;;  %v3246_v36 = vmul.f32 %v7670_v23, %v3244_v57 }
 0x42d   : > { %10123 = vst [vmem:[#allocation308_spill] sm:$0xff] %v7657_v63  ;;  %v7660_v33 = vpop.permute.xlu0 %2833  ;;  %v3216_v63 = vstv %s5606_s7  ;;  %s5618_s7 = sld [smem:[#allocation2 + $0x40]] }
 0x42e   : > { %10124 = vst [vmem:[#allocation309_spill] sm:$0xff] %v7660_v33  ;;  %v7663_v31 = vpop.permute.xlu2 %2905  ;;  %v7675_v33 = vld [vmem:[%s6140_s28 + $0x22] sm:$0xff]  ;;  %v3218_v14 = vmul.f32 %v7670_v23, %v3216_v63 }
 0x42f   : > { %10125 = vst [vmem:[#allocation310_spill] sm:$0xff] %v7663_v31  ;;  %v3217_v18 = vmul.f32 %v7675_v33, %v3216_v63 }
 0x432   : > { %3181 = vrot.lane.b32.xlu1 %v3177_v38, %s6013_s8  ;;  %v3230_v38 = vstv %s5607_s23  ;;  %s5619_s23 = sld [smem:[#allocation2 + $0xa4]] }
 0x433   : > { %3169 = vrot.lane.b32.xlu0 %v3164_v50, %s6013_s8  ;;  %v3231_v50 = vmul.f32 %v7675_v33, %v3230_v38  ;;  %v3232_v63 = vmul.f32 %v7670_v23, %v3230_v38 }
 0x434   : > { %v7672_v1 = vpop.permute.xlu1 %2861  ;;  %3183 = vrot.lane.b32.xlu2 %v3178_v52, %s6013_s8 }
 0x435   : > { %10126 = vst [vmem:[#allocation311_spill] sm:$0xff] %v7672_v1  ;;  %v7678_v39 = vpop.permute.xlu0 %2849 }
 0x436   : > { %10127 = vst [vmem:[#allocation312_spill] sm:$0xff] %v7678_v39  ;;  %v7681_v31 = vpop.permute.xlu2 %2931  ;;  %v3245_v39 = vmul.f32 %v7675_v33, %v3244_v57 }
 0x437   : > { %10128 = vst [vmem:[#allocation313_spill] sm:$0xff] %v7681_v31 }
 0x43a   : > { %3223 = vrot.lane.b32.xlu1 %v3218_v14, %s6010_s14  ;;  %v3258_v14 = vstv %s5609_s20  ;;  %s5621_s20 = sld [smem:[#allocation2 + $0x16c]] }
 0x43b   : > { %3221 = vrot.lane.b32.xlu0 %v3217_v18, %s6010_s14  ;;  %v3259_v38 = vmul.f32 %v7675_v33, %v3258_v14 }
 0x43c   : > { %v7687_v1 = vpop.permute.xlu1 %2877  ;;  %3235 = vrot.lane.b32.xlu2 %v3231_v50, %s6010_s14 }
 0x43d   : > { %10129 = vst [vmem:[#allocation314_spill] sm:$0xff] %v7687_v1  ;;  %v7690_v52 = vpop.permute.xlu0 %2875  ;;  %v3260_v1 = vmul.f32 %v7670_v23, %v3258_v14 }
 0x43e   : > { %10130 = vst [vmem:[#allocation315_spill] sm:$0xff] %v7690_v52  ;;  %v7693_v31 = vpop.permute.xlu2 %2973  ;;  %v3272_v52 = vstv %s5610_s16  ;;  %s5628_s16 = sld [smem:[#allocation2 + $0x42]] }
 0x43f   : > { %10131 = vst [vmem:[#allocation316_spill] sm:$0xff] %v7693_v31  ;;  %v3273_v57 = vmul.f32 %v7675_v33, %v3272_v52  ;;  %v3274_v14 = vmul.f32 %v7670_v23, %v3272_v52 }
 0x442   : > { %3249 = vrot.lane.b32.xlu1 %v3245_v39, %s6010_s14  ;;  %v3286_v39 = vstv %s5611_s17  ;;  %s5629_s17 = sld [smem:[#allocation2 + $0xa6]] }
 0x443   : > { %3237 = vrot.lane.b32.xlu0 %v3232_v63, %s6010_s14 }
 0x444   : > { %v7699_v18 = vpop.permute.xlu1 %2903  ;;  %3251 = vrot.lane.b32.xlu2 %v3246_v36, %s6010_s14 }
 0x445   : > { %10132 = vst [vmem:[#allocation317_spill] sm:$0xff] %v7699_v18  ;;  %v7702_v50 = vpop.permute.xlu0 %2891  ;;  %v3288_v18 = vmul.f32 %v7670_v23, %v3286_v39 }
 0x446   : > { %10133 = vst [vmem:[#allocation318_spill] sm:$0xff] %v7702_v50  ;;  %v7705_v31 = vpop.permute.xlu2 %2999  ;;  %v3287_v50 = vmul.f32 %v7675_v33, %v3286_v39 }
 0x447   : > { %10134 = vst [vmem:[#allocation319_spill] sm:$0xff] %v7705_v31 }
 0x44a   : > { %3265 = vrot.lane.b32.xlu1 %v3260_v1, %s6010_s14  ;;  %v3300_v1 = vstv %s5612_s19  ;;  %s5630_s19 = sld [smem:[#allocation2 + $0x10a]] }
 0x44b   : > { %3263 = vrot.lane.b32.xlu0 %v3259_v38, %s6010_s14  ;;  %v3301_v52 = vmul.f32 %v7675_v33, %v3300_v1 }
 0x44c   : > { %v7711_v63 = vpop.permute.xlu1 %2919  ;;  %3277 = vrot.lane.b32.xlu2 %v3273_v57, %s6011_s24 }
 0x44d   : > { %10135 = vst [vmem:[#allocation320_spill] sm:$0xff] %v7711_v63  ;;  %v7714_v36 = vpop.permute.xlu0 %2917  ;;  %v3314_v63 = vstv %s5613_s25  ;;  %s5631_s25 = sld [smem:[#allocation2 + $0x16e]] }
 0x44e   : > { %10136 = vst [vmem:[#allocation321_spill] sm:$0xff] %v7714_v36  ;;  %v7717_v31 = vpop.permute.xlu2 %3015  ;;  %v3302_v36 = vmul.f32 %v7670_v23, %v3300_v1  ;;  %v3315_v39 = vmul.f32 %v7675_v33, %v3314_v63  ;;  %v3316_v1 = vmul.f32 %v7670_v23, %v3314_v63 }
 0x44f   : > { %10137 = vst [vmem:[#allocation322_spill] sm:$0xff] %v7717_v31 }
 0x452   : > { %3291 = vrot.lane.b32.xlu1 %v3287_v50, %s6011_s24  ;;  %v3328_v50 = vstv %s5614_s26  ;;  %s5632_s26 = sld [smem:[#allocation2 + $0x43]] }
 0x453   : > { %3279 = vrot.lane.b32.xlu0 %v3274_v14, %s6011_s24 }
 0x454   : > { %v7723_v38 = vpop.permute.xlu1 %2971  ;;  %3293 = vrot.lane.b32.xlu2 %v3288_v18, %s6011_s24 }
 0x455   : > { %10138 = vst [vmem:[#allocation323_spill] sm:$0xff] %v7723_v38  ;;  %v7726_v57 = vpop.permute.xlu0 %2933  ;;  %v3330_v38 = vmul.f32 %v7670_v23, %v3328_v50 }
 0x456   : > { %10139 = vst [vmem:[#allocation324_spill] sm:$0xff] %v7726_v57  ;;  %v7729_v31 = vpop.permute.xlu2 %3041  ;;  %v3329_v57 = vmul.f32 %v7675_v33, %v3328_v50 }
 0x457   : > { %10140 = vst [vmem:[#allocation325_spill] sm:$0xff] %v7729_v31 }
 0x45a   : > { %3307 = vrot.lane.b32.xlu1 %v3302_v36, %s6011_s24  ;;  %v3342_v36 = vstv %s5615_s29  ;;  %s5633_s29 = sld [smem:[#allocation2 + $0xa7]] }
 0x45b   : > { %3305 = vrot.lane.b32.xlu0 %v3301_v52, %s6011_s24  ;;  %v3343_v63 = vmul.f32 %v7675_v33, %v3342_v36 }
 0x45c   : > { %v7735_v14 = vpop.permute.xlu1 %2987  ;;  %3319 = vrot.lane.b32.xlu2 %v3315_v39, %s6011_s24 }
 0x45d   : > { %10141 = vst [vmem:[#allocation326_spill] sm:$0xff] %v7735_v14  ;;  %v7738_v18 = vpop.permute.xlu0 %2985  ;;  %v3344_v14 = vmul.f32 %v7670_v23, %v3342_v36 }
 0x45e   : > { %10142 = vst [vmem:[#allocation327_spill] sm:$0xff] %v7738_v18  ;;  %v7741_v31 = vpop.permute.xlu2 %3057 }
 0x45f   : > { %10143 = vst [vmem:[#allocation328_spill] sm:$0xff] %v7741_v31  ;;  %v3356_v31 = vstv %s5616_s30  ;;  %s5634_s30 = sld [smem:[#allocation2 + $0x10b]] }
 0x460   : > { %v3357_v50 = vmul.f32 %v7675_v33, %v3356_v31  ;;  %v3358_v36 = vmul.f32 %v7670_v23, %v3356_v31 }
 0x462   : > { %3333 = vrot.lane.b32.xlu1 %v3329_v57, %s6012_s27  ;;  %v3370_v57 = vstv %s5617_s3  ;;  %s5635_s3 = sld [smem:[#allocation2 + $0x16f]] }
 0x463   : > { %3321 = vrot.lane.b32.xlu0 %v3316_v1, %s6011_s24 }
 0x464   : > { %v7747_v52 = vpop.permute.xlu1 %3013  ;;  %3335 = vrot.lane.b32.xlu2 %v3330_v38, %s6012_s27 }
 0x465   : > { %10144 = vst [vmem:[#allocation329_spill] sm:$0xff] %v7747_v52  ;;  %v7750_v39 = vpop.permute.xlu0 %3001  ;;  %v3371_v52 = vmul.f32 %v7675_v33, %v3370_v57 }
 0x466   : > { %10145 = vst [vmem:[#allocation330_spill] sm:$0xff] %v7750_v39  ;;  %v7753_v18 = vpop.permute.xlu2 %3083  ;;  %v3372_v39 = vmul.f32 %v7670_v23, %v3370_v57 }
 0x467   : > { %10146 = vst [vmem:[#allocation331_spill] sm:$0xff] %v7753_v18 }
 0x46a   : > { %3349 = vrot.lane.b32.xlu1 %v3344_v14, %s6012_s27  ;;  %v3384_v14 = vstv %s5618_s7  ;;  %s5636_s7 = sld [smem:[#allocation2 + $0x44]] }
 0x46b   : > { %3347 = vrot.lane.b32.xlu0 %v3343_v63, %s6012_s27  ;;  %v3385_v31 = vmul.f32 %v7675_v33, %v3384_v14 }
 0x46c   : > { %v7759_v1 = vpop.permute.xlu1 %3029  ;;  %3361 = vrot.lane.b32.xlu2 %v3357_v50, %s6012_s27 }
 0x46d   : > { %10147 = vst [vmem:[#allocation332_spill] sm:$0xff] %v7759_v1  ;;  %v7762_v38 = vpop.permute.xlu0 %3027  ;;  %v3386_v1 = vmul.f32 %v7670_v23, %v3384_v14 }
 0x46e   : > { %10148 = vst [vmem:[#allocation333_spill] sm:$0xff] %v7762_v38  ;;  %v7765_v18 = vpop.permute.xlu2 %3099  ;;  %v3398_v38 = vstv %s5619_s23  ;;  %s5637_s23 = sld [smem:[#allocation2 + $0xa8]] }
 0x46f   : > { %10149 = vst [vmem:[#allocation334_spill] sm:$0xff] %v7765_v18  ;;  %v3399_v57 = vmul.f32 %v7675_v33, %v3398_v38  ;;  %v3400_v14 = vmul.f32 %v7670_v23, %v3398_v38 }
 0x472   : > { %3375 = vrot.lane.b32.xlu1 %v3371_v52, %s6012_s27  ;;  %v3412_v52 = vstv %s5620_s5  ;;  %s5638_s5 = sld [smem:[#allocation2 + $0x10c]] }
 0x473   : > { %3363 = vrot.lane.b32.xlu0 %v3358_v36, %s6012_s27 }
 0x474   : > { %v7771_v63 = vpop.permute.xlu1 %3055  ;;  %3377 = vrot.lane.b32.xlu2 %v3372_v39, %s6012_s27 }
 0x475   : > { %10150 = vst [vmem:[#allocation335_spill] sm:$0xff] %v7771_v63  ;;  %v7774_v50 = vpop.permute.xlu0 %3043 }
 0x476   : > { %10151 = vst [vmem:[#allocation336_spill] sm:$0xff] %v7774_v50  ;;  %v7777_v18 = vpop.permute.xlu2 %3125 }
 0x477   : > { %10152 = vst [vmem:[#allocation337_spill] sm:$0xff] %v7777_v18  ;;  %v3413_v18 = vmul.f32 %v7675_v33, %v3412_v52 }
 0x47a   : > { %3391 = vrot.lane.b32.xlu1 %v3386_v1, %s6013_s8  ;;  %v3414_v1 = vmul.f32 %v7670_v23, %v3412_v52  ;;  %v7805_v52 = vld [vmem:[%s6140_s28 + $0x23] sm:$0xff] }
 0x47b   : > { %3389 = vrot.lane.b32.xlu0 %v3385_v31, %s6013_s8  ;;  %v3426_v31 = vstv %s5621_s20  ;;  %s5639_s20 = sld [smem:[#allocation2 + $0x170]] }
 0x47c   : > { %v7783_v36 = vpop.permute.xlu1 %3071  ;;  %3403 = vrot.lane.b32.xlu2 %v3399_v57, %s6013_s8  ;;  %v3427_v38 = vmul.f32 %v7675_v33, %v3426_v31 }
 0x47d   : > { %10153 = vst [vmem:[#allocation338_spill] sm:$0xff] %v7783_v36  ;;  %v7786_v39 = vpop.permute.xlu0 %3069 }
 0x47e   : > { %10154 = vst [vmem:[#allocation339_spill] sm:$0xff] %v7786_v39  ;;  %v7789_v63 = vpop.permute.xlu2 %3141 }
 0x47f   : > { %10155 = vst [vmem:[#allocation340_spill] sm:$0xff] %v7789_v63  ;;  %v3428_v63 = vmul.f32 %v7670_v23, %v3426_v31 }
 0x482   : > { %3417 = vrot.lane.b32.xlu1 %v3413_v18, %s6013_s8  ;;  %v3466_v18 = vstv %s5628_s16  ;;  %s5640_s16 = sld [smem:[#allocation2 + $0x45]] }
 0x483   : > { %3405 = vrot.lane.b32.xlu0 %v3400_v14, %s6013_s8  ;;  %v3467_v14 = vmul.f32 %v7805_v52, %v3466_v18 }
 0x484   : > { %v7795_v57 = vpop.permute.xlu1 %3097  ;;  %3419 = vrot.lane.b32.xlu2 %v3414_v1, %s6013_s8 }
 0x485   : > { %10156 = vst [vmem:[#allocation341_spill] sm:$0xff] %v7795_v57  ;;  %v7798_v36 = vpop.permute.xlu0 %3085  ;;  %v3480_v57 = vstv %s5629_s17  ;;  %s5641_s17 = sld [smem:[#allocation2 + $0xa9]] }
 0x486   : > { %10157 = vst [vmem:[#allocation342_spill] sm:$0xff] %v7798_v36  ;;  %v7801_v39 = vpop.permute.xlu2 %3167  ;;  %v7813_v36 = vld [vmem:[%s6140_s28 + $0x2b] sm:$0xf]  ;;  %v3481_v33 = vmul.f32 %v7805_v52, %v3480_v57 }
 0x487   : > { %10158 = vst [vmem:[#allocation343_spill] sm:$0xff] %v7801_v39  ;;  %v3468_v39 = vmul.f32 %v7813_v36, %v3466_v18 }
 0x48a   : > { %3433 = vrot.lane.b32.xlu1 %v3428_v63, %s6013_s8  ;;  %v3482_v63 = vmul.f32 %v7813_v36, %v3480_v57 }
 0x48b   : > { %3431 = vrot.lane.b32.xlu0 %v3427_v38, %s6013_s8  ;;  %v3494_v38 = vstv %s5630_s19  ;;  %s5642_s19 = sld [smem:[#allocation2 + $0x10d]] }
 0x48c   : > { %v7810_v1 = vpop.permute.xlu1 %3113  ;;  %3471 = vrot.lane.b32.xlu2 %v3467_v14, %s6010_s14  ;;  %v3495_v18 = vmul.f32 %v7805_v52, %v3494_v38 }
 0x48d   : > { %10159 = vst [vmem:[#allocation344_spill] sm:$0xff] %v7810_v1  ;;  %v7816_v23 = vpop.permute.xlu0 %3111  ;;  %v3508_v1 = vstv %s5631_s25  ;;  %s5643_s25 = sld [smem:[#allocation2 + $0x171]] }
 0x48e   : > { %10160 = vst [vmem:[#allocation345_spill] sm:$0xff] %v7816_v23  ;;  %v7819_v31 = vpop.permute.xlu2 %3183  ;;  %v3496_v23 = vmul.f32 %v7813_v36, %v3494_v38  ;;  %v3509_v57 = vmul.f32 %v7805_v52, %v3508_v1  ;;  %v3510_v38 = vmul.f32 %v7813_v36, %v3508_v1 }
 0x48f   : > { %10161 = vst [vmem:[#allocation346_spill] sm:$0xff] %v7819_v31 }
 0x492   : > { %3485 = vrot.lane.b32.xlu1 %v3481_v33, %s6010_s14 }
 0x493   : > { %3473 = vrot.lane.b32.xlu0 %v3468_v39, %s6010_s14  ;;  %v3522_v39 = vstv %s5632_s26  ;;  %s5650_s26 = sld [smem:[#allocation2 + $0x47]] }
 0x494   : > { %v7825_v50 = vpop.permute.xlu1 %3139  ;;  %3487 = vrot.lane.b32.xlu2 %v3482_v63, %s6010_s14 }
 0x495   : > { %10162 = vst [vmem:[#allocation347_spill] sm:$0xff] %v7825_v50  ;;  %v7828_v14 = vpop.permute.xlu0 %3127  ;;  %v3524_v50 = vmul.f32 %v7813_v36, %v3522_v39 }
 0x496   : > { %10163 = vst [vmem:[#allocation348_spill] sm:$0xff] %v7828_v14  ;;  %v7831_v31 = vpop.permute.xlu2 %3235  ;;  %v3523_v14 = vmul.f32 %v7805_v52, %v3522_v39 }
 0x497   : > { %10164 = vst [vmem:[#allocation349_spill] sm:$0xff] %v7831_v31 }
 0x49a   : > { %3501 = vrot.lane.b32.xlu1 %v3496_v23, %s6010_s14  ;;  %v3536_v23 = vstv %s5633_s29  ;;  %s5651_s29 = sld [smem:[#allocation2 + $0xab]] }
 0x49b   : > { %3499 = vrot.lane.b32.xlu0 %v3495_v18, %s6010_s14  ;;  %v3537_v1 = vmul.f32 %v7805_v52, %v3536_v23 }
 0x49c   : > { %v7837_v33 = vpop.permute.xlu1 %3155  ;;  %3513 = vrot.lane.b32.xlu2 %v3509_v57, %s6010_s14 }
 0x49d   : > { %10165 = vst [vmem:[#allocation350_spill] sm:$0xff] %v7837_v33  ;;  %v7840_v63 = vpop.permute.xlu0 %3153 }
 0x49e   : > { %10166 = vst [vmem:[#allocation351_spill] sm:$0xff] %v7840_v63  ;;  %v7843_v31 = vpop.permute.xlu2 %3251  ;;  %v3538_v63 = vmul.f32 %v7813_v36, %v3536_v23 }
 0x49f   : > { %10167 = vst [vmem:[#allocation352_spill] sm:$0xff] %v7843_v31  ;;  %v3550_v31 = vstv %s5634_s30  ;;  %s5652_s30 = sld [smem:[#allocation2 + $0x10f]] }
 0x4a0   : > { %v3551_v39 = vmul.f32 %v7805_v52, %v3550_v31  ;;  %v3552_v23 = vmul.f32 %v7813_v36, %v3550_v31 }
 0x4a2   : > { %3527 = vrot.lane.b32.xlu1 %v3523_v14, %s6011_s24  ;;  %v3564_v14 = vstv %s5635_s3  ;;  %s5653_s3 = sld [smem:[#allocation2 + $0x173]] }
 0x4a3   : > { %3515 = vrot.lane.b32.xlu0 %v3510_v38, %s6010_s14 }
 0x4a4   : > { %v7849_v18 = vpop.permute.xlu1 %3181  ;;  %3529 = vrot.lane.b32.xlu2 %v3524_v50, %s6011_s24 }
 0x4a5   : > { %10168 = vst [vmem:[#allocation353_spill] sm:$0xff] %v7849_v18  ;;  %v7852_v57 = vpop.permute.xlu0 %3169  ;;  %v3565_v18 = vmul.f32 %v7805_v52, %v3564_v14 }
 0x4a6   : > { %10169 = vst [vmem:[#allocation354_spill] sm:$0xff] %v7852_v57  ;;  %v7855_v33 = vpop.permute.xlu2 %3277  ;;  %v3566_v57 = vmul.f32 %v7813_v36, %v3564_v14 }
 0x4a7   : > { %10170 = vst [vmem:[#allocation355_spill] sm:$0xff] %v7855_v33 }
 0x4aa   : > { %3543 = vrot.lane.b32.xlu1 %v3538_v63, %s6011_s24  ;;  %v3578_v63 = vstv %s5636_s7  ;;  %s189_s7 = sld [smem:[#allocation2]] }
 0x4ab   : > { %3541 = vrot.lane.b32.xlu0 %v3537_v1, %s6011_s24  ;;  %v3579_v31 = vmul.f32 %v7805_v52, %v3578_v63 }
 0x4ac   : > { %v7861_v38 = vpop.permute.xlu1 %3223  ;;  %3555 = vrot.lane.b32.xlu2 %v3551_v39, %s6011_s24 }
 0x4ad   : > { %10171 = vst [vmem:[#allocation356_spill] sm:$0xff] %v7861_v38  ;;  %v7864_v50 = vpop.permute.xlu0 %3221  ;;  %v3580_v38 = vmul.f32 %v7813_v36, %v3578_v63 }
 0x4ae   : > { %10172 = vst [vmem:[#allocation357_spill] sm:$0xff] %v7864_v50  ;;  %v7867_v33 = vpop.permute.xlu2 %3293  ;;  %v3592_v50 = vstv %s5637_s23  ;;  %s7960_s23 = sld [smem:[#allocation2 + $0xc8]] }
 0x4af   : > { %10173 = vst [vmem:[#allocation358_spill] sm:$0xff] %v7867_v33  ;;  %v3593_v14 = vmul.f32 %v7805_v52, %v3592_v50  ;;  %v3594_v63 = vmul.f32 %v7813_v36, %v3592_v50 }
 0x4b2   : > { %3569 = vrot.lane.b32.xlu1 %v3565_v18, %s6011_s24  ;;  %v3606_v18 = vstv %s5638_s5  ;;  %s7963_s5 = sld [smem:[#allocation2 + $0x64]] }
 0x4b3   : > { %3557 = vrot.lane.b32.xlu0 %v3552_v23, %s6011_s24 }
 0x4b4   : > { %v7873_v1 = vpop.permute.xlu1 %3249  ;;  %3571 = vrot.lane.b32.xlu2 %v3566_v57, %s6011_s24 }
 0x4b5   : > { %10174 = vst [vmem:[#allocation359_spill] sm:$0xff] %v7873_v1  ;;  %v7876_v39 = vpop.permute.xlu0 %3237  ;;  %v3607_v1 = vmul.f32 %v7805_v52, %v3606_v18 }
 0x4b6   : > { %10175 = vst [vmem:[#allocation360_spill] sm:$0xff] %v7876_v39  ;;  %v7879_v33 = vpop.permute.xlu2 %3319  ;;  %v3608_v39 = vmul.f32 %v7813_v36, %v3606_v18 }
 0x4b7   : > { %10176 = vst [vmem:[#allocation361_spill] sm:$0xff] %v7879_v33 }
 0x4b8   : > { %v196_v3 = vstv %s7963_s5  ;;  %s8066_s5 = sld [smem:[#allocation2 + $0x6e]] }
 0x4ba   : > { %3585 = vrot.lane.b32.xlu1 %v3580_v38, %s6012_s27  ;;  %v3620_v38 = vstv %s5639_s20  ;;  %s7965_s20 = sld [smem:[#allocation2 + $0x12c]] }
 0x4bb   : > { %3583 = vrot.lane.b32.xlu0 %v3579_v31, %s6012_s27  ;;  %v3621_v50 = vmul.f32 %v7805_v52, %v3620_v38 }
 0x4bc   : > { %v7885_v23 = vpop.permute.xlu1 %3265  ;;  %3597 = vrot.lane.b32.xlu2 %v3593_v14, %s6012_s27 }
 0x4bd   : > { %10177 = vst [vmem:[#allocation362_spill] sm:$0xff] %v7885_v23  ;;  %v7888_v57 = vpop.permute.xlu0 %3263  ;;  %v3622_v23 = vmul.f32 %v7813_v36, %v3620_v38 }
 0x4be   : > { %10178 = vst [vmem:[#allocation363_spill] sm:$0xff] %v7888_v57  ;;  %v7891_v33 = vpop.permute.xlu2 %3335  ;;  %v3634_v57 = vstv %s5640_s16  ;;  %s7969_s16 = sld [smem:[#allocation2 + $0x48]] }
 0x4bf   : > { %10179 = vst [vmem:[#allocation364_spill] sm:$0xff] %v7891_v33  ;;  %v3635_v18 = vmul.f32 %v7805_v52, %v3634_v57  ;;  %v3636_v38 = vmul.f32 %v7813_v36, %v3634_v57 }
 0x4c0   : > { %v208_v44 = vstv %s7965_s20  ;;  %s8073_s20 = sld [smem:[#allocation2 + $0xad]] }
 0x4c2   : > { %3611 = vrot.lane.b32.xlu1 %v3607_v1, %s6012_s27  ;;  %v3648_v1 = vstv %s5641_s17  ;;  %s7980_s17 = sld [smem:[#allocation2 + $0xac]] }
 0x4c3   : > { %3599 = vrot.lane.b32.xlu0 %v3594_v63, %s6012_s27 }
 0x4c4   : > { %v7897_v31 = vpop.permute.xlu1 %3291  ;;  %3613 = vrot.lane.b32.xlu2 %v3608_v39, %s6012_s27 }
 0x4c5   : > { %10180 = vst [vmem:[#allocation365_spill] sm:$0xff] %v7897_v31  ;;  %v7900_v14 = vpop.permute.xlu0 %3279 }
 0x4c6   : > { %10181 = vst [vmem:[#allocation366_spill] sm:$0xff] %v7900_v14  ;;  %v7903_v33 = vpop.permute.xlu2 %3361  ;;  %v3649_v14 = vmul.f32 %v7805_v52, %v3648_v1 }
 0x4c7   : > { %10182 = vst [vmem:[#allocation367_spill] sm:$0xff] %v7903_v33 }
 0x4ca   : > { %3627 = vrot.lane.b32.xlu1 %v3622_v23, %s6012_s27  ;;  %v3650_v23 = vmul.f32 %v7813_v36, %v3648_v1  ;;  %v3676_v1 = vstv %s5643_s25  ;;  %s7989_s25 = sld [smem:[#allocation2 + $0x5]] }
 0x4cb   : > { %3625 = vrot.lane.b32.xlu0 %v3621_v50, %s6012_s27  ;;  %v3662_v50 = vstv %s5642_s19  ;;  %s7983_s19 = sld [smem:[#allocation2 + $0x69]] }
 0x4cc   : > { %v7909_v63 = vpop.permute.xlu1 %3307  ;;  %3639 = vrot.lane.b32.xlu2 %v3635_v18, %s6013_s8 }
 0x4cd   : > { %10183 = vst [vmem:[#allocation368_spill] sm:$0xff] %v7909_v63  ;;  %v7912_v39 = vpop.permute.xlu0 %3305  ;;  %v7946_v63 = vld [vmem:[%s6140_s28 + $0x2c] sm:$0xf] }
 0x4ce   : > { %10184 = vst [vmem:[#allocation369_spill] sm:$0xff] %v7912_v39  ;;  %v7915_v33 = vpop.permute.xlu2 %3377  ;;  %v3663_v39 = vmul.f32 %v7805_v52, %v3662_v50 }
 0x4cf   : > { %10185 = vst [vmem:[#allocation370_spill] sm:$0xff] %v7915_v33  ;;  %v3664_v33 = vmul.f32 %v7813_v36, %v3662_v50 }
 0x4d2   : > { %3653 = vrot.lane.b32.xlu1 %v3649_v14, %s6013_s8  ;;  %v3677_v14 = vmul.f32 %v7805_v52, %v3676_v1  ;;  %v3678_v52 = vmul.f32 %v7813_v36, %v3676_v1 }
 0x4d3   : > { %3641 = vrot.lane.b32.xlu0 %v3636_v38, %s6013_s8  ;;  %v7934_v38 = vld [vmem:[%s6140_s28 + $0x24] sm:$0xff] }
 0x4d4   : > { %v7921_v31 = vpop.permute.xlu1 %3333  ;;  %3655 = vrot.lane.b32.xlu2 %v3650_v23, %s6013_s8 }
 0x4d5   : > { %10186 = vst [vmem:[#allocation371_spill] sm:$0xff] %v7921_v31  ;;  %v7924_v18 = vpop.permute.xlu0 %3321  ;;  %v3716_v31 = vstv %s5650_s26  ;;  %s7995_s26 = sld [smem:[#allocation2 + $0x110]] }
 0x4d6   : > { %10187 = vst [vmem:[#allocation372_spill] sm:$0xff] %v7924_v18  ;;  %v7927_v57 = vpop.permute.xlu2 %3403 }
 0x4d7   : > { %10188 = vst [vmem:[#allocation373_spill] sm:$0xff] %v7927_v57  ;;  %v3717_v57 = vmul.f32 %v7934_v38, %v3716_v31 }
 0x4da   : > { %3669 = vrot.lane.b32.xlu1 %v3664_v33, %s6013_s8  ;;  %v3718_v33 = vmul.f32 %v7946_v63, %v3716_v31  ;;  %v3744_v31 = vstv %s5652_s30  ;;  %s8010_s30 = sld [smem:[#allocation2 + $0x131]] }
 0x4db   : > { %3667 = vrot.lane.b32.xlu0 %v3663_v39, %s6013_s8  ;;  %v3730_v39 = vstv %s5651_s29  ;;  %s7998_s29 = sld [smem:[#allocation2 + $0xcd]] }
 0x4dc   : > { %v7936_v23 = vpop.permute.xlu1 %3349  ;;  %3681 = vrot.lane.b32.xlu2 %v3677_v14, %s6013_s8  ;;  %v3731_v1 = vmul.f32 %v7934_v38, %v3730_v39 }
 0x4dd   : > { %10189 = vst [vmem:[#allocation374_spill] sm:$0xff] %v7936_v23  ;;  %v7939_v18 = vpop.permute.xlu0 %3347  ;;  %v3732_v23 = vmul.f32 %v7946_v63, %v3730_v39 }
 0x4de   : > { %10190 = vst [vmem:[#allocation375_spill] sm:$0xff] %v7939_v18  ;;  %v7942_v50 = vpop.permute.xlu2 %3419 }
 0x4df   : > { %10191 = vst [vmem:[#allocation376_spill] sm:$0xff] %v7942_v50  ;;  %v5856_v50 = vld [vmem:[%s6140_s28 + $0x8] sm:$0xf] }
 0x4e0   : > { %v210_v48 = vmul.f32 %v5856_v50, %v208_v44 }
 0x4e2   : > { %3721 = vrot.lane.b32.xlu1 %v3717_v57, %s6010_s14  ;;  %v3745_v57 = vmul.f32 %v7934_v38, %v3744_v31 }
 0x4e3   : > { %3683 = vrot.lane.b32.xlu0 %v3678_v52, %s6013_s8  ;;  %v3758_v52 = vstv %s5653_s3  ;;  %s8029_s3 = sld [smem:[#allocation2 + $0x174]] }
 0x4e4   : > { %v7951_v14 = vpop.permute.xlu1 %3375  ;;  %3723 = vrot.lane.b32.xlu2 %v3718_v33, %s6010_s14 }
 0x4e5   : > { %10192 = vst [vmem:[#allocation377_spill] sm:$0xff] %v7951_v14  ;;  %v7954_v18 = vpop.permute.xlu0 %3363  ;;  %v3759_v14 = vmul.f32 %v7934_v38, %v3758_v52 }
 0x4e6   : > { %10193 = vst [vmem:[#allocation378_spill] sm:$0xff] %v7954_v18  ;;  %v7957_v36 = vpop.permute.xlu2 %3471 }
 0x4e7   : > { %10194 = vst [vmem:[#allocation379_spill] sm:$0xff] %v7957_v36 }
 0x4ea   : > { %3737 = vrot.lane.b32.xlu1 %v3732_v23, %s6010_s14  ;;  %v190_v23 = vstv %s189_s7  ;;  %s8053_s7 = sld [smem:[#allocation2 + $0x49]] }
 0x4eb   : > { %3735 = vrot.lane.b32.xlu0 %v3731_v1, %s6010_s14  ;;  %v3746_v1 = vmul.f32 %v7946_v63, %v3744_v31  ;;  %v192_v18 = vmul.f32 %v5856_v50, %v190_v23  ;;  %v3772_v31 = vstv %s7969_s16  ;;  %s8076_s16 = sld [smem:[#allocation2 + $0x136]] }
 0x4ec   : > { %v7971_v33 = vpop.permute.xlu1 %3391  ;;  %3749 = vrot.lane.b32.xlu2 %v3745_v57, %s6010_s14  ;;  %v202_v57 = vstv %s7960_s23  ;;  %v3774_v47 = vmul.f32 %v7946_v63, %v3772_v31  ;;  %s8058_s23 = sld [smem:[#allocation2 + $0xa]] }
 0x4ed   : > { %10195 = vst [vmem:[#allocation380_spill] sm:$0xff] %v7971_v33  ;;  %v7974_v39 = vpop.permute.xlu0 %3389  ;;  %v3760_v33 = vmul.f32 %v7946_v63, %v3758_v52  ;;  %v226_v11 = vadd.f32 %v6268_v20, %v192_v18  ;;  %v204_v10 = vmul.f32 %v5856_v50, %v202_v57 }
 0x4ee   : > { %10196 = vst [vmem:[#allocation381_spill] sm:$0xff] %v7974_v39  ;;  %v7977_v36 = vpop.permute.xlu2 %3487  ;;  %v5857_v39 = vld [vmem:[%s6140_s28] sm:$0xff] }
 0x4ef   : > { %10197 = vst [vmem:[#allocation382_spill] sm:$0xff] %v7977_v36  ;;  %v191_v58 = vmul.f32 %v5857_v39, %v190_v23  ;;  %v198_v36 = vmul.f32 %v5856_v50, %v196_v3  ;;  %v209_v59 = vmul.f32 %v5857_v39, %v208_v44  ;;  %v203_v23 = vmul.f32 %v5857_v39, %v202_v57 }
 0x4f0   : > { %v197_v4 = vmul.f32 %v5857_v39, %v196_v3  ;;  %v282_v3 = vadd.f32 %v6292_v35, %v226_v11  ;;  %v5858_v35 = vld [vmem:[%s6140_s28 + $0x1] sm:$0xff]  ;;  %v452_v11 = vstv %s7998_s29  ;;  %s8150_s29 = sld [smem:[#allocation2 + $0x4a]] }
 0x4f1   : > { %v240_v18 = vadd.f32 %v6265_v19, %v198_v36  ;;  %v267_v57 = vadd.f32 %v6280_v28, %v209_v59  ;;  %v253_v39 = vadd.f32 %v6231_v60, %v203_v23  ;;  %v254_v19 = vadd.f32 %v6239_v2, %v204_v10 }
 0x4f2   : > { %3763 = vrot.lane.b32.xlu1 %v3759_v14, %s6010_s14  ;;  %v239_v44 = vadd.f32 %v6253_v12, %v197_v4  ;;  %v440_v36 = vstv %s7989_s25  ;;  %v268_v28 = vadd.f32 %v6277_v27, %v210_v48  ;;  %v3800_v60 = vstv %s7995_s26  ;;  %v5859_v4 = vld [vmem:[%s6140_s28 + $0x9] sm:$0xf]  ;;  %s8132_s25 = sld [smem:[#allocation2 + $0x175]] }
 0x4f3   : > { %3751 = vrot.lane.b32.xlu0 %v3746_v1, %s6010_s14  ;;  %v225_v1 = vadd.f32 %v6256_v13, %v191_v58  ;;  %v446_v13 = vstv %s7983_s19  ;;  %v323_v2 = vadd.f32 %v6271_v22, %v267_v57  ;;  %v309_v27 = vadd.f32 %v6304_v43, %v253_v39  ;;  %s8108_s19 = sld [smem:[#allocation2 + $0x111]] }
 0x4f4   : > { %v8000_v52 = vpop.permute.xlu1 %3417  ;;  %3765 = vrot.lane.b32.xlu2 %v3760_v33, %s6010_s14  ;;  %v3773_v33 = vmul.f32 %v7934_v38, %v3772_v31  ;;  %v296_v31 = vadd.f32 %v6259_v15, %v240_v18  ;;  %v447_v59 = vmul.f32 %v5858_v35, %v446_v13  ;;  %v295_v12 = vadd.f32 %v6289_v34, %v239_v44  ;;  %s8139_s26 = sld [smem:[#allocation2 + $0xf]] }
 0x4f5   : > { %10198 = vst [vmem:[#allocation383_spill] sm:$0xff] %v8000_v52  ;;  %v8003_v14 = vpop.permute.xlu0 %3405  ;;  %v3786_v52 = vstv %s7980_s17  ;;  %v281_v50 = vadd.f32 %v6247_v7, %v225_v1  ;;  %v338_v7 = vadd.f32 %v6283_v30, %v282_v3  ;;  %v310_v15 = vadd.f32 %v6301_v42, %v254_v19  ;;  %s8084_s17 = sld [smem:[#allocation2 + $0xd2]] }
 0x4f6   : > { %v8007_v20 = vpop.permute.xlu2 %3513  ;;  %v3787_v58 = vmul.f32 %v7934_v38, %v3786_v52  ;;  %v324_v48 = vadd.f32 %v6316_v51, %v268_v28  ;;  %v442_v10 = vmul.f32 %v5859_v4, %v440_v36  ;;  %v351_v30 = vadd.f32 %v6331_v62, %v295_v12 }
 0x4f7   : > { %v337_v22 = vadd.f32 %v6313_v49, %v281_v50  ;;  %v441_v34 = vmul.f32 %v5858_v35, %v440_v36  ;;  %v3801_v1 = vmul.f32 %v7934_v38, %v3800_v60  ;;  %v379_v42 = vadd.f32 %v6343_v5, %v323_v2 }
 0x4f8   : > { %v458_v43 = vstv %s8010_s30  ;;  %v3788_v51 = vmul.f32 %v7946_v63, %v3786_v52  ;;  %v366_v57 = vadd.f32 %v6346_v6, %v310_v15  ;;  %v394_v49 = vadd.f32 %v6355_v16, %v338_v7  ;;  %s8156_s30 = sld [smem:[#allocation2 + $0x73]] }
 0x4f9   : > { %v393_v62 = vadd.f32 %v6358_v17, %v337_v22  ;;  %v3802_v3 = vmul.f32 %v7946_v63, %v3800_v60  ;;  %v380_v5 = vadd.f32 %v6307_v45, %v324_v48  ;;  %v407_v39 = vadd.f32 %v6319_v53, %v351_v30 }
 0x4fa   : > { %3779 = vrot.lane.b32.xlu1 %v3774_v47, %s6011_s24  ;;  %v453_v19 = vmul.f32 %v5858_v35, %v452_v11  ;;  %v459_v6 = vmul.f32 %v5858_v35, %v458_v43  ;;  %v435_v16 = vadd.f32 %v6382_v41, %v379_v42  ;;  %v460_v44 = vmul.f32 %v5859_v4, %v458_v43  ;;  %v10204_v43 = vld [vmem:[#allocation18_spill] sm:$0xff] }
 0x4fb   : > { %3777 = vrot.lane.b32.xlu0 %v3773_v33, %s6011_s24  ;;  %v352_v33 = vadd.f32 %v6328_v61, %v296_v31  ;;  %v365_v61 = vadd.f32 %v6295_v37, %v309_v27  ;;  %v436_v37 = vadd.f32 %v6379_v40, %v380_v5  ;;  %v3814_v45 = vstv %s8029_s3  ;;  %v10207_v5 = vld [vmem:[#allocation21_spill] sm:$0xff]  ;;  %s8160_s3 = sld [smem:[#allocation2 + $0xd7]] }
 0x4fc   : > { %v8035_v47 = vpop.permute.xlu1 %3433  ;;  %3791 = vrot.lane.b32.xlu2 %v3787_v58, %s6011_s24  ;;  %v448_v58 = vmul.f32 %v5859_v4, %v446_v13  ;;  %v422_v53 = vadd.f32 %v6334_v0, %v366_v57  ;;  %v444_v13 = vadd.f32 %v442_v10, %v394_v49  ;;  %v443_v41 = vadd.f32 %v441_v34, %v393_v62 }
 0x4fd   : > { %v8042_v23 = vpop.permute.xlu0 %3431  ;;  %v408_v52 = vadd.f32 %v6370_v29, %v352_v33  ;;  %v421_v17 = vadd.f32 %v6367_v26, %v365_v61  ;;  %v454_v29 = vmul.f32 %v5859_v4, %v452_v11  ;;  %v449_v36 = vadd.f32 %v447_v59, %v407_v39  ;;  %v10201_v33 = vld [vmem:[#allocation15_spill] sm:$0xff] }
 0x4fe   : > { %v8047_v18 = vpop.permute.xlu2 %3529  ;;  %v461_v31 = vadd.f32 %v459_v6, %v435_v16  ;;  %v476_v28 = vadd.f32 %v6394_v56, %v444_v13  ;;  %v3816_v0 = vmul.f32 %v7946_v63, %v3814_v45  ;;  %v462_v2 = vadd.f32 %v460_v44, %v436_v37  ;;  %v10209_v6 = vld [vmem:[#allocation24_spill] sm:$0xff] }
 0x4ff   : > { %10199 = vst [vmem:[#allocation384_spill] sm:$0xff] %v8047_v18  ;;  %v450_v26 = vadd.f32 %v448_v58, %v408_v52  ;;  %v455_v60 = vadd.f32 %v453_v19, %v421_v17  ;;  %v3815_v12 = vmul.f32 %v7934_v38, %v3814_v45  ;;  %v3828_v7 = vstv %s8053_s7  ;;  %v5861_v52 = vld [vmem:[%s6140_s28 + $0xa] sm:$0xf]  ;;  %v10210_v17 = vld [vmem:[#allocation27_spill] sm:$0xff]  ;;  %s8165_s7 = sld [smem:[#allocation2 + $0x13b]] }
 0x500   : > { %v456_v11 = vadd.f32 %v454_v29, %v422_v53  ;;  %v475_v15 = vadd.f32 %v6349_v54, %v443_v41  ;;  %v690_v59 = vstv %s8058_s23  ;;  %v3829_v56 = vmul.f32 %v7934_v38, %v3828_v7  ;;  %v10211_v53 = vld [vmem:[#allocation13_spill] sm:$0xff]  ;;  %v10212_v41 = vld [vmem:[#allocation20_spill] sm:$0xff]  ;;  %s8183_s23 = sld [smem:[#allocation2 + $0xae]] }
 0x501   : > { %v490_v27 = vadd.f32 %v6361_v21, %v450_v26  ;;  %v489_v48 = vadd.f32 %v6391_v55, %v449_v36  ;;  %v503_v4 = vadd.f32 %v6406_v9, %v455_v60  ;;  %v518_v10 = vadd.f32 %v6418_v25, %v462_v2  ;;  %v5860_v55 = vld [vmem:[%s6140_s28 + $0x2] sm:$0xff]  ;;  %v10203_v25 = vld [vmem:[#allocation17_spill] sm:$0xff] }
 0x502   : > { %3805 = vrot.lane.b32.xlu1 %v3801_v1, %s6011_s24  ;;  %v517_v22 = vadd.f32 %v6373_v32, %v461_v31  ;;  %v532_v30 = vadd.f32 %v6385_v46, %v476_v28  ;;  %v504_v34 = vadd.f32 %v6403_v8, %v456_v11  ;;  %v696_v54 = vstv %s8066_s5  ;;  %v10202_v32 = vld [vmem:[#allocation14_spill] sm:$0xff]  ;;  %v10213_v28 = vld [vmem:[#allocation16_spill] sm:$0xff]  ;;  %v10214_v11 = vld [vmem:[#allocation19_spill] sm:$0xff]  ;;  %s8208_s5 = sld [smem:[#allocation2 + $0x112]] }
 0x503   : > { %3793 = vrot.lane.b32.xlu0 %v3788_v51, %s6011_s24  ;;  %v531_v1 = vadd.f32 %v6415_v24, %v475_v15  ;;  %v545_v21 = vadd.f32 %v10201_v33, %v489_v48  ;;  %v691_v42 = vmul.f32 %v5860_v55, %v690_v59  ;;  %v3842_v9 = vstv %s8073_s20  ;;  %v10205_v24 = vld [vmem:[#allocation11_spill] sm:$0xff]  ;;  %v10216_v48 = vld [vmem:[#allocation30_spill] sm:$0xff]  ;;  %s8216_s20 = sld [smem:[#allocation2 + $0x78]] }
 0x504   : > { %v8078_v50 = vpop.permute.xlu1 %3485  ;;  %3807 = vrot.lane.b32.xlu2 %v3802_v3, %s6011_s24  ;;  %v546_v46 = vadd.f32 %v10202_v32, %v490_v27  ;;  %v573_v8 = vadd.f32 %v10203_v25, %v517_v22  ;;  %v560_v51 = vadd.f32 %v10204_v43, %v504_v34  ;;  %v708_v57 = vstv %s8076_s16  ;;  %v10206_v3 = vld [vmem:[#allocation12_spill] sm:$0xff]  ;;  %v10217_v22 = vld [vmem:[#allocation22_spill] sm:$0xff]  ;;  %s8222_s16 = sld [smem:[#allocation2 + $0xdc]] }
 0x505   : > { %v8081_v40 = vpop.permute.xlu0 %3473  ;;  %v559_v62 = vadd.f32 %v10205_v24, %v503_v4  ;;  %v574_v61 = vadd.f32 %v10206_v3, %v518_v10  ;;  %v587_v58 = vadd.f32 %v10207_v5, %v531_v1  ;;  %v698_v39 = vmul.f32 %v5861_v52, %v696_v54  ;;  %v10219_v1 = vld [vmem:[#allocation25_spill] sm:$0xff] }
 0x506   : > { %v8087_v35 = vpop.permute.xlu2 %3555  ;;  %v602_v16 = vadd.f32 %v10209_v6, %v546_v46  ;;  %v629_v44 = vadd.f32 %v10210_v17, %v573_v8  ;;  %v702_v37 = vstv %s8084_s17  ;;  %v3843_v45 = vmul.f32 %v7934_v38, %v3842_v9  ;;  %v10222_v46 = vld [vmem:[#allocation33_spill] sm:$0xff]  ;;  %s8229_s17 = sld [smem:[#allocation2 + $0x176]] }
 0x507   : > { %10200 = vst [vmem:[#allocation385_spill] sm:$0xff] %v8087_v35  ;;  %v601_v13 = vadd.f32 %v10211_v53, %v545_v21  ;;  %v588_v26 = vadd.f32 %v10212_v41, %v532_v30  ;;  %v709_v36 = vmul.f32 %v5860_v55, %v708_v57  ;;  %v3830_v31 = vmul.f32 %v7946_v63, %v3828_v7  ;;  %v10218_v30 = vld [vmem:[#allocation26_spill] sm:$0xff]  ;;  %v10221_v21 = vld [vmem:[#allocation32_spill] sm:$0xff]  ;;  %v10226_v53 = vld [vmem:[#allocation39_spill] sm:$0xff] }
 0x508   : > { %v697_v60 = vmul.f32 %v5860_v55, %v696_v54  ;;  %v692_v2 = vmul.f32 %v5861_v52, %v690_v59  ;;  %v643_v15 = vadd.f32 %v10214_v11, %v587_v58  ;;  %v704_v10 = vmul.f32 %v5861_v52, %v702_v37  ;;  %v10220_v54 = vld [vmem:[#allocation29_spill] sm:$0xff] }
 0x509   : > { %v644_v4 = vadd.f32 %v10216_v48, %v588_v26  ;;  %v658_v7 = vadd.f32 %v10217_v22, %v602_v16  ;;  %v630_v34 = vadd.f32 %v10218_v30, %v574_v61  ;;  %v685_v33 = vadd.f32 %v10219_v1, %v629_v44  ;;  %v10227_v26 = vld [vmem:[#allocation28_spill] sm:$0xff] }
 0x50a   : > { %3821 = vrot.lane.b32.xlu1 %v3816_v0, %s6011_s24  ;;  %v616_v0 = vadd.f32 %v10213_v28, %v560_v51  ;;  %v657_v59 = vadd.f32 %v10220_v54, %v601_v13  ;;  %v703_v32 = vmul.f32 %v5860_v55, %v702_v37  ;;  %v3856_v8 = vstv %s8108_s19  ;;  %v10223_v51 = vld [vmem:[#allocation36_spill] sm:$0xff]  ;;  %v10225_v37 = vld [vmem:[#allocation35_spill] sm:$0xff]  ;;  %s8236_s19 = sld [smem:[#allocation2 + $0x14]] }
 0x50b   : > { %3819 = vrot.lane.b32.xlu0 %v3815_v12, %s6011_s24  ;;  %v3844_v12 = vmul.f32 %v7946_v63, %v3842_v9  ;;  %v710_v43 = vmul.f32 %v5861_v52, %v708_v57  ;;  %v686_v24 = vadd.f32 %v10223_v51, %v630_v34  ;;  %v693_v3 = vadd.f32 %v691_v42, %v643_v15  ;;  %v10231_v15 = vld [vmem:[#allocation41_spill] sm:$0xff]  ;;  %v10235_v34 = vld [vmem:[#allocation34_spill] sm:$0xff] }
 0x50c   : > { %v8114_v49 = vpop.permute.xlu1 %3501  ;;  %3833 = vrot.lane.b32.xlu2 %v3829_v56, %s6012_s27  ;;  %v10215_v56 = vld [vmem:[#allocation23_spill] sm:$0xff]  ;;  %v672_v9 = vadd.f32 %v10221_v21, %v616_v0  ;;  %v694_v61 = vadd.f32 %v692_v2, %v644_v4  ;;  %v700_v5 = vadd.f32 %v698_v39, %v658_v7  ;;  %v711_v58 = vadd.f32 %v709_v36, %v685_v33  ;;  %v10229_v0 = vld [vmem:[#allocation42_spill] sm:$0xff]  ;;  %v10233_v4 = vld [vmem:[#allocation48_spill] sm:$0xff] }
 0x50d   : > { %v8121_v19 = vpop.permute.xlu0 %3499  ;;  %v615_v27 = vadd.f32 %v10215_v56, %v559_v62  ;;  %v699_v6 = vadd.f32 %v697_v60, %v657_v59  ;;  %v3858_v57 = vmul.f32 %v7946_v63, %v3856_v8  ;;  %v3857_v42 = vmul.f32 %v7934_v38, %v3856_v8  ;;  %v10234_v7 = vld [vmem:[#allocation31_spill] sm:$0xff]  ;;  %v10236_v33 = vld [vmem:[#allocation37_spill] sm:$0xff]  ;;  %v5862_v59 = vld [vmem:[%s6140_s28 + $0xb] sm:$0xf] }
 0x50e   : > { %10208 = vst [vmem:[#allocation15_spill] sm:$0xff] %v8121_v19  ;;  %v8127_v29 = vpop.permute.xlu2 %3571  ;;  %v706_v16 = vadd.f32 %v704_v10, %v672_v9  ;;  %v3870_v44 = vstv %s8132_s25  ;;  %v712_v39 = vadd.f32 %v710_v43, %v686_v24  ;;  %v726_v36 = vadd.f32 %v10227_v26, %v694_v61  ;;  %v10239_v43 = vld [vmem:[#allocation54_spill] sm:$0xff]  ;;  %v10240_v61 = vld [vmem:[#allocation43_spill] sm:$0xff]  ;;  %s8250_s25 = sld [smem:[#allocation2 + $0x140]] }
 0x50f   : > { %v671_v25 = vadd.f32 %v10222_v46, %v615_v27  ;;  %v739_v13 = vadd.f32 %v10226_v53, %v699_v6  ;;  %v3871_v41 = vmul.f32 %v7934_v38, %v3870_v44  ;;  %v940_v2 = vstv %s8139_s26  ;;  %v10232_v27 = vld [vmem:[#allocation44_spill] sm:$0xff]  ;;  %s8260_s26 = sld [smem:[#allocation2 + $0x4c]] }
 0x510   : > { %v754_v60 = vadd.f32 %v10229_v0, %v706_v16  ;;  %v767_v56 = vadd.f32 %v10231_v15, %v711_v58  ;;  %v782_v48 = vadd.f32 %v10232_v27, %v726_v36  ;;  %v3884_v22 = vstv %s8150_s29  ;;  %v5863_v6 = vld [vmem:[%s6140_s28 + $0x3] sm:$0xff]  ;;  %v10244_v0 = vld [vmem:[#allocation49_spill] sm:$0xff]  ;;  %s8285_s29 = sld [smem:[#allocation2 + $0xb0]] }
 0x511   : > { %v705_v17 = vadd.f32 %v703_v32, %v671_v25  ;;  %v768_v1 = vadd.f32 %v10235_v34, %v712_v39  ;;  %v795_v54 = vadd.f32 %v10236_v33, %v739_v13  ;;  %v942_v21 = vmul.f32 %v5862_v59, %v940_v2  ;;  %v10237_v32 = vld [vmem:[#allocation40_spill] sm:$0xff]  ;;  %v10238_v25 = vld [vmem:[#allocation51_spill] sm:$0xff]  ;;  %v10251_v34 = vld [vmem:[#allocation62_spill] sm:$0xff] }
 0x512   : > { %3847 = vrot.lane.b32.xlu1 %v3843_v45, %s6012_s27  ;;  %v725_v45 = vadd.f32 %v10225_v37, %v693_v3  ;;  %v810_v46 = vadd.f32 %v10237_v32, %v754_v60  ;;  %v823_v8 = vadd.f32 %v10238_v25, %v767_v56  ;;  %v838_v51 = vadd.f32 %v10239_v43, %v782_v48  ;;  %v10247_v56 = vld [vmem:[#allocation57_spill] sm:$0xff]  ;;  %v10254_v43 = vld [vmem:[#allocation66_spill] sm:$0xff] }
 0x513   : > { %3835 = vrot.lane.b32.xlu0 %v3830_v31, %s6012_s27  ;;  %v10228_v31 = vld [vmem:[#allocation38_spill] sm:$0xff]  ;;  %v753_v30 = vadd.f32 %v10234_v7, %v705_v17  ;;  %v946_v24 = vstv %s8156_s30  ;;  %v952_v58 = vstv %s8160_s3  ;;  %v3885_v16 = vmul.f32 %v7934_v38, %v3884_v22  ;;  %v10250_v7 = vld [vmem:[#allocation60_spill] sm:$0xff]  ;;  %v10253_v32 = vld [vmem:[#allocation65_spill] sm:$0xff]  ;;  %s8295_s30 = sld [smem:[#allocation2 + $0x19]] }
 0x514   : > { %v8153_v62 = vpop.permute.xlu1 %3527  ;;  %3849 = vrot.lane.b32.xlu2 %v3844_v12, %s6012_s27  ;;  %v740_v28 = vadd.f32 %v10228_v31, %v700_v5  ;;  %v10230_v12 = vld [vmem:[#allocation45_spill] sm:$0xff]  ;;  %v958_v53 = vstv %s8165_s7  ;;  %v3872_v13 = vmul.f32 %v7946_v63, %v3870_v44  ;;  %v948_v36 = vmul.f32 %v5862_v59, %v946_v24  ;;  %v10248_v44 = vld [vmem:[#allocation56_spill] sm:$0xff]  ;;  %s8306_s3 = sld [smem:[#allocation2 + $0x114]] }
 0x515   : > { %v8158_v55 = vpop.permute.xlu0 %3515  ;;  %v781_v11 = vadd.f32 %v10230_v12, %v725_v45  ;;  %v10242_v45 = vld [vmem:[#allocation46_spill] sm:$0xff]  ;;  %v947_v31 = vmul.f32 %v5863_v6, %v946_v24  ;;  %v879_v60 = vadd.f32 %v10244_v0, %v823_v8  ;;  %v866_v48 = vadd.f32 %v10248_v44, %v810_v46  ;;  %s8322_s7 = sld [smem:[#allocation2 + $0xe1]] }
 0x516   : > { %v8163_v52 = vpop.permute.xlu2 %3597  ;;  %v796_v10 = vadd.f32 %v10233_v4, %v740_v28  ;;  %v3886_v28 = vmul.f32 %v7946_v63, %v3884_v22  ;;  %v10249_v4 = vld [vmem:[#allocation59_spill] sm:$0xff]  ;;  %v3898_v8 = vstv %s8183_s23  ;;  %v954_v46 = vmul.f32 %v5862_v59, %v952_v58  ;;  %s8327_s23 = sld [smem:[#allocation2 + $0x7d]] }
 0x517   : > { %10224 = vst [vmem:[#allocation14_spill] sm:$0xff] %v8163_v52  ;;  %v837_v5 = vadd.f32 %v10240_v61, %v781_v11  ;;  %v10246_v11 = vld [vmem:[#allocation52_spill] sm:$0xff]  ;;  %v10252_v22 = vld [vmem:[#allocation63_spill] sm:$0xff]  ;;  %v935_v25 = vadd.f32 %v10253_v32, %v879_v60  ;;  %v3900_v0 = vmul.f32 %v7946_v63, %v3898_v8 }
 0x518   : > { %v852_v39 = vadd.f32 %v10242_v45, %v796_v10  ;;  %v894_v15 = vadd.f32 %v10246_v11, %v838_v51  ;;  %v922_v51 = vadd.f32 %v10254_v43, %v866_v48  ;;  %v1196_v48 = vstv %s8216_s20  ;;  %s8344_s20 = sld [smem:[#allocation2 + $0x178]]  ;;  %v10428_v52 = vld [vmem:[#allocation215_spill] sm:$0xff] }
 0x519   : > { %v893_v10 = vadd.f32 %v10249_v4, %v837_v5  ;;  %v953_v5 = vmul.f32 %v5863_v6, %v952_v58  ;;  %v3912_v58 = vstv %s8208_s5  ;;  %v10261_v4 = vld [vmem:[#allocation71_spill] sm:$0xff]  ;;  %s8331_s5 = sld [smem:[#allocation2 + $0x145]] }
 0x51a   : > { %3863 = vrot.lane.b32.xlu1 %v3858_v57, %s6012_s27  ;;  %v941_v57 = vmul.f32 %v5863_v6, %v940_v2  ;;  %v10245_v2 = vld [vmem:[#allocation53_spill] sm:$0xff]  ;;  %v944_v61 = vadd.f32 %v942_v21, %v894_v15  ;;  %v3899_v21 = vmul.f32 %v7934_v38, %v3898_v8  ;;  %v3913_v11 = vmul.f32 %v7934_v38, %v3912_v58  ;;  %v10259_v15 = vld [vmem:[#allocation68_spill] sm:$0xff] }
 0x51b   : > { %3861 = vrot.lane.b32.xlu0 %v3857_v42, %s6012_s27  ;;  %v10241_v42 = vld [vmem:[#allocation47_spill] sm:$0xff]  ;;  %v851_v12 = vadd.f32 %v10245_v2, %v795_v54  ;;  %v959_v54 = vmul.f32 %v5863_v6, %v958_v53  ;;  %v10257_v6 = vld [vmem:[#allocation69_spill] sm:$0xff] }
 0x51c   : > { %v8189_v9 = vpop.permute.xlu1 %3543  ;;  %3875 = vrot.lane.b32.xlu2 %v3871_v41, %s6012_s27  ;;  %v809_v37 = vadd.f32 %v10241_v42, %v753_v30  ;;  %v10243_v41 = vld [vmem:[#allocation50_spill] sm:$0xff] }
 0x51d   : > { %v8196_v3 = vpop.permute.xlu0 %3541  ;;  %v824_v26 = vadd.f32 %v10243_v41, %v768_v1  ;;  %v908_v1 = vadd.f32 %v10251_v34, %v852_v39  ;;  %v907_v33 = vadd.f32 %v10252_v22, %v851_v12  ;;  %v943_v39 = vadd.f32 %v941_v57, %v893_v10  ;;  %v10258_v12 = vld [vmem:[#allocation72_spill] sm:$0xff]  ;;  %v10263_v22 = vld [vmem:[#allocation61_spill] sm:$0xff] }
 0x51e   : > { %v8202_v17 = vpop.permute.xlu2 %3613  ;;  %v865_v27 = vadd.f32 %v10247_v56, %v809_v37  ;;  %v960_v37 = vmul.f32 %v5862_v59, %v958_v53  ;;  %v956_v59 = vadd.f32 %v954_v46, %v922_v51  ;;  %v976_v56 = vadd.f32 %v10259_v15, %v944_v61  ;;  %v10266_v46 = vld [vmem:[#allocation70_spill] sm:$0xff]  ;;  %v10274_v15 = vld [vmem:[#allocation84_spill] sm:$0xff] }
 0x51f   : > { %v880_v30 = vadd.f32 %v10250_v7, %v824_v26  ;;  %v950_v26 = vadd.f32 %v948_v36, %v908_v1  ;;  %v949_v2 = vadd.f32 %v947_v31, %v907_v33  ;;  %v975_v53 = vadd.f32 %v10257_v6, %v943_v39  ;;  %v10260_v31 = vld [vmem:[#allocation75_spill] sm:$0xff]  ;;  %v10262_v7 = vld [vmem:[#allocation78_spill] sm:$0xff] }
 0x520   : > { %v1202_v34 = vstv %s8222_s16  ;;  %v3926_v1 = vstv %s8229_s17  ;;  %v10268_v61 = vld [vmem:[#allocation74_spill] sm:$0xff]  ;;  %s8368_s16 = sld [smem:[#allocation2 + $0x4d]] }
 0x521   : > { %v990_v57 = vadd.f32 %v10258_v12, %v950_v26  ;;  %v989_v33 = vadd.f32 %v10263_v22, %v949_v2  ;;  %v10270_v26 = vld [vmem:[#allocation73_spill] sm:$0xff]  ;;  %v3927_v6 = vmul.f32 %v7934_v38, %v3926_v1  ;;  %v10272_v12 = vld [vmem:[#allocation76_spill] sm:$0xff]  ;;  %v3928_v38 = vmul.f32 %v7946_v63, %v3926_v1  ;;  %v10277_v22 = vld [vmem:[#allocation79_spill] sm:$0xff]  ;;  %s8380_s17 = sld [smem:[#allocation2 + $0x1e]] }
 0x522   : > { %3889 = vrot.lane.b32.xlu1 %v3885_v16, %s6013_s8  ;;  %v10255_v16 = vld [vmem:[#allocation55_spill] sm:$0xff]  ;;  %v10271_v2 = vld [vmem:[#allocation77_spill] sm:$0xff] }
 0x523   : > { %3877 = vrot.lane.b32.xlu0 %v3872_v13, %s6012_s27  ;;  %v921_v42 = vadd.f32 %v10255_v16, %v865_v27  ;;  %v10256_v13 = vld [vmem:[#allocation58_spill] sm:$0xff]  ;;  %v1046_v43 = vadd.f32 %v10266_v46, %v990_v57  ;;  %v10269_v16 = vld [vmem:[#allocation81_spill] sm:$0xff] }
 0x524   : > { %v8232_v24 = vpop.permute.xlu1 %3569  ;;  %3891 = vrot.lane.b32.xlu2 %v3886_v28, %s6013_s8  ;;  %v936_v41 = vadd.f32 %v10256_v13, %v880_v30  ;;  %v961_v28 = vadd.f32 %v959_v54, %v935_v25  ;;  %v1032_v30 = vadd.f32 %v10262_v7, %v976_v56  ;;  %v10264_v54 = vld [vmem:[#allocation64_spill] sm:$0xff]  ;;  %v10265_v25 = vld [vmem:[#allocation67_spill] sm:$0xff]  ;;  %v1190_v13 = vstv %s8236_s19  ;;  %v10279_v46 = vld [vmem:[#allocation86_spill] sm:$0xff]  ;;  %s8388_s19 = sld [smem:[#allocation2 + $0xb1]] }
 0x525   : > { %v8238_v45 = vpop.permute.xlu0 %3557  ;;  %v955_v36 = vadd.f32 %v953_v5, %v921_v42  ;;  %v1004_v32 = vadd.f32 %v10264_v54, %v956_v59  ;;  %v1031_v8 = vadd.f32 %v10265_v25, %v975_v53  ;;  %v1208_v25 = vstv %s8250_s25  ;;  %v10282_v1 = vld [vmem:[#allocation89_spill] sm:$0xff]  ;;  %s8404_s25 = sld [smem:[#allocation2 + $0xe6]] }
 0x526   : > { %v8242_v60 = vpop.permute.xlu2 %3639  ;;  %v962_v27 = vadd.f32 %v960_v37, %v936_v41  ;;  %v1017_v44 = vadd.f32 %v10260_v31, %v961_v28  ;;  %v5864_v37 = vld [vmem:[%s6140_s28 + $0x4] sm:$0xff]  ;;  %v1045_v28 = vadd.f32 %v10271_v2, %v989_v33  ;;  %v1088_v57 = vadd.f32 %v10272_v12, %v1032_v30  ;;  %v10278_v30 = vld [vmem:[#allocation90_spill] sm:$0xff] }
 0x527   : > { %v1003_v10 = vadd.f32 %v10261_v4, %v955_v36  ;;  %v1197_v39 = vmul.f32 %v5864_v37, %v1196_v48  ;;  %v10275_v31 = vld [vmem:[#allocation83_spill] sm:$0xff] }
 0x528   : > { %v1018_v5 = vadd.f32 %v10268_v61, %v962_v27  ;;  %v3914_v27 = vmul.f32 %v7946_v63, %v3912_v58  ;;  %v10276_v4 = vld [vmem:[#allocation87_spill] sm:$0xff]  ;;  %v1102_v61 = vadd.f32 %v10279_v46, %v1046_v43  ;;  %v10280_v58 = vld [vmem:[#allocation93_spill] sm:$0xff]  ;;  %v3967_v43 = vstv %s8260_s26  ;;  %s8408_s26 = sld [smem:[#allocation2 + $0x82]] }
 0x529   : > { %v1059_v42 = vadd.f32 %v10269_v16, %v1003_v10  ;;  %v1101_v10 = vadd.f32 %v10276_v4, %v1045_v28  ;;  %v1203_v16 = vmul.f32 %v5864_v37, %v1202_v34  ;;  %v1209_v4 = vmul.f32 %v5864_v37, %v1208_v25 }
 0x52a   : > { %3905 = vrot.lane.b32.xlu1 %v3900_v0, %s6013_s8  ;;  %v1073_v0 = vadd.f32 %v10270_v26, %v1017_v44  ;;  %v1074_v56 = vadd.f32 %v10274_v15, %v1018_v5  ;;  %v1087_v44 = vadd.f32 %v10275_v31, %v1031_v8  ;;  %v10281_v26 = vld [vmem:[#allocation82_spill] sm:$0xff] }
 0x52b   : > { %3903 = vrot.lane.b32.xlu0 %v3899_v21, %s6013_s8  ;;  %v5865_v21 = vld [vmem:[%s6140_s28 + $0xc] sm:$0xf]  ;;  %v1115_v33 = vadd.f32 %v10277_v22, %v1059_v42  ;;  %v10289_v31 = vld [vmem:[#allocation98_spill] sm:$0xff]  ;;  %v10290_v22 = vld [vmem:[#allocation99_spill] sm:$0xff] }
 0x52c   : > { %v8266_v51 = vpop.permute.xlu1 %3585  ;;  %3917 = vrot.lane.b32.xlu2 %v3913_v11, %s6013_s8  ;;  %v1204_v59 = vmul.f32 %v5865_v21, %v1202_v34  ;;  %v10273_v11 = vld [vmem:[#allocation80_spill] sm:$0xff]  ;;  %v1192_v7 = vmul.f32 %v5865_v21, %v1190_v13  ;;  %v1143_v5 = vadd.f32 %v10280_v58, %v1087_v44  ;;  %v1198_v8 = vmul.f32 %v5865_v21, %v1196_v48  ;;  %v10284_v34 = vld [vmem:[#allocation85_spill] sm:$0xff]  ;;  %v10285_v48 = vld [vmem:[#allocation95_spill] sm:$0xff] }
 0x52d   : > { %10267 = vst [vmem:[#allocation17_spill] sm:$0xff] %v8266_v51  ;;  %v8273_v41 = vpop.permute.xlu0 %3583  ;;  %v1060_v36 = vadd.f32 %v10273_v11, %v1004_v32  ;;  %v1191_v32 = vmul.f32 %v5864_v37, %v1190_v13  ;;  %v1130_v63 = vadd.f32 %v10281_v26, %v1074_v56  ;;  %v1129_v2 = vadd.f32 %v10282_v1, %v1073_v0  ;;  %v10283_v42 = vld [vmem:[#allocation92_spill] sm:$0xff]  ;;  %v8303_v13 = vld [vmem:[%s6140_s28 + $0x38] sm:$0xf]  ;;  %v8314_v0 = vld [vmem:[%s6140_s28 + $0x30] sm:$0xff] }
 0x52e   : > { %v8279_v53 = vpop.permute.xlu2 %3655  ;;  %v1144_v28 = vadd.f32 %v10283_v42, %v1088_v57  ;;  %v1157_v12 = vadd.f32 %v10284_v34, %v1101_v10  ;;  %v1171_v11 = vadd.f32 %v10285_v48, %v1115_v33  ;;  %v10288_v57 = vld [vmem:[#allocation88_spill] sm:$0xff]  ;;  %v10292_v1 = vld [vmem:[#allocation102_spill] sm:$0xff]  ;;  %v10295_v48 = vld [vmem:[#allocation105_spill] sm:$0xff] }
 0x52f   : > { %v1116_v54 = vadd.f32 %v10278_v30, %v1060_v36  ;;  %v10286_v36 = vld [vmem:[#allocation96_spill] sm:$0xff]  ;;  %v1186_v44 = vadd.f32 %v10289_v31, %v1130_v63  ;;  %v1185_v30 = vadd.f32 %v10290_v22, %v1129_v2  ;;  %v1193_v33 = vadd.f32 %v1191_v32, %v1143_v5 }
 0x530   : > { %v1158_v15 = vadd.f32 %v10286_v36, %v1102_v61  ;;  %v1194_v61 = vadd.f32 %v1192_v7, %v1144_v28  ;;  %v1199_v58 = vadd.f32 %v1197_v39, %v1157_v12  ;;  %v1205_v37 = vadd.f32 %v1203_v16, %v1171_v11  ;;  %v10293_v7 = vld [vmem:[#allocation91_spill] sm:$0xff]  ;;  %v10294_v28 = vld [vmem:[#allocation101_spill] sm:$0xff]  ;;  %v10296_v16 = vld [vmem:[#allocation104_spill] sm:$0xff] }
 0x531   : > { %v1211_v63 = vadd.f32 %v1209_v4, %v1185_v30  ;;  %v1225_v42 = vadd.f32 %v10293_v7, %v1193_v33  ;;  %v1441_v39 = vstv %s8295_s30  ;;  %v10297_v12 = vld [vmem:[#allocation108_spill] sm:$0xff]  ;;  %v10298_v36 = vld [vmem:[#allocation94_spill] sm:$0xff]  ;;  %v10302_v4 = vld [vmem:[#allocation97_spill] sm:$0xff]  ;;  %v1453_v7 = vstv %s8322_s7  ;;  %s8421_s30 = sld [smem:[#allocation2 + $0x115]] }
 0x532   : > { %3931 = vrot.lane.b32.xlu1 %v3927_v6, %s6013_s8  ;;  %v1210_v6 = vmul.f32 %v5865_v21, %v1208_v25  ;;  %v3969_v21 = vmul.f32 %v8303_v13, %v3967_v43  ;;  %v1200_v25 = vadd.f32 %v1198_v8, %v1158_v15  ;;  %v1226_v2 = vadd.f32 %v10292_v1, %v1194_v61  ;;  %v10303_v30 = vld [vmem:[#allocation100_spill] sm:$0xff]  ;;  %s8462_s7 = sld [smem:[#allocation2 + $0x4e]] }
 0x533   : > { %3919 = vrot.lane.b32.xlu0 %v3914_v27, %s6013_s8  ;;  %v1172_v27 = vadd.f32 %v10288_v57, %v1116_v54  ;;  %v3981_v54 = vstv %s8285_s29  ;;  %v1239_v34 = vadd.f32 %v10294_v28, %v1199_v58  ;;  %v1267_v22 = vadd.f32 %v10302_v4, %v1211_v63  ;;  %v10309_v63 = vld [vmem:[#allocation106_spill] sm:$0xff]  ;;  %v10313_v4 = vld [vmem:[#allocation112_spill] sm:$0xff]  ;;  %s8413_s29 = sld [smem:[#allocation2 + $0x14a]] }
 0x534   : > { %v8311_v56 = vpop.permute.xlu1 %3611  ;;  %3933 = vrot.lane.b32.xlu2 %v3928_v38, %s6013_s8  ;;  %v3968_v38 = vmul.f32 %v8314_v0, %v3967_v43  ;;  %v3982_v32 = vmul.f32 %v8314_v0, %v3981_v54  ;;  %v1212_v26 = vadd.f32 %v1210_v6, %v1186_v44  ;;  %v1253_v43 = vadd.f32 %v10295_v48, %v1205_v37  ;;  %v10299_v6 = vld [vmem:[#allocation107_spill] sm:$0xff] }
 0x535   : > { %10287 = vst [vmem:[#allocation18_spill] sm:$0xff] %v8311_v56  ;;  %v8320_v10 = vpop.permute.xlu0 %3599  ;;  %v1206_v5 = vadd.f32 %v1204_v59, %v1172_v27  ;;  %v3995_v59 = vstv %s8306_s3  ;;  %v1240_v15 = vadd.f32 %v10298_v36, %v1200_v25  ;;  %v1281_v57 = vadd.f32 %v10299_v6, %v1225_v42  ;;  %v10300_v27 = vld [vmem:[#allocation111_spill] sm:$0xff]  ;;  %v10317_v56 = vld [vmem:[#allocation120_spill] sm:$0xff]  ;;  %s8444_s3 = sld [smem:[#allocation2 + $0x179]] }
 0x536   : > { %v8325_v46 = vpop.permute.xlu2 %3681  ;;  %v1268_v11 = vadd.f32 %v10297_v12, %v1212_v26  ;;  %v1295_v31 = vadd.f32 %v10300_v27, %v1239_v34  ;;  %v1282_v33 = vadd.f32 %v10303_v30, %v1226_v2  ;;  %v10306_v25 = vld [vmem:[#allocation103_spill] sm:$0xff]  ;;  %v10307_v26 = vld [vmem:[#allocation117_spill] sm:$0xff]  ;;  %v3996_v42 = vmul.f32 %v8314_v0, %v3995_v59  ;;  %v10310_v2 = vld [vmem:[#allocation110_spill] sm:$0xff] }
 0x537   : > { %10291 = vst [vmem:[#allocation11_spill] sm:$0xff] %v8325_v46  ;;  %v1254_v8 = vadd.f32 %v10296_v16, %v1206_v5  ;;  %v1309_v5 = vadd.f32 %v10306_v25, %v1253_v43  ;;  %v1337_v1 = vadd.f32 %v10307_v26, %v1281_v57  ;;  %v1296_v34 = vadd.f32 %v10310_v2, %v1240_v15  ;;  %v10312_v57 = vld [vmem:[#allocation113_spill] sm:$0xff]  ;;  %v10314_v15 = vld [vmem:[#allocation116_spill] sm:$0xff]  ;;  %v10316_v2 = vld [vmem:[#allocation119_spill] sm:$0xff] }
 0x538   : > { %v1324_v28 = vadd.f32 %v10309_v63, %v1268_v11  ;;  %v1447_v48 = vstv %s8327_s23  ;;  %v3983_v16 = vmul.f32 %v8303_v13, %v3981_v54  ;;  %v1459_v43 = vstv %s8331_s5  ;;  %v10315_v63 = vld [vmem:[#allocation115_spill] sm:$0xff]  ;;  %s8475_s23 = sld [smem:[#allocation2 + $0x87]] }
 0x539   : > { %v3997_v6 = vmul.f32 %v8303_v13, %v3995_v59  ;;  %v1323_v27 = vadd.f32 %v10312_v57, %v1267_v22  ;;  %v1338_v26 = vadd.f32 %v10314_v15, %v1282_v33  ;;  %v1393_v54 = vadd.f32 %v10315_v63, %v1337_v1  ;;  %v10318_v59 = vld [vmem:[#allocation122_spill] sm:$0xff]  ;;  %v10319_v22 = vld [vmem:[#allocation123_spill] sm:$0xff]  ;;  %s8482_s5 = sld [smem:[#allocation2 + $0xeb]] }
 0x53a   : > { %3974 = vrot.lane.b32.xlu1 %v3969_v21, %s6010_s14  ;;  %v10304_v21 = vld [vmem:[#allocation114_spill] sm:$0xff] }
 0x53b   : > { %3972 = vrot.lane.b32.xlu0 %v3968_v38, %s6010_s14  ;;  %v1310_v61 = vadd.f32 %v10304_v21, %v1254_v8  ;;  %v5866_v38 = vld [vmem:[%s6140_s28 + $0x10] sm:$0xff]  ;;  %v5867_v21 = vld [vmem:[%s6140_s28 + $0x18] sm:$0xf]  ;;  %v1379_v57 = vadd.f32 %v10319_v22, %v1323_v27 }
 0x53c   : > { %v8349_v44 = vpop.permute.xlu1 %3627  ;;  %3986 = vrot.lane.b32.xlu2 %v3982_v32, %s6010_s14  ;;  %v1442_v58 = vmul.f32 %v5866_v38, %v1441_v39  ;;  %v10311_v8 = vld [vmem:[#allocation109_spill] sm:$0xff]  ;;  %v1448_v36 = vmul.f32 %v5866_v38, %v1447_v48  ;;  %v1443_v11 = vmul.f32 %v5867_v21, %v1441_v39  ;;  %v1455_v25 = vmul.f32 %v5867_v21, %v1453_v7  ;;  %v10321_v33 = vld [vmem:[#allocation126_spill] sm:$0xff] }
 0x53d   : > { %10301 = vst [vmem:[#allocation12_spill] sm:$0xff] %v8349_v44  ;;  %v8356_v37 = vpop.permute.xlu0 %3625  ;;  %v1351_v12 = vadd.f32 %v10311_v8, %v1295_v31  ;;  %v1366_v30 = vadd.f32 %v10313_v4, %v1310_v61  ;;  %v1352_v31 = vadd.f32 %v10317_v56, %v1296_v34  ;;  %v1380_v8 = vadd.f32 %v10318_v59, %v1324_v28  ;;  %v10320_v61 = vld [vmem:[#allocation125_spill] sm:$0xff]  ;;  %v10327_v22 = vld [vmem:[#allocation118_spill] sm:$0xff] }
 0x53e   : > { %10305 = vst [vmem:[#allocation21_spill] sm:$0xff] %v8356_v37  ;;  %v8362_v32 = vpop.permute.xlu2 %3723  ;;  %v4009_v39 = vstv %s8344_s20  ;;  %v1394_v1 = vadd.f32 %v10321_v33, %v1338_v26  ;;  %v1454_v56 = vmul.f32 %v5866_v38, %v1453_v7  ;;  %v10323_v34 = vld [vmem:[#allocation129_spill] sm:$0xff]  ;;  %v1449_v28 = vmul.f32 %v5867_v21, %v1447_v48  ;;  %s8487_s20 = sld [smem:[#allocation2 + $0x23]]  ;;  %v10433_v37 = vld [vmem:[#allocation222_spill] sm:$0xff] }
 0x53f   : > { %10308 = vst [vmem:[#allocation24_spill] sm:$0xff] %v8362_v32  ;;  %v1365_v32 = vadd.f32 %v10316_v2, %v1309_v5  ;;  %v1407_v4 = vadd.f32 %v10320_v61, %v1351_v12  ;;  %v10322_v5 = vld [vmem:[#allocation128_spill] sm:$0xff]  ;;  %v1461_v27 = vmul.f32 %v5867_v21, %v1459_v43  ;;  %v1444_v59 = vadd.f32 %v1442_v58, %v1393_v54 }
 0x540   : > { %v1422_v15 = vadd.f32 %v10322_v5, %v1366_v30  ;;  %v10325_v12 = vld [vmem:[#allocation132_spill] sm:$0xff]  ;;  %v1408_v61 = vadd.f32 %v10327_v22, %v1352_v31  ;;  %v1460_v26 = vmul.f32 %v5866_v38, %v1459_v43  ;;  %v4011_v30 = vmul.f32 %v8303_v13, %v4009_v39  ;;  %v10330_v43 = vld [vmem:[#allocation131_spill] sm:$0xff] }
 0x541   : > { %v1421_v63 = vadd.f32 %v10323_v34, %v1365_v32  ;;  %v1436_v2 = vadd.f32 %v10325_v12, %v1380_v8  ;;  %v10329_v32 = vld [vmem:[#allocation121_spill] sm:$0xff]  ;;  %v1450_v5 = vadd.f32 %v1448_v36, %v1407_v4  ;;  %v4010_v48 = vmul.f32 %v8314_v0, %v4009_v39  ;;  %v10331_v34 = vld [vmem:[#allocation135_spill] sm:$0xff]  ;;  %v10332_v4 = vld [vmem:[#allocation138_spill] sm:$0xff] }
 0x542   : > { %4000 = vrot.lane.b32.xlu1 %v3996_v42, %s6010_s14  ;;  %v1435_v33 = vadd.f32 %v10329_v32, %v1379_v57  ;;  %v1445_v21 = vadd.f32 %v1443_v11, %v1394_v1  ;;  %v1457_v8 = vadd.f32 %v1455_v25, %v1422_v15  ;;  %v1476_v54 = vadd.f32 %v10330_v43, %v1444_v59  ;;  %v10333_v1 = vld [vmem:[#allocation141_spill] sm:$0xff]  ;;  %v10335_v12 = vld [vmem:[#allocation127_spill] sm:$0xff]  ;;  %v10336_v59 = vld [vmem:[#allocation130_spill] sm:$0xff] }
 0x543   : > { %3988 = vrot.lane.b32.xlu0 %v3983_v16, %s6010_s14  ;;  %v1456_v58 = vadd.f32 %v1454_v56, %v1421_v63  ;;  %v1463_v31 = vadd.f32 %v1461_v27, %v1436_v2  ;;  %v1490_v57 = vadd.f32 %v10331_v34, %v1450_v5  ;;  %v1451_v36 = vadd.f32 %v1449_v28, %v1408_v61  ;;  %v10334_v63 = vld [vmem:[#allocation124_spill] sm:$0xff]  ;;  %v10337_v61 = vld [vmem:[#allocation134_spill] sm:$0xff] }
 0x544   : > { %v8393_v42 = vpop.permute.xlu1 %3653  ;;  %4002 = vrot.lane.b32.xlu2 %v3997_v6, %s6010_s14  ;;  %v4023_v6 = vstv %s8368_s16  ;;  %v1505_v39 = vadd.f32 %v10332_v4, %v1457_v8  ;;  %v1462_v11 = vadd.f32 %v1460_v26, %v1435_v33  ;;  %v1532_v25 = vadd.f32 %v10333_v1, %v1476_v54  ;;  %v10339_v33 = vld [vmem:[#allocation137_spill] sm:$0xff]  ;;  %v5868_v54 = vld [vmem:[%s6140_s28 + $0x19] sm:$0xf]  ;;  %v10345_v1 = vld [vmem:[#allocation144_spill] sm:$0xff]  ;;  %s8491_s16 = sld [smem:[#allocation2 + $0x14f]] }
 0x545   : > { %10324 = vst [vmem:[#allocation27_spill] sm:$0xff] %v8393_v42  ;;  %v8397_v16 = vpop.permute.xlu0 %3641  ;;  %v4024_v38 = vmul.f32 %v8314_v0, %v4023_v6  ;;  %v1691_v15 = vstv %s8380_s17  ;;  %v4037_v56 = vstv %s8388_s19  ;;  %v1477_v27 = vadd.f32 %v10334_v63, %v1445_v21  ;;  %v10341_v21 = vld [vmem:[#allocation136_spill] sm:$0xff]  ;;  %s8496_s17 = sld [smem:[#allocation2 + $0xb2]] }
 0x546   : > { %10326 = vst [vmem:[#allocation13_spill] sm:$0xff] %v8397_v16  ;;  %v8401_v7 = vpop.permute.xlu2 %3749  ;;  %v1504_v2 = vadd.f32 %v10335_v12, %v1456_v58  ;;  %v1519_v22 = vadd.f32 %v10336_v59, %v1463_v31  ;;  %v1491_v26 = vadd.f32 %v10337_v61, %v1451_v36  ;;  %v1518_v5 = vadd.f32 %v10339_v33, %v1462_v11  ;;  %v10342_v58 = vld [vmem:[#allocation140_spill] sm:$0xff]  ;;  %v10344_v36 = vld [vmem:[#allocation139_spill] sm:$0xff]  ;;  %v5869_v59 = vld [vmem:[%s6140_s28 + $0x11] sm:$0xff]  ;;  %s8520_s19 = sld [smem:[#allocation2 + $0x116]] }
 0x547   : > { %10328 = vst [vmem:[#allocation20_spill] sm:$0xff] %v8401_v7  ;;  %v1561_v8 = vadd.f32 %v10341_v21, %v1505_v39  ;;  %v1533_v43 = vadd.f32 %v10342_v58, %v1477_v27  ;;  %v1693_v34 = vmul.f32 %v5868_v54, %v1691_v15  ;;  %v1588_v4 = vadd.f32 %v10344_v36, %v1532_v25  ;;  %v10346_v12 = vld [vmem:[#allocation143_spill] sm:$0xff]  ;;  %v10347_v33 = vld [vmem:[#allocation146_spill] sm:$0xff]  ;;  %v10349_v25 = vld [vmem:[#allocation149_spill] sm:$0xff] }
 0x548   : > { %v1703_v63 = vstv %s8404_s25  ;;  %v4025_v11 = vmul.f32 %v8303_v13, %v4023_v6  ;;  %v1560_v39 = vadd.f32 %v10346_v12, %v1504_v2  ;;  %v1692_v27 = vmul.f32 %v5869_v59, %v1691_v15  ;;  %v10348_v58 = vld [vmem:[#allocation147_spill] sm:$0xff]  ;;  %v10351_v6 = vld [vmem:[#allocation152_spill] sm:$0xff]  ;;  %v10352_v16 = vld [vmem:[#allocation153_spill] sm:$0xff]  ;;  %s8538_s25 = sld [smem:[#allocation2 + $0x17a]] }
 0x549   : > { %v1697_v61 = vstv %s8408_s26  ;;  %v1575_v21 = vadd.f32 %v10347_v33, %v1519_v22  ;;  %v1574_v7 = vadd.f32 %v10348_v58, %v1518_v5  ;;  %v10353_v2 = vld [vmem:[#allocation155_spill] sm:$0xff]  ;;  %v10354_v15 = vld [vmem:[#allocation142_spill] sm:$0xff]  ;;  %v4051_v22 = vstv %s8421_s30  ;;  %s8552_s26 = sld [smem:[#allocation2 + $0x28]] }
 0x54a   : > { %4016 = vrot.lane.b32.xlu1 %v4011_v30, %s6010_s14  ;;  %v10338_v30 = vld [vmem:[#allocation133_spill] sm:$0xff]  ;;  %v1616_v35 = vadd.f32 %v10352_v16, %v1560_v39  ;;  %v1644_v12 = vadd.f32 %v10353_v2, %v1588_v4  ;;  %v1698_v46 = vmul.f32 %v5869_v59, %v1697_v61  ;;  %v10357_v58 = vld [vmem:[#allocation162_spill] sm:$0xff]  ;;  %s8567_s30 = sld [smem:[#allocation2 + $0xf0]] }
 0x54b   : > { %4014 = vrot.lane.b32.xlu0 %v4010_v48, %s6010_s14  ;;  %v1546_v32 = vadd.f32 %v10338_v30, %v1490_v57  ;;  %v1547_v57 = vadd.f32 %v10345_v1, %v1491_v26  ;;  %v4039_v30 = vmul.f32 %v8303_v13, %v4037_v56  ;;  %v1709_v26 = vstv %s8413_s29  ;;  %v10350_v1 = vld [vmem:[#allocation150_spill] sm:$0xff]  ;;  %s8559_s29 = sld [smem:[#allocation2 + $0x8c]] }
 0x54c   : > { %v8425_v28 = vpop.permute.xlu1 %3669  ;;  %4028 = vrot.lane.b32.xlu2 %v4024_v38, %s6011_s24  ;;  %v4038_v38 = vmul.f32 %v8314_v0, %v4037_v56  ;;  %v1704_v56 = vmul.f32 %v5869_v59, %v1703_v63 }
 0x54d   : > { %v8432_v48 = vpop.permute.xlu0 %3667  ;;  %v1602_v36 = vadd.f32 %v10349_v25, %v1546_v32  ;;  %v1603_v42 = vadd.f32 %v10354_v15, %v1547_v57  ;;  %v10355_v32 = vld [vmem:[#allocation156_spill] sm:$0xff]  ;;  %v1711_v57 = vmul.f32 %v5868_v54, %v1709_v26  ;;  %v1699_v25 = vmul.f32 %v5868_v54, %v1697_v61 }
 0x54e   : > { %10340 = vst [vmem:[#allocation16_spill] sm:$0xff] %v8432_v48  ;;  %v8438_v31 = vpop.permute.xlu2 %3765  ;;  %v1617_v48 = vadd.f32 %v10351_v6, %v1561_v8  ;;  %v1631_v5 = vadd.f32 %v10355_v32, %v1575_v21  ;;  %v1705_v8 = vmul.f32 %v5868_v54, %v1703_v63  ;;  %v10360_v6 = vld [vmem:[#allocation148_spill] sm:$0xff]  ;;  %v10361_v21 = vld [vmem:[#allocation151_spill] sm:$0xff]  ;;  %v4052_v54 = vmul.f32 %v8314_v0, %v4051_v22 }
 0x54f   : > { %10343 = vst [vmem:[#allocation19_spill] sm:$0xff] %v8438_v31  ;;  %v1589_v31 = vadd.f32 %v10350_v1, %v1533_v43  ;;  %v10356_v43 = vld [vmem:[#allocation159_spill] sm:$0xff]  ;;  %v1672_v15 = vadd.f32 %v10361_v21, %v1616_v35  ;;  %v10369_v21 = vld [vmem:[#allocation164_spill] sm:$0xff] }
 0x550   : > { %v1658_v33 = vadd.f32 %v10356_v43, %v1602_v36  ;;  %v1673_v16 = vadd.f32 %v10357_v58, %v1617_v48  ;;  %v1694_v36 = vadd.f32 %v1692_v27, %v1644_v12  ;;  %v4053_v48 = vmul.f32 %v8303_v13, %v4051_v22  ;;  %v10364_v43 = vld [vmem:[#allocation161_spill] sm:$0xff] }
 0x551   : > { %v1645_v2 = vadd.f32 %v10360_v6, %v1589_v31  ;;  %v10365_v31 = vld [vmem:[#allocation154_spill] sm:$0xff]  ;;  %v10366_v12 = vld [vmem:[#allocation165_spill] sm:$0xff]  ;;  %v4079_v22 = vstv %s8462_s7  ;;  %s8574_s7 = sld [smem:[#allocation2 + $0x4f]] }
 0x552   : > { %4042 = vrot.lane.b32.xlu1 %v4038_v38, %s6011_s24  ;;  %v10358_v38 = vld [vmem:[#allocation145_spill] sm:$0xff]  ;;  %v1687_v61 = vadd.f32 %v10365_v31, %v1631_v5  ;;  %v1700_v35 = vadd.f32 %v1698_v46, %v1658_v33  ;;  %v1707_v27 = vadd.f32 %v1705_v8, %v1673_v16  ;;  %v1726_v58 = vadd.f32 %v10366_v12, %v1694_v36  ;;  %v10368_v8 = vld [vmem:[#allocation160_spill] sm:$0xff] }
 0x553   : > { %4030 = vrot.lane.b32.xlu0 %v4025_v11, %s6011_s24  ;;  %v1630_v4 = vadd.f32 %v10358_v38, %v1574_v7  ;;  %v1710_v11 = vmul.f32 %v5869_v59, %v1709_v26  ;;  %v4065_v59 = vstv %s8444_s3  ;;  %v1695_v38 = vadd.f32 %v1693_v34, %v1645_v2  ;;  %v10367_v5 = vld [vmem:[#allocation157_spill] sm:$0xff]  ;;  %v10373_v36 = vld [vmem:[#allocation168_spill] sm:$0xff]  ;;  %s8569_s3 = sld [smem:[#allocation2 + $0x154]] }
 0x554   : > { %v8467_v39 = vpop.permute.xlu1 %3721  ;;  %4044 = vrot.lane.b32.xlu2 %v4039_v30, %s6011_s24  ;;  %v10363_v30 = vld [vmem:[#allocation158_spill] sm:$0xff]  ;;  %v4066_v26 = vmul.f32 %v8314_v0, %v4065_v59  ;;  %v1713_v46 = vadd.f32 %v1711_v57, %v1687_v61  ;;  %v1740_v33 = vadd.f32 %v10367_v5, %v1700_v35  ;;  %v1755_v16 = vadd.f32 %v10368_v8, %v1707_v27  ;;  %v10381_v5 = vld [vmem:[#allocation180_spill] sm:$0xff] }
 0x555   : > { %v8471_v1 = vpop.permute.xlu0 %3683  ;;  %v1659_v32 = vadd.f32 %v10363_v30, %v1603_v42  ;;  %v1686_v7 = vadd.f32 %v10364_v43, %v1630_v4  ;;  %v1706_v42 = vadd.f32 %v1704_v56, %v1672_v15  ;;  %v1727_v34 = vadd.f32 %v10369_v21, %v1695_v38  ;;  %v10371_v56 = vld [vmem:[#allocation163_spill] sm:$0xff]  ;;  %v10376_v43 = vld [vmem:[#allocation170_spill] sm:$0xff] }
 0x556   : > { %10359 = vst [vmem:[#allocation23_spill] sm:$0xff] %v8471_v1  ;;  %v8478_v63 = vpop.permute.xlu2 %3791  ;;  %v10374_v30 = vld [vmem:[#allocation171_spill] sm:$0xff]  ;;  %v1947_v61 = vstv %s8475_s23  ;;  %v4080_v35 = vmul.f32 %v8314_v0, %v4079_v22  ;;  %v1941_v21 = vstv %s8487_s20  ;;  %v10393_v1 = vld [vmem:[#allocation185_spill] sm:$0xff]  ;;  %s8594_s23 = sld [smem:[#allocation2 + $0xb3]] }
 0x557   : > { %10362 = vst [vmem:[#allocation30_spill] sm:$0xff] %v8478_v63  ;;  %v1701_v4 = vadd.f32 %v1699_v25, %v1659_v32  ;;  %v1712_v6 = vadd.f32 %v1710_v11, %v1686_v7  ;;  %v1782_v25 = vadd.f32 %v10371_v56, %v1726_v58  ;;  %v10372_v11 = vld [vmem:[#allocation167_spill] sm:$0xff]  ;;  %v1769_v7 = vadd.f32 %v10376_v43, %v1713_v46  ;;  %v10379_v58 = vld [vmem:[#allocation177_spill] sm:$0xff]  ;;  %v10382_v56 = vld [vmem:[#allocation166_spill] sm:$0xff]  ;;  %s8634_s20 = sld [smem:[#allocation2 + $0x2d]] }
 0x558   : > { %v1754_v15 = vadd.f32 %v10372_v11, %v1706_v42  ;;  %v1953_v42 = vstv %s8482_s5  ;;  %v5870_v43 = vld [vmem:[%s6140_s28 + $0x12] sm:$0xff]  ;;  %s8614_s5 = sld [smem:[#allocation2 + $0x117]] }
 0x559   : > { %v1768_v57 = vadd.f32 %v10374_v30, %v1712_v6  ;;  %v10380_v6 = vld [vmem:[#allocation176_spill] sm:$0xff]  ;;  %v1825_v8 = vadd.f32 %v10381_v5, %v1769_v7  ;;  %v10384_v30 = vld [vmem:[#allocation183_spill] sm:$0xff] }
 0x55a   : > { %4058 = vrot.lane.b32.xlu1 %v4053_v48, %s6011_s24  ;;  %v1741_v48 = vadd.f32 %v10373_v36, %v1701_v4  ;;  %v1810_v38 = vadd.f32 %v10379_v58, %v1754_v15  ;;  %v4067_v4 = vmul.f32 %v8303_v13, %v4065_v59  ;;  %v1811_v46 = vadd.f32 %v10380_v6, %v1755_v16  ;;  %v10386_v58 = vld [vmem:[#allocation186_spill] sm:$0xff]  ;;  %v10387_v7 = vld [vmem:[#allocation175_spill] sm:$0xff] }
 0x55b   : > { %4056 = vrot.lane.b32.xlu0 %v4052_v54, %s6011_s24  ;;  %v10377_v54 = vld [vmem:[#allocation174_spill] sm:$0xff]  ;;  %v1959_v6 = vstv %s8491_s16  ;;  %s8639_s16 = sld [smem:[#allocation2 + $0xf5]] }
 0x55c   : > { %v8501_v2 = vpop.permute.xlu1 %3737  ;;  %4070 = vrot.lane.b32.xlu2 %v4066_v26, %s6011_s24  ;;  %v1783_v31 = vadd.f32 %v10377_v54, %v1727_v34  ;;  %v10378_v26 = vld [vmem:[#allocation173_spill] sm:$0xff]  ;;  %v4081_v34 = vmul.f32 %v8303_v13, %v4079_v22  ;;  %v1797_v11 = vadd.f32 %v10382_v56, %v1741_v48  ;;  %v1948_v54 = vmul.f32 %v5870_v43, %v1947_v61  ;;  %v10389_v56 = vld [vmem:[#allocation178_spill] sm:$0xff] }
 0x55d   : > { %10370 = vst [vmem:[#allocation22_spill] sm:$0xff] %v8501_v2  ;;  %v8508_v32 = vpop.permute.xlu0 %3735  ;;  %v1796_v12 = vadd.f32 %v10378_v26, %v1740_v33  ;;  %v10383_v33 = vld [vmem:[#allocation169_spill] sm:$0xff]  ;;  %v10385_v26 = vld [vmem:[#allocation172_spill] sm:$0xff]  ;;  %v1867_v63 = vadd.f32 %v10386_v58, %v1811_v46  ;;  %v1866_v22 = vadd.f32 %v10387_v7, %v1810_v38  ;;  %v1942_v2 = vmul.f32 %v5870_v43, %v1941_v21 }
 0x55e   : > { %10375 = vst [vmem:[#allocation26_spill] sm:$0xff] %v8508_v32  ;;  %v8514_v27 = vpop.permute.xlu2 %3807  ;;  %v1824_v36 = vadd.f32 %v10383_v33, %v1768_v57  ;;  %v1839_v59 = vadd.f32 %v10385_v26, %v1783_v31  ;;  %v5871_v32 = vld [vmem:[%s6140_s28 + $0x1a] sm:$0xf]  ;;  %v4093_v48 = vstv %s8496_s17  ;;  %v10388_v57 = vld [vmem:[#allocation179_spill] sm:$0xff]  ;;  %v1881_v31 = vadd.f32 %v10389_v56, %v1825_v8  ;;  %v10392_v26 = vld [vmem:[#allocation181_spill] sm:$0xff]  ;;  %s8650_s17 = sld [smem:[#allocation2 + $0x17b]] }
 0x55f   : > { %v1852_v15 = vadd.f32 %v10384_v30, %v1796_v12  ;;  %v1955_v16 = vmul.f32 %v5871_v32, %v1953_v42  ;;  %v1943_v5 = vmul.f32 %v5871_v32, %v1941_v21  ;;  %v1838_v12 = vadd.f32 %v10388_v57, %v1782_v25  ;;  %v10394_v25 = vld [vmem:[#allocation184_spill] sm:$0xff]  ;;  %v10397_v56 = vld [vmem:[#allocation189_spill] sm:$0xff] }
 0x560   : > { %v1954_v33 = vmul.f32 %v5870_v43, %v1953_v42  ;;  %v1949_v46 = vmul.f32 %v5871_v32, %v1947_v61  ;;  %v1961_v58 = vmul.f32 %v5871_v32, %v1959_v6  ;;  %v1880_v51 = vadd.f32 %v10393_v1, %v1824_v36  ;;  %v10395_v8 = vld [vmem:[#allocation188_spill] sm:$0xff] }
 0x561   : > { %v1908_v21 = vadd.f32 %v10392_v26, %v1852_v15  ;;  %v1923_v57 = vadd.f32 %v10394_v25, %v1867_v63  ;;  %v1895_v42 = vadd.f32 %v10395_v8, %v1839_v59  ;;  %v4095_v61 = vmul.f32 %v8303_v13, %v4093_v48  ;;  %v10399_v36 = vld [vmem:[#allocation192_spill] sm:$0xff] }
 0x562   : > { %4084 = vrot.lane.b32.xlu1 %v4080_v35, %s6012_s27  ;;  %v10391_v35 = vld [vmem:[#allocation182_spill] sm:$0xff]  ;;  %v4094_v32 = vmul.f32 %v8314_v0, %v4093_v48  ;;  %v4107_v1 = vstv %s8520_s19  ;;  %s8652_s19 = sld [smem:[#allocation2 + $0x159]] }
 0x563   : > { %4072 = vrot.lane.b32.xlu0 %v4067_v4, %s6011_s24  ;;  %v1853_v38 = vadd.f32 %v10391_v35, %v1797_v11  ;;  %v1960_v4 = vmul.f32 %v5870_v43, %v1959_v6  ;;  %v1894_v11 = vadd.f32 %v10397_v56, %v1838_v12  ;;  %v10398_v35 = vld [vmem:[#allocation191_spill] sm:$0xff]  ;;  %v10400_v43 = vld [vmem:[#allocation194_spill] sm:$0xff]  ;;  %v4108_v25 = vmul.f32 %v8314_v0, %v4107_v1 }
 0x564   : > { %v8542_v30 = vpop.permute.xlu1 %3763  ;;  %4086 = vrot.lane.b32.xlu2 %v4081_v34, %s6012_s27  ;;  %v1922_v15 = vadd.f32 %v10398_v35, %v1866_v22  ;;  %v1937_v59 = vadd.f32 %v10400_v43, %v1881_v31  ;;  %v10401_v6 = vld [vmem:[#allocation195_spill] sm:$0xff]  ;;  %v1950_v8 = vadd.f32 %v1948_v54, %v1908_v21  ;;  %v1957_v12 = vadd.f32 %v1955_v16, %v1923_v57  ;;  %v10404_v21 = vld [vmem:[#allocation197_spill] sm:$0xff] }
 0x565   : > { %10390 = vst [vmem:[#allocation25_spill] sm:$0xff] %v8542_v30  ;;  %v8547_v7 = vpop.permute.xlu0 %3751  ;;  %v1909_v63 = vadd.f32 %v10399_v36, %v1853_v38  ;;  %v1936_v26 = vadd.f32 %v10401_v6, %v1880_v51  ;;  %v1945_v22 = vadd.f32 %v1943_v5, %v1895_v42  ;;  %v1944_v56 = vadd.f32 %v1942_v2, %v1894_v11  ;;  %v10402_v36 = vld [vmem:[#allocation200_spill] sm:$0xff]  ;;  %v10405_v2 = vld [vmem:[#allocation198_spill] sm:$0xff]  ;;  %v10406_v57 = vld [vmem:[#allocation201_spill] sm:$0xff] }
 0x566   : > { %v8555_v34 = vpop.permute.xlu2 %3833  ;;  %v1956_v48 = vadd.f32 %v1954_v33, %v1922_v15  ;;  %v4121_v38 = vstv %s8538_s25  ;;  %v1963_v31 = vadd.f32 %v1961_v58, %v1937_v59  ;;  %v2005_v54 = vadd.f32 %v10402_v36, %v1957_v12  ;;  %v10407_v11 = vld [vmem:[#allocation204_spill] sm:$0xff]  ;;  %v10408_v15 = vld [vmem:[#allocation210_spill] sm:$0xff]  ;;  %v10410_v43 = vld [vmem:[#allocation207_spill] sm:$0xff]  ;;  %s8658_s25 = sld [smem:[#allocation2 + $0x91]] }
 0x567   : > { %10396 = vst [vmem:[#allocation29_spill] sm:$0xff] %v8555_v34  ;;  %v1951_v51 = vadd.f32 %v1949_v46, %v1909_v63  ;;  %v1962_v35 = vadd.f32 %v1960_v4, %v1936_v26  ;;  %v1990_v5 = vadd.f32 %v10404_v21, %v1950_v8  ;;  %v1977_v33 = vadd.f32 %v10405_v2, %v1945_v22  ;;  %v10412_v12 = vld [vmem:[#allocation190_spill] sm:$0xff]  ;;  %v10415_v2 = vld [vmem:[#allocation199_spill] sm:$0xff] }
 0x568   : > { %v2004_v42 = vadd.f32 %v10406_v57, %v1956_v48  ;;  %v2019_v46 = vadd.f32 %v10407_v11, %v1963_v31  ;;  %v2061_v58 = vadd.f32 %v10408_v15, %v2005_v54  ;;  %v2191_v4 = vstv %s8552_s26  ;;  %v10413_v48 = vld [vmem:[#allocation193_spill] sm:$0xff]  ;;  %v10414_v54 = vld [vmem:[#allocation196_spill] sm:$0xff]  ;;  %s8671_s26 = sld [smem:[#allocation2 + $0x51]] }
 0x569   : > { %v2046_v59 = vadd.f32 %v10410_v43, %v1990_v5  ;;  %v2197_v6 = vstv %s8559_s29  ;;  %v4109_v26 = vmul.f32 %v8303_v13, %v4107_v1  ;;  %v1991_v22 = vadd.f32 %v10412_v12, %v1951_v51  ;;  %v5872_v57 = vld [vmem:[%s6140_s28 + $0x13] sm:$0xff]  ;;  %v10416_v1 = vld [vmem:[#allocation203_spill] sm:$0xff]  ;;  %v5873_v51 = vld [vmem:[%s6140_s28 + $0x1b] sm:$0xf]  ;;  %s8690_s29 = sld [smem:[#allocation2 + $0xb5]] }
 0x56a   : > { %4100 = vrot.lane.b32.xlu1 %v4095_v61, %s6012_s27  ;;  %v2018_v31 = vadd.f32 %v10413_v48, %v1962_v35  ;;  %v4123_v36 = vmul.f32 %v8303_v13, %v4121_v38  ;;  %v2033_v21 = vadd.f32 %v10414_v54, %v1977_v33  ;;  %v2060_v5 = vadd.f32 %v10415_v2, %v2004_v42  ;;  %v10419_v35 = vld [vmem:[#allocation206_spill] sm:$0xff]  ;;  %v10420_v48 = vld [vmem:[#allocation205_spill] sm:$0xff] }
 0x56b   : > { %4098 = vrot.lane.b32.xlu0 %v4094_v32, %s6012_s27  ;;  %v4122_v32 = vmul.f32 %v8314_v0, %v4121_v38  ;;  %v2192_v11 = vmul.f32 %v5872_v57, %v2191_v4  ;;  %v2203_v15 = vstv %s8567_s30  ;;  %v2199_v12 = vmul.f32 %v5873_v51, %v2197_v6  ;;  %v10421_v54 = vld [vmem:[#allocation209_spill] sm:$0xff]  ;;  %s8711_s30 = sld [smem:[#allocation2 + $0xfa]] }
 0x56c   : > { %v8577_v16 = vpop.permute.xlu1 %3779  ;;  %4112 = vrot.lane.b32.xlu2 %v4108_v25, %s6012_s27  ;;  %v10411_v25 = vld [vmem:[#allocation187_spill] sm:$0xff]  ;;  %v2047_v38 = vadd.f32 %v10419_v35, %v1991_v22  ;;  %v2209_v33 = vstv %s8569_s3  ;;  %v4135_v42 = vstv %s8574_s7  ;;  %v10422_v2 = vld [vmem:[#allocation213_spill] sm:$0xff]  ;;  %v10426_v22 = vld [vmem:[#allocation216_spill] sm:$0xff]  ;;  %s8724_s3 = sld [smem:[#allocation2 + $0x96]] }
 0x56d   : > { %10403 = vst [vmem:[#allocation32_spill] sm:$0xff] %v8577_v16  ;;  %v8583_v61 = vpop.permute.xlu0 %3777  ;;  %v1976_v8 = vadd.f32 %v10411_v25, %v1944_v56  ;;  %v10417_v16 = vld [vmem:[#allocation202_spill] sm:$0xff]  ;;  %v10418_v56 = vld [vmem:[#allocation208_spill] sm:$0xff]  ;;  %s8728_s7 = sld [smem:[#allocation2 + $0x32]] }
 0x56e   : > { %v8589_v63 = vpop.permute.xlu2 %3849  ;;  %v2075_v30 = vadd.f32 %v10417_v16, %v2019_v46  ;;  %v2117_v25 = vadd.f32 %v10418_v56, %v2061_v58  ;;  %v2205_v46 = vmul.f32 %v5873_v51, %v2203_v15  ;;  %v10423_v58 = vld [vmem:[#allocation224_spill] sm:$0xff]  ;;  %v2103_v35 = vadd.f32 %v10426_v22, %v2047_v38  ;;  %v10434_v38 = vld [vmem:[#allocation211_spill] sm:$0xff] }
 0x56f   : > { %10409 = vst [vmem:[#allocation33_spill] sm:$0xff] %v8589_v63  ;;  %v2032_v43 = vadd.f32 %v10416_v1, %v1976_v8  ;;  %v2102_v63 = vadd.f32 %v10420_v48, %v2046_v59  ;;  %v2074_v8 = vadd.f32 %v10421_v54, %v2018_v31  ;;  %v2193_v48 = vmul.f32 %v5873_v51, %v2191_v4  ;;  %v10429_v54 = vld [vmem:[#allocation218_spill] sm:$0xff] }
 0x570   : > { %v2173_v1 = vadd.f32 %v10423_v58, %v2117_v25  ;;  %v2116_v31 = vadd.f32 %v10428_v52, %v2060_v5  ;;  %v4137_v25 = vmul.f32 %v8303_v13, %v4135_v42  ;;  %v4136_v4 = vmul.f32 %v8314_v0, %v4135_v42 }
 0x571   : > { %v2088_v16 = vadd.f32 %v10422_v2, %v2032_v43  ;;  %v2131_v43 = vadd.f32 %v10429_v54, %v2075_v30  ;;  %v10430_v2 = vld [vmem:[#allocation219_spill] sm:$0xff]  ;;  %v2204_v30 = vmul.f32 %v5872_v57, %v2203_v15  ;;  %v10436_v54 = vld [vmem:[#allocation225_spill] sm:$0xff] }
 0x572   : > { %4126 = vrot.lane.b32.xlu1 %v4122_v32, %s6012_s27  ;;  %v10425_v32 = vld [vmem:[#allocation212_spill] sm:$0xff]  ;;  %v2130_v19 = vadd.f32 %v10430_v2, %v2074_v8  ;;  %v2207_v52 = vadd.f32 %v2205_v46, %v2173_v1  ;;  %v10435_v8 = vld [vmem:[#allocation214_spill] sm:$0xff]  ;;  %v2210_v2 = vmul.f32 %v5872_v57, %v2209_v33  ;;  %v4163_v46 = vstv %s8614_s5  ;;  %s8748_s5 = sld [smem:[#allocation2 + $0x15e]] }
 0x573   : > { %4114 = vrot.lane.b32.xlu0 %v4109_v26, %s6012_s27  ;;  %v2089_v59 = vadd.f32 %v10425_v32, %v2033_v21  ;;  %v2198_v26 = vmul.f32 %v5872_v57, %v2197_v6  ;;  %v4149_v6 = vstv %s8594_s23  ;;  %v2144_v32 = vadd.f32 %v10434_v38, %v2088_v16  ;;  %s8734_s23 = sld [smem:[#allocation2 + $0x119]] }
 0x574   : > { %v8619_v56 = vpop.permute.xlu1 %3805  ;;  %4128 = vrot.lane.b32.xlu2 %v4123_v36, %s6012_s27  ;;  %v4150_v5 = vmul.f32 %v8314_v0, %v4149_v6  ;;  %v2159_v22 = vadd.f32 %v10435_v8, %v2103_v35  ;;  %v10449_v8 = vld [vmem:[#allocation248_spill] sm:$0xff] }
 0x575   : > { %10424 = vst [vmem:[#allocation36_spill] sm:$0xff] %v8619_v56  ;;  %v8624_v34 = vpop.permute.xlu0 %3793  ;;  %v10432_v56 = vld [vmem:[#allocation221_spill] sm:$0xff]  ;;  %v2145_v21 = vadd.f32 %v10433_v37, %v2089_v59  ;;  %v10437_v37 = vld [vmem:[#allocation228_spill] sm:$0xff]  ;;  %v2194_v1 = vadd.f32 %v2192_v11, %v2144_v32  ;;  %v2441_v32 = vstv %s8634_s20  ;;  %s8756_s20 = sld [smem:[#allocation2 + $0x17d]] }
 0x576   : > { %10427 = vst [vmem:[#allocation35_spill] sm:$0xff] %v8624_v34  ;;  %v8630_v58 = vpop.permute.xlu2 %3875  ;;  %v2158_v36 = vadd.f32 %v10432_v56, %v2102_v63  ;;  %v2172_v63 = vadd.f32 %v10436_v54, %v2116_v31  ;;  %v2211_v56 = vmul.f32 %v5873_v51, %v2209_v33  ;;  %v2187_v59 = vadd.f32 %v10437_v37, %v2131_v43  ;;  %v10439_v34 = vld [vmem:[#allocation234_spill] sm:$0xff]  ;;  %v10441_v33 = vld [vmem:[#allocation231_spill] sm:$0xff]  ;;  %v10444_v43 = vld [vmem:[#allocation232_spill] sm:$0xff] }
 0x577   : > { %10431 = vst [vmem:[#allocation39_spill] sm:$0xff] %v8630_v58  ;;  %v10438_v58 = vld [vmem:[#allocation217_spill] sm:$0xff]  ;;  %v2255_v44 = vadd.f32 %v10439_v34, %v2207_v52  ;;  %v2195_v15 = vadd.f32 %v2193_v48, %v2145_v21  ;;  %v10443_v31 = vld [vmem:[#allocation227_spill] sm:$0xff]  ;;  %v10446_v21 = vld [vmem:[#allocation220_spill] sm:$0xff]  ;;  %v4151_v52 = vmul.f32 %v8303_v13, %v4149_v6  ;;  %v4165_v54 = vmul.f32 %v8303_v13, %v4163_v46 }
 0x578   : > { %v2186_v42 = vadd.f32 %v10438_v58, %v2130_v19  ;;  %v2200_v16 = vadd.f32 %v2198_v26, %v2158_v36  ;;  %v2201_v19 = vadd.f32 %v2199_v12, %v2159_v22  ;;  %v2206_v57 = vadd.f32 %v2204_v30, %v2172_v63  ;;  %v10448_v30 = vld [vmem:[#allocation237_spill] sm:$0xff]  ;;  %v10450_v63 = vld [vmem:[#allocation223_spill] sm:$0xff]  ;;  %v10451_v37 = vld [vmem:[#allocation226_spill] sm:$0xff] }
 0x579   : > { %v2213_v34 = vadd.f32 %v2211_v56, %v2187_v59  ;;  %v2226_v11 = vadd.f32 %v10443_v31, %v2194_v1  ;;  %v4164_v58 = vmul.f32 %v8314_v0, %v4163_v46  ;;  %v2227_v12 = vadd.f32 %v10446_v21, %v2195_v15  ;;  %v10454_v6 = vld [vmem:[#allocation236_spill] sm:$0xff]  ;;  %v5874_v31 = vld [vmem:[%s6140_s28 + $0x1c] sm:$0xf]  ;;  %v10457_v46 = vld [vmem:[#allocation239_spill] sm:$0xff] }
 0x57a   : > { %4142 = vrot.lane.b32.xlu1 %v4137_v25, %s6013_s8  ;;  %v2240_v35 = vadd.f32 %v10441_v33, %v2200_v16  ;;  %v2212_v48 = vadd.f32 %v2210_v2, %v2186_v42  ;;  %v2311_v25 = vadd.f32 %v10444_v43, %v2255_v44  ;;  %v2453_v44 = vstv %s8639_s16  ;;  %v10452_v2 = vld [vmem:[#allocation229_spill] sm:$0xff]  ;;  %v10456_v43 = vld [vmem:[#allocation258_spill] sm:$0xff]  ;;  %s8776_s16 = sld [smem:[#allocation2 + $0x52]] }
 0x57b   : > { %4140 = vrot.lane.b32.xlu0 %v4136_v4, %s6013_s8  ;;  %v10447_v4 = vld [vmem:[#allocation230_spill] sm:$0xff]  ;;  %v2254_v56 = vadd.f32 %v10450_v63, %v2206_v57  ;;  %v2269_v59 = vadd.f32 %v10451_v37, %v2213_v34  ;;  %v10453_v16 = vld [vmem:[#allocation233_spill] sm:$0xff]  ;;  %v2283_v1 = vadd.f32 %v10454_v6, %v2227_v12  ;;  %v2443_v57 = vmul.f32 %v5874_v31, %v2441_v32 }
 0x57c   : > { %v8654_v51 = vpop.permute.xlu1 %3821  ;;  %4154 = vrot.lane.b32.xlu2 %v4150_v5, %s6013_s8  ;;  %v2241_v38 = vadd.f32 %v10447_v4, %v2201_v19  ;;  %v2282_v5 = vadd.f32 %v10448_v30, %v2226_v11  ;;  %v2367_v22 = vadd.f32 %v10449_v8, %v2311_v25  ;;  %v2296_v42 = vadd.f32 %v10452_v2, %v2240_v35  ;;  %v10455_v19 = vld [vmem:[#allocation240_spill] sm:$0xff]  ;;  %v5875_v34 = vld [vmem:[%s6140_s28 + $0x14] sm:$0xff] }
 0x57d   : > { %10440 = vst [vmem:[#allocation28_spill] sm:$0xff] %v8654_v51  ;;  %v8660_v26 = vpop.permute.xlu0 %3819  ;;  %v2268_v15 = vadd.f32 %v10453_v16, %v2212_v48  ;;  %v2455_v11 = vmul.f32 %v5874_v31, %v2453_v44  ;;  %v2310_v21 = vadd.f32 %v10457_v46, %v2254_v56  ;;  %v2454_v4 = vmul.f32 %v5875_v34, %v2453_v44  ;;  %v10458_v48 = vld [vmem:[#allocation235_spill] sm:$0xff]  ;;  %v10460_v8 = vld [vmem:[#allocation246_spill] sm:$0xff]  ;;  %v10463_v37 = vld [vmem:[#allocation249_spill] sm:$0xff] }
 0x57e   : > { %10442 = vst [vmem:[#allocation38_spill] sm:$0xff] %v8660_v26  ;;  %v8665_v36 = vpop.permute.xlu2 %3891  ;;  %v2297_v33 = vadd.f32 %v10455_v19, %v2241_v38  ;;  %v2423_v25 = vadd.f32 %v10456_v43, %v2367_v22  ;;  %v4177_v35 = vstv %s8650_s17  ;;  %v2338_v12 = vadd.f32 %v10458_v48, %v2282_v5  ;;  %v10459_v38 = vld [vmem:[#allocation243_spill] sm:$0xff]  ;;  %v10462_v56 = vld [vmem:[#allocation242_spill] sm:$0xff]  ;;  %s8787_s17 = sld [smem:[#allocation2 + $0xff]] }
 0x57f   : > { %10445 = vst [vmem:[#allocation42_spill] sm:$0xff] %v8665_v36  ;;  %v2324_v30 = vadd.f32 %v10459_v38, %v2268_v15  ;;  %v2339_v22 = vadd.f32 %v10460_v8, %v2283_v1  ;;  %v2442_v63 = vmul.f32 %v5875_v34, %v2441_v32  ;;  %v2325_v44 = vadd.f32 %v10462_v56, %v2269_v59  ;;  %v10465_v5 = vld [vmem:[#allocation238_spill] sm:$0xff]  ;;  %v10466_v15 = vld [vmem:[#allocation245_spill] sm:$0xff]  ;;  %v10468_v48 = vld [vmem:[#allocation251_spill] sm:$0xff] }
 0x580   : > { %v2459_v2 = vstv %s8652_s19  ;;  %v2447_v16 = vstv %s8658_s25  ;;  %v2353_v19 = vadd.f32 %v10465_v5, %v2297_v33  ;;  %v2352_v43 = vadd.f32 %v10466_v15, %v2296_v42  ;;  %v10469_v38 = vld [vmem:[#allocation252_spill] sm:$0xff]  ;;  %s8805_s19 = sld [smem:[#allocation2 + $0x37]] }
 0x581   : > { %v2457_v1 = vadd.f32 %v2455_v11, %v2423_v25  ;;  %v4179_v32 = vmul.f32 %v8303_v13, %v4177_v35  ;;  %v2381_v8 = vadd.f32 %v10469_v38, %v2325_v44  ;;  %v4178_v59 = vmul.f32 %v8314_v0, %v4177_v35  ;;  %v10471_v5 = vld [vmem:[#allocation244_spill] sm:$0xff]  ;;  %v10472_v25 = vld [vmem:[#allocation247_spill] sm:$0xff]  ;;  %v10475_v35 = vld [vmem:[#allocation257_spill] sm:$0xff]  ;;  %s8810_s25 = sld [smem:[#allocation2 + $0x9b]] }
 0x582   : > { %4168 = vrot.lane.b32.xlu1 %v4164_v58, %s6013_s8  ;;  %v4217_v56 = vstv %s8671_s26  ;;  %v2395_v42 = vadd.f32 %v10471_v5, %v2339_v22  ;;  %v2449_v11 = vmul.f32 %v5874_v31, %v2447_v16  ;;  %v2448_v44 = vmul.f32 %v5875_v34, %v2447_v16  ;;  %v10474_v38 = vld [vmem:[#allocation255_spill] sm:$0xff]  ;;  %s8817_s26 = sld [smem:[#allocation2 + $0xb6]] }
 0x583   : > { %4156 = vrot.lane.b32.xlu0 %v4151_v52, %s6013_s8  ;;  %v2366_v52 = vadd.f32 %v10463_v37, %v2310_v21  ;;  %v8715_v21 = vld [vmem:[%s6140_s28 + $0x31] sm:$0xff]  ;;  %v2460_v0 = vmul.f32 %v5875_v34, %v2459_v2  ;;  %v2461_v5 = vmul.f32 %v5874_v31, %v2459_v2  ;;  %v4231_v16 = vstv %s8690_s29  ;;  %s8823_s29 = sld [smem:[#allocation2 + $0x163]] }
 0x584   : > { %v8695_v58 = vpop.permute.xlu1 %3847  ;;  %4170 = vrot.lane.b32.xlu2 %v4165_v54, %s6013_s8  ;;  %v2394_v54 = vadd.f32 %v10468_v48, %v2338_v12  ;;  %v10470_v37 = vld [vmem:[#allocation241_spill] sm:$0xff]  ;;  %v4218_v13 = vmul.f32 %v8715_v21, %v4217_v56  ;;  %v10473_v12 = vld [vmem:[#allocation254_spill] sm:$0xff] }
 0x585   : > { %10461 = vst [vmem:[#allocation45_spill] sm:$0xff] %v8695_v58  ;;  %v8702_v6 = vpop.permute.xlu0 %3835  ;;  %v2380_v33 = vadd.f32 %v10470_v37, %v2324_v30  ;;  %v2422_v15 = vadd.f32 %v10472_v25, %v2366_v52  ;;  %v2409_v48 = vadd.f32 %v10473_v12, %v2353_v19  ;;  %v10476_v30 = vld [vmem:[#allocation256_spill] sm:$0xff]  ;;  %v10477_v52 = vld [vmem:[#allocation250_spill] sm:$0xff]  ;;  %v2445_v19 = vadd.f32 %v2443_v57, %v2395_v42  ;;  %v10479_v2 = vld [vmem:[#allocation261_spill] sm:$0xff] }
 0x586   : > { %10464 = vst [vmem:[#allocation41_spill] sm:$0xff] %v8702_v6  ;;  %v8707_v46 = vpop.permute.xlu2 %3917  ;;  %v2505_v37 = vadd.f32 %v10476_v30, %v2457_v1  ;;  %v2444_v22 = vadd.f32 %v2442_v63, %v2394_v54  ;;  %v2437_v25 = vadd.f32 %v10477_v52, %v2381_v8  ;;  %v8740_v1 = vld [vmem:[%s6140_s28 + $0x39] sm:$0xf]  ;;  %v10507_v58 = vld [vmem:[#allocation296_spill] sm:$0xff] }
 0x587   : > { %10467 = vst [vmem:[#allocation44_spill] sm:$0xff] %v8707_v46  ;;  %v2408_v46 = vadd.f32 %v10474_v38, %v2352_v43  ;;  %v2436_v36 = vadd.f32 %v10475_v35, %v2380_v33  ;;  %v10478_v43 = vld [vmem:[#allocation272_spill] sm:$0xff]  ;;  %v2451_v63 = vadd.f32 %v2449_v11, %v2409_v48  ;;  %v10482_v57 = vld [vmem:[#allocation282_spill] sm:$0xff]  ;;  %v4232_v35 = vmul.f32 %v8715_v21, %v4231_v16 }
 0x588   : > { %v2561_v34 = vadd.f32 %v10478_v43, %v2505_v37  ;;  %v2476_v54 = vadd.f32 %v10479_v2, %v2444_v22  ;;  %v10481_v33 = vld [vmem:[#allocation260_spill] sm:$0xff]  ;;  %v10487_v37 = vld [vmem:[#allocation270_spill] sm:$0xff]  ;;  %v4233_v52 = vmul.f32 %v8740_v1, %v4231_v16  ;;  %v2698_v2 = vstv %s8724_s3  ;;  %v10494_v16 = vld [vmem:[#allocation269_spill] sm:$0xff]  ;;  %s8850_s3 = sld [smem:[#allocation2 + $0x17e]] }
 0x589   : > { %v2450_v31 = vadd.f32 %v2448_v44, %v2408_v46  ;;  %v2477_v38 = vadd.f32 %v10481_v33, %v2445_v19  ;;  %v10484_v11 = vld [vmem:[#allocation264_spill] sm:$0xff]  ;;  %v10486_v44 = vld [vmem:[#allocation267_spill] sm:$0xff]  ;;  %v10488_v19 = vld [vmem:[#allocation253_spill] sm:$0xff] }
 0x58a   : > { %4184 = vrot.lane.b32.xlu1 %v4179_v32, %s6013_s8  ;;  %v2456_v32 = vadd.f32 %v2454_v4, %v2422_v15  ;;  %v2617_v42 = vadd.f32 %v10482_v57, %v2561_v34  ;;  %v2463_v4 = vadd.f32 %v2461_v5, %v2437_v25  ;;  %v2491_v46 = vadd.f32 %v10484_v11, %v2451_v63  ;;  %v10489_v5 = vld [vmem:[#allocation259_spill] sm:$0xff]  ;;  %v10490_v34 = vld [vmem:[#allocation266_spill] sm:$0xff]  ;;  %v10491_v33 = vld [vmem:[#allocation273_spill] sm:$0xff] }
 0x58b   : > { %4182 = vrot.lane.b32.xlu0 %v4178_v59, %s6013_s8  ;;  %v2462_v59 = vadd.f32 %v2460_v0, %v2436_v36  ;;  %v4219_v15 = vmul.f32 %v8740_v1, %v4217_v56  ;;  %v10485_v36 = vld [vmem:[#allocation263_spill] sm:$0xff]  ;;  %v2533_v22 = vadd.f32 %v10487_v37, %v2477_v38  ;;  %v2490_v43 = vadd.f32 %v10488_v19, %v2450_v31  ;;  %v5876_v57 = vld [vmem:[%s6140_s28 + $0x28] sm:$0xf]  ;;  %v10493_v38 = vld [vmem:[#allocation262_spill] sm:$0xff] }
 0x58c   : > { %v8737_v12 = vpop.permute.xlu1 %3863  ;;  %4222 = vrot.lane.b32.xlu2 %v4218_v13, %s6010_s14  ;;  %v2704_v13 = vstv %s8711_s30  ;;  %v2504_v48 = vadd.f32 %v10485_v36, %v2456_v32  ;;  %v2532_v25 = vadd.f32 %v10489_v5, %v2476_v54  ;;  %v2519_v63 = vadd.f32 %v10490_v34, %v2463_v4  ;;  %v10492_v32 = vld [vmem:[#allocation280_spill] sm:$0xff]  ;;  %v10495_v31 = vld [vmem:[#allocation275_spill] sm:$0xff]  ;;  %v10496_v4 = vld [vmem:[#allocation265_spill] sm:$0xff]  ;;  %s8834_s30 = sld [smem:[#allocation2 + $0x11a]] }
 0x58d   : > { %v8744_v8 = vpop.permute.xlu0 %3861  ;;  %v2518_v0 = vadd.f32 %v10486_v44, %v2462_v59  ;;  %v2706_v11 = vmul.f32 %v5876_v57, %v2704_v13  ;;  %v2673_v36 = vadd.f32 %v10492_v32, %v2617_v42  ;;  %v2692_v59 = vstv %s8728_s7  ;;  %v10497_v5 = vld [vmem:[#allocation268_spill] sm:$0xff]  ;;  %v5877_v32 = vld [vmem:[%s6140_s28 + $0x20] sm:$0xff]  ;;  %s8861_s7 = sld [smem:[#allocation2 + $0x104]] }
 0x58e   : > { %10480 = vst [vmem:[#allocation48_spill] sm:$0xff] %v8744_v8  ;;  %v8751_v30 = vpop.permute.xlu2 %3933  ;;  %v2560_v56 = vadd.f32 %v10491_v33, %v2504_v48  ;;  %v2547_v44 = vadd.f32 %v10493_v38, %v2491_v46  ;;  %v2546_v37 = vadd.f32 %v10494_v16, %v2490_v43  ;;  %v2588_v19 = vadd.f32 %v10495_v31, %v2532_v25  ;;  %v10498_v33 = vld [vmem:[#allocation276_spill] sm:$0xff]  ;;  %v10500_v46 = vld [vmem:[#allocation279_spill] sm:$0xff]  ;;  %v10501_v38 = vld [vmem:[#allocation285_spill] sm:$0xff] }
 0x58f   : > { %10483 = vst [vmem:[#allocation31_spill] sm:$0xff] %v8751_v30  ;;  %v4245_v54 = vstv %s8734_s23  ;;  %v2574_v48 = vadd.f32 %v10496_v4, %v2518_v0  ;;  %v2589_v34 = vadd.f32 %v10497_v5, %v2533_v22  ;;  %v2575_v42 = vadd.f32 %v10498_v33, %v2519_v63  ;;  %v10503_v22 = vld [vmem:[#allocation271_spill] sm:$0xff]  ;;  %s8882_s23 = sld [smem:[#allocation2 + $0x3c]] }
 0x590   : > { %v2602_v43 = vadd.f32 %v10500_v46, %v2546_v37  ;;  %v2693_v25 = vmul.f32 %v5877_v32, %v2692_v59  ;;  %v2644_v16 = vadd.f32 %v10501_v38, %v2588_v19  ;;  %v2616_v63 = vadd.f32 %v10503_v22, %v2560_v56  ;;  %v10506_v19 = vld [vmem:[#allocation278_spill] sm:$0xff]  ;;  %v10508_v56 = vld [vmem:[#allocation277_spill] sm:$0xff]  ;;  %v10510_v22 = vld [vmem:[#allocation284_spill] sm:$0xff] }
 0x591   : > { %v2708_v31 = vadd.f32 %v2706_v11, %v2673_v36  ;;  %v2705_v4 = vmul.f32 %v5877_v32, %v2704_v13  ;;  %v4247_v5 = vmul.f32 %v8740_v1, %v4245_v54  ;;  %v2700_v30 = vmul.f32 %v5876_v57, %v2698_v2  ;;  %v10509_v11 = vld [vmem:[#allocation281_spill] sm:$0xff] }
 0x592   : > { %4236 = vrot.lane.b32.xlu1 %v4232_v35, %s6010_s14  ;;  %v2699_v35 = vmul.f32 %v5877_v32, %v2698_v2  ;;  %v4246_v37 = vmul.f32 %v8715_v21, %v4245_v54  ;;  %v4259_v46 = vstv %s8756_s20  ;;  %v2603_v38 = vadd.f32 %v10506_v19, %v2547_v44  ;;  %v10511_v54 = vld [vmem:[#allocation287_spill] sm:$0xff]  ;;  %v10513_v44 = vld [vmem:[#allocation306_spill] sm:$0xff]  ;;  %s8914_s20 = sld [smem:[#allocation2 + $0xb7]] }
 0x593   : > { %4224 = vrot.lane.b32.xlu0 %v4219_v15, %s6010_s14  ;;  %v2694_v15 = vmul.f32 %v5876_v57, %v2692_v59  ;;  %v10505_v59 = vld [vmem:[#allocation274_spill] sm:$0xff]  ;;  %v2756_v26 = vadd.f32 %v10507_v58, %v2708_v31  ;;  %v2658_v13 = vadd.f32 %v10508_v56, %v2602_v43  ;;  %v2630_v36 = vadd.f32 %v10509_v11, %v2574_v48  ;;  %v10515_v19 = vld [vmem:[#allocation291_spill] sm:$0xff] }
 0x594   : > { %v8782_v8 = vpop.permute.xlu1 %3889  ;;  %4238 = vrot.lane.b32.xlu2 %v4233_v52, %s6010_s14  ;;  %v2710_v52 = vstv %s8748_s5  ;;  %v2631_v6 = vadd.f32 %v10505_v59, %v2575_v42  ;;  %v2695_v2 = vadd.f32 %v2693_v25, %v2644_v16  ;;  %v2672_v51 = vadd.f32 %v10511_v54, %v2616_v63  ;;  %v10514_v43 = vld [vmem:[#allocation290_spill] sm:$0xff]  ;;  %s8890_s5 = sld [smem:[#allocation2 + $0x53]] }
 0x595   : > { %10499 = vst [vmem:[#allocation34_spill] sm:$0xff] %v8782_v8  ;;  %v8789_v0 = vpop.permute.xlu0 %3877  ;;  %v10512_v8 = vld [vmem:[#allocation288_spill] sm:$0xff]  ;;  %v2712_v59 = vmul.f32 %v5876_v57, %v2710_v52  ;;  %v2812_v58 = vadd.f32 %v10513_v44, %v2756_v26  ;;  %v2711_v48 = vmul.f32 %v5877_v32, %v2710_v52  ;;  %v4273_v25 = vstv %s8776_s16  ;;  %v10517_v57 = vld [vmem:[#allocation283_spill] sm:$0xff]  ;;  %s8916_s16 = sld [smem:[#allocation2 + $0x168]] }
 0x596   : > { %10502 = vst [vmem:[#allocation37_spill] sm:$0xff] %v8789_v0  ;;  %v8793_v33 = vpop.permute.xlu2 %3986  ;;  %v4260_v0 = vmul.f32 %v8715_v21, %v4259_v46  ;;  %v2659_v42 = vadd.f32 %v10512_v8, %v2603_v38  ;;  %v2687_v31 = vadd.f32 %v10514_v43, %v2631_v6  ;;  %v2701_v8 = vadd.f32 %v2699_v35, %v2658_v13  ;;  %v10526_v43 = vld [vmem:[#allocation300_spill] sm:$0xff] }
 0x597   : > { %10504 = vst [vmem:[#allocation40_spill] sm:$0xff] %v8793_v33  ;;  %v2645_v33 = vadd.f32 %v10510_v22, %v2589_v34  ;;  %v2686_v34 = vadd.f32 %v10515_v19, %v2630_v36  ;;  %v2727_v63 = vadd.f32 %v10517_v57, %v2695_v2  ;;  %v2954_v6 = vstv %s8787_s17  ;;  %v10522_v36 = vld [vmem:[#allocation299_spill] sm:$0xff]  ;;  %v10523_v22 = vld [vmem:[#allocation320_spill] sm:$0xff]  ;;  %s8920_s17 = sld [smem:[#allocation2 + $0xa0]] }
 0x598   : > { %v2702_v52 = vadd.f32 %v2700_v30, %v2659_v42  ;;  %v4274_v56 = vmul.f32 %v8715_v21, %v4273_v25  ;;  %v2714_v35 = vadd.f32 %v2712_v59, %v2687_v31  ;;  %v4261_v13 = vmul.f32 %v8740_v1, %v4259_v46  ;;  %v5878_v30 = vld [vmem:[%s6140_s28 + $0x29] sm:$0xf]  ;;  %v10524_v42 = vld [vmem:[#allocation293_spill] sm:$0xff] }
 0x599   : > { %v2696_v26 = vadd.f32 %v2694_v15, %v2645_v33  ;;  %v2713_v15 = vadd.f32 %v2711_v48, %v2686_v34  ;;  %v4275_v54 = vmul.f32 %v8740_v1, %v4273_v25  ;;  %v2741_v44 = vadd.f32 %v10524_v42, %v2701_v8  ;;  %v10527_v48 = vld [vmem:[#allocation309_spill] sm:$0xff] }
 0x59a   : > { %4252 = vrot.lane.b32.xlu1 %v4247_v5, %s6010_s14  ;;  %v2707_v5 = vadd.f32 %v2705_v4, %v2672_v51  ;;  %v2783_v51 = vadd.f32 %v10522_v36, %v2727_v63  ;;  %v2956_v4 = vmul.f32 %v5878_v30, %v2954_v6  ;;  %v2770_v31 = vadd.f32 %v10526_v43, %v2714_v35  ;;  %v10529_v25 = vld [vmem:[#allocation289_spill] sm:$0xff]  ;;  %v10536_v43 = vld [vmem:[#allocation307_spill] sm:$0xff] }
 0x59b   : > { %4250 = vrot.lane.b32.xlu0 %v4246_v37, %s6010_s14  ;;  %v10519_v37 = vld [vmem:[#allocation304_spill] sm:$0xff]  ;;  %v2942_v19 = vstv %s8805_s19  ;;  %v2948_v34 = vstv %s8810_s25  ;;  %v4287_v63 = vstv %s8817_s26  ;;  %v2769_v8 = vadd.f32 %v10529_v25, %v2713_v15  ;;  %v10535_v15 = vld [vmem:[#allocation298_spill] sm:$0xff]  ;;  %v10540_v25 = vld [vmem:[#allocation305_spill] sm:$0xff]  ;;  %s8924_s19 = sld [smem:[#allocation2 + $0x109]] }
 0x59c   : > { %v8819_v16 = vpop.permute.xlu1 %3905  ;;  %4264 = vrot.lane.b32.xlu2 %v4260_v0, %s6010_s14  ;;  %v2868_v38 = vadd.f32 %v10519_v37, %v2812_v58  ;;  %v10521_v0 = vld [vmem:[#allocation294_spill] sm:$0xff]  ;;  %v10525_v58 = vld [vmem:[#allocation297_spill] sm:$0xff]  ;;  %v2839_v46 = vadd.f32 %v10527_v48, %v2783_v51  ;;  %v10533_v51 = vld [vmem:[#allocation295_spill] sm:$0xff]  ;;  %v2960_v42 = vstv %s8823_s29  ;;  %v4289_v48 = vmul.f32 %v8740_v1, %v4287_v63  ;;  %s8931_s25 = sld [smem:[#allocation2 + $0x11b]] }
 0x59d   : > { %10516 = vst [vmem:[#allocation51_spill] sm:$0xff] %v8819_v16  ;;  %v8826_v32 = vpop.permute.xlu0 %3903  ;;  %v2728_v33 = vadd.f32 %v10521_v0, %v2696_v26  ;;  %v2755_v59 = vadd.f32 %v10525_v58, %v2707_v5  ;;  %v10528_v26 = vld [vmem:[#allocation286_spill] sm:$0xff]  ;;  %v10530_v5 = vld [vmem:[#allocation292_spill] sm:$0xff]  ;;  %v2944_v18 = vmul.f32 %v5878_v30, %v2942_v19  ;;  %s8955_s26 = sld [smem:[#allocation2 + $0x41]] }
 0x59e   : > { %10518 = vst [vmem:[#allocation54_spill] sm:$0xff] %v8826_v32  ;;  %v8830_v11 = vpop.permute.xlu2 %4002  ;;  %v2924_v2 = vadd.f32 %v10523_v22, %v2868_v38  ;;  %v2742_v57 = vadd.f32 %v10528_v26, %v2702_v52  ;;  %v10531_v38 = vld [vmem:[#allocation303_spill] sm:$0xff]  ;;  %v10539_v26 = vld [vmem:[#allocation302_spill] sm:$0xff]  ;;  %s8976_s29 = sld [smem:[#allocation2 + $0x17f]] }
 0x59f   : > { %10520 = vst [vmem:[#allocation43_spill] sm:$0xff] %v8830_v11  ;;  %v2784_v37 = vadd.f32 %v10530_v5, %v2728_v33  ;;  %v2797_v35 = vadd.f32 %v10531_v38, %v2741_v44  ;;  %v5879_v52 = vld [vmem:[%s6140_s28 + $0x21] sm:$0xff]  ;;  %v2826_v33 = vadd.f32 %v10535_v15, %v2770_v31  ;;  %v2895_v44 = vadd.f32 %v10536_v43, %v2839_v46 }
 0x5a0   : > { %v2958_v0 = vadd.f32 %v2956_v4, %v2924_v2  ;;  %v2943_v22 = vmul.f32 %v5879_v52, %v2942_v19  ;;  %v10537_v4 = vld [vmem:[#allocation330_spill] sm:$0xff]  ;;  %v2825_v5 = vadd.f32 %v10540_v25, %v2769_v8  ;;  %v4288_v38 = vmul.f32 %v8715_v21, %v4287_v63  ;;  %v10542_v46 = vld [vmem:[#allocation308_spill] sm:$0xff] }
 0x5a1   : > { %v2961_v16 = vmul.f32 %v5879_v52, %v2960_v42  ;;  %v2949_v11 = vmul.f32 %v5879_v52, %v2948_v34  ;;  %v10543_v15 = vld [vmem:[#allocation312_spill] sm:$0xff]  ;;  %v2955_v25 = vmul.f32 %v5879_v52, %v2954_v6  ;;  %v4315_v19 = vstv %s8850_s3  ;;  %v10550_v6 = vld [vmem:[#allocation321_spill] sm:$0xff]  ;;  %v10551_v52 = vld [vmem:[#allocation323_spill] sm:$0xff]  ;;  %s9006_s3 = sld [smem:[#allocation2 + $0x54]] }
 0x5a2   : > { %4278 = vrot.lane.b32.xlu1 %v4274_v56, %s6011_s24  ;;  %v2811_v56 = vadd.f32 %v10533_v51, %v2755_v59  ;;  %v3006_v2 = vadd.f32 %v10537_v4, %v2958_v0  ;;  %v2798_v59 = vadd.f32 %v10539_v26, %v2742_v57  ;;  %v4301_v51 = vstv %s8834_s30  ;;  %v10544_v4 = vld [vmem:[#allocation315_spill] sm:$0xff]  ;;  %v10546_v63 = vld [vmem:[#allocation328_spill] sm:$0xff]  ;;  %s8991_s30 = sld [smem:[#allocation2 + $0xa5]] }
 0x5a3   : > { %4266 = vrot.lane.b32.xlu0 %v4261_v13, %s6010_s14  ;;  %v2950_v13 = vmul.f32 %v5878_v30, %v2948_v34  ;;  %v4302_v31 = vmul.f32 %v8715_v21, %v4301_v51  ;;  %v2840_v0 = vadd.f32 %v10542_v46, %v2784_v37  ;;  %v2945_v57 = vadd.f32 %v2943_v22, %v2895_v44  ;;  %v10545_v26 = vld [vmem:[#allocation311_spill] sm:$0xff]  ;;  %v10547_v34 = vld [vmem:[#allocation314_spill] sm:$0xff] }
 0x5a4   : > { %v8855_v36 = vpop.permute.xlu1 %3931  ;;  %4280 = vrot.lane.b32.xlu2 %v4275_v54, %s6011_s24  ;;  %v2854_v43 = vadd.f32 %v10543_v15, %v2798_v59  ;;  %v2867_v8 = vadd.f32 %v10545_v26, %v2811_v56  ;;  %v10549_v46 = vld [vmem:[#allocation318_spill] sm:$0xff]  ;;  %v2962_v44 = vmul.f32 %v5878_v30, %v2960_v42  ;;  %v3204_v26 = vstv %s8861_s7  ;;  %s9010_s7 = sld [smem:[#allocation2 + $0x10e]] }
 0x5a5   : > { %10532 = vst [vmem:[#allocation47_spill] sm:$0xff] %v8855_v36  ;;  %v8863_v58 = vpop.permute.xlu0 %3919  ;;  %v10541_v36 = vld [vmem:[#allocation301_spill] sm:$0xff]  ;;  %v2896_v59 = vadd.f32 %v10549_v46, %v2840_v0  ;;  %v2977_v22 = vadd.f32 %v10551_v52, %v2945_v57  ;;  %v10558_v42 = vld [vmem:[#allocation354_spill] sm:$0xff] }
 0x5a6   : > { %10534 = vst [vmem:[#allocation46_spill] sm:$0xff] %v8863_v58  ;;  %v8869_v54 = vpop.permute.xlu2 %4028  ;;  %v2853_v32 = vadd.f32 %v10541_v36, %v2797_v35  ;;  %v3062_v58 = vadd.f32 %v10546_v63, %v3006_v2  ;;  %v2882_v35 = vadd.f32 %v10547_v34, %v2826_v33  ;;  %v10548_v36 = vld [vmem:[#allocation317_spill] sm:$0xff]  ;;  %v2923_v56 = vadd.f32 %v10550_v6, %v2867_v8  ;;  %v10552_v2 = vld [vmem:[#allocation344_spill] sm:$0xff] }
 0x5a7   : > { %10538 = vst [vmem:[#allocation50_spill] sm:$0xff] %v8869_v54  ;;  %v2881_v54 = vadd.f32 %v10544_v4, %v2825_v5  ;;  %v10555_v0 = vld [vmem:[#allocation313_spill] sm:$0xff]  ;;  %v10556_v4 = vld [vmem:[#allocation324_spill] sm:$0xff]  ;;  %v4317_v6 = vmul.f32 %v8740_v1, %v4315_v19 }
 0x5a8   : > { %v2909_v37 = vadd.f32 %v10548_v36, %v2853_v32  ;;  %v10554_v32 = vld [vmem:[#allocation310_spill] sm:$0xff]  ;;  %v10557_v34 = vld [vmem:[#allocation333_spill] sm:$0xff]  ;;  %v8906_v36 = vld [vmem:[%s6140_s28 + $0x2a] sm:$0xf]  ;;  %v2957_v46 = vadd.f32 %v2955_v25, %v2923_v56 }
 0x5a9   : > { %v2910_v33 = vadd.f32 %v10554_v32, %v2854_v43  ;;  %v2937_v15 = vadd.f32 %v10555_v0, %v2881_v54  ;;  %v3033_v8 = vadd.f32 %v10557_v34, %v2977_v22  ;;  %v3206_v30 = vmul.f32 %v8906_v36, %v3204_v26  ;;  %v10562_v25 = vld [vmem:[#allocation316_spill] sm:$0xff]  ;;  %v10563_v56 = vld [vmem:[#allocation326_spill] sm:$0xff] }
 0x5aa   : > { %4294 = vrot.lane.b32.xlu1 %v4289_v48, %s6011_s24  ;;  %v3118_v48 = vadd.f32 %v10552_v2, %v3062_v58  ;;  %v2951_v43 = vadd.f32 %v2949_v11, %v2909_v37  ;;  %v2946_v54 = vadd.f32 %v2944_v18, %v2896_v59  ;;  %v10560_v2 = vld [vmem:[#allocation327_spill] sm:$0xff]  ;;  %v3192_v37 = vstv %s8882_s23  ;;  %s9020_s23 = sld [smem:[#allocation2 + $0x16d]] }
 0x5ab   : > { %4292 = vrot.lane.b32.xlu0 %v4288_v38, %s6011_s24  ;;  %v2938_v38 = vadd.f32 %v10556_v4, %v2882_v35  ;;  %v4303_v35 = vmul.f32 %v8740_v1, %v4301_v51  ;;  %v2952_v52 = vadd.f32 %v2950_v13, %v2910_v33  ;;  %v2963_v32 = vadd.f32 %v2961_v16, %v2937_v15  ;;  %v10561_v11 = vld [vmem:[#allocation331_spill] sm:$0xff]  ;;  %v10565_v16 = vld [vmem:[#allocation329_spill] sm:$0xff] }
 0x5ac   : > { %v8895_v5 = vpop.permute.xlu1 %3974  ;;  %4306 = vrot.lane.b32.xlu2 %v4302_v31, %s6011_s24  ;;  %v3174_v58 = vadd.f32 %v10558_v42, %v3118_v48  ;;  %v4316_v31 = vmul.f32 %v8715_v21, %v4315_v19  ;;  %v2991_v48 = vadd.f32 %v10560_v2, %v2951_v43  ;;  %v3089_v18 = vadd.f32 %v10561_v11, %v3033_v8  ;;  %v5881_v15 = vld [vmem:[%s6140_s28 + $0x22] sm:$0xff] }
 0x5ad   : > { %10553 = vst [vmem:[#allocation49_spill] sm:$0xff] %v8895_v5  ;;  %v8902_v63 = vpop.permute.xlu0 %3972  ;;  %v2964_v22 = vadd.f32 %v2962_v44, %v2938_v38  ;;  %v2978_v59 = vadd.f32 %v10562_v25, %v2946_v54  ;;  %v2992_v19 = vadd.f32 %v10563_v56, %v2952_v52  ;;  %v4329_v13 = vstv %s8890_s5  ;;  %v10564_v44 = vld [vmem:[#allocation319_spill] sm:$0xff]  ;;  %v10570_v43 = vld [vmem:[#allocation336_spill] sm:$0xff]  ;;  %s9026_s5 = sld [smem:[#allocation2 + $0xb8]] }
 0x5ae   : > { %v8911_v57 = vpop.permute.xlu2 %4044  ;;  %v3208_v51 = vadd.f32 %v3206_v30, %v3174_v58  ;;  %v3005_v33 = vadd.f32 %v10564_v44, %v2957_v46  ;;  %v3019_v0 = vadd.f32 %v10565_v16, %v2963_v32  ;;  %v3193_v4 = vmul.f32 %v5881_v15, %v3192_v37  ;;  %v10566_v38 = vld [vmem:[#allocation347_spill] sm:$0xff]  ;;  %v10568_v30 = vld [vmem:[#allocation322_spill] sm:$0xff]  ;;  %v10569_v58 = vld [vmem:[#allocation325_spill] sm:$0xff] }
 0x5af   : > { %10559 = vst [vmem:[#allocation53_spill] sm:$0xff] %v8911_v57  ;;  %v3145_v34 = vadd.f32 %v10566_v38, %v3089_v18  ;;  %v3020_v42 = vadd.f32 %v10568_v30, %v2964_v22  ;;  %v3048_v54 = vadd.f32 %v10570_v43, %v2992_v19  ;;  %v10572_v52 = vld [vmem:[#allocation332_spill] sm:$0xff]  ;;  %v10573_v32 = vld [vmem:[#allocation339_spill] sm:$0xff]  ;;  %v3205_v44 = vmul.f32 %v5881_v15, %v3204_v26  ;;  %v10578_v30 = vld [vmem:[#allocation334_spill] sm:$0xff] }
 0x5b0   : > { %v3034_v2 = vadd.f32 %v10572_v52, %v2978_v59  ;;  %v3075_v11 = vadd.f32 %v10573_v32, %v3019_v0  ;;  %v10574_v18 = vld [vmem:[#allocation352_spill] sm:$0xff]  ;;  %v10576_v56 = vld [vmem:[#allocation335_spill] sm:$0xff]  ;;  %v4343_v19 = vstv %s8914_s20  ;;  %v3210_v59 = vstv %s8916_s16  ;;  %v10579_v43 = vld [vmem:[#allocation338_spill] sm:$0xff]  ;;  %s9046_s20 = sld [smem:[#allocation2 + $0x46]] }
 0x5b1   : > { %v3256_v25 = vadd.f32 %v10574_v18, %v3208_v51  ;;  %v3195_v16 = vadd.f32 %v3193_v4, %v3145_v34  ;;  %v10577_v38 = vld [vmem:[#allocation368_spill] sm:$0xff]  ;;  %v4344_v51 = vmul.f32 %v8715_v21, %v4343_v19  ;;  %v3076_v52 = vadd.f32 %v10579_v43, %v3020_v42  ;;  %v10580_v32 = vld [vmem:[#allocation342_spill] sm:$0xff]  ;;  %v10581_v18 = vld [vmem:[#allocation337_spill] sm:$0xff]  ;;  %s9068_s16 = sld [smem:[#allocation2 + $0x11c]] }
 0x5b2   : > { %4320 = vrot.lane.b32.xlu1 %v4316_v31, %s6011_s24  ;;  %v3047_v31 = vadd.f32 %v10569_v58, %v2991_v48  ;;  %v3061_v48 = vadd.f32 %v10576_v56, %v3005_v33  ;;  %v3104_v58 = vadd.f32 %v10578_v30, %v3048_v54  ;;  %v3090_v33 = vadd.f32 %v10580_v32, %v3034_v2  ;;  %v10584_v4 = vld [vmem:[#allocation378_spill] sm:$0xff]  ;;  %v10586_v57 = vld [vmem:[#allocation348_spill] sm:$0xff]  ;;  %v10590_v30 = vld [vmem:[#allocation353_spill] sm:$0xff] }
 0x5b3   : > { %4308 = vrot.lane.b32.xlu0 %v4303_v35, %s6011_s24  ;;  %v8944_v35 = vmul.f32 %v8906_v36, %v3192_v37  ;;  %v4330_v37 = vmul.f32 %v8715_v21, %v4329_v13  ;;  %v3312_v0 = vadd.f32 %v10577_v38, %v3256_v25  ;;  %v3198_v26 = vstv %s8920_s17  ;;  %v10585_v25 = vld [vmem:[#allocation345_spill] sm:$0xff]  ;;  %v10587_v2 = vld [vmem:[#allocation350_spill] sm:$0xff]  ;;  %v10591_v32 = vld [vmem:[#allocation355_spill] sm:$0xff]  ;;  %s9086_s17 = sld [smem:[#allocation2 + $0xaa]] }
 0x5b4   : > { %v8937_v8 = vpop.permute.xlu1 %4000  ;;  %4322 = vrot.lane.b32.xlu2 %v4317_v6, %s6011_s24  ;;  %v4331_v6 = vmul.f32 %v8740_v1, %v4329_v13  ;;  %v3131_v56 = vadd.f32 %v10581_v18, %v3075_v11  ;;  %v3117_v38 = vadd.f32 %v10585_v25, %v3061_v48  ;;  %v9819_v54 = vstv %s8924_s19 }
 0x5b5   : > { %10567 = vst [vmem:[#allocation52_spill] sm:$0xff] %v8937_v8  ;;  %v8946_v46 = vpop.permute.xlu0 %3988  ;;  %v10582_v8 = vld [vmem:[#allocation341_spill] sm:$0xff]  ;;  %v3368_v34 = vadd.f32 %v10584_v4, %v3312_v0  ;;  %v4357_v42 = vstv %s8931_s25  ;;  %v3160_v11 = vadd.f32 %v10587_v2, %v3104_v58  ;;  %v3211_v0 = vmul.f32 %v5881_v15, %v3210_v59  ;;  %v8994_v58 = vld [vmem:[%s6140_s28 + $0x2b] sm:$0xf]  ;;  %v10595_v2 = vld [vmem:[#allocation371_spill] sm:$0xff]  ;;  %s9099_s25 = sld [smem:[#allocation2 + $0x180]] }
 0x5b6   : > { %10571 = vst [vmem:[#allocation57_spill] sm:$0xff] %v8946_v46  ;;  %v8952_v22 = vpop.permute.xlu2 %4070  ;;  %v3103_v13 = vadd.f32 %v10582_v8, %v3047_v31  ;;  %v3132_v46 = vadd.f32 %v10586_v57, %v3076_v52  ;;  %v3212_v8 = vmul.f32 %v8906_v36, %v3210_v59  ;;  %v3200_v31 = vmul.f32 %v8906_v36, %v3198_v26  ;;  %v10588_v57 = vld [vmem:[#allocation340_spill] sm:$0xff]  ;;  %v10593_v59 = vld [vmem:[#allocation343_spill] sm:$0xff] }
 0x5b7   : > { %10575 = vst [vmem:[#allocation56_spill] sm:$0xff] %v8952_v22  ;;  %v10583_v22 = vld [vmem:[#allocation357_spill] sm:$0xff]  ;;  %v3146_v48 = vadd.f32 %v10588_v57, %v3090_v33  ;;  %v3187_v43 = vadd.f32 %v10590_v30, %v3131_v56  ;;  %v10592_v36 = vld [vmem:[#allocation376_spill] sm:$0xff]  ;;  %v4358_v33 = vmul.f32 %v8715_v21, %v4357_v42  ;;  %v10594_v56 = vld [vmem:[#allocation346_spill] sm:$0xff] }
 0x5b8   : > { %v3227_v5 = vadd.f32 %v10583_v22, %v3195_v16  ;;  %v3199_v22 = vmul.f32 %v5881_v15, %v3198_v26  ;;  %v3424_v4 = vadd.f32 %v10592_v36, %v3368_v34  ;;  %v3173_v26 = vadd.f32 %v10593_v59, %v3117_v38  ;;  %v10596_v36 = vld [vmem:[#allocation360_spill] sm:$0xff]  ;;  %v10597_v38 = vld [vmem:[#allocation381_spill] sm:$0xff] }
 0x5b9   : > { %v4345_v34 = vmul.f32 %v8740_v1, %v4343_v19  ;;  %v3202_v25 = vadd.f32 %v3200_v31, %v3160_v11 }
 0x5ba   : > { %4336 = vrot.lane.b32.xlu1 %v4331_v6, %s6012_s27  ;;  %v3283_v18 = vadd.f32 %v10591_v32, %v3227_v5  ;;  %v3442_v5 = vstv %s8955_s26  ;;  %v3213_v32 = vadd.f32 %v3211_v0, %v3187_v43  ;;  %v3207_v11 = vadd.f32 %v3205_v44, %v3173_v26  ;;  %v10598_v0 = vld [vmem:[#allocation363_spill] sm:$0xff]  ;;  %s9145_s26 = sld [smem:[#allocation2 + $0x4b]] }
 0x5bb   : > { %4334 = vrot.lane.b32.xlu0 %v4330_v37, %s6012_s27  ;;  %v10589_v37 = vld [vmem:[#allocation351_spill] sm:$0xff] }
 0x5bc   : > { %v8981_v6 = vpop.permute.xlu1 %4016  ;;  %4348 = vrot.lane.b32.xlu2 %v4344_v51, %s6012_s27  ;;  %v3159_v16 = vadd.f32 %v10589_v37, %v3103_v13  ;;  %v3456_v51 = vmul.f32 %v8994_v58, %v9819_v54  ;;  %v3188_v13 = vadd.f32 %v10594_v56, %v3132_v46  ;;  %v3339_v57 = vadd.f32 %v10595_v2, %v3283_v18  ;;  %v9015_v46 = vld [vmem:[%s6140_s28 + $0x23] sm:$0xff] }
 0x5bd   : > { %v8987_v52 = vpop.permute.xlu0 %4014  ;;  %v4359_v37 = vmul.f32 %v8740_v1, %v4357_v42  ;;  %v3242_v54 = vadd.f32 %v10596_v36, %v3202_v25  ;;  %v3443_v19 = vmul.f32 %v9015_v46, %v3442_v5  ;;  %v3196_v42 = vadd.f32 %v8944_v35, %v3146_v48  ;;  %v10600_v35 = vld [vmem:[#allocation356_spill] sm:$0xff] }
 0x5be   : > { %v9000_v15 = vpop.permute.xlu2 %4086  ;;  %v3201_v30 = vadd.f32 %v3199_v22, %v3159_v16  ;;  %v3395_v59 = vadd.f32 %v10597_v38, %v3339_v57  ;;  %v3458_v31 = vadd.f32 %v3456_v51, %v3424_v4  ;;  %v3214_v22 = vadd.f32 %v3212_v8, %v3188_v13  ;;  %v10599_v4 = vld [vmem:[#allocation349_spill] sm:$0xff]  ;;  %v10601_v8 = vld [vmem:[#allocation359_spill] sm:$0xff] }
 0x5bf   : > { %v4371_v16 = vstv %s8976_s29  ;;  %v3269_v43 = vadd.f32 %v10598_v0, %v3213_v32  ;;  %v3228_v44 = vadd.f32 %v10600_v35, %v3196_v42  ;;  %v3255_v48 = vadd.f32 %v10601_v8, %v3207_v11  ;;  %v10605_v42 = vld [vmem:[#allocation361_spill] sm:$0xff]  ;;  %v10608_v0 = vld [vmem:[#allocation366_spill] sm:$0xff]  ;;  %s9105_s29 = sld [smem:[#allocation2 + $0x172]] }
 0x5c0   : > { %v3506_v18 = vadd.f32 %v8114_v49, %v3458_v31  ;;  %v3241_v51 = vadd.f32 %v10599_v4, %v3201_v30  ;;  %v3445_v2 = vadd.f32 %v3443_v19, %v3395_v59  ;;  %v4373_v57 = vmul.f32 %v8740_v1, %v4371_v16  ;;  %v10607_v19 = vld [vmem:[#allocation374_spill] sm:$0xff]  ;;  %v10609_v4 = vld [vmem:[#allocation369_spill] sm:$0xff] }
 0x5c1   : > { %v3448_v36 = vstv %s8991_s30  ;;  %v4372_v38 = vmul.f32 %v8715_v21, %v4371_v16  ;;  %v4385_v31 = vstv %s9006_s3  ;;  %v3325_v11 = vadd.f32 %v10605_v42, %v3269_v43  ;;  %v10612_v42 = vld [vmem:[#allocation375_spill] sm:$0xff]  ;;  %s9112_s30 = sld [smem:[#allocation2 + $0x113]] }
 0x5c2   : > { %4362 = vrot.lane.b32.xlu1 %v4358_v33, %s6012_s27  ;;  %v10602_v33 = vld [vmem:[#allocation362_spill] sm:$0xff]  ;;  %v3562_v49 = vadd.f32 %v8238_v45, %v3506_v18  ;;  %v3284_v18 = vadd.f32 %v10608_v0, %v3228_v44  ;;  %v3311_v35 = vadd.f32 %v10609_v4, %v3255_v48  ;;  %v3450_v8 = vmul.f32 %v8994_v58, %v3448_v36  ;;  %s9175_s3 = sld [smem:[#allocation2 + $0xba]] }
 0x5c3   : > { %4350 = vrot.lane.b32.xlu0 %v4345_v34, %s6012_s27  ;;  %v3270_v26 = vadd.f32 %v10602_v33, %v3214_v22  ;;  %v10603_v34 = vld [vmem:[#allocation358_spill] sm:$0xff]  ;;  %v4386_v22 = vmul.f32 %v8715_v21, %v4385_v31  ;;  %v3704_v33 = vstv %s9010_s7  ;;  %s9257_s7 = sld [smem:[#allocation2 + $0xb4]] }
 0x5c4   : > { %v9030_v56 = vpop.permute.xlu1 %4042  ;;  %4364 = vrot.lane.b32.xlu2 %v4359_v37, %s6012_s27  ;;  %v3298_v25 = vadd.f32 %v10603_v34, %v3242_v54  ;;  %v10604_v37 = vld [vmem:[#allocation372_spill] sm:$0xff]  ;;  %v10606_v54 = vld [vmem:[#allocation365_spill] sm:$0xff]  ;;  %v3460_v34 = vstv %s9020_s23  ;;  %s9187_s23 = sld [smem:[#allocation2 + $0xaf]] }
 0x5c5   : > { %v9037_v13 = vpop.permute.xlu0 %4030  ;;  %v3326_v30 = vadd.f32 %v10604_v37, %v3270_v26  ;;  %v3297_v59 = vadd.f32 %v10606_v54, %v3241_v51  ;;  %v10610_v26 = vld [vmem:[#allocation379_spill] sm:$0xff]  ;;  %v3618_v51 = vadd.f32 %v8202_v17, %v3562_v49  ;;  %v10613_v54 = vld [vmem:[#allocation377_spill] sm:$0xff]  ;;  %v9074_v17 = vld [vmem:[%s6140_s28 + $0x2c] sm:$0xf] }
 0x5c6   : > { %v9042_v32 = vpop.permute.xlu2 %4112  ;;  %v3354_v45 = vadd.f32 %v10607_v19, %v3298_v25  ;;  %v3477_v16 = vadd.f32 %v10610_v26, %v3445_v2  ;;  %v10611_v25 = vld [vmem:[#allocation370_spill] sm:$0xff]  ;;  %v3381_v48 = vadd.f32 %v10613_v54, %v3325_v11  ;;  %v4399_v19 = vstv %s9026_s5  ;;  %v10614_v11 = vld [vmem:[#allocation364_spill] sm:$0xff]  ;;  %s9200_s5 = sld [smem:[#allocation2 + $0x11e]] }
 0x5c7   : > { %v3382_v37 = vadd.f32 %v10611_v25, %v3326_v30  ;;  %v3353_v44 = vadd.f32 %v10612_v42, %v3297_v59  ;;  %v3449_v2 = vmul.f32 %v9015_v46, %v3448_v36  ;;  %v3706_v49 = vmul.f32 %v9074_v17, %v3704_v33 }
 0x5c8   : > { %v3410_v43 = vadd.f32 %v8003_v14, %v3354_v45  ;;  %v3533_v14 = vadd.f32 %v8153_v62, %v3477_v16  ;;  %v3674_v45 = vadd.f32 %v8425_v28, %v3618_v51  ;;  %v3461_v36 = vmul.f32 %v9015_v46, %v3460_v34  ;;  %v10616_v16 = vld [vmem:[#allocation373_spill] sm:$0xff] }
 0x5c9   : > { %v3438_v30 = vadd.f32 %v8035_v47, %v3382_v37  ;;  %v3462_v62 = vmul.f32 %v8994_v58, %v3460_v34  ;;  %v3340_v59 = vadd.f32 %v10614_v11, %v3284_v18  ;;  %v3409_v51 = vadd.f32 %v10616_v16, %v3353_v44  ;;  %v10617_v18 = vld [vmem:[#allocation380_spill] sm:$0xff]  ;;  %v10618_v37 = vld [vmem:[#allocation383_spill] sm:$0xff] }
 0x5ca   : > { %4378 = vrot.lane.b32.xlu1 %v4373_v57, %s6012_s27  ;;  %v3452_v0 = vadd.f32 %v3450_v8, %v3410_v43  ;;  %v3589_v4 = vadd.f32 %v8273_v41, %v3533_v14  ;;  %v3692_v34 = vstv %s9046_s20  ;;  %v4387_v25 = vmul.f32 %v8740_v1, %v4385_v31  ;;  %v10620_v14 = vld [vmem:[#allocation382_spill] sm:$0xff]  ;;  %s9229_s20 = sld [smem:[#allocation2 + $0x182]] }
 0x5cb   : > { %4376 = vrot.lane.b32.xlu0 %v4372_v38, %s6012_s27  ;;  %v3437_v38 = vadd.f32 %v8042_v23, %v3381_v48  ;;  %v10615_v23 = vld [vmem:[#allocation367_spill] sm:$0xff]  ;;  %v3396_v8 = vadd.f32 %v10617_v18, %v3340_v59  ;;  %v3444_v41 = vmul.f32 %v8994_v58, %v3442_v5  ;;  %v3708_v43 = vadd.f32 %v3706_v49, %v3674_v45 }
 0x5cc   : > { %v9079_v57 = vpop.permute.xlu1 %4058  ;;  %4390 = vrot.lane.b32.xlu2 %v4386_v22, %s6013_s8  ;;  %v4400_v22 = vmul.f32 %v8715_v21, %v4399_v19  ;;  %v3367_v26 = vadd.f32 %v10615_v23, %v3311_v35  ;;  %v4401_v35 = vmul.f32 %v8740_v1, %v4399_v19  ;;  %v10619_v54 = vstv %s8924_s19  ;;  %v9117_v58 = vld [vmem:[%s6140_s28 + $0x24] sm:$0xff]  ;;  %s9127_s19 = sld [smem:[#allocation2 + $0x56]] }
 0x5cd   : > { %v9088_v28 = vpop.permute.xlu0 %4056  ;;  %v3463_v44 = vadd.f32 %v3461_v36, %v3437_v38  ;;  %v3455_v48 = vmul.f32 %v9015_v46, %v10619_v54  ;;  %v3464_v31 = vadd.f32 %v3462_v62, %v3438_v30  ;;  %v3492_v11 = vadd.f32 %v10620_v14, %v3452_v0  ;;  %v10624_v54 = vld [vmem:[#allocation21_spill] sm:$0xff] }
 0x5ce   : > { %v9093_v47 = vpop.permute.xlu2 %4128  ;;  %v3423_v42 = vadd.f32 %v10618_v37, %v3367_v26  ;;  %v3645_v59 = vadd.f32 %v8242_v60, %v3589_v4  ;;  %v3693_v5 = vmul.f32 %v9117_v58, %v3692_v34  ;;  %v3756_v19 = vadd.f32 %v8547_v7, %v3708_v43  ;;  %v9161_v37 = vld [vmem:[%s6140_s28 + $0x38] sm:$0xf] }
 0x5cf   : > { %v3451_v45 = vadd.f32 %v3449_v2, %v3409_v51  ;;  %v3520_v46 = vadd.f32 %v8158_v55, %v3464_v31  ;;  %v4413_v49 = vstv %s9068_s16  ;;  %v3446_v30 = vadd.f32 %v3444_v41, %v3396_v8  ;;  %v10625_v31 = vld [vmem:[#allocation15_spill] sm:$0xff]  ;;  %s9216_s16 = sld [smem:[#allocation2 + $0x50]] }
 0x5d0   : > { %v3548_v60 = vadd.f32 %v8189_v9, %v3492_v11  ;;  %v3519_v7 = vadd.f32 %v8007_v20, %v3463_v44  ;;  %v3457_v2 = vadd.f32 %v3455_v48, %v3423_v42  ;;  %v3698_v62 = vstv %s9086_s17  ;;  %v10626_v11 = vld [vmem:[#allocation14_spill] sm:$0xff]  ;;  %s9220_s17 = sld [smem:[#allocation2 + $0x177]] }
 0x5d1   : > { %v3491_v36 = vadd.f32 %v8078_v50, %v3451_v45  ;;  %v3695_v4 = vadd.f32 %v3693_v5, %v3645_v59  ;;  %v3812_v9 = vadd.f32 %v8514_v27, %v3756_v19  ;;  %v3478_v26 = vadd.f32 %v8081_v40, %v3446_v30  ;;  %v10627_v45 = vld [vmem:[#allocation17_spill] sm:$0xff] }
 0x5d2   : > { %4404 = vrot.lane.b32.xlu1 %v4400_v22, %s6013_s8  ;;  %v3604_v0 = vadd.f32 %v8320_v10, %v3548_v60  ;;  %v4415_v22 = vmul.f32 %v8740_v1, %v4413_v49  ;;  %v3576_v20 = vadd.f32 %v8127_v29, %v3520_v46  ;;  %v4414_v50 = vmul.f32 %v8715_v21, %v4413_v49  ;;  %v10628_v49 = vld [vmem:[#allocation23_spill] sm:$0xff] }
 0x5d3   : > { %4392 = vrot.lane.b32.xlu0 %v4387_v25, %s6013_s8  ;;  %v4427_v16 = vstv %s9099_s25  ;;  %v3547_v10 = vadd.f32 %v8196_v3, %v3491_v36  ;;  %v3727_v51 = vadd.f32 %v8467_v39, %v3695_v4  ;;  %v3868_v27 = vadd.f32 %v8737_v12, %v3812_v9  ;;  %v10622_v12 = vld [vmem:[#allocation384_spill] sm:$0xff]  ;;  %s9263_s25 = sld [smem:[#allocation2 + $0x57]] }
 0x5d4   : > { %v9130_v38 = vpop.permute.xlu1 %4084  ;;  %4406 = vrot.lane.b32.xlu2 %v4401_v35, %s6013_s8  ;;  %v4428_v25 = vmul.f32 %v8715_v21, %v4427_v16  ;;  %v3575_v40 = vadd.f32 %v8232_v24, %v3519_v7  ;;  %v3710_v18 = vstv %s9105_s29  ;;  %v3700_v29 = vmul.f32 %v9074_v17, %v3698_v62  ;;  %v10621_v35 = vld [vmem:[#allocation46_spill] sm:$0xff]  ;;  %v10623_v24 = vld [vmem:[#allocation12_spill] sm:$0xff]  ;;  %s9284_s29 = sld [smem:[#allocation2 + $0xbb]] }
 0x5d5   : > { %v9136_v55 = vpop.permute.xlu0 %4072  ;;  %v3955_v8 = vstv %s9112_s30  ;;  %v3660_v41 = vadd.f32 %v8279_v53, %v3604_v0  ;;  %v3783_v43 = vadd.f32 %v8583_v61, %v3727_v51  ;;  %v3924_v3 = vadd.f32 %v10621_v35, %v3868_v27  ;;  %v9172_v53 = vld [vmem:[%s6140_s28 + $0x32] sm:$0xff]  ;;  %s9335_s30 = sld [smem:[#allocation2 + $0x183]] }
 0x5d6   : > { %v9141_v23 = vpop.permute.xlu2 %4154  ;;  %v3957_v39 = vmul.f32 %v9161_v37, %v3955_v8  ;;  %v3534_v42 = vadd.f32 %v10622_v12, %v3478_v26  ;;  %v3632_v44 = vadd.f32 %v10623_v24, %v3576_v20  ;;  %v3631_v48 = vadd.f32 %v10624_v54, %v3575_v40  ;;  %v10629_v0 = vld [vmem:[#allocation29_spill] sm:$0xff]  ;;  %v10630_v20 = vld [vmem:[#allocation11_spill] sm:$0xff]  ;;  %v10632_v40 = vld [vmem:[#allocation22_spill] sm:$0xff] }
 0x5d7   : > { %v4467_v61 = vstv %s9127_s19  ;;  %v3505_v14 = vadd.f32 %v10625_v31, %v3457_v2  ;;  %v3603_v59 = vadd.f32 %v10626_v11, %v3547_v10  ;;  %v3711_v5 = vmul.f32 %v9117_v58, %v3710_v18  ;;  %v10631_v10 = vld [vmem:[#allocation27_spill] sm:$0xff]  ;;  %s9292_s19 = sld [smem:[#allocation2 + $0x17c]] }
 0x5d8   : > { %v3590_v46 = vadd.f32 %v10627_v45, %v3534_v42  ;;  %v3688_v30 = vadd.f32 %v10628_v49, %v3632_v44  ;;  %v3712_v60 = vmul.f32 %v9074_v17, %v3710_v18  ;;  %v3699_v7 = vmul.f32 %v9117_v58, %v3698_v62  ;;  %v10636_v54 = vld [vmem:[#allocation35_spill] sm:$0xff] }
 0x5d9   : > { %v3702_v2 = vadd.f32 %v3700_v29, %v3660_v41  ;;  %v3839_v4 = vadd.f32 %v10629_v0, %v3783_v43  ;;  %v3959_v9 = vadd.f32 %v3957_v39, %v3924_v3  ;;  %v3659_v51 = vadd.f32 %v10631_v10, %v3603_v59  ;;  %v10633_v29 = vld [vmem:[#allocation34_spill] sm:$0xff]  ;;  %v9205_v43 = vld [vmem:[%s6140_s28 + $0x30] sm:$0xff]  ;;  %v10637_v31 = vld [vmem:[#allocation43_spill] sm:$0xff] }
 0x5da   : > { %4420 = vrot.lane.b32.xlu1 %v4415_v22, %s6013_s8  ;;  %v4468_v22 = vmul.f32 %v9172_v53, %v4467_v61  ;;  %v3943_v27 = vstv %s9145_s26  ;;  %v4429_v62 = vmul.f32 %v8740_v1, %v4427_v16  ;;  %v10634_v39 = vld [vmem:[#allocation385_spill] sm:$0xff]  ;;  %v3694_v24 = vmul.f32 %v9074_v17, %v3692_v34  ;;  %v10642_v10 = vld [vmem:[#allocation26_spill] sm:$0xff]  ;;  %s9303_s26 = sld [smem:[#allocation2 + $0x11f]] }
 0x5db   : > { %4418 = vrot.lane.b32.xlu0 %v4414_v50, %s6013_s8  ;;  %v3687_v50 = vadd.f32 %v10630_v20, %v3631_v48  ;;  %v3742_v18 = vadd.f32 %v10632_v40, %v3702_v2  ;;  %v3895_v41 = vadd.f32 %v10633_v29, %v3839_v4  ;;  %v3944_v35 = vmul.f32 %v9205_v43, %v3943_v27  ;;  %v10635_v16 = vld [vmem:[#allocation13_spill] sm:$0xff]  ;;  %v10639_v2 = vld [vmem:[#allocation16_spill] sm:$0xff]  ;;  %v10640_v4 = vld [vmem:[#allocation19_spill] sm:$0xff] }
 0x5dc   : > { %v9180_v19 = vpop.permute.xlu1 %4100  ;;  %4432 = vrot.lane.b32.xlu2 %v4428_v25, %s6013_s8  ;;  %v9198_v25 = vld [vmem:[%s6140_s28 + $0x3a] sm:$0xf]  ;;  %v3561_v12 = vadd.f32 %v10634_v39, %v3505_v14  ;;  %v3646_v42 = vadd.f32 %v10635_v16, %v3590_v46  ;;  %v3714_v44 = vadd.f32 %v3712_v60, %v3688_v30  ;;  %v4007_v11 = vadd.f32 %v10637_v31, %v3959_v9  ;;  %v10645_v16 = vld [vmem:[#allocation28_spill] sm:$0xff] }
 0x5dd   : > { %v9189_v36 = vpop.permute.xlu0 %4098  ;;  %v4469_v3 = vmul.f32 %v9198_v25, %v4467_v61  ;;  %v3798_v48 = vadd.f32 %v10636_v54, %v3742_v18  ;;  %v10638_v61 = vld [vmem:[#allocation18_spill] sm:$0xff]  ;;  %v3705_v14 = vmul.f32 %v9117_v58, %v3704_v33  ;;  %v4481_v17 = vstv %s9175_s3  ;;  %s9342_s3 = sld [smem:[#allocation2 + $0x118]] }
 0x5de   : > { %v4171_v26 = vpop.permute.xlu2 %4170  ;;  %v3617_v59 = vadd.f32 %v10638_v61, %v3561_v12  ;;  %v3701_v34 = vadd.f32 %v3699_v7, %v3659_v51  ;;  %v3713_v45 = vadd.f32 %v3711_v5, %v3687_v50  ;;  %v3946_v46 = vadd.f32 %v3944_v35, %v3895_v41  ;;  %v10644_v41 = vld [vmem:[#allocation51_spill] sm:$0xff] }
 0x5df   : > { %v4063_v49 = vadd.f32 %v9079_v57, %v4007_v11  ;;  %v3696_v60 = vadd.f32 %v3694_v24, %v3646_v42  ;;  %v3770_v33 = vadd.f32 %v10640_v4, %v3714_v44  ;;  %v3949_v58 = vstv %s9187_s23  ;;  %v10646_v24 = vld [vmem:[#allocation38_spill] sm:$0xff]  ;;  %s9351_s23 = sld [smem:[#allocation2 + $0x58]] }
 0x5e0   : > { %v3673_v0 = vadd.f32 %v10639_v2, %v3617_v59  ;;  %v3978_v5 = vadd.f32 %v8902_v63, %v3946_v46  ;;  %v4483_v57 = vmul.f32 %v9198_v25, %v4481_v17  ;;  %v3741_v51 = vadd.f32 %v10642_v10, %v3701_v34  ;;  %v10648_v11 = vld [vmem:[#allocation50_spill] sm:$0xff]  ;;  %v10650_v34 = vld [vmem:[#allocation37_spill] sm:$0xff]  ;;  %v10651_v46 = vld [vmem:[#allocation32_spill] sm:$0xff] }
 0x5e1   : > { %v4482_v18 = vmul.f32 %v9172_v53, %v4481_v17  ;;  %v4495_v29 = vstv %s9200_s5  ;;  %v3826_v42 = vadd.f32 %v10645_v16, %v3770_v33  ;;  %v4193_v54 = vstv %s9216_s16  ;;  %v10652_v33 = vld [vmem:[#allocation20_spill] sm:$0xff]  ;;  %s9364_s5 = sld [smem:[#allocation2 + $0xbc]] }
 0x5e2   : > { %4472 = vrot.lane.b32.xlu1 %v4468_v22, %s6010_s14  ;;  %v10641_v22 = vld [vmem:[#allocation33_spill] sm:$0xff]  ;;  %v4496_v63 = vmul.f32 %v9172_v53, %v4495_v29  ;;  %v3707_v12 = vadd.f32 %v3705_v14, %v3673_v0  ;;  %v4034_v61 = vadd.f32 %v10648_v11, %v3978_v5  ;;  %v3961_v59 = vstv %s9220_s17  ;;  %s5726_s16 = sld [smem:[#allocation2 + $0x120]] }
 0x5e3   : > { %4434 = vrot.lane.b32.xlu0 %v4429_v62, %s6013_s8  ;;  %v3854_v20 = vadd.f32 %v10641_v22, %v3798_v48  ;;  %v10643_v62 = vld [vmem:[#allocation25_spill] sm:$0xff]  ;;  %v10647_v48 = vld [vmem:[#allocation24_spill] sm:$0xff]  ;;  %v4509_v14 = vstv %s9229_s20  ;;  %v4194_v4 = vmul.f32 %v8715_v21, %v4193_v54  ;;  %v10653_v22 = vld [vmem:[#allocation39_spill] sm:$0xff]  ;;  %v3950_v16 = vmul.f32 %v9205_v43, %v3949_v58  ;;  %s9383_s17 = sld [smem:[#allocation2 + $0x184]] }
 0x5e4   : > { %v9232_v30 = vpop.permute.xlu1 %4126  ;;  %4474 = vrot.lane.b32.xlu2 %v4469_v3, %s6010_s14  ;;  %v3769_v40 = vadd.f32 %v10643_v62, %v3713_v45  ;;  %v3951_v3 = vmul.f32 %v9161_v37, %v3949_v58  ;;  %v3728_v31 = vadd.f32 %v10647_v48, %v3696_v60  ;;  %v3882_v45 = vadd.f32 %v10650_v34, %v3826_v42  ;;  %v10654_v5 = vld [vmem:[#allocation45_spill] sm:$0xff]  ;;  %s5728_s20 = sld [smem:[#allocation2 + $0x59]] }
 0x5e5   : > { %v4115_v9 = vpop.permute.xlu0 %4114  ;;  %v3910_v35 = vadd.f32 %v10644_v41, %v3854_v20  ;;  %v4090_v60 = vadd.f32 %v9130_v38, %v4034_v61  ;;  %v10656_v38 = vld [vmem:[#allocation57_spill] sm:$0xff]  ;;  %v4510_v41 = vmul.f32 %v9172_v53, %v4509_v14  ;;  %v4497_v42 = vmul.f32 %v9198_v25, %v4495_v29 }
 0x5e6   : > { %v4119_v7 = vadd.f32 %v4115_v9, %v4063_v49  ;;  %v4223_v50 = vpop.permute.xlu2 %4222  ;;  %v3825_v44 = vadd.f32 %v10646_v24, %v3769_v40  ;;  %v3784_v49 = vadd.f32 %v10651_v46, %v3728_v31  ;;  %v3755_v9 = vadd.f32 %v10652_v33, %v3707_v12  ;;  %v10659_v24 = vld [vmem:[#allocation47_spill] sm:$0xff]  ;;  %v10662_v34 = vld [vmem:[#allocation53_spill] sm:$0xff] }
 0x5e7   : > { %v3953_v2 = vadd.f32 %v3951_v3, %v3910_v35  ;;  %v10657_v35 = vld [vmem:[#allocation31_spill] sm:$0xff]  ;;  %v3962_v48 = vmul.f32 %v9205_v43, %v3961_v59  ;;  %v4511_v11 = vmul.f32 %v9198_v25, %v4509_v14  ;;  %v3945_v61 = vmul.f32 %v9161_v37, %v3943_v27 }
 0x5e8   : > { %v9247_v39 = vadd.f32 %v4171_v26, %v4119_v7  ;;  %v10649_v26 = vld [vmem:[#allocation30_spill] sm:$0xff]  ;;  %v3881_v20 = vadd.f32 %v10653_v22, %v3825_v44  ;;  %v3938_v3 = vadd.f32 %v10657_v35, %v3882_v45  ;;  %v4199_v14 = vstv %s9257_s7  ;;  %v10666_v35 = vld [vmem:[#allocation44_spill] sm:$0xff]  ;;  %s5729_s7 = sld [smem:[#allocation2 + $0xbd]] }
 0x5e9   : > { %v3797_v17 = vadd.f32 %v10649_v26, %v3741_v51  ;;  %v10655_v51 = vld [vmem:[#allocation41_spill] sm:$0xff]  ;;  %v3993_v40 = vadd.f32 %v10656_v38, %v3953_v2  ;;  %v10660_v26 = vld [vmem:[#allocation36_spill] sm:$0xff]  ;;  %v4523_v2 = vstv %s9263_s25  ;;  %v4537_v38 = vstv %s9284_s29  ;;  %s5730_s25 = sld [smem:[#allocation2 + $0x121]] }
 0x5ea   : > { %4488 = vrot.lane.b32.xlu1 %v4483_v57, %s6010_s14  ;;  %v3963_v57 = vmul.f32 %v9161_v37, %v3961_v59  ;;  %v3840_v62 = vadd.f32 %v10655_v51, %v3784_v49  ;;  %v3937_v44 = vadd.f32 %v10659_v24, %v3881_v20  ;;  %v3811_v58 = vadd.f32 %v10660_v26, %v3755_v9  ;;  %s5731_s29 = sld [smem:[#allocation2 + $0x185]] }
 0x5eb   : > { %4486 = vrot.lane.b32.xlu0 %v4482_v18, %s6010_s14  ;;  %v3853_v7 = vadd.f32 %v10654_v5, %v3797_v17  ;;  %v10661_v17 = vld [vmem:[#allocation42_spill] sm:$0xff]  ;;  %v4049_v45 = vadd.f32 %v10662_v34, %v3993_v40  ;;  %v10665_v40 = vld [vmem:[#allocation49_spill] sm:$0xff]  ;;  %v4539_v34 = vmul.f32 %v9198_v25, %v4537_v38 }
 0x5ec   : > { %v9267_v0 = vpop.permute.xlu1 %4142  ;;  %4500 = vrot.lane.b32.xlu2 %v4496_v63, %s6010_s14  ;;  %v10658_v63 = vld [vmem:[#allocation54_spill] sm:$0xff]  ;;  %v3896_v29 = vadd.f32 %v10661_v17, %v3840_v62  ;;  %v3965_v59 = vadd.f32 %v3963_v57, %v3938_v3  ;;  %v3964_v37 = vadd.f32 %v3962_v48, %v3937_v44  ;;  %v4525_v57 = vmul.f32 %v9198_v25, %v4523_v2 }
 0x5ed   : > { %v4141_v10 = vpop.permute.xlu0 %4140  ;;  %v3909_v12 = vadd.f32 %v10658_v63, %v3853_v7  ;;  %v4105_v27 = vadd.f32 %v9180_v19, %v4049_v45  ;;  %v4524_v62 = vmul.f32 %v9172_v53, %v4523_v2  ;;  %v3956_v3 = vmul.f32 %v9205_v43, %v3955_v8  ;;  %v5888_v43 = vld [vmem:[%s6140_s28 + $0x31] sm:$0xff]  ;;  %v5889_v2 = vld [vmem:[%s6140_s28 + $0x39] sm:$0xf] }
 0x5ee   : > { %v4146_v18 = vadd.f32 %v4141_v10, %v4090_v60  ;;  %v4239_v21 = vpop.permute.xlu2 %4238  ;;  %v4021_v9 = vadd.f32 %v8981_v6, %v3965_v59  ;;  %v3947_v20 = vadd.f32 %v3945_v61, %v3896_v29  ;;  %v4020_v5 = vadd.f32 %v8987_v52, %v3964_v37  ;;  %v10664_v10 = vld [vmem:[#allocation40_spill] sm:$0xff] }
 0x5ef   : > { %v3952_v49 = vadd.f32 %v3950_v16, %v3909_v12  ;;  %v4211_v12 = vstv %s9292_s19  ;;  %v4200_v45 = vmul.f32 %v5888_v43, %v4199_v14  ;;  %s5738_s19 = sld [smem:[#allocation2 + $0x5b]] }
 0x5f0   : > { %v4196_v31 = vadd.f32 %v4194_v4, %v4146_v18  ;;  %v4201_v4 = vmul.f32 %v8740_v1, %v4199_v14  ;;  %v4077_v1 = vadd.f32 %v9136_v55, %v4021_v9  ;;  %v3979_v18 = vadd.f32 %v10665_v40, %v3947_v20  ;;  %v10667_v55 = vld [vmem:[#allocation56_spill] sm:$0xff] }
 0x5f1   : > { %v3992_v51 = vadd.f32 %v10664_v10, %v3952_v49  ;;  %v4076_v16 = vadd.f32 %v10667_v55, %v4020_v5  ;;  %v4565_v14 = vstv %s9335_s30  ;;  %s5740_s30 = sld [smem:[#allocation2 + $0x123]] }
 0x5f2   : > { %v9297_v46 = vadd.f32 %v4223_v50, %v4196_v31  ;;  %4514 = vrot.lane.b32.xlu1 %v4510_v41, %s6010_s14  ;;  %v10663_v50 = vld [vmem:[#allocation48_spill] sm:$0xff]  ;;  %v4538_v41 = vmul.f32 %v9172_v53, %v4537_v38  ;;  %v4133_v44 = vadd.f32 %v9093_v47, %v4077_v1  ;;  %v4551_v31 = vstv %s9303_s26  ;;  %s9425_s26 = sld [smem:[#allocation2 + $0xbf]] }
 0x5f3   : > { %4502 = vrot.lane.b32.xlu0 %v4497_v42, %s6010_s14  ;;  %v3867_v33 = vadd.f32 %v10663_v50, %v3811_v58  ;;  %v4048_v63 = vadd.f32 %v9030_v56, %v3992_v51  ;;  %v4035_v42 = vadd.f32 %v9037_v13, %v3979_v18  ;;  %v4132_v56 = vadd.f32 %v9232_v30, %v4076_v16  ;;  %v10668_v58 = vld [vmem:[#allocation52_spill] sm:$0xff] }
 0x5f4   : > { %v9306_v60 = vpop.permute.xlu1 %4168  ;;  %4516 = vrot.lane.b32.xlu2 %v4511_v11, %s6010_s14  ;;  %v4212_v11 = vmul.f32 %v5888_v43, %v4211_v12  ;;  %v4552_v26 = vmul.f32 %v9172_v53, %v4551_v31  ;;  %v4553_v37 = vmul.f32 %v9198_v25, %v4551_v31  ;;  %v4567_v20 = vmul.f32 %v9198_v25, %v4565_v14 }
 0x5f5   : > { %v4157_v22 = vpop.permute.xlu0 %4156  ;;  %v3923_v52 = vadd.f32 %v10666_v35, %v3867_v33  ;;  %v4104_v48 = vadd.f32 %v9189_v36, %v4048_v63  ;;  %v4593_v38 = vstv %s9364_s5  ;;  %v4607_v16 = vstv %s5726_s16  ;;  %s9454_s5 = sld [smem:[#allocation2 + $0x5c]] }
 0x5f6   : > { %v4161_v7 = vadd.f32 %v4157_v22, %v4105_v27  ;;  %v4265_v19 = vpop.permute.xlu2 %4264  ;;  %v4594_v35 = vmul.f32 %v9172_v53, %v4593_v38  ;;  %v4595_v55 = vmul.f32 %v9198_v25, %v4593_v38  ;;  %s9459_s16 = sld [smem:[#allocation2 + $0x11d]] }
 0x5f7   : > { %v3958_v13 = vadd.f32 %v3956_v3, %v3923_v52  ;;  %v4160_v29 = vadd.f32 %v9141_v23, %v4104_v48 }
 0x5f8   : > { %v4203_v6 = vadd.f32 %v4201_v4, %v4161_v7  ;;  %v4566_v7 = vmul.f32 %v9172_v53, %v4565_v14 }
 0x5f9   : > { %v4006_v17 = vadd.f32 %v10668_v58, %v3958_v13  ;;  %v4202_v23 = vadd.f32 %v4200_v45, %v4160_v29  ;;  %v4649_v45 = vstv %s5729_s7  ;;  %s9481_s7 = sld [smem:[#allocation2 + $0x124]] }
 0x5fa   : > { %v9328_v24 = vadd.f32 %v4239_v21, %v4203_v6  ;;  %4530 = vrot.lane.b32.xlu1 %v4525_v57, %s6011_s24  ;;  %v4091_v21 = vadd.f32 %v9000_v15, %v4035_v42  ;;  %v4195_v15 = vmul.f32 %v5889_v2, %v4193_v54  ;;  %v4205_v54 = vstv %s9342_s3  ;;  %s9447_s3 = sld [smem:[#allocation2 + $0x55]] }
 0x5fb   : > { %4528 = vrot.lane.b32.xlu0 %v4524_v62, %s6011_s24  ;;  %v4062_v27 = vadd.f32 %v9088_v28, %v4006_v17  ;;  %v4207_v57 = vmul.f32 %v5889_v2, %v4205_v54  ;;  %v4206_v1 = vmul.f32 %v5888_v43, %v4205_v54  ;;  %v4608_v43 = vmul.f32 %v9172_v53, %v4607_v16 }
 0x5fc   : > { %v4185_v8 = vpop.permute.xlu1 %4184  ;;  %4542 = vrot.lane.b32.xlu2 %v4538_v41, %s6011_s24  ;;  %v4147_v49 = vadd.f32 %v9267_v0, %v4091_v21 }
 0x5fd   : > { %v9344_v47 = vadd.f32 %v4185_v8, %v4133_v44  ;;  %v4183_v36 = vpop.permute.xlu0 %4182  ;;  %v4118_v28 = vadd.f32 %v9042_v32, %v4062_v27  ;;  %v4209_v32 = vadd.f32 %v4207_v57, %v9247_v39  ;;  %v4213_v39 = vmul.f32 %v5889_v2, %v4211_v12  ;;  %v9433_v57 = vld [vmem:[%s6140_s28 + $0x3b] sm:$0xf] }
 0x5fe   : > { %v4188_v61 = vadd.f32 %v4183_v36, %v4132_v56  ;;  %v4281_v30 = vpop.permute.xlu2 %4280  ;;  %v4197_v50 = vadd.f32 %v4195_v15, %v4147_v49  ;;  %v4609_v8 = vmul.f32 %v9198_v25, %v4607_v16  ;;  %v4651_v15 = vmul.f32 %v9198_v25, %v4649_v45 }
 0x5ff   : > { %v4174_v10 = vadd.f32 %v9306_v60, %v4118_v28  ;;  %v4215_v44 = vadd.f32 %v4213_v39, %v9344_v47  ;;  %v4635_v47 = vstv %s5728_s20  ;;  %v4650_v27 = vmul.f32 %v9172_v53, %v4649_v45  ;;  %s9477_s20 = sld [smem:[#allocation2 + $0x181]] }
 0x600   : > { %v4214_v59 = vadd.f32 %v4212_v11, %v4188_v61  ;;  %v4621_v11 = vstv %s9383_s17  ;;  %s9464_s17 = sld [smem:[#allocation2 + $0xc0]] }
 0x601   : > { %v4208_v18 = vadd.f32 %v4206_v1, %v4174_v10  ;;  %v4622_v36 = vmul.f32 %v9172_v53, %v4621_v11  ;;  %v4623_v17 = vmul.f32 %v9198_v25, %v4621_v11 }
 0x602   : > { %v9359_v4 = vadd.f32 %v4265_v19, %v4214_v59  ;;  %4556 = vrot.lane.b32.xlu1 %v4552_v26, %s6011_s24  ;;  %v4579_v19 = vstv %s9351_s23  ;;  %s5741_s23 = sld [smem:[#allocation2 + $0x187]] }
 0x603   : > { %4544 = vrot.lane.b32.xlu0 %v4539_v34, %s6011_s24  ;;  %v4580_v62 = vmul.f32 %v9172_v53, %v4579_v19  ;;  %v4581_v3 = vmul.f32 %v9198_v25, %v4579_v19  ;;  %v4637_v34 = vmul.f32 %v9198_v25, %v4635_v47  ;;  %v4717_v19 = vstv %s5738_s19  ;;  %s9501_s19 = sld [smem:[#allocation2 + $0x5d]] }
 0x604   : > { %v4237_v0 = vpop.permute.xlu1 %4236  ;;  %4558 = vrot.lane.b32.xlu2 %v4553_v37, %s6011_s24  ;;  %v4719_v38 = vmul.f32 %v9433_v57, %v4717_v19 }
 0x605   : > { %v4242_v33 = vadd.f32 %v4237_v0, %v4202_v23  ;;  %v4225_v9 = vpop.permute.xlu0 %4224  ;;  %v4663_v23 = vstv %s5730_s25  ;;  %s9485_s25 = sld [smem:[#allocation2 + $0xb9]] }
 0x606   : > { %v4229_v22 = vadd.f32 %v4225_v9, %v4197_v50  ;;  %v4307_v5 = vpop.permute.xlu2 %4306  ;;  %v4664_v0 = vmul.f32 %v9172_v53, %v4663_v23  ;;  %v4677_v50 = vstv %s5731_s29  ;;  %s9491_s29 = sld [smem:[#allocation2 + $0x188]] }
 0x607   : > { %v4678_v28 = vmul.f32 %v9172_v53, %v4677_v50 }
 0x608   : > { %v9373_v51 = vadd.f32 %v4281_v30, %v4229_v22  ;;  %v4636_v30 = vmul.f32 %v9172_v53, %v4635_v47 }
 0x60a   : > { %4572 = vrot.lane.b32.xlu1 %v4567_v20, %s6011_s24  ;;  %v4665_v20 = vmul.f32 %v9198_v25, %v4663_v23 }
 0x60b   : > { %4570 = vrot.lane.b32.xlu0 %v4566_v7, %s6011_s24  ;;  %v4679_v7 = vmul.f32 %v9198_v25, %v4677_v50  ;;  %v4461_v50 = vstv %s9477_s20  ;;  %s9562_s20 = sld [smem:[#allocation2 + $0x60]] }
 0x60c   : > { %v4253_v40 = vpop.permute.xlu1 %4252  ;;  %4584 = vrot.lane.b32.xlu2 %v4580_v62, %s6012_s27 }
 0x60d   : > { %v4257_v6 = vadd.f32 %v4253_v40, %v4209_v32  ;;  %v4251_v60 = vpop.permute.xlu0 %4250 }
 0x60e   : > { %v4256_v41 = vadd.f32 %v4251_v60, %v4208_v18  ;;  %v4323_v52 = vpop.permute.xlu2 %4322 }
 0x610   : > { %v9385_v63 = vadd.f32 %v4307_v5, %v4256_v41 }
 0x612   : > { %4598 = vrot.lane.b32.xlu1 %v4594_v35, %s6012_s27  ;;  %v4745_v35 = vstv %s5740_s30  ;;  %s9522_s30 = sld [smem:[#allocation2 + $0x125]] }
 0x613   : > { %4586 = vrot.lane.b32.xlu0 %v4581_v3, %s6012_s27 }
 0x614   : > { %v4279_v42 = vpop.permute.xlu1 %4278  ;;  %4600 = vrot.lane.b32.xlu2 %v4595_v55, %s6012_s27 }
 0x615   : > { %v4284_v48 = vadd.f32 %v4279_v42, %v9297_v46  ;;  %v4267_v31 = vpop.permute.xlu0 %4266 }
 0x616   : > { %v4271_v56 = vadd.f32 %v4267_v31, %v4215_v44  ;;  %v4349_v12 = vpop.permute.xlu2 %4348  ;;  %v4443_v31 = vstv %s9447_s3  ;;  %s5749_s3 = sld [smem:[#allocation2 + $0x189]] }
 0x618   : > { %v9398_v13 = vadd.f32 %v4323_v52, %v4271_v56  ;;  %v4759_v56 = vstv %s5741_s23  ;;  %s5750_s23 = sld [smem:[#allocation2 + $0x5e]] }
 0x61a   : > { %4614 = vrot.lane.b32.xlu1 %v4609_v8, %s6012_s27 }
 0x61b   : > { %4612 = vrot.lane.b32.xlu0 %v4608_v43, %s6012_s27 }
 0x61c   : > { %v4295_v21 = vpop.permute.xlu1 %4294  ;;  %4626 = vrot.lane.b32.xlu2 %v4622_v36, %s6012_s27  ;;  %v4761_v36 = vmul.f32 %v9433_v57, %v4759_v56 }
 0x61d   : > { %v4299_v46 = vadd.f32 %v4295_v21, %v9328_v24  ;;  %v4293_v61 = vpop.permute.xlu0 %4292 }
 0x61e   : > { %v4298_v26 = vadd.f32 %v4293_v61, %v4242_v33  ;;  %v4365_v58 = vpop.permute.xlu2 %4364 }
 0x620   : > { %v9407_v29 = vadd.f32 %v4349_v12, %v4298_v26  ;;  %v4445_v12 = vmul.f32 %v9198_v25, %v4443_v31 }
 0x622   : > { %4640 = vrot.lane.b32.xlu1 %v4636_v30, %s6013_s8  ;;  %v4455_v30 = vstv %s9459_s16  ;;  %s5752_s16 = sld [smem:[#allocation2 + $0x126]] }
 0x623   : > { %4628 = vrot.lane.b32.xlu0 %v4623_v17, %s6012_s27  ;;  %v4787_v17 = vstv %s9464_s17  ;;  %s5753_s17 = sld [smem:[#allocation2 + $0x18a]] }
 0x624   : > { %v4321_v49 = vpop.permute.xlu1 %4320  ;;  %4642 = vrot.lane.b32.xlu2 %v4637_v34, %s6013_s8  ;;  %v4456_v34 = vmul.f32 %v9172_v53, %v4455_v30  ;;  %v4789_v23 = vmul.f32 %v9433_v57, %v4787_v17 }
 0x625   : > { %v4326_v24 = vadd.f32 %v4321_v49, %v9359_v4  ;;  %v4309_v59 = vpop.permute.xlu0 %4308 }
 0x626   : > { %v4313_v2 = vadd.f32 %v4309_v59, %v4257_v6  ;;  %v4391_v37 = vpop.permute.xlu2 %4390  ;;  %v4731_v6 = vstv %s9425_s26  ;;  %s5747_s26 = sld [smem:[#allocation2 + $0xc1]] }
 0x627   : > { %v4733_v42 = vmul.f32 %v9433_v57, %v4731_v6 }
 0x628   : > { %v9416_v14 = vadd.f32 %v4365_v58, %v4313_v2 }
 0x62a   : > { %4656 = vrot.lane.b32.xlu1 %v4651_v15, %s6013_s8 }
 0x62b   : > { %4654 = vrot.lane.b32.xlu0 %v4650_v27, %s6013_s8 }
 0x62c   : > { %v4337_v4 = vpop.permute.xlu1 %4336  ;;  %4668 = vrot.lane.b32.xlu2 %v4664_v0, %s6013_s8 }
 0x62d   : > { %v4341_v54 = vadd.f32 %v4337_v4, %v9373_v51  ;;  %v4335_v33 = vpop.permute.xlu0 %4334  ;;  %v9436_v51 = vld [vmem:[%s6140_s28 + $0x33] sm:$0xff]  ;;  %v4801_v4 = vstv %s9481_s7  ;;  %s5761_s7 = sld [smem:[#allocation2 + $0xc4]] }
 0x62e   : > { %v4340_v9 = vadd.f32 %v4335_v33, %v4284_v48  ;;  %v4407_v22 = vpop.permute.xlu2 %4406  ;;  %v4718_v18 = vmul.f32 %v9436_v51, %v4717_v19  ;;  %v4732_v41 = vmul.f32 %v9436_v51, %v4731_v6  ;;  %v4746_v55 = vmul.f32 %v9436_v51, %v4745_v35 }
 0x62f   : > { %v4747_v48 = vmul.f32 %v9433_v57, %v4745_v35  ;;  %v4760_v21 = vmul.f32 %v9436_v51, %v4759_v56  ;;  %v4788_v59 = vmul.f32 %v9436_v51, %v4787_v17  ;;  %v4463_v33 = vmul.f32 %v9198_v25, %v4461_v50 }
 0x630   : > { %v9427_v5 = vadd.f32 %v4391_v37, %v4340_v9  ;;  %v4444_v37 = vmul.f32 %v9172_v53, %v4443_v31  ;;  %v4449_v9 = vstv %s9485_s25  ;;  %v4829_v6 = vstv %s9501_s19  ;;  %s5762_s25 = sld [smem:[#allocation2 + $0x128]] }
 0x631   : > { %v4831_v31 = vmul.f32 %v9433_v57, %v4829_v6  ;;  %s5764_s19 = sld [smem:[#allocation2 + $0x61]] }
 0x632   : > { %4682 = vrot.lane.b32.xlu1 %v4678_v28, %s6013_s8 }
 0x633   : > { %4670 = vrot.lane.b32.xlu0 %v4665_v20, %s6013_s8 }
 0x634   : > { %v4363_v10 = vpop.permute.xlu1 %4362  ;;  %4684 = vrot.lane.b32.xlu2 %v4679_v7, %s6013_s8  ;;  %v4803_v7 = vmul.f32 %v9433_v57, %v4801_v4 }
 0x635   : > { %v4368_v1 = vadd.f32 %v4363_v10, %v9385_v63  ;;  %v4351_v62 = vpop.permute.xlu0 %4350  ;;  %v4802_v10 = vmul.f32 %v9436_v51, %v4801_v4 }
 0x636   : > { %v4355_v32 = vadd.f32 %v4351_v62, %v4299_v46  ;;  %v4433_v40 = vpop.permute.xlu2 %4432  ;;  %v4773_v46 = vstv %s9454_s5  ;;  %s5751_s5 = sld [smem:[#allocation2 + $0xc2]] }
 0x637   : > { %v4774_v26 = vmul.f32 %v9436_v51, %v4773_v46  ;;  %v4775_v15 = vmul.f32 %v9433_v57, %v4773_v46 }
 0x638   : > { %v9443_v60 = vadd.f32 %v4407_v22, %v4355_v32  ;;  %v4450_v32 = vmul.f32 %v9172_v53, %v4449_v9 }
 0x63a   : > { %4724 = vrot.lane.b32.xlu1 %v4719_v38, %s6010_s14 }
 0x63b   : > { %4722 = vrot.lane.b32.xlu0 %v4718_v18, %s6010_s14 }
 0x63c   : > { %v4379_v52 = vpop.permute.xlu1 %4378  ;;  %4736 = vrot.lane.b32.xlu2 %v4732_v41, %s6010_s14  ;;  %v4899_v4 = vstv %s5751_s5  ;;  %s9624_s5 = sld [smem:[#allocation2 + $0x18d]] }
 0x63d   : > { %v4383_v3 = vadd.f32 %v4379_v52, %v9398_v13  ;;  %v4377_v63 = vpop.permute.xlu0 %4376 }
 0x63e   : > { %v4382_v39 = vadd.f32 %v4377_v63, %v4326_v24  ;;  %v4475_v16 = vpop.permute.xlu2 %4474 }
 0x640   : > { %v9456_v44 = vadd.f32 %v4433_v40, %v4382_v39  ;;  %v4830_v39 = vmul.f32 %v9436_v51, %v4829_v6 }
 0x642   : > { %4750 = vrot.lane.b32.xlu1 %v4746_v55, %s6010_s14 }
 0x643   : > { %4738 = vrot.lane.b32.xlu0 %v4733_v42, %s6010_s14  ;;  %v4462_v42 = vmul.f32 %v9172_v53, %v4461_v50 }
 0x644   : > { %v4405_v8 = vpop.permute.xlu1 %4404  ;;  %4752 = vrot.lane.b32.xlu2 %v4747_v48, %s6010_s14 }
 0x645   : > { %v4410_v43 = vadd.f32 %v4405_v8, %v9407_v29  ;;  %v4393_v11 = vpop.permute.xlu0 %4392  ;;  %v4464_v56 = vadd.f32 %v4462_v42, %v9456_v44  ;;  %v4843_v8 = vstv %s5747_s26  ;;  %v4871_v44 = vstv %s5749_s3  ;;  %v9583_v42 = vld [vmem:[%s6140_s28 + $0x3c] sm:$0xf]  ;;  %s9608_s26 = sld [smem:[#allocation2 + $0x122]] }
 0x646   : > { %v4397_v13 = vadd.f32 %v4393_v11, %v4341_v54  ;;  %v4501_v47 = vpop.permute.xlu2 %4500  ;;  %s5734_s3 = sld [smem:[#allocation2 + $0x5a]] }
 0x647   : > { %v4452_v35 = vadd.f32 %v4450_v32, %v4410_v43 }
 0x648   : > { %v4447_v61 = vadd.f32 %v4445_v12, %v4397_v13 }
 0x64a   : > { %v9474_v58 = vadd.f32 %v4475_v16, %v4447_v61  ;;  %4766 = vrot.lane.b32.xlu1 %v4761_v36, %s6010_s14 }
 0x64b   : > { %4764 = vrot.lane.b32.xlu0 %v4760_v21, %s6010_s14  ;;  %v4857_v21 = vstv %s9522_s30  ;;  %s5765_s30 = sld [smem:[#allocation2 + $0xc5]] }
 0x64c   : > { %v4421_v29 = vpop.permute.xlu1 %4420  ;;  %4778 = vrot.lane.b32.xlu2 %v4774_v26, %s6011_s24  ;;  %v4858_v61 = vmul.f32 %v9436_v51, %v4857_v21 }
 0x64d   : > { %v4425_v45 = vadd.f32 %v4421_v29, %v9416_v14  ;;  %v4419_v49 = vpop.permute.xlu0 %4418  ;;  %v4446_v14 = vadd.f32 %v4444_v37, %v9427_v5  ;;  %v4451_v5 = vmul.f32 %v9198_v25, %v4449_v9  ;;  %v4913_v9 = vstv %s5752_s16  ;;  %s5737_s16 = sld [smem:[#allocation2 + $0x186]] }
 0x64e   : > { %v4424_v24 = vadd.f32 %v4419_v49, %v4368_v1  ;;  %v4517_v2 = vpop.permute.xlu2 %4516  ;;  %v4815_v1 = vstv %s9491_s29  ;;  %v4859_v49 = vmul.f32 %v9433_v57, %v4857_v21  ;;  %s9589_s29 = sld [smem:[#allocation2 + $0x18c]] }
 0x64f   : > { %v4816_v38 = vmul.f32 %v9436_v51, %v4815_v1  ;;  %v4453_v18 = vadd.f32 %v4451_v5, %v9443_v60  ;;  %v4817_v16 = vmul.f32 %v9433_v57, %v4815_v1  ;;  %v4457_v60 = vmul.f32 %v9198_v25, %v4455_v30 }
 0x650   : > { %v4458_v27 = vadd.f32 %v4456_v34, %v4424_v24  ;;  %v4845_v25 = vmul.f32 %v9433_v57, %v4843_v8  ;;  %v4872_v34 = vmul.f32 %v9436_v51, %v4871_v44  ;;  %v4915_v1 = vmul.f32 %v9433_v57, %v4913_v9 }
 0x651   : > { %v4459_v43 = vadd.f32 %v4457_v60, %v4425_v45 }
 0x652   : > { %v9494_v0 = vadd.f32 %v4501_v47, %v4458_v27  ;;  %4792 = vrot.lane.b32.xlu1 %v4788_v59, %s6011_s24  ;;  %v4844_v47 = vmul.f32 %v9436_v51, %v4843_v8  ;;  %v4873_v59 = vmul.f32 %v9433_v57, %v4871_v44 }
 0x653   : > { %4780 = vrot.lane.b32.xlu0 %v4775_v15, %s6011_s24 }
 0x654   : > { %v4473_v54 = vpop.permute.xlu1 %4472  ;;  %4794 = vrot.lane.b32.xlu2 %v4789_v23, %s6011_s24  ;;  %v5009_v44 = vstv %s9589_s29  ;;  %s5774_s29 = sld [smem:[#allocation2 + $0x12b]] }
 0x655   : > { %v4478_v28 = vadd.f32 %v4473_v54, %v4446_v14  ;;  %v4435_v22 = vpop.permute.xlu0 %4434 }
 0x656   : > { %v4439_v20 = vadd.f32 %v4435_v22, %v4383_v3  ;;  %v4543_v19 = vpop.permute.xlu2 %4542 }
 0x658   : > { %v4465_v62 = vadd.f32 %v4463_v33, %v4439_v20  ;;  %v4900_v33 = vmul.f32 %v9436_v51, %v4899_v4 }
 0x65a   : > { %v9512_v40 = vadd.f32 %v4517_v2, %v4465_v62  ;;  %4808 = vrot.lane.b32.xlu1 %v4803_v7, %s6011_s24  ;;  %v4885_v2 = vstv %s5750_s23  ;;  %v4914_v7 = vmul.f32 %v9436_v51, %v4913_v9  ;;  %v4927_v62 = vstv %s5753_s17  ;;  %s9616_s23 = sld [smem:[#allocation2 + $0x129]] }
 0x65b   : > { %4806 = vrot.lane.b32.xlu0 %v4802_v10, %s6011_s24  ;;  %v4887_v23 = vmul.f32 %v9433_v57, %v4885_v2  ;;  %v4886_v50 = vmul.f32 %v9436_v51, %v4885_v2  ;;  %v4901_v10 = vmul.f32 %v9433_v57, %v4899_v4  ;;  %v4929_v6 = vmul.f32 %v9433_v57, %v4927_v62  ;;  %s9645_s17 = sld [smem:[#allocation2 + $0xc6]] }
 0x65c   : > { %v4489_v41 = vpop.permute.xlu1 %4488  ;;  %4820 = vrot.lane.b32.xlu2 %v4816_v38, %s6011_s24 }
 0x65d   : > { %v4493_v52 = vadd.f32 %v4489_v41, %v4453_v18  ;;  %v4487_v3 = vpop.permute.xlu0 %4486 }
 0x65e   : > { %v4492_v63 = vadd.f32 %v4487_v3, %v4452_v35  ;;  %v4559_v55 = vpop.permute.xlu2 %4558  ;;  %v4928_v35 = vmul.f32 %v9436_v51, %v4927_v62  ;;  %v4967_v3 = vstv %s9562_s20  ;;  %s9654_s20 = sld [smem:[#allocation2 + $0x12a]] }
 0x660   : > { %v9524_v48 = vadd.f32 %v4543_v19, %v4492_v63 }
 0x662   : > { %4834 = vrot.lane.b32.xlu1 %v4830_v39, %s6012_s27 }
 0x663   : > { %4822 = vrot.lane.b32.xlu0 %v4817_v16, %s6011_s24 }
 0x664   : > { %v4515_v12 = vpop.permute.xlu1 %4514  ;;  %4836 = vrot.lane.b32.xlu2 %v4831_v31, %s6012_s27 }
 0x665   : > { %v4520_v53 = vadd.f32 %v4515_v12, %v4464_v56  ;;  %v4503_v11 = vpop.permute.xlu0 %4502  ;;  %v4969_v12 = vmul.f32 %v9583_v42, %v4967_v3 }
 0x666   : > { %v4507_v13 = vadd.f32 %v4503_v11, %v4459_v43  ;;  %v4585_v36 = vpop.permute.xlu2 %4584  ;;  %v4995_v11 = vstv %s5762_s25  ;;  %s5773_s25 = sld [smem:[#allocation2 + $0xc7]] }
 0x667   : > { %v4997_v21 = vmul.f32 %v9583_v42, %v4995_v11 }
 0x668   : > { %v9535_v46 = vadd.f32 %v4559_v55, %v4507_v13  ;;  %v4981_v55 = vstv %s5761_s7  ;;  %s5772_s7 = sld [smem:[#allocation2 + $0x63]] }
 0x66a   : > { %4850 = vrot.lane.b32.xlu1 %v4845_v25, %s6012_s27 }
 0x66b   : > { %4848 = vrot.lane.b32.xlu0 %v4844_v47, %s6012_s27 }
 0x66c   : > { %v4531_v26 = vpop.permute.xlu1 %4530  ;;  %4862 = vrot.lane.b32.xlu2 %v4858_v61, %s6012_s27 }
 0x66d   : > { %v4535_v30 = vadd.f32 %v4531_v26, %v9474_v58  ;;  %v4529_v17 = vpop.permute.xlu0 %4528 }
 0x66e   : > { %v4534_v29 = vadd.f32 %v4529_v17, %v4478_v28  ;;  %v4601_v45 = vpop.permute.xlu2 %4600 }
 0x670   : > { %v9544_v24 = vadd.f32 %v4585_v36, %v4534_v29  ;;  %v5023_v29 = vstv %s5764_s19  ;;  %s9728_s19 = sld [smem:[#allocation2 + $0x18b]] }
 0x672   : > { %4876 = vrot.lane.b32.xlu1 %v4872_v34, %s6012_s27 }
 0x673   : > { %4864 = vrot.lane.b32.xlu0 %v4859_v49, %s6012_s27 }
 0x674   : > { %v4557_v15 = vpop.permute.xlu1 %4556  ;;  %4878 = vrot.lane.b32.xlu2 %v4873_v59, %s6012_s27 }
 0x675   : > { %v4562_v58 = vadd.f32 %v4557_v15, %v9494_v0  ;;  %v4545_v37 = vpop.permute.xlu0 %4544 }
 0x676   : > { %v4549_v27 = vadd.f32 %v4545_v37, %v4493_v52  ;;  %v4627_v14 = vpop.permute.xlu2 %4626  ;;  %v9574_v52 = vld [vmem:[%s6140_s28 + $0x34] sm:$0xff]  ;;  %s9594_s28 = sld [smem:[#allocation2 + $0xbe]] }
 0x677   : > { %v4968_v39 = vmul.f32 %v9574_v52, %v4967_v3  ;;  %v4982_v56 = vmul.f32 %v9574_v52, %v4981_v55  ;;  %v4996_v61 = vmul.f32 %v9574_v52, %v4995_v11  ;;  %v5024_v2 = vmul.f32 %v9574_v52, %v5023_v29 }
 0x678   : > { %v9553_v54 = vadd.f32 %v4601_v45, %v4549_v27  ;;  %v5025_v27 = vmul.f32 %v9583_v42, %v5023_v29  ;;  %v4711_v11 = vstv %s5737_s16 }
 0x67a   : > { %4892 = vrot.lane.b32.xlu1 %v4887_v23, %s6013_s8 }
 0x67b   : > { %4890 = vrot.lane.b32.xlu0 %v4886_v50, %s6013_s8  ;;  %v5037_v50 = vstv %s5765_s30  ;;  %s5758_s30 = sld [smem:[#allocation2 + $0x127]] }
 0x67c   : > { %v4573_v28 = vpop.permute.xlu1 %4572  ;;  %4904 = vrot.lane.b32.xlu2 %v4900_v33, %s6013_s8  ;;  %v4699_v17 = vstv %s9594_s28  ;;  %v4693_v33 = vstv %s5734_s3  ;;  %s5775_s28 = sld [smem:[#allocation2 + $0x18f]]  ;;  %s9760_s3 = scalar_lea.vmem [#allocation7], %s5345_s6 }
 0x67d   : > { %v4577_v0 = vadd.f32 %v4573_v28, %v9512_v40  ;;  %v4571_v22 = vpop.permute.xlu0 %4570  ;;  %v4700_v45 = vmul.f32 %v9436_v51, %v4699_v17  ;;  %v4694_v62 = vmul.f32 %v9436_v51, %v4693_v33  ;;  %s5788_s6 = sshll.u32 %s6054_s13, 6  ;;  %s5248_s16 = sshll.u32 %s9760_s3, 4  ;;  %s5249_s16 = int_to_ptr.vmem [resolvable:$true] %s5248_s16 }
 0x67e   : > { %v4576_v20 = vadd.f32 %v4571_v22, %v4520_v53  ;;  %v4643_v19 = vpop.permute.xlu2 %4642  ;;  %v4983_v53 = vmul.f32 %v9583_v42, %v4981_v55  ;;  %v5039_v22 = vmul.f32 %v9583_v42, %v5037_v50 }
 0x680   : > { %v9564_v5 = vadd.f32 %v4627_v14, %v4576_v20  ;;  %v4705_v14 = vstv %s9608_s26  ;;  %s6014_s26 = smov 2  }
 0x682   : > { %4918 = vrot.lane.b32.xlu1 %v4914_v7, %s6013_s8  ;;  %v5038_v7 = vmul.f32 %v9574_v52, %v5037_v50 }
 0x683   : > { %4906 = vrot.lane.b32.xlu0 %v4901_v10, %s6013_s8  ;;  %v5051_v10 = vstv %s9616_s23 }
 0x684   : > { %v4599_v32 = vpop.permute.xlu1 %4598  ;;  %4920 = vrot.lane.b32.xlu2 %v4915_v1, %s6013_s8 }
 0x685   : > { %v4604_v38 = vadd.f32 %v4599_v32, %v9524_v48  ;;  %v4587_v40 = vpop.permute.xlu0 %4586  ;;  %v5052_v32 = vmul.f32 %v9574_v52, %v5051_v10 }
 0x686   : > { %v4591_v18 = vadd.f32 %v4587_v40, %v4535_v30  ;;  %v4669_v41 = vpop.permute.xlu2 %4668  ;;  %v5010_v30 = vmul.f32 %v9574_v52, %v5009_v44  ;;  %v5065_v40 = vstv %s9624_s5 }
 0x688   : > { %v9577_v63 = vadd.f32 %v4643_v19, %v4591_v18  ;;  %v4695_v19 = vmul.f32 %v9433_v57, %v4693_v33 }
 0x68a   : > { %4934 = vrot.lane.b32.xlu1 %v4929_v6, %s6013_s8 }
 0x68b   : > { %4932 = vrot.lane.b32.xlu0 %v4928_v35, %s6013_s8 }
 0x68c   : > { %v4615_v16 = vpop.permute.xlu1 %4614  ;;  %4972 = vrot.lane.b32.xlu2 %v4968_v39, %s6010_s14  ;;  %v5066_v39 = vmul.f32 %v9574_v52, %v5065_v40 }
 0x68d   : > { %v4619_v48 = vadd.f32 %v4615_v16, %v9535_v46  ;;  %v4613_v60 = vpop.permute.xlu0 %4612  ;;  %v5053_v16 = vmul.f32 %v9583_v42, %v5051_v10 }
 0x68e   : > { %v4618_v31 = vadd.f32 %v4613_v60, %v4562_v58  ;;  %v4685_v8 = vpop.permute.xlu2 %4684  ;;  %v5011_v58 = vmul.f32 %v9583_v42, %v5009_v44  ;;  %v4701_v60 = vmul.f32 %v9433_v57, %v4699_v17 }
 0x690   : > { %v9591_v43 = vadd.f32 %v4669_v41, %v4618_v31  ;;  %v5067_v31 = vmul.f32 %v9583_v42, %v5065_v40 }
 0x692   : > { %4986 = vrot.lane.b32.xlu1 %v4982_v56, %s6010_s14 }
 0x693   : > { %4974 = vrot.lane.b32.xlu0 %v4969_v12, %s6010_s14 }
 0x694   : > { %v4641_v13 = vpop.permute.xlu1 %4640  ;;  %4988 = vrot.lane.b32.xlu2 %v4983_v53, %s6010_s14 }
 0x695   : > { %v4646_v25 = vadd.f32 %v4641_v13, %v9544_v24  ;;  %v4629_v36 = vpop.permute.xlu0 %4628 }
 0x696   : > { %v4633_v47 = vadd.f32 %v4629_v36, %v4577_v0  ;;  %v4737_v46 = vpop.permute.xlu2 %4736 }
 0x697   : > { %v4696_v6 = vadd.f32 %v4694_v62, %v4646_v25 }
 0x698   : > { %v9603_v26 = vadd.f32 %v4685_v8, %v4633_v47 }
 0x69a   : > { %5002 = vrot.lane.b32.xlu1 %v4997_v21, %s6010_s14 }
 0x69b   : > { %5000 = vrot.lane.b32.xlu0 %v4996_v61, %s6010_s14  ;;  %v4713_v61 = vmul.f32 %v9433_v57, %v4711_v11 }
 0x69c   : > { %v4657_v34 = vpop.permute.xlu1 %4656  ;;  %5014 = vrot.lane.b32.xlu2 %v5010_v30, %s6010_s14  ;;  %v4712_v30 = vmul.f32 %v9436_v51, %v4711_v11 }
 0x69d   : > { %v4661_v49 = vadd.f32 %v4657_v34, %v9553_v54  ;;  %v4655_v24 = vpop.permute.xlu0 %4654  ;;  %v4707_v54 = vmul.f32 %v9433_v57, %v4705_v14  ;;  %v4715_v29 = vadd.f32 %v4713_v61, %v9603_v26  ;;  %v5107_v34 = vstv %s9654_s20  ;;  %s5236_s20 = scalar_lea.sflag [#allocation4], %s6134_s4 }
 0x69e   : > { %v4660_v59 = vadd.f32 %v4655_v24, %v4604_v38  ;;  %v4753_v15 = vpop.permute.xlu2 %4752 }
 0x69f   : > { %v4703_v53 = vadd.f32 %v4701_v60, %v4661_v49 }
 0x6a0   : > { %v4702_v37 = vadd.f32 %v4700_v45, %v4660_v59 }
 0x6a2   : > { %v9619_v23 = vadd.f32 %v4737_v46, %v4702_v37  ;;  %5028 = vrot.lane.b32.xlu1 %v5024_v2, %s6011_s24  ;;  %v5108_v2 = vmul.f32 %v9574_v52, %v5107_v34  ;;  %v5109_v37 = vmul.f32 %v9583_v42, %v5107_v34 }
 0x6a3   : > { %5016 = vrot.lane.b32.xlu0 %v5011_v58, %s6010_s14  ;;  %s5768_s14 = sld [smem:[#allocation2 + $0x62]] }
 0x6a4   : > { %v4683_v4 = vpop.permute.xlu1 %4682  ;;  %5030 = vrot.lane.b32.xlu2 %v5025_v27, %s6011_s24 }
 0x6a5   : > { %v4688_v9 = vadd.f32 %v4683_v4, %v9564_v5  ;;  %v4671_v28 = vpop.permute.xlu0 %4670  ;;  %v4697_v5 = vadd.f32 %v4695_v19, %v9577_v63 }
 0x6a6   : > { %v4675_v0 = vadd.f32 %v4671_v28, %v4619_v48  ;;  %v4779_v20 = vpop.permute.xlu2 %4778  ;;  %v4706_v48 = vmul.f32 %v9436_v51, %v4705_v14  ;;  %v5135_v28 = vstv %s5772_s7 }
 0x6a7   : > { %v4714_v49 = vadd.f32 %v4712_v30, %v4688_v9 }
 0x6a8   : > { %v4709_v1 = vadd.f32 %v4707_v54, %v4675_v0  ;;  %v4708_v56 = vadd.f32 %v4706_v48, %v9591_v43  ;;  %v5093_v43 = vstv %s9645_s17 }
 0x6a9   : > { %v5079_v8 = vstv %s5768_s14  ;;  %v5094_v17 = vmul.f32 %v9574_v52, %v5093_v43  ;;  %s5247_s14 = scalar_lea.hbm %s9818_s2, %s5788_s6 }
 0x6aa   : > { %v9635_v38 = vadd.f32 %v4753_v15, %v4709_v1  ;;  %5044 = vrot.lane.b32.xlu1 %v5039_v22, %s6011_s24  ;;  %v5081_v47 = vmul.f32 %v9583_v42, %v5079_v8  ;;  %v5080_v46 = vmul.f32 %v9574_v52, %v5079_v8  ;;  %v5095_v15 = vmul.f32 %v9583_v42, %v5093_v43  ;;  %s5250_s17 = sshll.u32 %s5247_s14, 4  ;;  %s5251_s17 = int_to_ptr.hbm [resolvable:$true] %s5250_s17 }
 0x6ab   : > { %5042 = vrot.lane.b32.xlu0 %v5038_v7, %s6011_s24  ;;  %v5136_v22 = vmul.f32 %v9574_v52, %v5135_v28 }
 0x6ac   : > { %v4725_v18 = vpop.permute.xlu1 %4724  ;;  %5056 = vrot.lane.b32.xlu2 %v5052_v32, %s6011_s24  ;;  %v5137_v32 = vmul.f32 %v9583_v42, %v5135_v28 }
 0x6ad   : > { %v4729_v41 = vadd.f32 %v4725_v18, %v4697_v5  ;;  %v4723_v35 = vpop.permute.xlu0 %4722  ;;  %v5163_v18 = vstv %s5774_s29  ;;  %s5955_s29 = scalar_lea.hbm %s9818_s2, 128 }
 0x6ae   : > { %v4728_v3 = vadd.f32 %v4723_v35, %v4696_v6  ;;  %v4795_v55 = vpop.permute.xlu2 %4794 }
 0x6b0   : > { %v9647_v63 = vadd.f32 %v4779_v20, %v4728_v3  ;;  %v5149_v20 = vstv %s5773_s25  ;;  %v5165_v3 = vmul.f32 %v9583_v42, %v5163_v18 }
 0x6b1   : > { %v5150_v1 = vmul.f32 %v9574_v52, %v5149_v20  ;;  %v5151_v40 = vmul.f32 %v9583_v42, %v5149_v20 }
 0x6b2   : > { %5070 = vrot.lane.b32.xlu1 %v5066_v39, %s6011_s24 }
 0x6b3   : > { %5058 = vrot.lane.b32.xlu0 %v5053_v16, %s6011_s24  ;;  %v5177_v16 = vstv %s5775_s28 }
 0x6b4   : > { %v4751_v12 = vpop.permute.xlu1 %4750  ;;  %5072 = vrot.lane.b32.xlu2 %v5067_v31, %s6011_s24  ;;  %s5771_s24 = sld [smem:[#allocation2 + $0x18e]]  ;;  %v5178_v60 = vmul.f32 %v9574_v52, %v5177_v16 }
 0x6b5   : > { %v4756_v13 = vadd.f32 %v4751_v12, %v4708_v56  ;;  %v4739_v25 = vpop.permute.xlu0 %4738 }
 0x6b6   : > { %v4743_v36 = vadd.f32 %v4739_v25, %v4703_v53  ;;  %v4821_v21 = vpop.permute.xlu2 %4820  ;;  %v5179_v53 = vmul.f32 %v9583_v42, %v5177_v16 }
 0x6b8   : > { %v9661_v44 = vadd.f32 %v4795_v55, %v4743_v36  ;;  %v5164_v55 = vmul.f32 %v9574_v52, %v5163_v18 }
 0x6ba   : > { %5086 = vrot.lane.b32.xlu1 %v5081_v47, %s6012_s27  ;;  %v5121_v26 = vstv %s5771_s24  ;;  %s5949_s24 = sshra.s32 %s5251_s17, 4  ;;  %s5950_s24 = int_to_ptr.hbm [resolvable:$true] %s5949_s24 }
 0x6bb   : > { %5084 = vrot.lane.b32.xlu0 %v5080_v46, %s6012_s27  ;;  %v5123_v54 = vmul.f32 %v9583_v42, %v5121_v26  ;;  %v5122_v9 = vmul.f32 %v9574_v52, %v5121_v26  ;;  %s5951_s7 = scalar_lea.hbm %s5950_s24, 64  ;;  %p5956_p0 = scmp.lt.s32.totalorder %s5950_s24, %s9818_s2 }
 0x6bc   : > { %v4767_v45 = vpop.permute.xlu1 %4766  ;;  %5098 = vrot.lane.b32.xlu2 %v5094_v17, %s6012_s27  ;;  %p5952_p4 = scmp.ne.s32.totalorder %s5950_s24, %s5951_s7  ;;  %p5957_p3 = scmp.lt.s32.totalorder %s5955_s29, %s5951_s7 }
 0x6bd   : > { %v4771_v57 = vadd.f32 %v4767_v45, %v4715_v29  ;;  %v4765_v24 = vpop.permute.xlu0 %4764 }
 0x6be   : > { %v4770_v59 = vadd.f32 %v4765_v24, %v4714_v49  ;;  %v4837_v51 = vpop.permute.xlu2 %4836  ;;  %p5953_p6 = pnand %p5952_p4, %p6085_p11  ;;  %p5958_p5 = por %p5957_p3, %p5956_p0 }
 0x6c0   : > { %v4826_v58 = vadd.f32 %v4821_v21, %v4770_v59  ;;  %p5954_p13 = pneg %p5953_p6 }
 0x6c2   : > { %5112 = vrot.lane.b32.xlu1 %v5108_v2, %s6012_s27  ;;  %p5959_p8 = pnand %p5958_p5, %p5954_p13 }
 0x6c3   : > { %5100 = vrot.lane.b32.xlu0 %v5095_v15, %s6012_s27 }
 0x6c4   : > { %v4793_v27 = vpop.permute.xlu1 %4792  ;;  %5114 = vrot.lane.b32.xlu2 %v5109_v37, %s6012_s27 }
 0x6c5   : > { %v4798_v14 = vadd.f32 %v4793_v27, %v9619_v23  ;;  %v4781_v50 = vpop.permute.xlu0 %4780 }
 0x6c6   : > { %v4785_v4 = vadd.f32 %v4781_v50, %v4729_v41  ;;  %v4863_v33 = vpop.permute.xlu2 %4862 }
 0x6c8   : > { %v4841_v0 = vadd.f32 %v4837_v51, %v4785_v4 }
 0x6ca   : > { %5128 = vrot.lane.b32.xlu1 %v5123_v54, %s6012_s27 }
 0x6cb   : > { %5126 = vrot.lane.b32.xlu0 %v5122_v9, %s6012_s27  ;;  %s9720_s27 = sld [smem:[#allocation2 + $0x5f]] }
 0x6cc   : > { %v4809_v7 = vpop.permute.xlu1 %4808  ;;  %5140 = vrot.lane.b32.xlu2 %v5136_v22, %s6013_s8 }
 0x6cd   : > { %v4813_v23 = vadd.f32 %v4809_v7, %v9635_v38  ;;  %v4807_v19 = vpop.permute.xlu0 %4806 }
 0x6ce   : > { %v4812_v10 = vadd.f32 %v4807_v19, %v4756_v13  ;;  %v4879_v62 = vpop.permute.xlu2 %4878 }
 0x6d0   : > { %v4868_v5 = vadd.f32 %v4863_v33, %v4812_v10 }
 0x6d1   : > { %v4943_v33 = vstv %s9720_s27 }
 0x6d2   : > { %5154 = vrot.lane.b32.xlu1 %v5150_v1, %s6013_s8 }
 0x6d3   : > { %5142 = vrot.lane.b32.xlu0 %v5137_v32, %s6013_s8 }
 0x6d4   : > { %v4835_v6 = vpop.permute.xlu1 %4834  ;;  %5156 = vrot.lane.b32.xlu2 %v5151_v40, %s6013_s8 }
 0x6d5   : > { %v4840_v38 = vadd.f32 %v4835_v6, %v9647_v63  ;;  %v4823_v41 = vpop.permute.xlu0 %4822 }
 0x6d6   : > { %v4827_v35 = vadd.f32 %v4823_v41, %v4771_v57  ;;  %v4905_v39 = vpop.permute.xlu2 %4904 }
 0x6d8   : > { %v4883_v48 = vadd.f32 %v4879_v62, %v4827_v35 }
 0x6da   : > { %5170 = vrot.lane.b32.xlu1 %v5165_v3, %s6013_s8 }
 0x6db   : > { %5168 = vrot.lane.b32.xlu0 %v5164_v55, %s6013_s8 }
 0x6dc   : > { %v4851_v31 = vpop.permute.xlu1 %4850  ;;  %5182 = vrot.lane.b32.xlu2 %v5178_v60, %s6013_s8 }
 0x6dd   : > { %v4855_v63 = vadd.f32 %v4851_v31, %v9661_v44  ;;  %v4849_v56 = vpop.permute.xlu0 %4848 }
 0x6de   : > { %v4854_v8 = vadd.f32 %v4849_v56, %v4798_v14  ;;  %v4921_v12 = vpop.permute.xlu2 %4920 }
 0x6e0   : > { %v9699_v11 = vadd.f32 %v4905_v39, %v4854_v8  ;;  %v4945_v8 = vmul.f32 %v9583_v42, %v4943_v33 }
 0x6e3   : > { %5184 = vrot.lane.b32.xlu0 %v5179_v53, %s6013_s8  ;;  %s9725_s8 = sld [smem:[#allocation2 + $0xc3]] }
 0x6e4   : > { %v4877_v13 = vpop.permute.xlu1 %4876 }
 0x6e5   : > { %v4882_v25 = vadd.f32 %v4877_v13, %v4826_v58  ;;  %v4865_v36 = vpop.permute.xlu0 %4864 }
 0x6e6   : > { %v4869_v47 = vadd.f32 %v4865_v36, %v4813_v23  ;;  %v4973_v21 = vpop.permute.xlu2 %4972  ;;  %v4955_v36 = vstv %s5758_s30 }
 0x6e8   : > { %v9702_v46 = vadd.f32 %v4921_v12, %v4869_v47 }
 0x6e9   : > { %v4949_v23 = vstv %s9725_s8 }
 0x6ea   : > { %v4951_v62 = vmul.f32 %v9583_v42, %v4949_v23  ;;  %v4950_v56 = vmul.f32 %v9574_v52, %v4949_v23 }
 0x6ec   : > { %v4893_v61 = vpop.permute.xlu1 %4892  ;;  %v4952_v13 = vadd.f32 %v4950_v56, %v9699_v11 }
 0x6ed   : > { %v4897_v43 = vadd.f32 %v4893_v61, %v4841_v0  ;;  %v4891_v30 = vpop.permute.xlu0 %4890  ;;  %v4944_v0 = vmul.f32 %v9574_v52, %v4943_v33 }
 0x6ee   : > { %v4989_v44 = vpop.permute.xlu2 %4988  ;;  %v4896_v28 = vadd.f32 %v4891_v30, %v4840_v38  ;;  %v4961_v38 = vstv %s9728_s19 }
 0x6ef   : > { %v4962_v39 = vmul.f32 %v9574_v52, %v4961_v38 }
 0x6f0   : > { %v4946_v7 = vadd.f32 %v4944_v0, %v4896_v28 }
 0x6f2   : > { %v4978_v10 = vadd.f32 %v4973_v21, %v4946_v7 }
 0x6f4   : > { %v4919_v17 = vpop.permute.xlu1 %4918 }
 0x6f5   : > { %v9704_v29 = vadd.f32 %v4919_v17, %v4868_v5  ;;  %v4907_v34 = vpop.permute.xlu0 %4906 }
 0x6f6   : > { %v5015_v45 = vpop.permute.xlu2 %5014  ;;  %v4911_v1 = vadd.f32 %v4907_v34, %v4855_v63 }
 0x6f8   : > { %v4953_v18 = vadd.f32 %v4951_v62, %v4911_v1 }
 0x6fa   : > { %v4993_v35 = vadd.f32 %v4989_v44, %v4953_v18 }
 0x6fc   : > { %v4935_v49 = vpop.permute.xlu1 %4934 }
 0x6fd   : > { %v9706_v57 = vadd.f32 %v4935_v49, %v4883_v48  ;;  %v4933_v24 = vpop.permute.xlu0 %4932  ;;  %v4957_v49 = vmul.f32 %v9583_v42, %v4955_v36 }
 0x6fe   : > { %v9708_v59 = vpop.permute.xlu2 %5030  ;;  %v4938_v3 = vadd.f32 %v4933_v24, %v4882_v25  ;;  %v4947_v25 = vadd.f32 %v4945_v8, %v4897_v43 }
 0x6ff   : > { %v4959_v11 = vadd.f32 %v4957_v49, %v9702_v46 }
 0x700   : > { %v4964_v31 = vadd.f32 %v4962_v39, %v4938_v3 }
 0x702   : > { %v5020_v53 = vadd.f32 %v5015_v45, %v4964_v31 }
 0x704   : > { %v4987_v2 = vpop.permute.xlu1 %4986 }
 0x705   : > { %v4975_v51 = vpop.permute.xlu0 %4974  ;;  %v4992_v61 = vadd.f32 %v4987_v2, %v4952_v13 }
 0x706   : > { %v9710_v15 = vpop.permute.xlu2 %5056  ;;  %v4979_v17 = vadd.f32 %v4975_v51, %v4947_v25 }
 0x708   : > { %v5035_v45 = vadd.f32 %v9708_v59, %v4979_v17  ;;  %v4963_v59 = vmul.f32 %v9583_v42, %v4961_v38 }
 0x70c   : > { %v9712_v58 = vpop.permute.xlu1 %5002 }
 0x70d   : > { %v9714_v37 = vpop.permute.xlu0 %5000  ;;  %v5007_v51 = vadd.f32 %v9712_v58, %v4959_v11 }
 0x70e   : > { %v9716_v26 = vpop.permute.xlu2 %5072 }
 0x714   : > { %v5029_v27 = vpop.permute.xlu1 %5028 }
 0x715   : > { %v9718_v14 = vpop.permute.xlu0 %5016  ;;  %v5034_v32 = vadd.f32 %v5029_v27, %v4978_v10  ;;  %v4956_v27 = vmul.f32 %v9574_v52, %v4955_v36 }
 0x716   : > { %v5099_v50 = vpop.permute.xlu2 %5098 }
 0x717   : > { %v4958_v33 = vadd.f32 %v4956_v27, %v9704_v29 }
 0x71c   : > { %v5045_v4 = vpop.permute.xlu1 %5044 }
 0x71d   : > { %v5043_v54 = vpop.permute.xlu0 %5042  ;;  %v5049_v16 = vadd.f32 %v5045_v4, %v4993_v35 }
 0x71e   : > { %v9723_v9 = vpop.permute.xlu2 %5114  ;;  %v5048_v24 = vadd.f32 %v5043_v54, %v4992_v61  ;;  %v5006_v54 = vadd.f32 %v9714_v37, %v4958_v33 }
 0x720   : > { %v5104_v43 = vadd.f32 %v5099_v50, %v5048_v24  ;;  %v5062_v46 = vadd.f32 %v9710_v15, %v5006_v54  ;;  %v4965_v50 = vadd.f32 %v4963_v59, %v9706_v57  ;;  %v6015_v57 = vmov 0.0  }
 0x721   : > { %180 = vst.msk [vmem:[%s9760_s3 + $0x8] sm:$0xff] %vm178_vm0, %v6015_v57 }
 0x722   : > { %v5021_v37 = vadd.f32 %v9718_v14, %v4965_v50  ;;  %179 = vst.msk [vmem:[%s9760_s3] sm:$0xff] %vm178_vm0, %v6015_v57 }
 0x723   : > { %181 = vst.msk [vmem:[%s9760_s3 + $0x10] sm:$0xff] %vm178_vm0, %v6015_v57 }
 0x724   : > { %v5071_v22 = vpop.permute.xlu1 %5070  ;;  %v5077_v42 = vadd.f32 %v9716_v26, %v5021_v37  ;;  %182 = vst.msk [vmem:[%s9760_s3 + $0x18] sm:$0xff] %vm178_vm0, %v6015_v57 }
 0x725   : > { %v5059_v20 = vpop.permute.xlu0 %5058  ;;  %v5076_v47 = vadd.f32 %v5071_v22, %v5020_v53  ;;  %183 = vst.msk [vmem:[%s9760_s3 + $0x20] sm:$0xff] %vm178_vm0, %v6015_v57 }
 0x726   : > { %v5141_v19 = vpop.permute.xlu2 %5140  ;;  %v5063_v52 = vadd.f32 %v5059_v20, %v5007_v51  ;;  %184 = vst.msk [vmem:[%s9760_s3 + $0x28] sm:$0xff] %vm178_vm0, %v6015_v57 }
 0x727   : > { %185 = vst.msk [vmem:[%s9760_s3 + $0x30] sm:$0xff] %vm178_vm0, %v6015_v57 }
 0x728   : > { %v5119_v29 = vadd.f32 %v9723_v9, %v5063_v52  ;;  %186 = vst.msk [vmem:[%s9760_s3 + $0x38] sm:$0xff] %vm178_vm0, %v6015_v57 }
 0x72c   : > { %v5087_v5 = vpop.permute.xlu1 %5086 }
 0x72d   : > { %v5085_v40 = vpop.permute.xlu0 %5084  ;;  %v5091_v2 = vadd.f32 %v5087_v5, %v5035_v45 }
 0x72e   : > { %v5090_v6 = vadd.f32 %v5085_v40, %v5034_v32  ;;  %v5157_v55 = vpop.permute.xlu2 %5156 }
 0x730   : > { %v5146_v41 = vadd.f32 %v5141_v19, %v5090_v6 }
 0x732   : > { %5192 = vrot.lane.b32.xlu1 %v5146_v41, %s6014_s26 }
 0x734   : > { %v5113_v48 = vpop.permute.xlu1 %5112 }
 0x735   : > { %v5101_v60 = vpop.permute.xlu0 %5100  ;;  %v5118_v58 = vadd.f32 %v5113_v48, %v5062_v46 }
 0x736   : > { %v5105_v63 = vadd.f32 %v5101_v60, %v5049_v16  ;;  %v5183_v44 = vpop.permute.xlu2 %5182 }
 0x738   : > { %v5161_v12 = vadd.f32 %v5157_v55, %v5105_v63 }
 0x73a   : > { %5206 = vrot.lane.b32.xlu1 %v5161_v12, %s6014_s26 }
 0x73c   : > { %v5129_v21 = vpop.permute.xlu1 %5128 }
 0x73d   : > { %v5127_v30 = vpop.permute.xlu0 %5126  ;;  %v5133_v1 = vadd.f32 %v5129_v21, %v5077_v42 }
 0x73e   : > { %v5132_v34 = vadd.f32 %v5127_v30, %v5076_v47 }
 0x740   : > { %v5188_v4 = vadd.f32 %v5183_v44, %v5132_v34 }
 0x742   : > { %5226 = vrot.lane.b32.xlu1 %v5188_v4, %s6014_s26 }
 0x744   : > { %v5155_v28 = vpop.permute.xlu1 %5154 }
 0x745   : > { %v5160_v0 = vadd.f32 %v5155_v28, %v5104_v43  ;;  %v5143_v22 = vpop.permute.xlu0 %5142 }
 0x746   : > { %v5147_v7 = vadd.f32 %v5143_v22, %v5091_v2 }
 0x747   : > { %5204 = vrot.lane.b32.xlu0 %v5160_v0, %s6014_s26 }
 0x748   : > { %5194 = vrot.lane.b32.xlu2 %v5147_v7, %s6014_s26 }
 0x74c   : > { %v5171_v23 = vpop.permute.xlu1 %5170 }
 0x74d   : > { %v5175_v19 = vadd.f32 %v5171_v23, %v5119_v29  ;;  %v5169_v10 = vpop.permute.xlu0 %5168 }
 0x74e   : > { %v5174_v20 = vadd.f32 %v5169_v10, %v5118_v58 }
 0x74f   : > { %5217 = vrot.lane.b32.xlu0 %v5175_v19, %s6014_s26 }
 0x750   : > { %5215 = vrot.lane.b32.xlu2 %v5174_v20, %s6014_s26 }
 0x755   : > { %v5185_v15 = vpop.permute.xlu0 %5184 }
 0x756   : > { %v5189_v62 = vadd.f32 %v5185_v15, %v5133_v1 }
 0x758   : > { %5228 = vrot.lane.b32.xlu2 %v5189_v62, %s6014_s26 }
 0x7a2   : > { %v5195_v26 = vpop.permute.xlu2 %5194 }
 0x7a3   : > { %5201 = vst.msk [vmem:[%s9760_s3 + $0xa] sm:$0xf] %vm5200_vm1, %v5195_v26 }
 0x7a4   : > { %v5193_v14 = vpop.permute.xlu1 %5192 }
 0x7a5   : > { %5199 = vst.msk [vmem:[%s9760_s3 + $0x2] sm:$0xff] %vm5198_vm2, %v5193_v14 }
 0x7aa   : > { %v5216_v9 = vpop.permute.xlu2 %5215 }
 0x7ab   : > { %5778 = vst.msk [vmem:[%s9760_s3 + $0x22] sm:$0xff] %vm5198_vm2, %v5216_v9 }
 0x7ac   : > { %v5207_v32 = vpop.permute.xlu1 %5206 }
 0x7ad   : > { %5777 = vst.msk [vmem:[%s9760_s3 + $0x1a] sm:$0xf] %vm5200_vm1, %v5207_v32 }
 0x7b2   : > { %v5229_v5 = vpop.permute.xlu2 %5228 }
 0x7b3   : > { %5781 = vst.msk [vmem:[%s9760_s3 + $0x3a] sm:$0xf] %vm5200_vm1, %v5229_v5 }
 0x7b4   : > { %v5227_v40 = vpop.permute.xlu1 %5226 }
 0x7b5   : > { %5780 = vst.msk [vmem:[%s9760_s3 + $0x32] sm:$0xff] %vm5198_vm2, %v5227_v40 }
 0x7b9   : > { %v5205_v18 = vpop.permute.xlu0 %5204 }
 0x7ba   : > { %5776 = vst.msk [vmem:[%s9760_s3 + $0x12] sm:$0xff] %vm5198_vm2, %v5205_v18 }
 0x7c1   : > { %v5218_v6 = vpop.permute.xlu0 %5217 }
 0x7c2   : > { %5779 = vst.msk [vmem:[%s9760_s3 + $0x2a] sm:$0xf] %vm5200_vm1, %v5218_v6 }
 0x7c3   : > { %5962 = shalt.err (!%p5959_p8)
}
 0x7c4   : > { %s6016_s4 = smov 128   ;;  %s6017_s8 = smov 8  }
 0x7c5   : > { %5795 = dma.vmem_to_hbm [thread:$0]  (%p6085_p11), %s5249_s16, 1024, %s5251_s17, %s5236_s20, %s6016_s4, %s6016_s4, %s6017_s8  }
 0x7c6 PF: > { %s5265_s19 = sand.u32 1, %s5993_s9   ;;  %p10669_p9 = scmp.ge.s32.totalorder %s6005_s12, 2 }
 0x7c7   : > { %s5266_s26 = scalar_lea.sflag [#allocation4], %s5265_s19 }
 0x7c8   : > { %p5806_p10 = pnand %p10669_p9, %p6089_p12 }
 0x7ca   : > { %p5807_p1 = pneg %p5806_p10 }
 0x7cc   : > { %5988 = dma.done.wait (%p5807_p1), %s5266_s26, 1024  }
 0x7cd   : > { %5990 = vsyncadd (%p5807_p1), %s5266_s26, 4294966272  ;;  %p16_p2 = scmp.ge.s32.totalorder %s6058_s15, 4   ;;  %s10670_s9 = smov %s5997_s10 }
 0x7ce   : > { %s10671_s10 = smov %s6001_s11  ;;  %s10672_s11 = smov %s6070_s18 }
 0x7cf   : > { %s10673_s12 = smov %s6058_s15  ;;  %18 = sbr.rel (!%p16_p2) target bundleno = 6 (0x6), region = 84 }
 0x7d4   :  { %5272 = vsyncpa [#allocation3], 1 }
 0x7d5   :  { %5274 = vsyncpa [#allocation3 + $0x1], 1 }
 0x7d6   :  { %5275 = vsyncpa [#allocation4], 1 }
 0x7d7   :  { %5277 = vsyncpa [#allocation4 + $0x1], 1 }
 0x7d8   :  { %5278 = vsyncpa [#allocation5], 1 }
 0x7d9   :  { %5280 = vsyncpa [#allocation5 + $0x1], 1 }

</bundles_post_ra>
